<compile_context>
chip_gen: v7x
topology: tpu7x:2x2x1
jax: 0.10.0
libtpu: 0.0.40
codegen_flags: <defaults>
</compile_context>

<pallas_src>
import functools

import jax
import jax.numpy as jnp
from jax.experimental import pallas as pl
from jax.experimental.pallas import tpu as pltpu

NUM_CLASSES = 10
NUM_ROUTING_ITERATIONS = 3  # torch forward returns inside the loop -> 1 effective iter


def _round_up(x, m):
    return (x + m - 1) // m * m


def _pick_block_k(K, max_bk=4096):
    """Largest 128-multiple divisor of K that is <= max_bk (else full K)."""
    if K <= max_bk or K % 128 != 0:
        return K
    d = K // 128
    best = 1
    for f in range(1, d + 1):
        if d % f == 0 and 128 * f <= max_bk:
            best = f
    return 128 * best


# ---------------------------------------------------------------------------
# Pallas kernels
# ---------------------------------------------------------------------------
def _grouped_squash(t, n_groups, group_stride, eps):
    """Capsule squash over column groups {c, c+S, ..., c+(G-1)S} of a
    (rows, G*S) f32 tile.  Lane-dense: the group reduction is G-1 XLU rolls
    (shifts are multiples of S, so every roll stays inside the group set)."""
    axis = t.ndim - 1
    sq = t * t
    tot = sq
    for g in range(1, n_groups):
        tot = tot + pltpu.roll(sq, shift=g * group_stride, axis=axis)
    # scale = |s|^2/(1+|s|^2) / |s|; reciprocal + rsqrt run on the EUP slot.
    scale = tot * pl.reciprocal(1.0 + tot, approx=True) * jax.lax.rsqrt(tot + eps)
    return t * scale


def _matmul_kernel(x_ref, w_ref, b_ref, o_ref, acc_ref, *,
                   activation, scale, n_groups, group_stride, eps):
    """acc += x @ w over the K grid axis; epilogue: scale + bias + activation."""
    k = pl.program_id(2)

    @pl.when(k == 0)
    def _():
        acc_ref[...] = jnp.zeros_like(acc_ref)

    acc_ref[...] += jnp.dot(x_ref[...], w_ref[...],
                            preferred_element_type=jnp.float32)

    @pl.when(k == pl.num_programs(2) - 1)
    def _():
        out = acc_ref[...]
        if scale != 1.0:
            out = out * scale
        out = out + b_ref[...].astype(jnp.float32)
        if activation == "relu":
            out = jnp.maximum(out, 0.0)
        elif activation == "sigmoid":
            out = jax.nn.sigmoid(out)
        elif activation == "squash_groups":
            out = _grouped_squash(out, n_groups, group_stride, eps)
        o_ref[...] = out.astype(o_ref.dtype)


def matmul_bias_act(x, w, b, *, activation="none", out_dtype=None, scale=1.0,
                    block_m=256, block_n=None, block_k=None,
                    squash_groups=None, squash_stride=None):
    """o = act(scale * (x @ w) + b).  x:(M,K)  w:(K,N)  b:(N,).

    Operands are bf16 (half the HBM traffic, MXU-native); accumulation is f32
    in a VMEM scratch.  Grid = (M, N, K) tiles, semantics (parallel, parallel,
    arbitrary) so independent tiles can be sharded across TensorCores while
    the K reduction stays innermost (accumulator-resident output tile).
    """
    M, K = x.shape
    K2, N = w.shape
    assert K == K2 and b.shape == (N,)
    out_dtype = out_dtype or x.dtype

    bm = min(block_m, _round_up(M, 8))
    Mp = _round_up(M, bm)
    bn = N if (block_n is None or N % block_n != 0) else block_n
    if block_k is not None and K % block_k == 0 and (block_k % 128 == 0 or block_k == K):
        bk = block_k
    else:
        bk = _pick_block_k(K)
    if activation == "squash_groups":
        assert squash_groups is not None and squash_stride is not None
        assert squash_groups * squash_stride == N and bn == N, \
            "grouped squash needs one full-width N tile"

    xx = x.astype(jnp.bfloat16)
    if Mp != M:
        xx = jnp.pad(xx, ((0, Mp - M), (0, 0)))
    ww = w.astype(jnp.bfloat16)          # no-op when params were prepped once
    bb = b.reshape(1, N).astype(jnp.float32)

    o_bytes = jnp.dtype(out_dtype).itemsize
    vmem = 2 * (bm * bk * 2 + bk * bn * 2 + bn * 4 + bm * bn * o_bytes) + bm * bn * 4
    # Clamp with headroom: v7x has only 64 MiB physical VMEM per TensorCore.
    vmem_limit = int(min(max(2 * vmem, 32 * 1024 * 1024), 48 * 1024 * 1024))
    cost = pl.CostEstimate(
        flops=2 * Mp * K * N,
        transcendentals=Mp * N if activation in ("sigmoid", "squash_groups") else 0,
        bytes_accessed=Mp * K * 2 + K * N * 2 + N * 4 + Mp * N * o_bytes,
    )

    out = pl.pallas_call(
        functools.partial(_matmul_kernel, activation=activation, scale=scale,
                          n_groups=squash_groups, group_stride=squash_stride,
                          eps=1e-8),
        out_shape=jax.ShapeDtypeStruct((Mp, N), out_dtype),
        grid_spec=pltpu.PrefetchScalarGridSpec(
            num_scalar_prefetch=0,
            grid=(Mp // bm, N // bn, K // bk),
            in_specs=[
                pl.BlockSpec((bm, bk), lambda i, j, k: (i, k)),
                pl.BlockSpec((bk, bn), lambda i, j, k: (k, j)),
                pl.BlockSpec((1, bn), lambda i, j, k: (0, j)),
            ],
            out_specs=pl.BlockSpec((bm, bn), lambda i, j, k: (i, j)),
            scratch_shapes=[pltpu.VMEM((bm, bn), jnp.float32)],
        ),
        compiler_params=pltpu.CompilerParams(
            dimension_semantics=("parallel", "parallel", "arbitrary"),
            vmem_limit_bytes=vmem_limit,
        ),
        cost_estimate=cost,
    )(xx, ww, bb)
    return out[:M] if Mp != M else out


def _squash_kernel(x_ref, o_ref, *, eps):
    """v = |s|^2/(1+|s|^2) * s/|s| along the last dim (tiny digit-caps tensor)."""
    t = x_ref[...].astype(jnp.float32)
    sq = jnp.sum(t * t, axis=-1, keepdims=True)
    o_ref[...] = (t * (sq / (1.0 + sq)) * jax.lax.rsqrt(sq + eps)).astype(o_ref.dtype)


def squash2d(x, eps=1e-8):
    R, C = x.shape
    return pl.pallas_call(
        functools.partial(_squash_kernel, eps=eps),
        out_shape=jax.ShapeDtypeStruct((R, C), x.dtype),
        grid=(1,),
        in_specs=[pl.BlockSpec((R, C), lambda i: (0, 0))],
        out_specs=pl.BlockSpec((R, C), lambda i: (0, 0)),
    )(x)


# ---------------------------------------------------------------------------
# Glue: NHWC im2col convolution built on the Pallas matmul kernel
# ---------------------------------------------------------------------------
def im2col_nhwc(x, k, stride):
    """x: (B,H,W,C) -> ((B*Ho*Wo, k*k*C), Ho, Wo).  Patch column order (kh,kw,C)."""
    B, H, W, C = x.shape
    Ho = (H - k) // stride + 1
    Wo = (W - k) // stride + 1
    cols = []
    for i in range(k):
        for j in range(k):
            cols.append(x[:, i:i + stride * Ho:stride, j:j + stride * Wo:stride, :])
    p = jnp.stack(cols, axis=0).reshape(k, k, B, Ho, Wo, C)
    p = p.transpose(2, 3, 4, 0, 1, 5)            # (B, Ho, Wo, kh, kw, C)
    return p.reshape(B * Ho * Wo, k * k * C), Ho, Wo


# TODO(synk): replace the materialized im2col with an implicit-GEMM Pallas
# kernel (index_map over (kh,kw)/K-chunks reading the NHWC activation directly)
# to remove the k*k x patch duplication in HBM at large batch.
def conv2d_nhwc(x, wf, b, ksize, stride, **mm_kwargs):
    """wf: (k*k*Cin, Cout) with rows in (kh,kw,Cin) order; returns (B,Ho,Wo,Cout)."""
    B = x.shape[0]
    patches, Ho, Wo = im2col_nhwc(x, ksize, stride)
    out = matmul_bias_act(patches, wf, b, **mm_kwargs)
    return out.reshape(B, Ho, Wo, -1)


# ---------------------------------------------------------------------------
# CapsuleNet forward
# ---------------------------------------------------------------------------
def capsule_net_forward(params, x):
    """params from prepare_params().  x: (B, 1, 28, 28) NCHW float32."""
    images = x                                                  # torch: x.clone()
    B = x.shape[0]
    xh = jnp.transpose(x, (0, 2, 3, 1)).astype(jnp.bfloat16)    # NHWC activations

    # conv1: Conv2d(1, 256, 9, 1) + ReLU -> (B, 20, 20, 256)
    h = conv2d_nhwc(xh, params["conv1_wf"], params["conv1_b"], 9, 1,
                    activation="relu", out_dtype=jnp.bfloat16)

    # primary capsules: 8x Conv2d(256, 32, 9, 2) fused as one 256-out conv with
    # the capsule squash fused into the epilogue.  Output columns are
    # capsule-major (col = k*32 + c), so squash groups are {c, c+32, ..., c+224}.
    u = conv2d_nhwc(h, params["prim_wf"], params["prim_b"], 9, 2,
                    activation="squash_groups", squash_groups=8, squash_stride=32,
                    out_dtype=jnp.bfloat16)                     # (B, 6, 6, 256)

    # digit capsules.  The reference torch forward has `return v_j` INSIDE the
    # routing loop -> exactly one iteration with uniform coupling 1/1152:
    # s[b,j,:] = (1/1152) * sum_{r,k} u[b,r,k] * W[j,r,k,:]  (one matmul).
    u_flat = u.reshape(B, 6 * 6 * 256)                          # (h, w, k, c) order
    s = matmul_bias_act(u_flat, params["digit_W2"], params["digit_b0"],
                        scale=1.0 / 1152.0, out_dtype=jnp.float32)   # (B, 160)
    x_caps = squash2d(s.reshape(B * NUM_CLASSES, 16)).reshape(B, NUM_CLASSES, 16)

    # class lengths, softmax, one-hot argmax (tiny -> plain JAX glue)
    classes = jnp.sqrt(jnp.sum(x_caps ** 2, axis=-1))
    classes = jax.nn.softmax(classes, axis=-1)
    y = jax.nn.one_hot(jnp.argmax(classes, axis=1), NUM_CLASSES, dtype=x.dtype)

    # decoder MLP: 160 -> 512 (relu) -> 1024 (relu) -> 784 (sigmoid)
    d = (x_caps * y[:, :, None]).reshape(B, NUM_CLASSES * 16)
    d = matmul_bias_act(d, params["dec_w1"], params["dec_b1"],
                        activation="relu", out_dtype=jnp.bfloat16)
    d = matmul_bias_act(d, params["dec_w2"], params["dec_b2"],
                        activation="relu", out_dtype=jnp.bfloat16)
    recon = matmul_bias_act(d, params["dec_w3"], params["dec_b3"],
                            activation="sigmoid", out_dtype=jnp.float32)

    return x_caps, recon, y, images


# ---------------------------------------------------------------------------
# Parameters: torch-layout init + one-time kernel-ready re-layout / bf16 cast
# ---------------------------------------------------------------------------
def init_params(key):
    """Torch-layout f32 parameters (shapes from CapsuleNet.__init__)."""
    ks = jax.random.split(key, 8)

    def nrm(k, shape, fan_in):
        return jax.random.normal(k, shape, jnp.float32) / jnp.sqrt(float(fan_in))

    p = {}
    p["conv1_w"] = nrm(ks[0], (256, 1, 9, 9), 1 * 81)
    p["conv1_b"] = jnp.zeros((256,), jnp.float32)
    # 8 primary-capsule convs stacked capsule-major along output channels
    p["prim_w"] = nrm(ks[1], (8 * 32, 256, 9, 9), 256 * 81)
    p["prim_b"] = jnp.zeros((8 * 32,), jnp.float32)
    # torch.randn(num_capsules, num_route_nodes, in_ch, out_ch)
    p["digit_W"] = jax.random.normal(ks[2], (NUM_CLASSES, 32 * 6 * 6, 8, 16), jnp.float32)
    p["dec_w1"] = nrm(ks[3], (16 * NUM_CLASSES, 512), 16 * NUM_CLASSES)
    p["dec_b1"] = jnp.zeros((512,), jnp.float32)
    p["dec_w2"] = nrm(ks[4], (512, 1024), 512)
    p["dec_b2"] = jnp.zeros((1024,), jnp.float32)
    p["dec_w3"] = nrm(ks[5], (1024, 784), 1024)
    p["dec_b3"] = jnp.zeros((784,), jnp.float32)
    return p


def prepare_params(p):
    """One-time re-layout + bf16 cast of the weights for the kernels.

    * conv weights -> (kh*kw*Cin, Cout) rows matching the NHWC im2col order.
    * digit W -> rows in (h, w, k, c) order so it consumes the primary-capsule
      output layout directly (no activation transposes); cols = j*16 + d.
    * matmul operands bf16, biases f32 (accumulation stays f32 in-kernel).
    """
    bf = jnp.bfloat16
    f = {}
    f["conv1_wf"] = jnp.transpose(p["conv1_w"], (2, 3, 1, 0)).reshape(81, 256).astype(bf)
    f["conv1_b"] = p["conv1_b"].astype(jnp.float32)
    f["prim_wf"] = jnp.transpose(p["prim_w"], (2, 3, 1, 0)).reshape(81 * 256, 256).astype(bf)
    f["prim_b"] = p["prim_b"].astype(jnp.float32)
    W6 = p["digit_W"].reshape(NUM_CLASSES, 32, 6, 6, 8, 16)      # (j, c, h, w, k, d)
    f["digit_W2"] = jnp.transpose(W6, (2, 3, 4, 1, 0, 5)).reshape(
        6 * 6 * 8 * 32, NUM_CLASSES * 16).astype(bf)             # rows (h,w,k,c)
    f["digit_b0"] = jnp.zeros((NUM_CLASSES * 16,), jnp.float32)
    f["dec_w1"] = p["dec_w1"].astype(bf)
    f["dec_b1"] = p["dec_b1"].astype(jnp.float32)
    f["dec_w2"] = p["dec_w2"].astype(bf)
    f["dec_b2"] = p["dec_b2"].astype(jnp.float32)
    f["dec_w3"] = p["dec_w3"].astype(bf)
    f["dec_b3"] = p["dec_b3"].astype(jnp.float32)
    return f


if __name__ == "__main__":
    key = jax.random.PRNGKey(0)
    k_params, k_input = jax.random.split(key)
    params = prepare_params(init_params(k_params))   # bf16 cast / re-layout happens ONCE
    # MNIST-shaped input (the module's geometry requires 28x28x1); small batch=2.
    x = jax.random.normal(k_input, (2, 1, 28, 28), jnp.float32)

    fwd = jax.jit(capsule_net_forward)
    x_caps, recon, y, images = fwd(params, x)
    jax.block_until_ready((x_caps, recon, y, images))

    assert x_caps.shape == (2, NUM_CLASSES, 16)
    assert recon.shape == (2, 784)
    assert y.shape == (2, NUM_CLASSES)
    assert images.shape == (2, 1, 28, 28)
    assert bool(jnp.all(jnp.isfinite(x_caps))) and bool(jnp.all(jnp.isfinite(recon)))
    print("KERNEL_OK")
</pallas_src>

<mosaic_0001>
module attributes {stable_mosaic.version = 11 : i64} {
  func.func @_matmul_kernel(%arg0: i32, %arg1: i32, %arg2: i32, %arg3: memref<256x81xbf16, #tpu.memory_space<vmem>>, %arg4: memref<81x256xbf16, #tpu.memory_space<vmem>>, %arg5: memref<1x256xf32, #tpu.memory_space<vmem>>, %arg6: memref<256x256xbf16, #tpu.memory_space<vmem>>, %arg7: memref<256x256xf32, #tpu.memory_space<vmem>>) attributes {dimension_semantics = [#tpu.dimension_semantics<parallel>, #tpu.dimension_semantics<parallel>, #tpu.dimension_semantics<arbitrary>], iteration_bounds = array<i64: 4, 1, 1>, scalar_prefetch = 0 : i64, scratch_operands = 1 : i64, tpu.core_type = #tpu.core_type<tc>, window_params = [{transform_indices = @transform_0, window_bounds = array<i64: 256, 81>}, {transform_indices = @transform_1, window_bounds = array<i64: 81, 256>}, {transform_indices = @transform_2, window_bounds = array<i64: 1, 256>}, {transform_indices = @transform_3, window_bounds = array<i64: 256, 256>}]} {
    %c0_i32 = arith.constant 0 : i32
    %0 = arith.cmpi eq, %arg2, %c0_i32 : i32
    %1 = arith.extui %0 : i1 to i32
    %c0_i32_0 = arith.constant 0 : i32
    %2 = arith.cmpi ne, %1, %c0_i32_0 : i32
    scf.if %2 {
      %cst_10 = arith.constant 0.000000e+00 : f32
      %12 = vector.broadcast %cst_10 : f32 to vector<256x256xf32>
      %c0_11 = arith.constant 0 : index
      %c0_12 = arith.constant 0 : index
      %13 = vector.load %arg7[%c0_11, %c0_12] : memref<256x256xf32, #tpu.memory_space<vmem>>, vector<256x256xf32>
      tpu.vector_store %arg7[%c0_11, %c0_12], %12 {strides = array<i32>} : memref<256x256xf32, #tpu.memory_space<vmem>>, vector<256x256xf32>,
    } else {
    }
    %c0 = arith.constant 0 : index
    %c0_1 = arith.constant 0 : index
    %3 = vector.load %arg7[%c0, %c0_1] : memref<256x256xf32, #tpu.memory_space<vmem>>, vector<256x256xf32>
    %c0_2 = arith.constant 0 : index
    %c0_3 = arith.constant 0 : index
    %4 = vector.load %arg3[%c0_2, %c0_3] : memref<256x81xbf16, #tpu.memory_space<vmem>>, vector<256x81xbf16>
    %c0_4 = arith.constant 0 : index
    %c0_5 = arith.constant 0 : index
    %5 = vector.load %arg4[%c0_4, %c0_5] : memref<81x256xbf16, #tpu.memory_space<vmem>>, vector<81x256xbf16>
    %cst = arith.constant dense<0.000000e+00> : vector<256x256xf32>
    %6 = tpu.matmul %4, %5, %cst {dimension_numbers = #tpu.dot_dimension_numbers<[1], [0], [0], [1], [0, 0, 1, 1], [], []>} : vector<256x81xbf16>, vector<81x256xbf16>, vector<256x256xf32> -> vector<256x256xf32>
    %7 = arith.addf %3, %6 : vector<256x256xf32>
    %c0_6 = arith.constant 0 : index
    %c0_7 = arith.constant 0 : index
    %8 = vector.load %arg7[%c0_6, %c0_7] : memref<256x256xf32, #tpu.memory_space<vmem>>, vector<256x256xf32>
    tpu.vector_store %arg7[%c0_6, %c0_7], %7 {strides = array<i32>} : memref<256x256xf32, #tpu.memory_space<vmem>>, vector<256x256xf32>,
    %c0_i32_8 = arith.constant 0 : i32
    %9 = arith.cmpi eq, %arg2, %c0_i32_8 : i32
    %10 = arith.extui %9 : i1 to i32
    %c0_i32_9 = arith.constant 0 : i32
    %11 = arith.cmpi ne, %10, %c0_i32_9 : i32
    scf.if %11 {
      %c0_10 = arith.constant 0 : index
      %c0_11 = arith.constant 0 : index
      %12 = vector.load %arg7[%c0_10, %c0_11] : memref<256x256xf32, #tpu.memory_space<vmem>>, vector<256x256xf32>
      %c0_12 = arith.constant 0 : index
      %c0_13 = arith.constant 0 : index
      %13 = vector.load %arg5[%c0_12, %c0_13] : memref<1x256xf32, #tpu.memory_space<vmem>>, vector<1x256xf32>
      %14 = vector.broadcast %13 : vector<1x256xf32> to vector<256x256xf32>
      %15 = arith.addf %12, %14 : vector<256x256xf32>
      %cst_14 = arith.constant 0.000000e+00 : f32
      %16 = vector.broadcast %cst_14 : f32 to vector<256x256xf32>
      %17 = arith.maximumf %15, %16 : vector<256x256xf32>
      %18 = arith.truncf %17 : vector<256x256xf32> to vector<256x256xbf16>
      %c0_15 = arith.constant 0 : index
      %c0_16 = arith.constant 0 : index
      %19 = vector.load %arg6[%c0_15, %c0_16] : memref<256x256xbf16, #tpu.memory_space<vmem>>, vector<256x256xbf16>
      tpu.vector_store %arg6[%c0_15, %c0_16], %18 {strides = array<i32>} : memref<256x256xbf16, #tpu.memory_space<vmem>>, vector<256x256xbf16>,
    } else {
    }
    return
  }
  func.func @transform_0(%arg0: i32, %arg1: i32, %arg2: i32) -> (i32, i32) {
    %c0_i32 = arith.constant 0 : i32
    return %arg0, %arg2 : i32, i32
  }
  func.func @transform_1(%arg0: i32, %arg1: i32, %arg2: i32) -> (i32, i32) {
    %c0_i32 = arith.constant 0 : i32
    return %arg2, %arg1 : i32, i32
  }
  func.func @transform_2(%arg0: i32, %arg1: i32, %arg2: i32) -> (i32, i32) {
    %c0_i32 = arith.constant 0 : i32
    %c0_i32_0 = arith.constant 0 : i32
    return %c0_i32, %arg1 : i32, i32
  }
  func.func @transform_3(%arg0: i32, %arg1: i32, %arg2: i32) -> (i32, i32) {
    %c0_i32 = arith.constant 0 : i32
    return %arg0, %arg1 : i32, i32
  }
}

module attributes {stable_mosaic.version = 11 : i64} {
  func.func @_matmul_kernel(%arg0: i32, %arg1: i32, %arg2: i32, %arg3: memref<72x3456xbf16, #tpu.memory_space<vmem>>, %arg4: memref<3456x256xbf16, #tpu.memory_space<vmem>>, %arg5: memref<1x256xf32, #tpu.memory_space<vmem>>, %arg6: memref<72x256xbf16, #tpu.memory_space<vmem>>, %arg7: memref<72x256xf32, #tpu.memory_space<vmem>>) attributes {dimension_semantics = [#tpu.dimension_semantics<parallel>, #tpu.dimension_semantics<parallel>, #tpu.dimension_semantics<arbitrary>], iteration_bounds = array<i64: 1, 1, 6>, scalar_prefetch = 0 : i64, scratch_operands = 1 : i64, tpu.core_type = #tpu.core_type<tc>, window_params = [{transform_indices = @transform_0, window_bounds = array<i64: 72, 3456>}, {transform_indices = @transform_1, window_bounds = array<i64: 3456, 256>}, {transform_indices = @transform_2, window_bounds = array<i64: 1, 256>}, {transform_indices = @transform_3, window_bounds = array<i64: 72, 256>}]} {
    %c0_i32 = arith.constant 0 : i32
    %0 = arith.cmpi eq, %arg2, %c0_i32 : i32
    %1 = arith.extui %0 : i1 to i32
    %c0_i32_0 = arith.constant 0 : i32
    %2 = arith.cmpi ne, %1, %c0_i32_0 : i32
    scf.if %2 {
      %cst_9 = arith.constant 0.000000e+00 : f32
      %12 = vector.broadcast %cst_9 : f32 to vector<72x256xf32>
      %c0_10 = arith.constant 0 : index
      %c0_11 = arith.constant 0 : index
      %13 = vector.load %arg7[%c0_10, %c0_11] : memref<72x256xf32, #tpu.memory_space<vmem>>, vector<72x256xf32>
      tpu.vector_store %arg7[%c0_10, %c0_11], %12 {strides = array<i32>} : memref<72x256xf32, #tpu.memory_space<vmem>>, vector<72x256xf32>,
    } else {
    }
    %c0 = arith.constant 0 : index
    %c0_1 = arith.constant 0 : index
    %3 = vector.load %arg7[%c0, %c0_1] : memref<72x256xf32, #tpu.memory_space<vmem>>, vector<72x256xf32>
    %c0_2 = arith.constant 0 : index
    %c0_3 = arith.constant 0 : index
    %4 = vector.load %arg3[%c0_2, %c0_3] : memref<72x3456xbf16, #tpu.memory_space<vmem>>, vector<72x3456xbf16>
    %c0_4 = arith.constant 0 : index
    %c0_5 = arith.constant 0 : index
    %5 = vector.load %arg4[%c0_4, %c0_5] : memref<3456x256xbf16, #tpu.memory_space<vmem>>, vector<3456x256xbf16>
    %cst = arith.constant dense<0.000000e+00> : vector<72x256xf32>
    %6 = tpu.matmul %4, %5, %cst {dimension_numbers = #tpu.dot_dimension_numbers<[1], [0], [0], [1], [0, 0, 1, 1], [], []>} : vector<72x3456xbf16>, vector<3456x256xbf16>, vector<72x256xf32> -> vector<72x256xf32>
    %7 = arith.addf %3, %6 : vector<72x256xf32>
    %c0_6 = arith.constant 0 : index
    %c0_7 = arith.constant 0 : index
    %8 = vector.load %arg7[%c0_6, %c0_7] : memref<72x256xf32, #tpu.memory_space<vmem>>, vector<72x256xf32>
    tpu.vector_store %arg7[%c0_6, %c0_7], %7 {strides = array<i32>} : memref<72x256xf32, #tpu.memory_space<vmem>>, vector<72x256xf32>,
    %c5_i32 = arith.constant 5 : i32
    %9 = arith.cmpi eq, %arg2, %c5_i32 : i32
    %10 = arith.extui %9 : i1 to i32
    %c0_i32_8 = arith.constant 0 : i32
    %11 = arith.cmpi ne, %10, %c0_i32_8 : i32
    scf.if %11 {
      %c0_9 = arith.constant 0 : index
      %c0_10 = arith.constant 0 : index
      %12 = vector.load %arg7[%c0_9, %c0_10] : memref<72x256xf32, #tpu.memory_space<vmem>>, vector<72x256xf32>
      %c0_11 = arith.constant 0 : index
      %c0_12 = arith.constant 0 : index
      %13 = vector.load %arg5[%c0_11, %c0_12] : memref<1x256xf32, #tpu.memory_space<vmem>>, vector<1x256xf32>
      %14 = vector.broadcast %13 : vector<1x256xf32> to vector<72x256xf32>
      %15 = arith.addf %12, %14 : vector<72x256xf32>
      %16 = arith.mulf %15, %15 : vector<72x256xf32>
      %c32_i32 = arith.constant 32 : i32
      %17 = tpu.dynamic_rotate %16 by %c32_i32 dim 1 : vector<72x256xf32>, i32 -> vector<72x256xf32>
      %18 = arith.addf %16, %17 : vector<72x256xf32>
      %c64_i32 = arith.constant 64 : i32
      %19 = tpu.dynamic_rotate %16 by %c64_i32 dim 1 : vector<72x256xf32>, i32 -> vector<72x256xf32>
      %20 = arith.addf %18, %19 : vector<72x256xf32>
      %c96_i32 = arith.constant 96 : i32
      %21 = tpu.dynamic_rotate %16 by %c96_i32 dim 1 : vector<72x256xf32>, i32 -> vector<72x256xf32>
      %22 = arith.addf %20, %21 : vector<72x256xf32>
      %c128_i32 = arith.constant 128 : i32
      %23 = tpu.dynamic_rotate %16 by %c128_i32 dim 1 : vector<72x256xf32>, i32 -> vector<72x256xf32>
      %24 = arith.addf %22, %23 : vector<72x256xf32>
      %c160_i32 = arith.constant 160 : i32
      %25 = tpu.dynamic_rotate %16 by %c160_i32 dim 1 : vector<72x256xf32>, i32 -> vector<72x256xf32>
      %26 = arith.addf %24, %25 : vector<72x256xf32>
      %c192_i32 = arith.constant 192 : i32
      %27 = tpu.dynamic_rotate %16 by %c192_i32 dim 1 : vector<72x256xf32>, i32 -> vector<72x256xf32>
      %28 = arith.addf %26, %27 : vector<72x256xf32>
      %c224_i32 = arith.constant 224 : i32
      %29 = tpu.dynamic_rotate %16 by %c224_i32 dim 1 : vector<72x256xf32>, i32 -> vector<72x256xf32>
      %30 = arith.addf %28, %29 : vector<72x256xf32>
      %cst_13 = arith.constant 1.000000e+00 : f32
      %31 = vector.broadcast %cst_13 : f32 to vector<72x256xf32>
      %32 = arith.addf %31, %30 : vector<72x256xf32>
      %33 = tpu.reciprocal %32 {approx = true} : vector<72x256xf32> -> vector<72x256xf32>
      %34 = arith.mulf %30, %33 : vector<72x256xf32>
      %cst_14 = arith.constant 9.99999993E-9 : f32
      %35 = vector.broadcast %cst_14 : f32 to vector<72x256xf32>
      %36 = arith.addf %30, %35 : vector<72x256xf32>
      %37 = math.rsqrt %36 : vector<72x256xf32>
      %38 = arith.mulf %34, %37 : vector<72x256xf32>
      %39 = arith.mulf %15, %38 : vector<72x256xf32>
      %40 = arith.truncf %39 : vector<72x256xf32> to vector<72x256xbf16>
      %c0_15 = arith.constant 0 : index
      %c0_16 = arith.constant 0 : index
      %41 = vector.load %arg6[%c0_15, %c0_16] : memref<72x256xbf16, #tpu.memory_space<vmem>>, vector<72x256xbf16>
      tpu.vector_store %arg6[%c0_15, %c0_16], %40 {strides = array<i32>} : memref<72x256xbf16, #tpu.memory_space<vmem>>, vector<72x256xbf16>,
    } else {
    }
    return
  }
  func.func @transform_0(%arg0: i32, %arg1: i32, %arg2: i32) -> (i32, i32) {
    %c0_i32 = arith.constant 0 : i32
    return %arg0, %arg2 : i32, i32
  }
  func.func @transform_1(%arg0: i32, %arg1: i32, %arg2: i32) -> (i32, i32) {
    %c0_i32 = arith.constant 0 : i32
    return %arg2, %arg1 : i32, i32
  }
  func.func @transform_2(%arg0: i32, %arg1: i32, %arg2: i32) -> (i32, i32) {
    %c0_i32 = arith.constant 0 : i32
    %c0_i32_0 = arith.constant 0 : i32
    return %c0_i32, %arg1 : i32, i32
  }
  func.func @transform_3(%arg0: i32, %arg1: i32, %arg2: i32) -> (i32, i32) {
    %c0_i32 = arith.constant 0 : i32
    return %arg0, %arg1 : i32, i32
  }
}

module attributes {stable_mosaic.version = 11 : i64} {
  func.func @_matmul_kernel(%arg0: i32, %arg1: i32, %arg2: i32, %arg3: memref<8x3072xbf16, #tpu.memory_space<vmem>>, %arg4: memref<3072x160xbf16, #tpu.memory_space<vmem>>, %arg5: memref<1x160xf32, #tpu.memory_space<vmem>>, %arg6: memref<8x160xf32, #tpu.memory_space<vmem>>, %arg7: memref<8x160xf32, #tpu.memory_space<vmem>>) attributes {dimension_semantics = [#tpu.dimension_semantics<parallel>, #tpu.dimension_semantics<parallel>, #tpu.dimension_semantics<arbitrary>], iteration_bounds = array<i64: 1, 1, 3>, scalar_prefetch = 0 : i64, scratch_operands = 1 : i64, tpu.core_type = #tpu.core_type<tc>, window_params = [{transform_indices = @transform_0, window_bounds = array<i64: 8, 3072>}, {transform_indices = @transform_1, window_bounds = array<i64: 3072, 160>}, {transform_indices = @transform_2, window_bounds = array<i64: 1, 160>}, {transform_indices = @transform_3, window_bounds = array<i64: 8, 160>}]} {
    %c0_i32 = arith.constant 0 : i32
    %0 = arith.cmpi eq, %arg2, %c0_i32 : i32
    %1 = arith.extui %0 : i1 to i32
    %c0_i32_0 = arith.constant 0 : i32
    %2 = arith.cmpi ne, %1, %c0_i32_0 : i32
    scf.if %2 {
      %cst_9 = arith.constant 0.000000e+00 : f32
      %12 = vector.broadcast %cst_9 : f32 to vector<8x160xf32>
      %c0_10 = arith.constant 0 : index
      %c0_11 = arith.constant 0 : index
      %13 = vector.load %arg7[%c0_10, %c0_11] : memref<8x160xf32, #tpu.memory_space<vmem>>, vector<8x160xf32>
      tpu.vector_store %arg7[%c0_10, %c0_11], %12 {strides = array<i32>} : memref<8x160xf32, #tpu.memory_space<vmem>>, vector<8x160xf32>,
    } else {
    }
    %c0 = arith.constant 0 : index
    %c0_1 = arith.constant 0 : index
    %3 = vector.load %arg7[%c0, %c0_1] : memref<8x160xf32, #tpu.memory_space<vmem>>, vector<8x160xf32>
    %c0_2 = arith.constant 0 : index
    %c0_3 = arith.constant 0 : index
    %4 = vector.load %arg3[%c0_2, %c0_3] : memref<8x3072xbf16, #tpu.memory_space<vmem>>, vector<8x3072xbf16>
    %c0_4 = arith.constant 0 : index
    %c0_5 = arith.constant 0 : index
    %5 = vector.load %arg4[%c0_4, %c0_5] : memref<3072x160xbf16, #tpu.memory_space<vmem>>, vector<3072x160xbf16>
    %cst = arith.constant dense<0.000000e+00> : vector<8x160xf32>
    %6 = tpu.matmul %4, %5, %cst {dimension_numbers = #tpu.dot_dimension_numbers<[1], [0], [0], [1], [0, 0, 1, 1], [], []>} : vector<8x3072xbf16>, vector<3072x160xbf16>, vector<8x160xf32> -> vector<8x160xf32>
    %7 = arith.addf %3, %6 : vector<8x160xf32>
    %c0_6 = arith.constant 0 : index
    %c0_7 = arith.constant 0 : index
    %8 = vector.load %arg7[%c0_6, %c0_7] : memref<8x160xf32, #tpu.memory_space<vmem>>, vector<8x160xf32>
    tpu.vector_store %arg7[%c0_6, %c0_7], %7 {strides = array<i32>} : memref<8x160xf32, #tpu.memory_space<vmem>>, vector<8x160xf32>,
    %c2_i32 = arith.constant 2 : i32
    %9 = arith.cmpi eq, %arg2, %c2_i32 : i32
    %10 = arith.extui %9 : i1 to i32
    %c0_i32_8 = arith.constant 0 : i32
    %11 = arith.cmpi ne, %10, %c0_i32_8 : i32
    scf.if %11 {
      %c0_9 = arith.constant 0 : index
      %c0_10 = arith.constant 0 : index
      %12 = vector.load %arg7[%c0_9, %c0_10] : memref<8x160xf32, #tpu.memory_space<vmem>>, vector<8x160xf32>
      %cst_11 = arith.constant 8.68055562E-4 : f32
      %13 = vector.broadcast %cst_11 : f32 to vector<8x160xf32>
      %14 = arith.mulf %12, %13 : vector<8x160xf32>
      %c0_12 = arith.constant 0 : index
      %c0_13 = arith.constant 0 : index
      %15 = vector.load %arg5[%c0_12, %c0_13] : memref<1x160xf32, #tpu.memory_space<vmem>>, vector<1x160xf32>
      %16 = vector.broadcast %15 : vector<1x160xf32> to vector<8x160xf32>
      %17 = arith.addf %14, %16 : vector<8x160xf32>
      %c0_14 = arith.constant 0 : index
      %c0_15 = arith.constant 0 : index
      %18 = vector.load %arg6[%c0_14, %c0_15] : memref<8x160xf32, #tpu.memory_space<vmem>>, vector<8x160xf32>
      tpu.vector_store %arg6[%c0_14, %c0_15], %17 {strides = array<i32>} : memref<8x160xf32, #tpu.memory_space<vmem>>, vector<8x160xf32>,
    } else {
    }
    return
  }
  func.func @transform_0(%arg0: i32, %arg1: i32, %arg2: i32) -> (i32, i32) {
    %c0_i32 = arith.constant 0 : i32
    return %arg0, %arg2 : i32, i32
  }
  func.func @transform_1(%arg0: i32, %arg1: i32, %arg2: i32) -> (i32, i32) {
    %c0_i32 = arith.constant 0 : i32
    return %arg2, %arg1 : i32, i32
  }
  func.func @transform_2(%arg0: i32, %arg1: i32, %arg2: i32) -> (i32, i32) {
    %c0_i32 = arith.constant 0 : i32
    %c0_i32_0 = arith.constant 0 : i32
    return %c0_i32, %arg1 : i32, i32
  }
  func.func @transform_3(%arg0: i32, %arg1: i32, %arg2: i32) -> (i32, i32) {
    %c0_i32 = arith.constant 0 : i32
    return %arg0, %arg1 : i32, i32
  }
}

module attributes {stable_mosaic.version = 11 : i64} {
  func.func @_squash_kernel(%arg0: i32, %arg1: memref<20x16xf32, #tpu.memory_space<vmem>>, %arg2: memref<20x16xf32, #tpu.memory_space<vmem>>) attributes {dimension_semantics = [#tpu.dimension_semantics<arbitrary>], iteration_bounds = array<i64: 1>, scalar_prefetch = 0 : i64, scratch_operands = 0 : i64, tpu.core_type = #tpu.core_type<tc>, window_params = [{pipeline_mode = #tpu.pipeline_mode<synchronous>, transform_indices = @transform_0, window_bounds = array<i64: 20, 16>}, {pipeline_mode = #tpu.pipeline_mode<synchronous>, transform_indices = @transform_1, window_bounds = array<i64: 20, 16>}]} {
    %c0 = arith.constant 0 : index
    %c0_0 = arith.constant 0 : index
    %0 = vector.load %arg1[%c0, %c0_0] : memref<20x16xf32, #tpu.memory_space<vmem>>, vector<20x16xf32>
    %1 = arith.mulf %0, %0 : vector<20x16xf32>
    %cst = arith.constant dense<0.000000e+00> : vector<20xf32>
    %2 = vector.multi_reduction <add>, %1, %cst [1] : vector<20x16xf32> to vector<20xf32>
    %3 = vector.shape_cast %2 : vector<20xf32> to vector<20x1xf32>
    %cst_1 = arith.constant 1.000000e+00 : f32
    %4 = vector.broadcast %cst_1 : f32 to vector<20x1xf32>
    %5 = arith.addf %4, %3 : vector<20x1xf32>
    %6 = arith.divf %3, %5 : vector<20x1xf32>
    %7 = vector.broadcast %6 : vector<20x1xf32> to vector<20x16xf32>
    %8 = arith.mulf %0, %7 : vector<20x16xf32>
    %cst_2 = arith.constant 9.99999993E-9 : f32
    %9 = vector.broadcast %cst_2 : f32 to vector<20x1xf32>
    %10 = arith.addf %3, %9 : vector<20x1xf32>
    %11 = math.rsqrt %10 : vector<20x1xf32>
    %12 = vector.broadcast %11 : vector<20x1xf32> to vector<20x16xf32>
    %13 = arith.mulf %8, %12 : vector<20x16xf32>
    %c0_3 = arith.constant 0 : index
    %c0_4 = arith.constant 0 : index
    %14 = vector.load %arg2[%c0_3, %c0_4] : memref<20x16xf32, #tpu.memory_space<vmem>>, vector<20x16xf32>
    tpu.vector_store %arg2[%c0_3, %c0_4], %13 {strides = array<i32>} : memref<20x16xf32, #tpu.memory_space<vmem>>, vector<20x16xf32>,
    return
  }
  func.func @transform_0(%arg0: i32) -> (i32, i32) {
    %c0_i32 = arith.constant 0 : i32
    %c0_i32_0 = arith.constant 0 : i32
    %c0_i32_1 = arith.constant 0 : i32
    return %c0_i32, %c0_i32_0 : i32, i32
  }
  func.func @transform_1(%arg0: i32) -> (i32, i32) {
    %c0_i32 = arith.constant 0 : i32
    %c0_i32_0 = arith.constant 0 : i32
    %c0_i32_1 = arith.constant 0 : i32
    return %c0_i32, %c0_i32_0 : i32, i32
  }
}

module attributes {stable_mosaic.version = 11 : i64} {
  func.func @_matmul_kernel(%arg0: i32, %arg1: i32, %arg2: i32, %arg3: memref<8x512xbf16, #tpu.memory_space<vmem>>, %arg4: memref<512x1024xbf16, #tpu.memory_space<vmem>>, %arg5: memref<1x1024xf32, #tpu.memory_space<vmem>>, %arg6: memref<8x1024xbf16, #tpu.memory_space<vmem>>, %arg7: memref<8x1024xf32, #tpu.memory_space<vmem>>) attributes {dimension_semantics = [#tpu.dimension_semantics<parallel>, #tpu.dimension_semantics<parallel>, #tpu.dimension_semantics<arbitrary>], iteration_bounds = array<i64: 1, 1, 1>, scalar_prefetch = 0 : i64, scratch_operands = 1 : i64, tpu.core_type = #tpu.core_type<tc>, window_params = [{transform_indices = @transform_0, window_bounds = array<i64: 8, 512>}, {transform_indices = @transform_1, window_bounds = array<i64: 512, 1024>}, {transform_indices = @transform_2, window_bounds = array<i64: 1, 1024>}, {transform_indices = @transform_3, window_bounds = array<i64: 8, 1024>}]} {
    %c0_i32 = arith.constant 0 : i32
    %0 = arith.cmpi eq, %arg2, %c0_i32 : i32
    %1 = arith.extui %0 : i1 to i32
    %c0_i32_0 = arith.constant 0 : i32
    %2 = arith.cmpi ne, %1, %c0_i32_0 : i32
    scf.if %2 {
      %cst_10 = arith.constant 0.000000e+00 : f32
      %12 = vector.broadcast %cst_10 : f32 to vector<8x1024xf32>
      %c0_11 = arith.constant 0 : index
      %c0_12 = arith.constant 0 : index
      %13 = vector.load %arg7[%c0_11, %c0_12] : memref<8x1024xf32, #tpu.memory_space<vmem>>, vector<8x1024xf32>
      tpu.vector_store %arg7[%c0_11, %c0_12], %12 {strides = array<i32>} : memref<8x1024xf32, #tpu.memory_space<vmem>>, vector<8x1024xf32>,
    } else {
    }
    %c0 = arith.constant 0 : index
    %c0_1 = arith.constant 0 : index
    %3 = vector.load %arg7[%c0, %c0_1] : memref<8x1024xf32, #tpu.memory_space<vmem>>, vector<8x1024xf32>
    %c0_2 = arith.constant 0 : index
    %c0_3 = arith.constant 0 : index
    %4 = vector.load %arg3[%c0_2, %c0_3] : memref<8x512xbf16, #tpu.memory_space<vmem>>, vector<8x512xbf16>
    %c0_4 = arith.constant 0 : index
    %c0_5 = arith.constant 0 : index
    %5 = vector.load %arg4[%c0_4, %c0_5] : memref<512x1024xbf16, #tpu.memory_space<vmem>>, vector<512x1024xbf16>
    %cst = arith.constant dense<0.000000e+00> : vector<8x1024xf32>
    %6 = tpu.matmul %4, %5, %cst {dimension_numbers = #tpu.dot_dimension_numbers<[1], [0], [0], [1], [0, 0, 1, 1], [], []>} : vector<8x512xbf16>, vector<512x1024xbf16>, vector<8x1024xf32> -> vector<8x1024xf32>
    %7 = arith.addf %3, %6 : vector<8x1024xf32>
    %c0_6 = arith.constant 0 : index
    %c0_7 = arith.constant 0 : index
    %8 = vector.load %arg7[%c0_6, %c0_7] : memref<8x1024xf32, #tpu.memory_space<vmem>>, vector<8x1024xf32>
    tpu.vector_store %arg7[%c0_6, %c0_7], %7 {strides = array<i32>} : memref<8x1024xf32, #tpu.memory_space<vmem>>, vector<8x1024xf32>,
    %c0_i32_8 = arith.constant 0 : i32
    %9 = arith.cmpi eq, %arg2, %c0_i32_8 : i32
    %10 = arith.extui %9 : i1 to i32
    %c0_i32_9 = arith.constant 0 : i32
    %11 = arith.cmpi ne, %10, %c0_i32_9 : i32
    scf.if %11 {
      %c0_10 = arith.constant 0 : index
      %c0_11 = arith.constant 0 : index
      %12 = vector.load %arg7[%c0_10, %c0_11] : memref<8x1024xf32, #tpu.memory_space<vmem>>, vector<8x1024xf32>
      %c0_12 = arith.constant 0 : index
      %c0_13 = arith.constant 0 : index
      %13 = vector.load %arg5[%c0_12, %c0_13] : memref<1x1024xf32, #tpu.memory_space<vmem>>, vector<1x1024xf32>
      %14 = vector.broadcast %13 : vector<1x1024xf32> to vector<8x1024xf32>
      %15 = arith.addf %12, %14 : vector<8x1024xf32>
      %cst_14 = arith.constant 0.000000e+00 : f32
      %16 = vector.broadcast %cst_14 : f32 to vector<8x1024xf32>
      %17 = arith.maximumf %15, %16 : vector<8x1024xf32>
      %18 = arith.truncf %17 : vector<8x1024xf32> to vector<8x1024xbf16>
      %c0_15 = arith.constant 0 : index
      %c0_16 = arith.constant 0 : index
      %19 = vector.load %arg6[%c0_15, %c0_16] : memref<8x1024xbf16, #tpu.memory_space<vmem>>, vector<8x1024xbf16>
      tpu.vector_store %arg6[%c0_15, %c0_16], %18 {strides = array<i32>} : memref<8x1024xbf16, #tpu.memory_space<vmem>>, vector<8x1024xbf16>,
    } else {
    }
    return
  }
  func.func @transform_0(%arg0: i32, %arg1: i32, %arg2: i32) -> (i32, i32) {
    %c0_i32 = arith.constant 0 : i32
    return %arg0, %arg2 : i32, i32
  }
  func.func @transform_1(%arg0: i32, %arg1: i32, %arg2: i32) -> (i32, i32) {
    %c0_i32 = arith.constant 0 : i32
    return %arg2, %arg1 : i32, i32
  }
  func.func @transform_2(%arg0: i32, %arg1: i32, %arg2: i32) -> (i32, i32) {
    %c0_i32 = arith.constant 0 : i32
    %c0_i32_0 = arith.constant 0 : i32
    return %c0_i32, %arg1 : i32, i32
  }
  func.func @transform_3(%arg0: i32, %arg1: i32, %arg2: i32) -> (i32, i32) {
    %c0_i32 = arith.constant 0 : i32
    return %arg0, %arg1 : i32, i32
  }
}

module attributes {stable_mosaic.version = 11 : i64} {
  func.func @_matmul_kernel(%arg0: i32, %arg1: i32, %arg2: i32, %arg3: memref<8x160xbf16, #tpu.memory_space<vmem>>, %arg4: memref<160x512xbf16, #tpu.memory_space<vmem>>, %arg5: memref<1x512xf32, #tpu.memory_space<vmem>>, %arg6: memref<8x512xbf16, #tpu.memory_space<vmem>>, %arg7: memref<8x512xf32, #tpu.memory_space<vmem>>) attributes {dimension_semantics = [#tpu.dimension_semantics<parallel>, #tpu.dimension_semantics<parallel>, #tpu.dimension_semantics<arbitrary>], iteration_bounds = array<i64: 1, 1, 1>, scalar_prefetch = 0 : i64, scratch_operands = 1 : i64, tpu.core_type = #tpu.core_type<tc>, window_params = [{transform_indices = @transform_0, window_bounds = array<i64: 8, 160>}, {transform_indices = @transform_1, window_bounds = array<i64: 160, 512>}, {transform_indices = @transform_2, window_bounds = array<i64: 1, 512>}, {transform_indices = @transform_3, window_bounds = array<i64: 8, 512>}]} {
    %c0_i32 = arith.constant 0 : i32
    %0 = arith.cmpi eq, %arg2, %c0_i32 : i32
    %1 = arith.extui %0 : i1 to i32
    %c0_i32_0 = arith.constant 0 : i32
    %2 = arith.cmpi ne, %1, %c0_i32_0 : i32
    scf.if %2 {
      %cst_10 = arith.constant 0.000000e+00 : f32
      %12 = vector.broadcast %cst_10 : f32 to vector<8x512xf32>
      %c0_11 = arith.constant 0 : index
      %c0_12 = arith.constant 0 : index
      %13 = vector.load %arg7[%c0_11, %c0_12] : memref<8x512xf32, #tpu.memory_space<vmem>>, vector<8x512xf32>
      tpu.vector_store %arg7[%c0_11, %c0_12], %12 {strides = array<i32>} : memref<8x512xf32, #tpu.memory_space<vmem>>, vector<8x512xf32>,
    } else {
    }
    %c0 = arith.constant 0 : index
    %c0_1 = arith.constant 0 : index
    %3 = vector.load %arg7[%c0, %c0_1] : memref<8x512xf32, #tpu.memory_space<vmem>>, vector<8x512xf32>
    %c0_2 = arith.constant 0 : index
    %c0_3 = arith.constant 0 : index
    %4 = vector.load %arg3[%c0_2, %c0_3] : memref<8x160xbf16, #tpu.memory_space<vmem>>, vector<8x160xbf16>
    %c0_4 = arith.constant 0 : index
    %c0_5 = arith.constant 0 : index
    %5 = vector.load %arg4[%c0_4, %c0_5] : memref<160x512xbf16, #tpu.memory_space<vmem>>, vector<160x512xbf16>
    %cst = arith.constant dense<0.000000e+00> : vector<8x512xf32>
    %6 = tpu.matmul %4, %5, %cst {dimension_numbers = #tpu.dot_dimension_numbers<[1], [0], [0], [1], [0, 0, 1, 1], [], []>} : vector<8x160xbf16>, vector<160x512xbf16>, vector<8x512xf32> -> vector<8x512xf32>
    %7 = arith.addf %3, %6 : vector<8x512xf32>
    %c0_6 = arith.constant 0 : index
    %c0_7 = arith.constant 0 : index
    %8 = vector.load %arg7[%c0_6, %c0_7] : memref<8x512xf32, #tpu.memory_space<vmem>>, vector<8x512xf32>
    tpu.vector_store %arg7[%c0_6, %c0_7], %7 {strides = array<i32>} : memref<8x512xf32, #tpu.memory_space<vmem>>, vector<8x512xf32>,
    %c0_i32_8 = arith.constant 0 : i32
    %9 = arith.cmpi eq, %arg2, %c0_i32_8 : i32
    %10 = arith.extui %9 : i1 to i32
    %c0_i32_9 = arith.constant 0 : i32
    %11 = arith.cmpi ne, %10, %c0_i32_9 : i32
    scf.if %11 {
      %c0_10 = arith.constant 0 : index
      %c0_11 = arith.constant 0 : index
      %12 = vector.load %arg7[%c0_10, %c0_11] : memref<8x512xf32, #tpu.memory_space<vmem>>, vector<8x512xf32>
      %c0_12 = arith.constant 0 : index
      %c0_13 = arith.constant 0 : index
      %13 = vector.load %arg5[%c0_12, %c0_13] : memref<1x512xf32, #tpu.memory_space<vmem>>, vector<1x512xf32>
      %14 = vector.broadcast %13 : vector<1x512xf32> to vector<8x512xf32>
      %15 = arith.addf %12, %14 : vector<8x512xf32>
      %cst_14 = arith.constant 0.000000e+00 : f32
      %16 = vector.broadcast %cst_14 : f32 to vector<8x512xf32>
      %17 = arith.maximumf %15, %16 : vector<8x512xf32>
      %18 = arith.truncf %17 : vector<8x512xf32> to vector<8x512xbf16>
      %c0_15 = arith.constant 0 : index
      %c0_16 = arith.constant 0 : index
      %19 = vector.load %arg6[%c0_15, %c0_16] : memref<8x512xbf16, #tpu.memory_space<vmem>>, vector<8x512xbf16>
      tpu.vector_store %arg6[%c0_15, %c0_16], %18 {strides = array<i32>} : memref<8x512xbf16, #tpu.memory_space<vmem>>, vector<8x512xbf16>,
    } else {
    }
    return
  }
  func.func @transform_0(%arg0: i32, %arg1: i32, %arg2: i32) -> (i32, i32) {
    %c0_i32 = arith.constant 0 : i32
    return %arg0, %arg2 : i32, i32
  }
  func.func @transform_1(%arg0: i32, %arg1: i32, %arg2: i32) -> (i32, i32) {
    %c0_i32 = arith.constant 0 : i32
    return %arg2, %arg1 : i32, i32
  }
  func.func @transform_2(%arg0: i32, %arg1: i32, %arg2: i32) -> (i32, i32) {
    %c0_i32 = arith.constant 0 : i32
    %c0_i32_0 = arith.constant 0 : i32
    return %c0_i32, %arg1 : i32, i32
  }
  func.func @transform_3(%arg0: i32, %arg1: i32, %arg2: i32) -> (i32, i32) {
    %c0_i32 = arith.constant 0 : i32
    return %arg0, %arg1 : i32, i32
  }
}

module attributes {stable_mosaic.version = 11 : i64} {
  func.func @_matmul_kernel(%arg0: i32, %arg1: i32, %arg2: i32, %arg3: memref<8x1024xbf16, #tpu.memory_space<vmem>>, %arg4: memref<1024x784xbf16, #tpu.memory_space<vmem>>, %arg5: memref<1x784xf32, #tpu.memory_space<vmem>>, %arg6: memref<8x784xf32, #tpu.memory_space<vmem>>, %arg7: memref<8x784xf32, #tpu.memory_space<vmem>>) attributes {dimension_semantics = [#tpu.dimension_semantics<parallel>, #tpu.dimension_semantics<parallel>, #tpu.dimension_semantics<arbitrary>], iteration_bounds = array<i64: 1, 1, 1>, scalar_prefetch = 0 : i64, scratch_operands = 1 : i64, tpu.core_type = #tpu.core_type<tc>, window_params = [{transform_indices = @transform_0, window_bounds = array<i64: 8, 1024>}, {transform_indices = @transform_1, window_bounds = array<i64: 1024, 784>}, {transform_indices = @transform_2, window_bounds = array<i64: 1, 784>}, {transform_indices = @transform_3, window_bounds = array<i64: 8, 784>}]} {
    %c0_i32 = arith.constant 0 : i32
    %0 = arith.cmpi eq, %arg2, %c0_i32 : i32
    %1 = arith.extui %0 : i1 to i32
    %c0_i32_0 = arith.constant 0 : i32
    %2 = arith.cmpi ne, %1, %c0_i32_0 : i32
    scf.if %2 {
      %cst_10 = arith.constant 0.000000e+00 : f32
      %12 = vector.broadcast %cst_10 : f32 to vector<8x784xf32>
      %c0_11 = arith.constant 0 : index
      %c0_12 = arith.constant 0 : index
      %13 = vector.load %arg7[%c0_11, %c0_12] : memref<8x784xf32, #tpu.memory_space<vmem>>, vector<8x784xf32>
      tpu.vector_store %arg7[%c0_11, %c0_12], %12 {strides = array<i32>} : memref<8x784xf32, #tpu.memory_space<vmem>>, vector<8x784xf32>,
    } else {
    }
    %c0 = arith.constant 0 : index
    %c0_1 = arith.constant 0 : index
    %3 = vector.load %arg7[%c0, %c0_1] : memref<8x784xf32, #tpu.memory_space<vmem>>, vector<8x784xf32>
    %c0_2 = arith.constant 0 : index
    %c0_3 = arith.constant 0 : index
    %4 = vector.load %arg3[%c0_2, %c0_3] : memref<8x1024xbf16, #tpu.memory_space<vmem>>, vector<8x1024xbf16>
    %c0_4 = arith.constant 0 : index
    %c0_5 = arith.constant 0 : index
    %5 = vector.load %arg4[%c0_4, %c0_5] : memref<1024x784xbf16, #tpu.memory_space<vmem>>, vector<1024x784xbf16>
    %cst = arith.constant dense<0.000000e+00> : vector<8x784xf32>
    %6 = tpu.matmul %4, %5, %cst {dimension_numbers = #tpu.dot_dimension_numbers<[1], [0], [0], [1], [0, 0, 1, 1], [], []>} : vector<8x1024xbf16>, vector<1024x784xbf16>, vector<8x784xf32> -> vector<8x784xf32>
    %7 = arith.addf %3, %6 : vector<8x784xf32>
    %c0_6 = arith.constant 0 : index
    %c0_7 = arith.constant 0 : index
    %8 = vector.load %arg7[%c0_6, %c0_7] : memref<8x784xf32, #tpu.memory_space<vmem>>, vector<8x784xf32>
    tpu.vector_store %arg7[%c0_6, %c0_7], %7 {strides = array<i32>} : memref<8x784xf32, #tpu.memory_space<vmem>>, vector<8x784xf32>,
    %c0_i32_8 = arith.constant 0 : i32
    %9 = arith.cmpi eq, %arg2, %c0_i32_8 : i32
    %10 = arith.extui %9 : i1 to i32
    %c0_i32_9 = arith.constant 0 : i32
    %11 = arith.cmpi ne, %10, %c0_i32_9 : i32
    scf.if %11 {
      %c0_10 = arith.constant 0 : index
      %c0_11 = arith.constant 0 : index
      %12 = vector.load %arg7[%c0_10, %c0_11] : memref<8x784xf32, #tpu.memory_space<vmem>>, vector<8x784xf32>
      %c0_12 = arith.constant 0 : index
      %c0_13 = arith.constant 0 : index
      %13 = vector.load %arg5[%c0_12, %c0_13] : memref<1x784xf32, #tpu.memory_space<vmem>>, vector<1x784xf32>
      %14 = vector.broadcast %13 : vector<1x784xf32> to vector<8x784xf32>
      %15 = arith.addf %12, %14 : vector<8x784xf32>
      %16 = arith.negf %15 : vector<8x784xf32>
      %17 = math.exp %16 : vector<8x784xf32>
      %cst_14 = arith.constant 1.000000e+00 : f32
      %18 = vector.broadcast %cst_14 : f32 to vector<8x784xf32>
      %19 = arith.addf %18, %17 : vector<8x784xf32>
      %20 = arith.divf %18, %19 : vector<8x784xf32>
      %c0_15 = arith.constant 0 : index
      %c0_16 = arith.constant 0 : index
      %21 = vector.load %arg6[%c0_15, %c0_16] : memref<8x784xf32, #tpu.memory_space<vmem>>, vector<8x784xf32>
      tpu.vector_store %arg6[%c0_15, %c0_16], %20 {strides = array<i32>} : memref<8x784xf32, #tpu.memory_space<vmem>>, vector<8x784xf32>,
    } else {
    }
    return
  }
  func.func @transform_0(%arg0: i32, %arg1: i32, %arg2: i32) -> (i32, i32) {
    %c0_i32 = arith.constant 0 : i32
    return %arg0, %arg2 : i32, i32
  }
  func.func @transform_1(%arg0: i32, %arg1: i32, %arg2: i32) -> (i32, i32) {
    %c0_i32 = arith.constant 0 : i32
    return %arg2, %arg1 : i32, i32
  }
  func.func @transform_2(%arg0: i32, %arg1: i32, %arg2: i32) -> (i32, i32) {
    %c0_i32 = arith.constant 0 : i32
    %c0_i32_0 = arith.constant 0 : i32
    return %c0_i32, %arg1 : i32, i32
  }
  func.func @transform_3(%arg0: i32, %arg1: i32, %arg2: i32) -> (i32, i32) {
    %c0_i32 = arith.constant 0 : i32
    return %arg0, %arg1 : i32, i32
  }
}

</mosaic_0001>

<bundles_post_ra>
// kernel: capsule_net_forward.7
= control target key start
LH: loop header
LB: loop body
LE: loop exit
PB: predicated region body
PF: predicated region fallthrough
CT: control target
= control target key end

     0   :  { %s1759_s12 = smov 0   ;;  %s1761_s13 = smov 0   ;;  %s1985_s0 = inlined_call_operand.vmem [shape: bf16[1024,81], index: 0, kind: input, shape index: {}]   ;;  %s1986_s1 = inlined_call_operand.vmem [shape: bf16[81,256], index: 1, kind: input, shape index: {}]   ;;  %s1987_s2 = inlined_call_operand.vmem [shape: f32[1,256], index: 2, kind: input, shape index: {}]   ;;  %s1988_s3 = inlined_call_operand.vmem [shape: bf16[1024,256], index: 3, kind: output, shape index: {}]  }
   0x1   :  { %s1763_s14 = smov 0  }
   0x2 LB: > { %s32_s15 = sadd.s32 1, %s1732_s13  ;;  %p1527_p0 = scmp.ge.s32.totalorder %s1736_s14, 1  ;;  %s1736_s14 = sphi %s1763_s14, %s13_s14   ;;  %s1732_s13 = sphi %s1761_s13, %s1990_s13   ;;  %s1728_s12 = sphi %s1759_s12, %s1989_s12  }
   0x3   : > { %p34_p1 = scmp.ge.s32.totalorder %s32_s15, 4  ;;  %p193_p2 = scmp.lt.s32.totalorder %s1736_s14, 5 }
   0x5   : > { %s1992_s15 = smov (%p34_p1, %s32_s15), 0  ;;  %p194_p3 = pnand %p1527_p0, %p193_p2 }
   0x6   : > { %v1681_v0 = vld [vmem:[%s1986_s1 + $0x4] ss:$8 sps:$4 sm:$0xff] (!%p194_p3)   ;;  %v1683_v1 = vld [vmem:[%s1986_s1] ss:$8 sps:$4 sm:$0xff] (!%p194_p3)   ;;  %v1738_v2 = vmov (!%p194_p3), 0   ;;  %s1528_s20 = sshll.u32 (!%p194_p3), %s1728_s12, 5  ;;  %v1036_v33 = vlaneseq (!%p194_p3) }
   0x7   : > { %197 = sbr.rel (%p194_p3) target bundleno = 310 (0x136), region = 32  ;;  %678 = vmatprep.mubr.bf16.mxu0 (!%p194_p3), %v1738_v2  ;;  %758 = vmatprep.mubr.bf16.mxu1 (!%p194_p3), %v1738_v2  ;;  %v1684_v3 = vld [vmem:[%s1986_s1 + $0x14] ss:$8 sps:$4 sm:$0xff] (!%p194_p3)   ;;  %p240_p4 = scmp.lt.s32.totalorder (!%p194_p3), %s1528_s20, 127  ;;  %v1686_v4 = vld [vmem:[%s1986_s1 + $0x10] ss:$8 sps:$4 sm:$0xff] (!%p194_p3)  }
   0x8   : > { %646 = vmatprep.subr.bf16.mxu0 (!%p194_p3), %v1681_v0  ;;  %1644 = vmatprep.subr.bf16.mxu1 (!%p194_p3), %v1681_v0  ;;  %v1687_v5 = vld [vmem:[%s1986_s1 + $0x24] ss:$8 sps:$4 sm:$0xff] (!%p194_p3)   ;;  %v1689_v6 = vld [vmem:[%s1986_s1 + $0x20] ss:$8 sps:$4 sm:$0xff] (!%p194_p3)   ;;  %v1690_v7 = vld [vmem:[%s1986_s1 + $0x34] ss:$8 sps:$4 sm:$0xff] (!%p194_p3)  }
   0x9   : > { %647 = vmatpush1.bf16.msra.mxu0 (!%p194_p3), %v1683_v1  ;;  %1650 = vmatpush1.bf16.msra.mxu1 (!%p194_p3), %v1683_v1  ;;  %v452_v8 = vld [vmem:[%s1986_s1 + $0x50] sm:$0x11] (!%p194_p3)  ;;  %vm637_vm0 = vcmask (!%p194_p3), 1040384   ;;  %v1693_v10 = vld [vmem:[%s1986_s1 + $0x44] ss:$8 sps:$4 sm:$0xff] (!%p194_p3)   ;;  %vm588_vm1 = vcmask (!%p194_p3), 662528  }
   0xa   : > { %648 = vmatprep.subr.bf16.mxu0 (!%p194_p3), %v1684_v3  ;;  %1645 = vmatprep.subr.bf16.mxu1 (!%p194_p3), %v1684_v3  ;;  %v1692_v9 = vld [vmem:[%s1986_s1 + $0x30] ss:$8 sps:$4 sm:$0xff] (!%p194_p3)   ;;  %v1560_v11 = vcombine.high (!%p194_p3), %v452_v8, %v452_v8  ;;  %v639_v12 = vsel (!%p194_p3), %vm637_vm0, 65535, %v1738_v2  ;;  %v1695_v13 = vld [vmem:[%s1986_s1 + $0x40] ss:$8 sps:$4 sm:$0xff] (!%p194_p3)   ;;  %v1559_v14 = vcombine.low (!%p194_p3), %v452_v8, %v452_v8  ;;  %v1037_v34 = vshrl.u32 (!%p194_p3), %v1036_v33, 7 }
   0xb   : > { %v1034_v36 = vld [vmem:[%s1987_s2] sm:$0x3] (!%p194_p3) }
   0xc   : > { %v644_v15 = vand.u32 (!%p194_p3), %v1560_v11, %v639_v12  ;;  %v641_v16 = vand.u32 (!%p194_p3), %v1559_v14, %v639_v12  ;;  %v1038_v35 = vsub.s32 (!%p194_p3), 0, %v1037_v34  ;;  %v1042_v37 = vsub.s32 (!%p194_p3), 1, %v1037_v34 }
   0xd   : > { %649 = vmatpush1.bf16.msra.mxu0 (!%p194_p3), %v1686_v4  ;;  %1651 = vmatpush1.bf16.msra.mxu1 (!%p194_p3), %v1686_v4 }
   0xe   : > { %s1994_s20 = smov (!%p240_p4, %s1528_s20), 127  ;;  %650 = vmatprep.subr.bf16.mxu0 %v1687_v5  ;;  %1646 = vmatprep.subr.bf16.mxu1 %v1687_v5  ;;  %v1870_v38 = vrot.slane %v1034_v36, %v1038_v35  ;;  %v1872_v39 = vrot.slane %v1034_v36, %v1042_v37 }
   0xf   : > { %s1529_s29 = sshll.u32 %s1994_s20, 2  ;;  %s1611_s22 = sshll.u32 %s1994_s20, 3 }
  0x10   : > { %s1806_s7 = scalar_lea.vmem %s1985_s0, %s1529_s29  ;;  %s1886_s24 = scalar_lea.vmem %s1988_s3, %s1611_s22 }
  0x11   : > { %651 = vmatpush1.bf16.msra.mxu0 %v1689_v6  ;;  %1652 = vmatpush1.bf16.msra.mxu1 %v1689_v6  ;;  %v1698_v17 = vld [vmem:[%s1806_s7] sm:$0xff]   ;;  %v1700_v19 = vld [vmem:[%s1806_s7 + $0x8] sm:$0xff]   ;;  %v1702_v21 = vld [vmem:[%s1806_s7 + $0x10] sm:$0xff]  }
  0x12   : > { %652 = vmatprep.subr.bf16.mxu0 %v1690_v7  ;;  %1647 = vmatprep.subr.bf16.mxu1 %v1690_v7  ;;  %v1699_v18 = vld [vmem:[%s1806_s7 + $0x40] sm:$0xff]   ;;  %v1701_v20 = vld [vmem:[%s1806_s7 + $0x48] sm:$0xff]   ;;  %v1703_v22 = vld [vmem:[%s1806_s7 + $0x50] sm:$0xff]  }
  0x13   : > { %v1704_v23 = vld [vmem:[%s1806_s7 + $0x18] sm:$0xff]   ;;  %v1706_v25 = vld [vmem:[%s1806_s7 + $0x20] sm:$0xff]   ;;  %v1708_v27 = vld [vmem:[%s1806_s7 + $0x28] sm:$0xff]  }
  0x14   : > { %v1705_v24 = vld [vmem:[%s1806_s7 + $0x58] sm:$0xff]   ;;  %v1707_v26 = vld [vmem:[%s1806_s7 + $0x60] sm:$0xff]   ;;  %v1709_v28 = vld [vmem:[%s1806_s7 + $0x68] sm:$0xff]  }
  0x15   : > { %653 = vmatpush1.bf16.msra.mxu0 %v1692_v9  ;;  %1653 = vmatpush1.bf16.msra.mxu1 %v1692_v9  ;;  %v1710_v29 = vld [vmem:[%s1806_s7 + $0x30] sm:$0xff]   ;;  %v1712_v31 = vld [vmem:[%s1806_s7 + $0x38] sm:$0xff]  }
  0x16   : > { %654 = vmatprep.subr.bf16.mxu0 %v1693_v10  ;;  %1648 = vmatprep.subr.bf16.mxu1 %v1693_v10  ;;  %v1711_v30 = vld [vmem:[%s1806_s7 + $0x70] sm:$0xff]   ;;  %v1713_v32 = vld [vmem:[%s1806_s7 + $0x78] sm:$0xff]  }
  0x19   : > { %655 = vmatpush1.bf16.msra.mxu0 %v1695_v13  ;;  %1654 = vmatpush1.bf16.msra.mxu1 %v1695_v13 }
  0x1a   : > { %656 = vmatprep.subr.bf16.mxu0 %v644_v15  ;;  %1649 = vmatprep.subr.bf16.mxu1 %v644_v15 }
  0x1d   : > { %657 = vmatpush1.bf16.msra.mxu0 %v641_v16  ;;  %1655 = vmatpush1.bf16.msra.mxu1 %v641_v16 }
  0x20   : > { %1561 = vmatmul.mubr.msk.bf16.vlgmr.msra.gmra.mrb[0].mxu0 %vm588_vm1, %v1698_v17  ;;  %1569 = vmatmul.mubr.msk.bf16.vlgmr.msra.gmra.mrb[0].mxu1 %vm588_vm1, %v1699_v18 }
  0x21   : > { %688 = vmatprep.mubr.bf16.mxu0 %v1738_v2  ;;  %768 = vmatprep.mubr.bf16.mxu1 %v1738_v2 }
  0x28   : > { %1562 = vmatmul.mubr.msk.bf16.gmra.mrb[4].mxu0 %vm588_vm1, %v1700_v19  ;;  %1570 = vmatmul.mubr.msk.bf16.gmra.mrb[4].mxu1 %vm588_vm1, %v1701_v20 }
  0x29   : > { %698 = vmatprep.mubr.bf16.mxu0 %v1738_v2  ;;  %778 = vmatprep.mubr.bf16.mxu1 %v1738_v2 }
  0x30   : > { %1563 = vmatmul.mubr.msk.bf16.gmra.mrb[8].mxu0 %vm588_vm1, %v1702_v21  ;;  %1571 = vmatmul.mubr.msk.bf16.gmra.mrb[8].mxu1 %vm588_vm1, %v1703_v22 }
  0x31   : > { %708 = vmatprep.mubr.bf16.mxu0 %v1738_v2  ;;  %788 = vmatprep.mubr.bf16.mxu1 %v1738_v2 }
  0x38   : > { %1564 = vmatmul.mubr.msk.bf16.gmra.mrb[12].mxu0 %vm588_vm1, %v1704_v23  ;;  %1572 = vmatmul.mubr.msk.bf16.gmra.mrb[12].mxu1 %vm588_vm1, %v1705_v24 }
  0x39   : > { %718 = vmatprep.mubr.bf16.mxu0 %v1738_v2  ;;  %798 = vmatprep.mubr.bf16.mxu1 %v1738_v2 }
  0x40   : > { %1565 = vmatmul.mubr.msk.bf16.gmra.mrb[16].mxu0 %vm588_vm1, %v1706_v25  ;;  %1573 = vmatmul.mubr.msk.bf16.gmra.mrb[16].mxu1 %vm588_vm1, %v1707_v26 }
  0x41   : > { %728 = vmatprep.mubr.bf16.mxu0 %v1738_v2  ;;  %808 = vmatprep.mubr.bf16.mxu1 %v1738_v2 }
  0x48   : > { %1566 = vmatmul.mubr.msk.bf16.gmra.mrb[20].mxu0 %vm588_vm1, %v1708_v27  ;;  %1574 = vmatmul.mubr.msk.bf16.gmra.mrb[20].mxu1 %vm588_vm1, %v1709_v28 }
  0x49   : > { %738 = vmatprep.mubr.bf16.mxu0 %v1738_v2  ;;  %818 = vmatprep.mubr.bf16.mxu1 %v1738_v2 }
  0x50   : > { %1567 = vmatmul.mubr.msk.bf16.gmra.mrb[24].mxu0 %vm588_vm1, %v1710_v29  ;;  %1575 = vmatmul.mubr.msk.bf16.gmra.mrb[24].mxu1 %vm588_vm1, %v1711_v30 }
  0x51   : > { %748 = vmatprep.mubr.bf16.mxu0 %v1738_v2  ;;  %828 = vmatprep.mubr.bf16.mxu1 %v1738_v2 }
  0x58   : > { %1568 = vmatmul.mubr.msk.bf16.gmra.mrb[28].mxu0 %vm588_vm1, %v1712_v31  ;;  %1576 = vmatmul.mubr.msk.bf16.gmra.mrb[28].mxu1 %vm588_vm1, %v1713_v32 }
  0xf3   : > { %v680_v40 = vpop.f32.mrb[0].mxu0  ;;  %v760_v41 = vpop.f32.mrb[0].mxu1 }
  0xf4   : > { %v1046_v42 = vadd.f32 %v1870_v38, %v680_v40  ;;  %v1078_v43 = vadd.f32 %v1870_v38, %v760_v41  ;;  %v682_v44 = vpop.f32.mrb[1].mxu0  ;;  %v762_v45 = vpop.f32.mrb[1].mxu1 }
  0xf5   : > { %v1047_v46 = vadd.f32 %v1872_v39, %v682_v44  ;;  %v1079_v47 = vadd.f32 %v1872_v39, %v762_v45  ;;  %v684_v48 = vpop.f32.mrb[2].mxu0  ;;  %v764_v49 = vpop.f32.mrb[2].mxu1 }
  0xf6   : > { %v1110_v50 = vmax.f32 %v1046_v42, 0.0  ;;  %v1142_v51 = vmax.f32 %v1078_v43, 0.0  ;;  %v1048_v52 = vadd.f32 %v1870_v38, %v684_v48  ;;  %v1080_v53 = vadd.f32 %v1870_v38, %v764_v49  ;;  %v686_v54 = vpop.f32.mrb[3].mxu0  ;;  %v766_v55 = vpop.f32.mrb[3].mxu1 }
  0xf7   : > { %v1111_v56 = vmax.f32 %v1047_v46, 0.0  ;;  %v1143_v57 = vmax.f32 %v1079_v47, 0.0  ;;  %v1049_v58 = vadd.f32 %v1872_v39, %v686_v54  ;;  %v1081_v59 = vadd.f32 %v1872_v39, %v766_v55 }
  0xf8   : > { %v1112_v60 = vmax.f32 %v1048_v52, 0.0  ;;  %v1144_v61 = vmax.f32 %v1080_v53, 0.0 }
  0xf9   : > { %v1612_v62 = vpack.c.bf16 %v1111_v56, %v1110_v50  ;;  %v1628_v63 = vpack.c.bf16 %v1143_v57, %v1142_v51  ;;  %v1113_v0 = vmax.f32 %v1049_v58, 0.0  ;;  %v1145_v1 = vmax.f32 %v1081_v59, 0.0 }
  0xfb   : > { %1366 = vst [vmem:[%s1886_s24] sm:$0xff] %v1612_v62  ;;  %1382 = vst [vmem:[%s1886_s24 + $0x80] sm:$0xff] %v1628_v63  ;;  %v1613_v2 = vpack.c.bf16 %v1113_v0, %v1112_v60  ;;  %v1629_v3 = vpack.c.bf16 %v1145_v1, %v1144_v61  ;;  %v690_v4 = vpop.f32.mrb[4].mxu0  ;;  %v770_v5 = vpop.f32.mrb[4].mxu1 }
  0xfc   : > { %v1050_v6 = vadd.f32 %v1870_v38, %v690_v4  ;;  %v1082_v7 = vadd.f32 %v1870_v38, %v770_v5  ;;  %v692_v8 = vpop.f32.mrb[5].mxu0  ;;  %v772_v9 = vpop.f32.mrb[5].mxu1 }
  0xfd   : > { %1367 = vst [vmem:[%s1886_s24 + $0x8] sm:$0xff] %v1613_v2  ;;  %1383 = vst [vmem:[%s1886_s24 + $0x88] sm:$0xff] %v1629_v3  ;;  %v1051_v10 = vadd.f32 %v1872_v39, %v692_v8  ;;  %v1083_v11 = vadd.f32 %v1872_v39, %v772_v9  ;;  %v694_v12 = vpop.f32.mrb[6].mxu0  ;;  %v774_v13 = vpop.f32.mrb[6].mxu1 }
  0xfe   : > { %v1114_v14 = vmax.f32 %v1050_v6, 0.0  ;;  %v1146_v15 = vmax.f32 %v1082_v7, 0.0  ;;  %v1052_v16 = vadd.f32 %v1870_v38, %v694_v12  ;;  %v1084_v17 = vadd.f32 %v1870_v38, %v774_v13  ;;  %v696_v18 = vpop.f32.mrb[7].mxu0  ;;  %v776_v19 = vpop.f32.mrb[7].mxu1 }
  0xff   : > { %v1115_v20 = vmax.f32 %v1051_v10, 0.0  ;;  %v1147_v21 = vmax.f32 %v1083_v11, 0.0  ;;  %v1053_v22 = vadd.f32 %v1872_v39, %v696_v18  ;;  %v1085_v23 = vadd.f32 %v1872_v39, %v776_v19 }
 0x100   : > { %v1116_v24 = vmax.f32 %v1052_v16, 0.0  ;;  %v1148_v25 = vmax.f32 %v1084_v17, 0.0 }
 0x101   : > { %v1614_v26 = vpack.c.bf16 %v1115_v20, %v1114_v14  ;;  %v1630_v27 = vpack.c.bf16 %v1147_v21, %v1146_v15  ;;  %v1117_v28 = vmax.f32 %v1053_v22, 0.0  ;;  %v1149_v29 = vmax.f32 %v1085_v23, 0.0 }
 0x103   : > { %1368 = vst [vmem:[%s1886_s24 + $0x10] sm:$0xff] %v1614_v26  ;;  %1384 = vst [vmem:[%s1886_s24 + $0x90] sm:$0xff] %v1630_v27  ;;  %v1615_v30 = vpack.c.bf16 %v1117_v28, %v1116_v24  ;;  %v1631_v31 = vpack.c.bf16 %v1149_v29, %v1148_v25  ;;  %v700_v32 = vpop.f32.mrb[8].mxu0  ;;  %v780_v33 = vpop.f32.mrb[8].mxu1 }
 0x104   : > { %v1054_v34 = vadd.f32 %v1870_v38, %v700_v32  ;;  %v1086_v35 = vadd.f32 %v1870_v38, %v780_v33  ;;  %v702_v36 = vpop.f32.mrb[9].mxu0  ;;  %v782_v37 = vpop.f32.mrb[9].mxu1 }
 0x105   : > { %1369 = vst [vmem:[%s1886_s24 + $0x18] sm:$0xff] %v1615_v30  ;;  %1385 = vst [vmem:[%s1886_s24 + $0x98] sm:$0xff] %v1631_v31  ;;  %v1055_v40 = vadd.f32 %v1872_v39, %v702_v36  ;;  %v1087_v41 = vadd.f32 %v1872_v39, %v782_v37  ;;  %v704_v42 = vpop.f32.mrb[10].mxu0  ;;  %v784_v43 = vpop.f32.mrb[10].mxu1 }
 0x106   : > { %v1118_v44 = vmax.f32 %v1054_v34, 0.0  ;;  %v1150_v45 = vmax.f32 %v1086_v35, 0.0  ;;  %v1056_v46 = vadd.f32 %v1870_v38, %v704_v42  ;;  %v1088_v47 = vadd.f32 %v1870_v38, %v784_v43  ;;  %v706_v48 = vpop.f32.mrb[11].mxu0  ;;  %v786_v49 = vpop.f32.mrb[11].mxu1 }
 0x107   : > { %v1119_v50 = vmax.f32 %v1055_v40, 0.0  ;;  %v1151_v51 = vmax.f32 %v1087_v41, 0.0  ;;  %v1057_v52 = vadd.f32 %v1872_v39, %v706_v48  ;;  %v1089_v53 = vadd.f32 %v1872_v39, %v786_v49 }
 0x108   : > { %v1120_v54 = vmax.f32 %v1056_v46, 0.0  ;;  %v1152_v55 = vmax.f32 %v1088_v47, 0.0 }
 0x109   : > { %v1616_v56 = vpack.c.bf16 %v1119_v50, %v1118_v44  ;;  %v1632_v57 = vpack.c.bf16 %v1151_v51, %v1150_v45  ;;  %v1121_v58 = vmax.f32 %v1057_v52, 0.0  ;;  %v1153_v59 = vmax.f32 %v1089_v53, 0.0 }
 0x10b   : > { %1370 = vst [vmem:[%s1886_s24 + $0x20] sm:$0xff] %v1616_v56  ;;  %1386 = vst [vmem:[%s1886_s24 + $0xa0] sm:$0xff] %v1632_v57  ;;  %v1617_v60 = vpack.c.bf16 %v1121_v58, %v1120_v54  ;;  %v1633_v61 = vpack.c.bf16 %v1153_v59, %v1152_v55  ;;  %v710_v62 = vpop.f32.mrb[12].mxu0  ;;  %v790_v63 = vpop.f32.mrb[12].mxu1 }
 0x10c   : > { %v1058_v0 = vadd.f32 %v1870_v38, %v710_v62  ;;  %v1090_v1 = vadd.f32 %v1870_v38, %v790_v63  ;;  %v712_v2 = vpop.f32.mrb[13].mxu0  ;;  %v792_v3 = vpop.f32.mrb[13].mxu1 }
 0x10d   : > { %1371 = vst [vmem:[%s1886_s24 + $0x28] sm:$0xff] %v1617_v60  ;;  %1387 = vst [vmem:[%s1886_s24 + $0xa8] sm:$0xff] %v1633_v61  ;;  %v1059_v4 = vadd.f32 %v1872_v39, %v712_v2  ;;  %v1091_v5 = vadd.f32 %v1872_v39, %v792_v3  ;;  %v714_v6 = vpop.f32.mrb[14].mxu0  ;;  %v794_v7 = vpop.f32.mrb[14].mxu1 }
 0x10e   : > { %v1122_v8 = vmax.f32 %v1058_v0, 0.0  ;;  %v1154_v9 = vmax.f32 %v1090_v1, 0.0  ;;  %v1060_v10 = vadd.f32 %v1870_v38, %v714_v6  ;;  %v1092_v11 = vadd.f32 %v1870_v38, %v794_v7  ;;  %v716_v12 = vpop.f32.mrb[15].mxu0  ;;  %v796_v13 = vpop.f32.mrb[15].mxu1 }
 0x10f   : > { %v1123_v14 = vmax.f32 %v1059_v4, 0.0  ;;  %v1155_v15 = vmax.f32 %v1091_v5, 0.0  ;;  %v1061_v16 = vadd.f32 %v1872_v39, %v716_v12  ;;  %v1093_v17 = vadd.f32 %v1872_v39, %v796_v13 }
 0x110   : > { %v1124_v18 = vmax.f32 %v1060_v10, 0.0  ;;  %v1156_v19 = vmax.f32 %v1092_v11, 0.0 }
 0x111   : > { %v1618_v20 = vpack.c.bf16 %v1123_v14, %v1122_v8  ;;  %v1634_v21 = vpack.c.bf16 %v1155_v15, %v1154_v9  ;;  %v1125_v22 = vmax.f32 %v1061_v16, 0.0  ;;  %v1157_v23 = vmax.f32 %v1093_v17, 0.0 }
 0x113   : > { %1372 = vst [vmem:[%s1886_s24 + $0x30] sm:$0xff] %v1618_v20  ;;  %1388 = vst [vmem:[%s1886_s24 + $0xb0] sm:$0xff] %v1634_v21  ;;  %v1619_v24 = vpack.c.bf16 %v1125_v22, %v1124_v18  ;;  %v1635_v25 = vpack.c.bf16 %v1157_v23, %v1156_v19  ;;  %v720_v26 = vpop.f32.mrb[16].mxu0  ;;  %v800_v27 = vpop.f32.mrb[16].mxu1 }
 0x114   : > { %v1062_v28 = vadd.f32 %v1870_v38, %v720_v26  ;;  %v1094_v29 = vadd.f32 %v1870_v38, %v800_v27  ;;  %v722_v30 = vpop.f32.mrb[17].mxu0  ;;  %v802_v31 = vpop.f32.mrb[17].mxu1 }
 0x115   : > { %1373 = vst [vmem:[%s1886_s24 + $0x38] sm:$0xff] %v1619_v24  ;;  %1389 = vst [vmem:[%s1886_s24 + $0xb8] sm:$0xff] %v1635_v25  ;;  %v1063_v32 = vadd.f32 %v1872_v39, %v722_v30  ;;  %v1095_v33 = vadd.f32 %v1872_v39, %v802_v31  ;;  %v724_v34 = vpop.f32.mrb[18].mxu0  ;;  %v804_v35 = vpop.f32.mrb[18].mxu1 }
 0x116   : > { %v1126_v36 = vmax.f32 %v1062_v28, 0.0  ;;  %v1158_v37 = vmax.f32 %v1094_v29, 0.0  ;;  %v1064_v40 = vadd.f32 %v1870_v38, %v724_v34  ;;  %v1096_v41 = vadd.f32 %v1870_v38, %v804_v35  ;;  %v726_v42 = vpop.f32.mrb[19].mxu0  ;;  %v806_v43 = vpop.f32.mrb[19].mxu1 }
 0x117   : > { %v1127_v44 = vmax.f32 %v1063_v32, 0.0  ;;  %v1159_v45 = vmax.f32 %v1095_v33, 0.0  ;;  %v1065_v46 = vadd.f32 %v1872_v39, %v726_v42  ;;  %v1097_v47 = vadd.f32 %v1872_v39, %v806_v43 }
 0x118   : > { %v1128_v48 = vmax.f32 %v1064_v40, 0.0  ;;  %v1160_v49 = vmax.f32 %v1096_v41, 0.0 }
 0x119   : > { %v1620_v50 = vpack.c.bf16 %v1127_v44, %v1126_v36  ;;  %v1636_v51 = vpack.c.bf16 %v1159_v45, %v1158_v37  ;;  %v1129_v52 = vmax.f32 %v1065_v46, 0.0  ;;  %v1161_v53 = vmax.f32 %v1097_v47, 0.0 }
 0x11b   : > { %1374 = vst [vmem:[%s1886_s24 + $0x40] sm:$0xff] %v1620_v50  ;;  %1390 = vst [vmem:[%s1886_s24 + $0xc0] sm:$0xff] %v1636_v51  ;;  %v1621_v54 = vpack.c.bf16 %v1129_v52, %v1128_v48  ;;  %v1637_v55 = vpack.c.bf16 %v1161_v53, %v1160_v49  ;;  %v730_v56 = vpop.f32.mrb[20].mxu0  ;;  %v810_v57 = vpop.f32.mrb[20].mxu1 }
 0x11c   : > { %v1066_v58 = vadd.f32 %v1870_v38, %v730_v56  ;;  %v1098_v59 = vadd.f32 %v1870_v38, %v810_v57  ;;  %v732_v60 = vpop.f32.mrb[21].mxu0  ;;  %v812_v61 = vpop.f32.mrb[21].mxu1 }
 0x11d   : > { %1375 = vst [vmem:[%s1886_s24 + $0x48] sm:$0xff] %v1621_v54  ;;  %1391 = vst [vmem:[%s1886_s24 + $0xc8] sm:$0xff] %v1637_v55  ;;  %v1067_v62 = vadd.f32 %v1872_v39, %v732_v60  ;;  %v1099_v63 = vadd.f32 %v1872_v39, %v812_v61  ;;  %v734_v0 = vpop.f32.mrb[22].mxu0  ;;  %v814_v1 = vpop.f32.mrb[22].mxu1 }
 0x11e   : > { %v1130_v2 = vmax.f32 %v1066_v58, 0.0  ;;  %v1162_v3 = vmax.f32 %v1098_v59, 0.0  ;;  %v1068_v4 = vadd.f32 %v1870_v38, %v734_v0  ;;  %v1100_v5 = vadd.f32 %v1870_v38, %v814_v1  ;;  %v736_v6 = vpop.f32.mrb[23].mxu0  ;;  %v816_v7 = vpop.f32.mrb[23].mxu1 }
 0x11f   : > { %v1131_v8 = vmax.f32 %v1067_v62, 0.0  ;;  %v1163_v9 = vmax.f32 %v1099_v63, 0.0  ;;  %v1069_v10 = vadd.f32 %v1872_v39, %v736_v6  ;;  %v1101_v11 = vadd.f32 %v1872_v39, %v816_v7 }
 0x120   : > { %v1132_v12 = vmax.f32 %v1068_v4, 0.0  ;;  %v1164_v13 = vmax.f32 %v1100_v5, 0.0 }
 0x121   : > { %v1622_v14 = vpack.c.bf16 %v1131_v8, %v1130_v2  ;;  %v1638_v15 = vpack.c.bf16 %v1163_v9, %v1162_v3  ;;  %v1133_v16 = vmax.f32 %v1069_v10, 0.0  ;;  %v1165_v17 = vmax.f32 %v1101_v11, 0.0 }
 0x123   : > { %1376 = vst [vmem:[%s1886_s24 + $0x50] sm:$0xff] %v1622_v14  ;;  %1392 = vst [vmem:[%s1886_s24 + $0xd0] sm:$0xff] %v1638_v15  ;;  %v1623_v18 = vpack.c.bf16 %v1133_v16, %v1132_v12  ;;  %v1639_v19 = vpack.c.bf16 %v1165_v17, %v1164_v13  ;;  %v740_v20 = vpop.f32.mrb[24].mxu0  ;;  %v820_v21 = vpop.f32.mrb[24].mxu1 }
 0x124   : > { %v1070_v22 = vadd.f32 %v1870_v38, %v740_v20  ;;  %v1102_v23 = vadd.f32 %v1870_v38, %v820_v21  ;;  %v742_v24 = vpop.f32.mrb[25].mxu0  ;;  %v822_v25 = vpop.f32.mrb[25].mxu1 }
 0x125   : > { %1377 = vst [vmem:[%s1886_s24 + $0x58] sm:$0xff] %v1623_v18  ;;  %1393 = vst [vmem:[%s1886_s24 + $0xd8] sm:$0xff] %v1639_v19  ;;  %v1071_v26 = vadd.f32 %v1872_v39, %v742_v24  ;;  %v1103_v27 = vadd.f32 %v1872_v39, %v822_v25  ;;  %v744_v28 = vpop.f32.mrb[26].mxu0  ;;  %v824_v29 = vpop.f32.mrb[26].mxu1 }
 0x126   : > { %v1134_v30 = vmax.f32 %v1070_v22, 0.0  ;;  %v1166_v31 = vmax.f32 %v1102_v23, 0.0  ;;  %v1072_v32 = vadd.f32 %v1870_v38, %v744_v28  ;;  %v1104_v33 = vadd.f32 %v1870_v38, %v824_v29  ;;  %v746_v34 = vpop.f32.mrb[27].mxu0  ;;  %v826_v35 = vpop.f32.mrb[27].mxu1 }
 0x127   : > { %v1135_v36 = vmax.f32 %v1071_v26, 0.0  ;;  %v1167_v37 = vmax.f32 %v1103_v27, 0.0  ;;  %v1073_v40 = vadd.f32 %v1872_v39, %v746_v34  ;;  %v1105_v41 = vadd.f32 %v1872_v39, %v826_v35 }
 0x128   : > { %v1136_v42 = vmax.f32 %v1072_v32, 0.0  ;;  %v1168_v43 = vmax.f32 %v1104_v33, 0.0 }
 0x129   : > { %v1624_v44 = vpack.c.bf16 %v1135_v36, %v1134_v30  ;;  %v1640_v45 = vpack.c.bf16 %v1167_v37, %v1166_v31  ;;  %v1137_v46 = vmax.f32 %v1073_v40, 0.0  ;;  %v1169_v47 = vmax.f32 %v1105_v41, 0.0 }
 0x12b   : > { %1378 = vst [vmem:[%s1886_s24 + $0x60] sm:$0xff] %v1624_v44  ;;  %1394 = vst [vmem:[%s1886_s24 + $0xe0] sm:$0xff] %v1640_v45  ;;  %v1625_v48 = vpack.c.bf16 %v1137_v46, %v1136_v42  ;;  %v1641_v49 = vpack.c.bf16 %v1169_v47, %v1168_v43  ;;  %v750_v50 = vpop.f32.mrb[28].mxu0  ;;  %v830_v51 = vpop.f32.mrb[28].mxu1 }
 0x12c   : > { %v1074_v52 = vadd.f32 %v1870_v38, %v750_v50  ;;  %v1106_v53 = vadd.f32 %v1870_v38, %v830_v51  ;;  %v752_v54 = vpop.f32.mrb[29].mxu0  ;;  %v832_v55 = vpop.f32.mrb[29].mxu1 }
 0x12d   : > { %1379 = vst [vmem:[%s1886_s24 + $0x68] sm:$0xff] %v1625_v48  ;;  %1395 = vst [vmem:[%s1886_s24 + $0xe8] sm:$0xff] %v1641_v49  ;;  %v1075_v56 = vadd.f32 %v1872_v39, %v752_v54  ;;  %v1107_v57 = vadd.f32 %v1872_v39, %v832_v55  ;;  %v754_v58 = vpop.f32.mrb[30].mxu0  ;;  %v834_v59 = vpop.f32.mrb[30].mxu1 }
 0x12e   : > { %v1138_v60 = vmax.f32 %v1074_v52, 0.0  ;;  %v1170_v61 = vmax.f32 %v1106_v53, 0.0  ;;  %v1076_v62 = vadd.f32 %v1870_v38, %v754_v58  ;;  %v1108_v63 = vadd.f32 %v1870_v38, %v834_v59  ;;  %v756_v0 = vpop.f32.mrb[31].mxu0  ;;  %v836_v1 = vpop.f32.mrb[31].mxu1 }
 0x12f   : > { %v1139_v2 = vmax.f32 %v1075_v56, 0.0  ;;  %v1171_v3 = vmax.f32 %v1107_v57, 0.0  ;;  %v1077_v4 = vadd.f32 %v1872_v39, %v756_v0  ;;  %v1109_v5 = vadd.f32 %v1872_v39, %v836_v1 }
 0x130   : > { %v1140_v6 = vmax.f32 %v1076_v62, 0.0  ;;  %v1172_v7 = vmax.f32 %v1108_v63, 0.0 }
 0x131   : > { %v1626_v8 = vpack.c.bf16 %v1139_v2, %v1138_v60  ;;  %v1642_v9 = vpack.c.bf16 %v1171_v3, %v1170_v61  ;;  %v1141_v10 = vmax.f32 %v1077_v4, 0.0  ;;  %v1173_v11 = vmax.f32 %v1109_v5, 0.0 }
 0x133   : > { %1380 = vst [vmem:[%s1886_s24 + $0x70] sm:$0xff] %v1626_v8  ;;  %1396 = vst [vmem:[%s1886_s24 + $0xf0] sm:$0xff] %v1642_v9  ;;  %v1627_v12 = vpack.c.bf16 %v1141_v10, %v1140_v6  ;;  %v1643_v38 = vpack.c.bf16 %v1173_v11, %v1172_v7 }
 0x135   : > { %1381 = vst [vmem:[%s1886_s24 + $0x78] sm:$0xff] %v1627_v12  ;;  %1397 = vst [vmem:[%s1886_s24 + $0xf8] sm:$0xff] %v1643_v38 }
 0x136 PF: > { %s13_s14 = sadd.s32 1, %s1736_s14   ;;  %s1989_s12 = smov %s1732_s13 }
 0x137   : > { %p10_p5 = scmp.ge.s32.totalorder %s13_s14, 6   ;;  %s1990_s13 = smov %s1992_s15 }
 0x139   :  { %12 = sbr.rel (!%p10_p5) target bundleno = 2 (0x2), region = 76 }

// kernel: capsule_net_forward.8
= control target key start
LH: loop header
LB: loop body
LE: loop exit
PB: predicated region body
PF: predicated region fallthrough
CT: control target
= control target key end

     0   :  { %s7645_s12 = smov 0   ;;  %s7647_s13 = smov 0   ;;  %s9275_s0 = inlined_call_operand.vmem [shape: bf16[72,20736], index: 0, kind: input, shape index: {}]   ;;  %s9276_s1 = inlined_call_operand.vmem [shape: bf16[20736,256], index: 1, kind: input, shape index: {}]   ;;  %s9277_s2 = inlined_call_operand.vmem [shape: f32[1,256], index: 2, kind: input, shape index: {}]   ;;  %s9278_s3 = inlined_call_operand.vmem [shape: bf16[72,256], index: 3, kind: output, shape index: {}]  }
   0x1   :  { %s7649_s14 = smov 0   ;;  %s7651_s15 = smov 0  }
   0x2   :  { %s7653_s16 = smov 0  }
   0x3 LB: > { %s25_s17 = sadd.s32 1, %s7614_s15  ;;  %p48_p1 = scmp.ne.s32.totalorder %s7606_s13, %s7602_s12  ;;  %s7618_s16 = sphi %s7653_s16, %s13_s16   ;;  %s7614_s15 = sphi %s7651_s15, %s9422_s15   ;;  %s7610_s14 = sphi %s7649_s14, %s9421_s14   ;;  %s7606_s13 = sphi %s7647_s13, %s9420_s13   ;;  %s7602_s12 = sphi %s7645_s12, %s9419_s12  }
   0x4   : > { %p26_p0 = scmp.ge.s32.totalorder %s25_s17, 6  ;;  %p49_p2 = scmp.eq.s32.totalorder %s7618_s16, 0 }
   0x5   : > { %s41_s19 = sadd.s32 1, %s7606_s13  ;;  %p5802_p5 = scmp.ge.s32.totalorder %s7618_s16, 6 }
   0x6   : > { %s9424_s17 = smov (%p26_p0, %s25_s17), 0  ;;  %p50_p3 = por %p49_p2, %p48_p1 }
   0x7   : > { %s37_s18 = ssub.s32 %s7614_s15, %s9424_s17  ;;  %164 = sbr.rel (%p5802_p5) target bundleno = 83 (0x53), region = 20 }
   0x8   : > { %p39_p4 = scmp.eq.s32.totalorder %s37_s18, 0 }
   0xa   : > { %s7680_s20 = scalar_select %p39_p4, %s7606_s13, %s41_s19  }
   0xe   : > { %167 = sbr.rel (!%p50_p3) target bundleno = 83 (0x53), region = 24  ;;  %s169_s21 = sand.u32 (%p50_p3), 1, %s7606_s13  }
   0xf   : > { %s6407_s22 = smul.u32 (%p50_p3), 108, %s7614_s15 }
  0x10   : > { %s6626_s23 = smul.u32 (%p50_p3), 972, %s169_s21 }
  0x11   : > { %s7688_s26 = scalar_lea.vmem (%p50_p3), %s9275_s0, %s6407_s22 }
  0x12   : > { %v192_v0 = vld [vmem:[%s7688_s26] sm:$0xff] (%p50_p3)  ;;  %v194_v1 = vld [vmem:[%s7688_s26 + $0x8] sm:$0xff] (%p50_p3)  ;;  %v196_v2 = vld [vmem:[%s7688_s26 + $0x10] sm:$0xff] (%p50_p3)  ;;  %s7693_s27 = scalar_lea.vmem (%p50_p3), [#allocation3], %s6626_s23 }
  0x13   : > { %193 = vst [vmem:[%s7693_s27] sm:$0xff] (%p50_p3), %v192_v0  ;;  %195 = vst [vmem:[%s7693_s27 + $0x8] sm:$0xff] (%p50_p3), %v194_v1  ;;  %v198_v3 = vld [vmem:[%s7688_s26 + $0x18] sm:$0xff] (%p50_p3)  ;;  %v200_v4 = vld [vmem:[%s7688_s26 + $0x20] sm:$0xff] (%p50_p3) }
  0x14   : > { %197 = vst [vmem:[%s7693_s27 + $0x10] sm:$0xff] (%p50_p3), %v196_v2  ;;  %v202_v5 = vld [vmem:[%s7688_s26 + $0x28] sm:$0xff] (%p50_p3)  ;;  %199 = vst [vmem:[%s7693_s27 + $0x18] sm:$0xff] (%p50_p3), %v198_v3  ;;  %v204_v6 = vld [vmem:[%s7688_s26 + $0x30] sm:$0xff] (%p50_p3) }
  0x15   : > { %201 = vst [vmem:[%s7693_s27 + $0x20] sm:$0xff] %v200_v4  ;;  %203 = vst [vmem:[%s7693_s27 + $0x28] sm:$0xff] %v202_v5  ;;  %v206_v7 = vld [vmem:[%s7688_s26 + $0x38] sm:$0xff]  ;;  %v208_v8 = vld [vmem:[%s7688_s26 + $0x40] sm:$0xff] }
  0x16   : > { %205 = vst [vmem:[%s7693_s27 + $0x30] sm:$0xff] %v204_v6  ;;  %207 = vst [vmem:[%s7693_s27 + $0x38] sm:$0xff] %v206_v7  ;;  %v210_v9 = vld [vmem:[%s7688_s26 + $0x48] sm:$0xff]  ;;  %v212_v10 = vld [vmem:[%s7688_s26 + $0x50] sm:$0xff] }
  0x17   : > { %209 = vst [vmem:[%s7693_s27 + $0x40] sm:$0xff] %v208_v8  ;;  %v214_v11 = vld [vmem:[%s7688_s26 + $0x58] sm:$0xff]  ;;  %211 = vst [vmem:[%s7693_s27 + $0x48] sm:$0xff] %v210_v9  ;;  %v216_v12 = vld [vmem:[%s7688_s26 + $0x60] sm:$0xff] }
  0x18   : > { %213 = vst [vmem:[%s7693_s27 + $0x50] sm:$0xff] %v212_v10  ;;  %215 = vst [vmem:[%s7693_s27 + $0x58] sm:$0xff] %v214_v11  ;;  %v218_v13 = vld [vmem:[%s7688_s26 + $0x288] sm:$0xff]  ;;  %v220_v14 = vld [vmem:[%s7688_s26 + $0x290] sm:$0xff] }
  0x19   : > { %217 = vst [vmem:[%s7693_s27 + $0x60] sm:$0xff] %v216_v12  ;;  %219 = vst [vmem:[%s7693_s27 + $0x6c] sm:$0xff] %v218_v13  ;;  %v222_v15 = vld [vmem:[%s7688_s26 + $0x298] sm:$0xff]  ;;  %v224_v16 = vld [vmem:[%s7688_s26 + $0x2a0] sm:$0xff] }
  0x1a   : > { %221 = vst [vmem:[%s7693_s27 + $0x74] sm:$0xff] %v220_v14  ;;  %v226_v17 = vld [vmem:[%s7688_s26 + $0x2a8] sm:$0xff]  ;;  %223 = vst [vmem:[%s7693_s27 + $0x7c] sm:$0xff] %v222_v15  ;;  %v228_v18 = vld [vmem:[%s7688_s26 + $0x2b0] sm:$0xff] }
  0x1b   : > { %225 = vst [vmem:[%s7693_s27 + $0x84] sm:$0xff] %v224_v16  ;;  %227 = vst [vmem:[%s7693_s27 + $0x8c] sm:$0xff] %v226_v17  ;;  %v230_v19 = vld [vmem:[%s7688_s26 + $0x2b8] sm:$0xff]  ;;  %v232_v20 = vld [vmem:[%s7688_s26 + $0x2c0] sm:$0xff] }
  0x1c   : > { %229 = vst [vmem:[%s7693_s27 + $0x94] sm:$0xff] %v228_v18  ;;  %231 = vst [vmem:[%s7693_s27 + $0x9c] sm:$0xff] %v230_v19  ;;  %v234_v21 = vld [vmem:[%s7688_s26 + $0x2c8] sm:$0xff]  ;;  %v236_v22 = vld [vmem:[%s7688_s26 + $0x2d0] sm:$0xff] }
  0x1d   : > { %233 = vst [vmem:[%s7693_s27 + $0xa4] sm:$0xff] %v232_v20  ;;  %v238_v23 = vld [vmem:[%s7688_s26 + $0x2d8] sm:$0xff]  ;;  %235 = vst [vmem:[%s7693_s27 + $0xac] sm:$0xff] %v234_v21  ;;  %v240_v24 = vld [vmem:[%s7688_s26 + $0x2e0] sm:$0xff] }
  0x1e   : > { %237 = vst [vmem:[%s7693_s27 + $0xb4] sm:$0xff] %v236_v22  ;;  %239 = vst [vmem:[%s7693_s27 + $0xbc] sm:$0xff] %v238_v23  ;;  %v242_v25 = vld [vmem:[%s7688_s26 + $0x2e8] sm:$0xff]  ;;  %v244_v26 = vld [vmem:[%s7688_s26 + $0x510] sm:$0xff] }
  0x1f   : > { %241 = vst [vmem:[%s7693_s27 + $0xc4] sm:$0xff] %v240_v24  ;;  %243 = vst [vmem:[%s7693_s27 + $0xcc] sm:$0xff] %v242_v25  ;;  %v246_v27 = vld [vmem:[%s7688_s26 + $0x518] sm:$0xff]  ;;  %v248_v28 = vld [vmem:[%s7688_s26 + $0x520] sm:$0xff] }
  0x20   : > { %245 = vst [vmem:[%s7693_s27 + $0xd8] sm:$0xff] %v244_v26  ;;  %v250_v29 = vld [vmem:[%s7688_s26 + $0x528] sm:$0xff]  ;;  %247 = vst [vmem:[%s7693_s27 + $0xe0] sm:$0xff] %v246_v27  ;;  %v252_v30 = vld [vmem:[%s7688_s26 + $0x530] sm:$0xff] }
  0x21   : > { %249 = vst [vmem:[%s7693_s27 + $0xe8] sm:$0xff] %v248_v28  ;;  %251 = vst [vmem:[%s7693_s27 + $0xf0] sm:$0xff] %v250_v29  ;;  %v254_v31 = vld [vmem:[%s7688_s26 + $0x538] sm:$0xff]  ;;  %v256_v32 = vld [vmem:[%s7688_s26 + $0x540] sm:$0xff] }
  0x22   : > { %253 = vst [vmem:[%s7693_s27 + $0xf8] sm:$0xff] %v252_v30  ;;  %255 = vst [vmem:[%s7693_s27 + $0x100] sm:$0xff] %v254_v31  ;;  %v258_v33 = vld [vmem:[%s7688_s26 + $0x548] sm:$0xff]  ;;  %v260_v34 = vld [vmem:[%s7688_s26 + $0x550] sm:$0xff] }
  0x23   : > { %257 = vst [vmem:[%s7693_s27 + $0x108] sm:$0xff] %v256_v32  ;;  %v262_v35 = vld [vmem:[%s7688_s26 + $0x558] sm:$0xff]  ;;  %259 = vst [vmem:[%s7693_s27 + $0x110] sm:$0xff] %v258_v33  ;;  %v264_v36 = vld [vmem:[%s7688_s26 + $0x560] sm:$0xff] }
  0x24   : > { %261 = vst [vmem:[%s7693_s27 + $0x118] sm:$0xff] %v260_v34  ;;  %263 = vst [vmem:[%s7693_s27 + $0x120] sm:$0xff] %v262_v35  ;;  %v266_v37 = vld [vmem:[%s7688_s26 + $0x568] sm:$0xff]  ;;  %v268_v38 = vld [vmem:[%s7688_s26 + $0x570] sm:$0xff] }
  0x25   : > { %265 = vst [vmem:[%s7693_s27 + $0x128] sm:$0xff] %v264_v36  ;;  %267 = vst [vmem:[%s7693_s27 + $0x130] sm:$0xff] %v266_v37  ;;  %v270_v39 = vld [vmem:[%s7688_s26 + $0x798] sm:$0xff]  ;;  %v272_v40 = vld [vmem:[%s7688_s26 + $0x7a0] sm:$0xff] }
  0x26   : > { %269 = vst [vmem:[%s7693_s27 + $0x138] sm:$0xff] %v268_v38  ;;  %v274_v41 = vld [vmem:[%s7688_s26 + $0x7a8] sm:$0xff]  ;;  %271 = vst [vmem:[%s7693_s27 + $0x144] sm:$0xff] %v270_v39  ;;  %v276_v42 = vld [vmem:[%s7688_s26 + $0x7b0] sm:$0xff] }
  0x27   : > { %273 = vst [vmem:[%s7693_s27 + $0x14c] sm:$0xff] %v272_v40  ;;  %275 = vst [vmem:[%s7693_s27 + $0x154] sm:$0xff] %v274_v41  ;;  %v278_v43 = vld [vmem:[%s7688_s26 + $0x7b8] sm:$0xff]  ;;  %v280_v44 = vld [vmem:[%s7688_s26 + $0x7c0] sm:$0xff] }
  0x28   : > { %277 = vst [vmem:[%s7693_s27 + $0x15c] sm:$0xff] %v276_v42  ;;  %279 = vst [vmem:[%s7693_s27 + $0x164] sm:$0xff] %v278_v43  ;;  %v282_v45 = vld [vmem:[%s7688_s26 + $0x7c8] sm:$0xff]  ;;  %v284_v46 = vld [vmem:[%s7688_s26 + $0x7d0] sm:$0xff] }
  0x29   : > { %281 = vst [vmem:[%s7693_s27 + $0x16c] sm:$0xff] %v280_v44  ;;  %v286_v47 = vld [vmem:[%s7688_s26 + $0x7d8] sm:$0xff]  ;;  %283 = vst [vmem:[%s7693_s27 + $0x174] sm:$0xff] %v282_v45  ;;  %v288_v48 = vld [vmem:[%s7688_s26 + $0x7e0] sm:$0xff] }
  0x2a   : > { %285 = vst [vmem:[%s7693_s27 + $0x17c] sm:$0xff] %v284_v46  ;;  %287 = vst [vmem:[%s7693_s27 + $0x184] sm:$0xff] %v286_v47  ;;  %v290_v49 = vld [vmem:[%s7688_s26 + $0x7e8] sm:$0xff]  ;;  %v292_v50 = vld [vmem:[%s7688_s26 + $0x7f0] sm:$0xff] }
  0x2b   : > { %289 = vst [vmem:[%s7693_s27 + $0x18c] sm:$0xff] %v288_v48  ;;  %291 = vst [vmem:[%s7693_s27 + $0x194] sm:$0xff] %v290_v49  ;;  %v294_v51 = vld [vmem:[%s7688_s26 + $0x7f8] sm:$0xff]  ;;  %v296_v52 = vld [vmem:[%s7688_s26 + $0xa20] sm:$0xff] }
  0x2c   : > { %293 = vst [vmem:[%s7693_s27 + $0x19c] sm:$0xff] %v292_v50  ;;  %v298_v53 = vld [vmem:[%s7688_s26 + $0xa28] sm:$0xff]  ;;  %295 = vst [vmem:[%s7693_s27 + $0x1a4] sm:$0xff] %v294_v51  ;;  %v300_v54 = vld [vmem:[%s7688_s26 + $0xa30] sm:$0xff] }
  0x2d   : > { %297 = vst [vmem:[%s7693_s27 + $0x1b0] sm:$0xff] %v296_v52  ;;  %299 = vst [vmem:[%s7693_s27 + $0x1b8] sm:$0xff] %v298_v53  ;;  %v302_v55 = vld [vmem:[%s7688_s26 + $0xa38] sm:$0xff]  ;;  %v304_v56 = vld [vmem:[%s7688_s26 + $0xa40] sm:$0xff] }
  0x2e   : > { %301 = vst [vmem:[%s7693_s27 + $0x1c0] sm:$0xff] %v300_v54  ;;  %303 = vst [vmem:[%s7693_s27 + $0x1c8] sm:$0xff] %v302_v55  ;;  %v306_v57 = vld [vmem:[%s7688_s26 + $0xa48] sm:$0xff]  ;;  %v308_v58 = vld [vmem:[%s7688_s26 + $0xa50] sm:$0xff] }
  0x2f   : > { %305 = vst [vmem:[%s7693_s27 + $0x1d0] sm:$0xff] %v304_v56  ;;  %v310_v59 = vld [vmem:[%s7688_s26 + $0xa58] sm:$0xff]  ;;  %307 = vst [vmem:[%s7693_s27 + $0x1d8] sm:$0xff] %v306_v57  ;;  %v312_v60 = vld [vmem:[%s7688_s26 + $0xa60] sm:$0xff] }
  0x30   : > { %309 = vst [vmem:[%s7693_s27 + $0x1e0] sm:$0xff] %v308_v58  ;;  %311 = vst [vmem:[%s7693_s27 + $0x1e8] sm:$0xff] %v310_v59  ;;  %v314_v61 = vld [vmem:[%s7688_s26 + $0xa68] sm:$0xff]  ;;  %v316_v62 = vld [vmem:[%s7688_s26 + $0xa70] sm:$0xff] }
  0x31   : > { %313 = vst [vmem:[%s7693_s27 + $0x1f0] sm:$0xff] %v312_v60  ;;  %315 = vst [vmem:[%s7693_s27 + $0x1f8] sm:$0xff] %v314_v61  ;;  %v318_v63 = vld [vmem:[%s7688_s26 + $0xa78] sm:$0xff]  ;;  %v320_v0 = vld [vmem:[%s7688_s26 + $0xa80] sm:$0xff] }
  0x32   : > { %317 = vst [vmem:[%s7693_s27 + $0x200] sm:$0xff] %v316_v62  ;;  %v322_v1 = vld [vmem:[%s7688_s26 + $0xca8] sm:$0xff]  ;;  %319 = vst [vmem:[%s7693_s27 + $0x208] sm:$0xff] %v318_v63  ;;  %v324_v2 = vld [vmem:[%s7688_s26 + $0xcb0] sm:$0xff] }
  0x33   : > { %321 = vst [vmem:[%s7693_s27 + $0x210] sm:$0xff] %v320_v0  ;;  %323 = vst [vmem:[%s7693_s27 + $0x21c] sm:$0xff] %v322_v1  ;;  %v326_v3 = vld [vmem:[%s7688_s26 + $0xcb8] sm:$0xff]  ;;  %v328_v4 = vld [vmem:[%s7688_s26 + $0xcc0] sm:$0xff] }
  0x34   : > { %325 = vst [vmem:[%s7693_s27 + $0x224] sm:$0xff] %v324_v2  ;;  %327 = vst [vmem:[%s7693_s27 + $0x22c] sm:$0xff] %v326_v3  ;;  %v330_v5 = vld [vmem:[%s7688_s26 + $0xcc8] sm:$0xff]  ;;  %v332_v6 = vld [vmem:[%s7688_s26 + $0xcd0] sm:$0xff] }
  0x35   : > { %329 = vst [vmem:[%s7693_s27 + $0x234] sm:$0xff] %v328_v4  ;;  %v334_v7 = vld [vmem:[%s7688_s26 + $0xcd8] sm:$0xff]  ;;  %331 = vst [vmem:[%s7693_s27 + $0x23c] sm:$0xff] %v330_v5  ;;  %v336_v8 = vld [vmem:[%s7688_s26 + $0xce0] sm:$0xff] }
  0x36   : > { %333 = vst [vmem:[%s7693_s27 + $0x244] sm:$0xff] %v332_v6  ;;  %335 = vst [vmem:[%s7693_s27 + $0x24c] sm:$0xff] %v334_v7  ;;  %v338_v9 = vld [vmem:[%s7688_s26 + $0xce8] sm:$0xff]  ;;  %v340_v10 = vld [vmem:[%s7688_s26 + $0xcf0] sm:$0xff] }
  0x37   : > { %337 = vst [vmem:[%s7693_s27 + $0x254] sm:$0xff] %v336_v8  ;;  %339 = vst [vmem:[%s7693_s27 + $0x25c] sm:$0xff] %v338_v9  ;;  %v342_v11 = vld [vmem:[%s7688_s26 + $0xcf8] sm:$0xff]  ;;  %v344_v12 = vld [vmem:[%s7688_s26 + $0xd00] sm:$0xff] }
  0x38   : > { %341 = vst [vmem:[%s7693_s27 + $0x264] sm:$0xff] %v340_v10  ;;  %v346_v13 = vld [vmem:[%s7688_s26 + $0xd08] sm:$0xff]  ;;  %343 = vst [vmem:[%s7693_s27 + $0x26c] sm:$0xff] %v342_v11  ;;  %v348_v14 = vld [vmem:[%s7688_s26 + $0xf30] sm:$0xff] }
  0x39   : > { %345 = vst [vmem:[%s7693_s27 + $0x274] sm:$0xff] %v344_v12  ;;  %347 = vst [vmem:[%s7693_s27 + $0x27c] sm:$0xff] %v346_v13  ;;  %v350_v15 = vld [vmem:[%s7688_s26 + $0xf38] sm:$0xff]  ;;  %v352_v16 = vld [vmem:[%s7688_s26 + $0xf40] sm:$0xff] }
  0x3a   : > { %349 = vst [vmem:[%s7693_s27 + $0x288] sm:$0xff] %v348_v14  ;;  %351 = vst [vmem:[%s7693_s27 + $0x290] sm:$0xff] %v350_v15  ;;  %v354_v17 = vld [vmem:[%s7688_s26 + $0xf48] sm:$0xff]  ;;  %v356_v18 = vld [vmem:[%s7688_s26 + $0xf50] sm:$0xff] }
  0x3b   : > { %353 = vst [vmem:[%s7693_s27 + $0x298] sm:$0xff] %v352_v16  ;;  %v358_v19 = vld [vmem:[%s7688_s26 + $0xf58] sm:$0xff]  ;;  %355 = vst [vmem:[%s7693_s27 + $0x2a0] sm:$0xff] %v354_v17  ;;  %v360_v20 = vld [vmem:[%s7688_s26 + $0xf60] sm:$0xff] }
  0x3c   : > { %357 = vst [vmem:[%s7693_s27 + $0x2a8] sm:$0xff] %v356_v18  ;;  %359 = vst [vmem:[%s7693_s27 + $0x2b0] sm:$0xff] %v358_v19  ;;  %v362_v21 = vld [vmem:[%s7688_s26 + $0xf68] sm:$0xff]  ;;  %v364_v22 = vld [vmem:[%s7688_s26 + $0xf70] sm:$0xff] }
  0x3d   : > { %361 = vst [vmem:[%s7693_s27 + $0x2b8] sm:$0xff] %v360_v20  ;;  %363 = vst [vmem:[%s7693_s27 + $0x2c0] sm:$0xff] %v362_v21  ;;  %v366_v23 = vld [vmem:[%s7688_s26 + $0xf78] sm:$0xff]  ;;  %v368_v24 = vld [vmem:[%s7688_s26 + $0xf80] sm:$0xff] }
  0x3e   : > { %365 = vst [vmem:[%s7693_s27 + $0x2c8] sm:$0xff] %v364_v22  ;;  %v370_v25 = vld [vmem:[%s7688_s26 + $0xf88] sm:$0xff]  ;;  %367 = vst [vmem:[%s7693_s27 + $0x2d0] sm:$0xff] %v366_v23  ;;  %v372_v26 = vld [vmem:[%s7688_s26 + $0xf90] sm:$0xff] }
  0x3f   : > { %369 = vst [vmem:[%s7693_s27 + $0x2d8] sm:$0xff] %v368_v24  ;;  %371 = vst [vmem:[%s7693_s27 + $0x2e0] sm:$0xff] %v370_v25  ;;  %v374_v27 = vld [vmem:[%s7688_s26 + $0x11b8] sm:$0xff]  ;;  %v376_v28 = vld [vmem:[%s7688_s26 + $0x11c0] sm:$0xff] }
  0x40   : > { %373 = vst [vmem:[%s7693_s27 + $0x2e8] sm:$0xff] %v372_v26  ;;  %375 = vst [vmem:[%s7693_s27 + $0x2f4] sm:$0xff] %v374_v27  ;;  %v378_v29 = vld [vmem:[%s7688_s26 + $0x11c8] sm:$0xff]  ;;  %v380_v30 = vld [vmem:[%s7688_s26 + $0x11d0] sm:$0xff] }
  0x41   : > { %377 = vst [vmem:[%s7693_s27 + $0x2fc] sm:$0xff] %v376_v28  ;;  %v382_v31 = vld [vmem:[%s7688_s26 + $0x11d8] sm:$0xff]  ;;  %379 = vst [vmem:[%s7693_s27 + $0x304] sm:$0xff] %v378_v29  ;;  %v384_v32 = vld [vmem:[%s7688_s26 + $0x11e0] sm:$0xff] }
  0x42   : > { %381 = vst [vmem:[%s7693_s27 + $0x30c] sm:$0xff] %v380_v30  ;;  %383 = vst [vmem:[%s7693_s27 + $0x314] sm:$0xff] %v382_v31  ;;  %v386_v33 = vld [vmem:[%s7688_s26 + $0x11e8] sm:$0xff]  ;;  %v388_v34 = vld [vmem:[%s7688_s26 + $0x11f0] sm:$0xff] }
  0x43   : > { %385 = vst [vmem:[%s7693_s27 + $0x31c] sm:$0xff] %v384_v32  ;;  %387 = vst [vmem:[%s7693_s27 + $0x324] sm:$0xff] %v386_v33  ;;  %v390_v35 = vld [vmem:[%s7688_s26 + $0x11f8] sm:$0xff]  ;;  %v392_v36 = vld [vmem:[%s7688_s26 + $0x1200] sm:$0xff] }
  0x44   : > { %389 = vst [vmem:[%s7693_s27 + $0x32c] sm:$0xff] %v388_v34  ;;  %v394_v37 = vld [vmem:[%s7688_s26 + $0x1208] sm:$0xff]  ;;  %391 = vst [vmem:[%s7693_s27 + $0x334] sm:$0xff] %v390_v35  ;;  %v396_v38 = vld [vmem:[%s7688_s26 + $0x1210] sm:$0xff] }
  0x45   : > { %393 = vst [vmem:[%s7693_s27 + $0x33c] sm:$0xff] %v392_v36  ;;  %395 = vst [vmem:[%s7693_s27 + $0x344] sm:$0xff] %v394_v37  ;;  %v398_v39 = vld [vmem:[%s7688_s26 + $0x1218] sm:$0xff]  ;;  %v400_v40 = vld [vmem:[%s7688_s26 + $0x1440] sm:$0xff] }
  0x46   : > { %397 = vst [vmem:[%s7693_s27 + $0x34c] sm:$0xff] %v396_v38  ;;  %399 = vst [vmem:[%s7693_s27 + $0x354] sm:$0xff] %v398_v39  ;;  %v402_v41 = vld [vmem:[%s7688_s26 + $0x1448] sm:$0xff]  ;;  %v404_v42 = vld [vmem:[%s7688_s26 + $0x1450] sm:$0xff] }
  0x47   : > { %401 = vst [vmem:[%s7693_s27 + $0x360] sm:$0xff] %v400_v40  ;;  %v406_v43 = vld [vmem:[%s7688_s26 + $0x1458] sm:$0xff]  ;;  %403 = vst [vmem:[%s7693_s27 + $0x368] sm:$0xff] %v402_v41  ;;  %v408_v44 = vld [vmem:[%s7688_s26 + $0x1460] sm:$0xff] }
  0x48   : > { %405 = vst [vmem:[%s7693_s27 + $0x370] sm:$0xff] %v404_v42  ;;  %407 = vst [vmem:[%s7693_s27 + $0x378] sm:$0xff] %v406_v43  ;;  %v410_v45 = vld [vmem:[%s7688_s26 + $0x1468] sm:$0xff]  ;;  %v412_v46 = vld [vmem:[%s7688_s26 + $0x1470] sm:$0xff] }
  0x49   : > { %409 = vst [vmem:[%s7693_s27 + $0x380] sm:$0xff] %v408_v44  ;;  %411 = vst [vmem:[%s7693_s27 + $0x388] sm:$0xff] %v410_v45  ;;  %v414_v47 = vld [vmem:[%s7688_s26 + $0x1478] sm:$0xff]  ;;  %v416_v48 = vld [vmem:[%s7688_s26 + $0x1480] sm:$0xff] }
  0x4a   : > { %413 = vst [vmem:[%s7693_s27 + $0x390] sm:$0xff] %v412_v46  ;;  %v418_v49 = vld [vmem:[%s7688_s26 + $0x1488] sm:$0xff]  ;;  %415 = vst [vmem:[%s7693_s27 + $0x398] sm:$0xff] %v414_v47  ;;  %v420_v50 = vld [vmem:[%s7688_s26 + $0x1490] sm:$0xff] }
  0x4b   : > { %417 = vst [vmem:[%s7693_s27 + $0x3a0] sm:$0xff] %v416_v48  ;;  %419 = vst [vmem:[%s7693_s27 + $0x3a8] sm:$0xff] %v418_v49  ;;  %v422_v51 = vld [vmem:[%s7688_s26 + $0x1498] sm:$0xff]  ;;  %v424_v52 = vld [vmem:[%s7688_s26 + $0x14a0] sm:$0xff] }
  0x4c   : > { %421 = vst [vmem:[%s7693_s27 + $0x3b0] sm:$0xff] %v420_v50  ;;  %423 = vst [vmem:[%s7693_s27 + $0x3b8] sm:$0xff] %v422_v51  ;;  %v5804_v53 = vld [vmem:[%s7688_s26 + $0x68] sm:$0xf]  ;;  %v5806_v54 = vld [vmem:[%s7688_s26 + $0x2f0] sm:$0xf] }
  0x4d   : > { %425 = vst [vmem:[%s7693_s27 + $0x3c0] sm:$0xff] %v424_v52  ;;  %v5808_v55 = vld [vmem:[%s7688_s26 + $0x578] sm:$0xf]  ;;  %5805 = vst [vmem:[%s7693_s27 + $0x68] sm:$0xf] %v5804_v53 }
  0x4e   : > { %5807 = vst [vmem:[%s7693_s27 + $0xd4] sm:$0xf] %v5806_v54  ;;  %5809 = vst [vmem:[%s7693_s27 + $0x140] sm:$0xf] %v5808_v55  ;;  %v5810_v56 = vld [vmem:[%s7688_s26 + $0x800] sm:$0xf] }
  0x4f   : > { %v5812_v57 = vld [vmem:[%s7688_s26 + $0xa88] sm:$0xf]  ;;  %v5814_v58 = vld [vmem:[%s7688_s26 + $0xd10] sm:$0xf]  ;;  %5811 = vst [vmem:[%s7693_s27 + $0x1ac] sm:$0xf] %v5810_v56 }
  0x50   : > { %5813 = vst [vmem:[%s7693_s27 + $0x218] sm:$0xf] %v5812_v57  ;;  %5815 = vst [vmem:[%s7693_s27 + $0x284] sm:$0xf] %v5814_v58  ;;  %v5816_v59 = vld [vmem:[%s7688_s26 + $0xf98] sm:$0xf] }
  0x51   : > { %v5818_v60 = vld [vmem:[%s7688_s26 + $0x1220] sm:$0xf]  ;;  %v5820_v61 = vld [vmem:[%s7688_s26 + $0x14a8] sm:$0xf]  ;;  %5817 = vst [vmem:[%s7693_s27 + $0x2f0] sm:$0xf] %v5816_v59 }
  0x52   : > { %5819 = vst [vmem:[%s7693_s27 + $0x35c] sm:$0xf] %v5818_v60  ;;  %5821 = vst [vmem:[%s7693_s27 + $0x3c8] sm:$0xf] %v5820_v61 }
  0x53 PF: > { %p5822_p6 = scmp.ge.s32.totalorder %s7618_s16, 1  ;;  %p470_p7 = scmp.lt.s32.totalorder %s7618_s16, 7 }
  0x55   : > { %p471_p8 = pnand %p5822_p6, %p470_p7 }
  0x56   : > { %s477_s28 = sand.u32 (!%p471_p8), 1, %s7602_s12   ;;  %s521_s29 = smul.u32 (!%p471_p8), 432, %s7610_s14 }
  0x57   : > { %474 = sbr.rel (%p471_p8) target bundleno = 1115 (0x45b), region = 54  ;;  %p5825_p10 = scmp.ne.s32.totalorder (!%p471_p8), %s7610_s14, 0 }
  0x58   : > { %s6627_s30 = smul.u32 (!%p471_p8), 972, %s477_s28  ;;  %p523_p9 = scmp.lt.s32.totalorder (!%p471_p8), %s521_s29, 2591 }
  0x5a   : > { %s7953_s8 = scalar_lea.vmem (!%p471_p8), [#allocation3], %s6627_s30 }
  0x5e   : > { %s9426_s29 = smov (!%p523_p9, %s521_s29), 2591  ;;  %554 = sbr.rel (%p5825_p10) target bundleno = 105 (0x69), region = 62 }
  0x5f   : > { %s6408_s4 = sshll.u32 %s9426_s29, 3  ;;  %v7620_v62 = vmov (!%p5825_p10), 0.0  }
  0x60   : > { %s7951_s7 = scalar_lea.vmem %s9276_s1, %s6408_s4  ;;  %555 = vst [vmem:[#allocation2] sm:$0xff] (!%p5825_p10), %v7620_v62  ;;  %556 = vst [vmem:[#allocation2 + $0x8] sm:$0xff] (!%p5825_p10), %v7620_v62 }
  0x61   : > { %557 = vst [vmem:[#allocation2 + $0x10] sm:$0xff] (!%p5825_p10), %v7620_v62  ;;  %558 = vst [vmem:[#allocation2 + $0x18] sm:$0xff] (!%p5825_p10), %v7620_v62 }
  0x62   : > { %559 = vst [vmem:[#allocation2 + $0x20] sm:$0xff] (!%p5825_p10), %v7620_v62  ;;  %560 = vst [vmem:[#allocation2 + $0x28] sm:$0xff] (!%p5825_p10), %v7620_v62 }
  0x63   : > { %561 = vst [vmem:[#allocation2 + $0x30] sm:$0xff] (!%p5825_p10), %v7620_v62  ;;  %562 = vst [vmem:[#allocation2 + $0x38] sm:$0xff] (!%p5825_p10), %v7620_v62 }
  0x64   : > { %563 = vst [vmem:[#allocation2 + $0x40] sm:$0xff] (!%p5825_p10), %v7620_v62  ;;  %564 = vst [vmem:[#allocation2 + $0x48] sm:$0xff] (!%p5825_p10), %v7620_v62 }
  0x65   : > { %565 = vst [vmem:[#allocation2 + $0x50] sm:$0xff] %v7620_v62  ;;  %566 = vst [vmem:[#allocation2 + $0x58] sm:$0xff] %v7620_v62 }
  0x66   : > { %567 = vst [vmem:[#allocation2 + $0x60] sm:$0xff] %v7620_v62  ;;  %568 = vst [vmem:[#allocation2 + $0x68] sm:$0xff] %v7620_v62 }
  0x67   : > { %569 = vst [vmem:[#allocation2 + $0x70] sm:$0xff] %v7620_v62  ;;  %570 = vst [vmem:[#allocation2 + $0x78] sm:$0xff] %v7620_v62 }
  0x68   : > { %571 = vst [vmem:[#allocation2 + $0x80] sm:$0xff] %v7620_v62  ;;  %572 = vst [vmem:[#allocation2 + $0x88] sm:$0xff] %v7620_v62 }
  0x69 PF: > { %v6673_v63 = vld [vmem:[%s7951_s7 + $0x4] ss:$8 sps:$4 sm:$0xff]   ;;  %v6677_v1 = vld [vmem:[%s7951_s7] ss:$8 sps:$4 sm:$0xff]   ;;  %v6679_v3 = vld [vmem:[%s7951_s7 + $0x14] ss:$8 sps:$4 sm:$0xff]  }
  0x6a   : > { %v6675_v0 = vld [vmem:[%s7951_s7 + $0x704] ss:$8 sps:$4 sm:$0xff]   ;;  %3948 = vmatprep.subr.bf16.mxu1 %v6673_v63  ;;  %v6678_v2 = vld [vmem:[%s7951_s7 + $0x700] ss:$8 sps:$4 sm:$0xff]   ;;  %v6681_v4 = vld [vmem:[%s7951_s7 + $0x714] ss:$8 sps:$4 sm:$0xff]  }
  0x6b   : > { %4515 = vmatprep.subr.bf16.mxu0 %v6675_v0  ;;  %3949 = vmatpush1.bf16.msra.mxu1 %v6677_v1  ;;  %v6683_v5 = vld [vmem:[%s7951_s7 + $0x10] ss:$8 sps:$4 sm:$0xff]   ;;  %v6685_v7 = vld [vmem:[%s7951_s7 + $0x24] ss:$8 sps:$4 sm:$0xff]   ;;  %v6689_v9 = vld [vmem:[%s7951_s7 + $0x20] ss:$8 sps:$4 sm:$0xff]  }
  0x6c   : > { %4516 = vmatpush1.bf16.msra.mxu0 %v6678_v2  ;;  %3950 = vmatprep.subr.bf16.mxu1 %v6679_v3  ;;  %v6684_v6 = vld [vmem:[%s7951_s7 + $0x710] ss:$8 sps:$4 sm:$0xff]   ;;  %v6687_v8 = vld [vmem:[%s7951_s7 + $0x724] ss:$8 sps:$4 sm:$0xff]   ;;  %v6690_v10 = vld [vmem:[%s7951_s7 + $0x720] ss:$8 sps:$4 sm:$0xff]  }
  0x6d   : > { %4517 = vmatprep.subr.bf16.mxu0 %v6681_v4  ;;  %v6691_v11 = vld [vmem:[%s7951_s7 + $0x34] ss:$8 sps:$4 sm:$0xff]   ;;  %v6695_v13 = vld [vmem:[%s7951_s7 + $0x30] ss:$8 sps:$4 sm:$0xff]   ;;  %v6697_v15 = vld [vmem:[%s7951_s7 + $0x44] ss:$8 sps:$4 sm:$0xff]  }
  0x6e   : > { %v6693_v12 = vld [vmem:[%s7951_s7 + $0x734] ss:$8 sps:$4 sm:$0xff]   ;;  %v6696_v14 = vld [vmem:[%s7951_s7 + $0x730] ss:$8 sps:$4 sm:$0xff]   ;;  %v6699_v16 = vld [vmem:[%s7951_s7 + $0x744] ss:$8 sps:$4 sm:$0xff]  }
  0x6f   : > { %3951 = vmatpush1.bf16.msra.mxu1 %v6683_v5  ;;  %v6701_v17 = vld [vmem:[%s7951_s7 + $0x40] ss:$8 sps:$4 sm:$0xff]   ;;  %v6703_v19 = vld [vmem:[%s7951_s7 + $0x54] ss:$8 sps:$4 sm:$0xff]   ;;  %v6707_v21 = vld [vmem:[%s7951_s7 + $0x50] ss:$8 sps:$4 sm:$0xff]  }
  0x70   : > { %4518 = vmatpush1.bf16.msra.mxu0 %v6684_v6  ;;  %3952 = vmatprep.subr.bf16.mxu1 %v6685_v7  ;;  %v6702_v18 = vld [vmem:[%s7951_s7 + $0x740] ss:$8 sps:$4 sm:$0xff]   ;;  %v6705_v20 = vld [vmem:[%s7951_s7 + $0x754] ss:$8 sps:$4 sm:$0xff]   ;;  %v6708_v22 = vld [vmem:[%s7951_s7 + $0x750] ss:$8 sps:$4 sm:$0xff]  }
  0x71   : > { %4519 = vmatprep.subr.bf16.mxu0 %v6687_v8  ;;  %v6709_v23 = vld [vmem:[%s7951_s7 + $0x64] ss:$8 sps:$4 sm:$0xff]   ;;  %v6713_v25 = vld [vmem:[%s7951_s7 + $0x60] ss:$8 sps:$4 sm:$0xff]   ;;  %v6715_v27 = vld [vmem:[%s7951_s7 + $0x74] ss:$8 sps:$4 sm:$0xff]  }
  0x72   : > { %v6711_v24 = vld [vmem:[%s7951_s7 + $0x764] ss:$8 sps:$4 sm:$0xff]   ;;  %v6714_v26 = vld [vmem:[%s7951_s7 + $0x760] ss:$8 sps:$4 sm:$0xff]   ;;  %v6717_v28 = vld [vmem:[%s7951_s7 + $0x774] ss:$8 sps:$4 sm:$0xff]  }
  0x73   : > { %3953 = vmatpush1.bf16.msra.mxu1 %v6689_v9  ;;  %v6719_v29 = vld [vmem:[%s7951_s7 + $0x70] ss:$8 sps:$4 sm:$0xff]   ;;  %v6721_v31 = vld [vmem:[%s7951_s7 + $0x84] ss:$8 sps:$4 sm:$0xff]   ;;  %v6725_v33 = vld [vmem:[%s7951_s7 + $0x80] ss:$8 sps:$4 sm:$0xff]  }
  0x74   : > { %4520 = vmatpush1.bf16.msra.mxu0 %v6690_v10  ;;  %3954 = vmatprep.subr.bf16.mxu1 %v6691_v11  ;;  %v6720_v30 = vld [vmem:[%s7951_s7 + $0x770] ss:$8 sps:$4 sm:$0xff]   ;;  %v6723_v32 = vld [vmem:[%s7951_s7 + $0x784] ss:$8 sps:$4 sm:$0xff]   ;;  %v6726_v34 = vld [vmem:[%s7951_s7 + $0x780] ss:$8 sps:$4 sm:$0xff]  }
  0x75   : > { %4521 = vmatprep.subr.bf16.mxu0 %v6693_v12  ;;  %v6727_v35 = vld [vmem:[%s7951_s7 + $0x94] ss:$8 sps:$4 sm:$0xff]   ;;  %v6731_v37 = vld [vmem:[%s7951_s7 + $0x90] ss:$8 sps:$4 sm:$0xff]   ;;  %v6733_v39 = vld [vmem:[%s7951_s7 + $0xa4] ss:$8 sps:$4 sm:$0xff]  }
  0x76   : > { %v6729_v36 = vld [vmem:[%s7951_s7 + $0x794] ss:$8 sps:$4 sm:$0xff]   ;;  %v6732_v38 = vld [vmem:[%s7951_s7 + $0x790] ss:$8 sps:$4 sm:$0xff]   ;;  %v6735_v40 = vld [vmem:[%s7951_s7 + $0x7a4] ss:$8 sps:$4 sm:$0xff]  }
  0x77   : > { %3955 = vmatpush1.bf16.msra.mxu1 %v6695_v13  ;;  %v6737_v41 = vld [vmem:[%s7951_s7 + $0xa0] ss:$8 sps:$4 sm:$0xff]   ;;  %v6739_v43 = vld [vmem:[%s7951_s7 + $0xb4] ss:$8 sps:$4 sm:$0xff]   ;;  %v6743_v45 = vld [vmem:[%s7951_s7 + $0xb0] ss:$8 sps:$4 sm:$0xff]  }
  0x78   : > { %4522 = vmatpush1.bf16.msra.mxu0 %v6696_v14  ;;  %3956 = vmatprep.subr.bf16.mxu1 %v6697_v15  ;;  %v6738_v42 = vld [vmem:[%s7951_s7 + $0x7a0] ss:$8 sps:$4 sm:$0xff]   ;;  %v6741_v44 = vld [vmem:[%s7951_s7 + $0x7b4] ss:$8 sps:$4 sm:$0xff]   ;;  %v6744_v46 = vld [vmem:[%s7951_s7 + $0x7b0] ss:$8 sps:$4 sm:$0xff]  }
  0x79   : > { %4523 = vmatprep.subr.bf16.mxu0 %v6699_v16  ;;  %v6771_v47 = vld [vmem:[%s7953_s8 + $0x4] ss:$108 sps:$4 sm:$0xff]   ;;  %v6777_v50 = vld [vmem:[%s7953_s8 + $0x3c] ss:$108 sps:$4 sm:$0xff]   ;;  %v6769_v3 = vld [vmem:[%s7953_s8] ss:$108 sps:$4 sm:$0xff]  }
  0x7a   : > { %v6745_v48 = vld [vmem:[%s7951_s7 + $0xc4] ss:$8 sps:$4 sm:$0xff]   ;;  %3980 = vmatprep.mubr.bf16.mxu1 %v6771_v47  ;;  %v6749_v51 = vld [vmem:[%s7951_s7 + $0xc0] ss:$8 sps:$4 sm:$0xff]   ;;  %v6751_v53 = vld [vmem:[%s7951_s7 + $0xd4] ss:$8 sps:$4 sm:$0xff]   ;;  %4547 = vmatprep.mubr.bf16.mxu0 %v6777_v50 }
  0x7b   : > { %3957 = vmatpush1.bf16.msra.mxu1 %v6701_v17  ;;  %v6747_v49 = vld [vmem:[%s7951_s7 + $0x7c4] ss:$8 sps:$4 sm:$0xff]   ;;  %v6750_v52 = vld [vmem:[%s7951_s7 + $0x7c0] ss:$8 sps:$4 sm:$0xff]   ;;  %v6753_v54 = vld [vmem:[%s7951_s7 + $0x7d4] ss:$8 sps:$4 sm:$0xff]  }
  0x7c   : > { %4524 = vmatpush1.bf16.msra.mxu0 %v6702_v18  ;;  %3958 = vmatprep.subr.bf16.mxu1 %v6703_v19  ;;  %v6755_v55 = vld [vmem:[%s7951_s7 + $0xd0] ss:$8 sps:$4 sm:$0xff]   ;;  %v6757_v57 = vld [vmem:[%s7951_s7 + $0xe4] ss:$8 sps:$4 sm:$0xff]   ;;  %v6761_v59 = vld [vmem:[%s7951_s7 + $0xe0] ss:$8 sps:$4 sm:$0xff]  }
  0x7d   : > { %4525 = vmatprep.subr.bf16.mxu0 %v6705_v20  ;;  %v6756_v56 = vld [vmem:[%s7951_s7 + $0x7d0] ss:$8 sps:$4 sm:$0xff]   ;;  %v6759_v58 = vld [vmem:[%s7951_s7 + $0x7e4] ss:$8 sps:$4 sm:$0xff]   ;;  %v6762_v60 = vld [vmem:[%s7951_s7 + $0x7e0] ss:$8 sps:$4 sm:$0xff]  }
  0x7e   : > { %v6763_v61 = vld [vmem:[%s7951_s7 + $0xf4] ss:$8 sps:$4 sm:$0xff]   ;;  %v6767_v63 = vld [vmem:[%s7951_s7 + $0xf0] ss:$8 sps:$4 sm:$0xff]   ;;  %v6774_v1 = vld [vmem:[%s7951_s7 + $0x104] ss:$8 sps:$4 sm:$0xff]  }
  0x7f   : > { %3959 = vmatpush1.bf16.msra.mxu1 %v6707_v21  ;;  %v6765_v62 = vld [vmem:[%s7951_s7 + $0x7f4] ss:$8 sps:$4 sm:$0xff]   ;;  %v6768_v0 = vld [vmem:[%s7951_s7 + $0x7f0] ss:$8 sps:$4 sm:$0xff]   ;;  %v6780_v2 = vld [vmem:[%s7951_s7 + $0x804] ss:$8 sps:$4 sm:$0xff]  }
  0x80   : > { %4526 = vmatpush1.bf16.msra.mxu0 %v6708_v22  ;;  %3960 = vmatprep.subr.bf16.mxu1 %v6709_v23  ;;  %v6772_v4 = vld [vmem:[%s7951_s7 + $0x100] ss:$8 sps:$4 sm:$0xff]   ;;  %v6783_v7 = vld [vmem:[%s7951_s7 + $0x114] ss:$8 sps:$4 sm:$0xff]   ;;  %v6781_v9 = vld [vmem:[%s7951_s7 + $0x110] ss:$8 sps:$4 sm:$0xff]  }
  0x81   : > { %4527 = vmatprep.subr.bf16.mxu0 %v6711_v24  ;;  %v6775_v5 = vld [vmem:[%s7953_s8 + $0x38] ss:$108 sps:$4 sm:$0xff]   ;;  %v6784_v10 = vld [vmem:[%s7951_s7 + $0x810] ss:$8 sps:$4 sm:$0xff]   ;;  %v6789_v12 = vld [vmem:[%s7951_s7 + $0x124] ss:$8 sps:$4 sm:$0xff]  }
  0x82   : > { %v6778_v6 = vld [vmem:[%s7951_s7 + $0x800] ss:$8 sps:$4 sm:$0xff]   ;;  %v6786_v8 = vld [vmem:[%s7951_s7 + $0x814] ss:$8 sps:$4 sm:$0xff]   ;;  %v6823_v11 = vld [vmem:[%s7953_s8 + $0xdc] ss:$108 sps:$4 sm:$0xff]  }
  0x83   : > { %3961 = vmatpush1.bf16.msra.mxu1 %v6713_v25  ;;  %v6792_v13 = vld [vmem:[%s7951_s7 + $0x824] ss:$8 sps:$4 sm:$0xff]   ;;  %v6787_v14 = vld [vmem:[%s7951_s7 + $0x120] ss:$8 sps:$4 sm:$0xff]   ;;  %v6795_v19 = vld [vmem:[%s7951_s7 + $0x134] ss:$8 sps:$4 sm:$0xff]  }
  0x84   : > { %4528 = vmatpush1.bf16.msra.mxu0 %v6714_v26  ;;  %3962 = vmatprep.subr.bf16.mxu1 %v6715_v27  ;;  %v6829_v15 = vld [vmem:[%s7953_s8 + $0x114] ss:$108 sps:$4 sm:$0xff]   ;;  %v6790_v16 = vld [vmem:[%s7951_s7 + $0x820] ss:$8 sps:$4 sm:$0xff]   ;;  %p6393_p11 = scmp.ne.s32.totalorder %s7610_s14, 5 }
  0x85   : > { %4529 = vmatprep.subr.bf16.mxu0 %v6717_v28  ;;  %v6825_v17 = vld [vmem:[%s7953_s8 + $0xd8] ss:$108 sps:$4 sm:$0xff]   ;;  %v6834_v18 = vld [vmem:[%s7953_s8 + $0x110] ss:$108 sps:$4 sm:$0xff]   ;;  %v6841_v23 = vld [vmem:[%s7953_s8 + $0x1b4] ss:$108 sps:$4 sm:$0xff]  }
  0x86   : > { %v6798_v20 = vld [vmem:[%s7951_s7 + $0x834] ss:$8 sps:$4 sm:$0xff]   ;;  %v6793_v21 = vld [vmem:[%s7951_s7 + $0x130] ss:$8 sps:$4 sm:$0xff]   ;;  %v6801_v24 = vld [vmem:[%s7951_s7 + $0x144] ss:$8 sps:$4 sm:$0xff]  }
  0x87   : > { %3963 = vmatpush1.bf16.msra.mxu1 %v6719_v29  ;;  %v6796_v22 = vld [vmem:[%s7951_s7 + $0x830] ss:$8 sps:$4 sm:$0xff]   ;;  %v6804_v25 = vld [vmem:[%s7951_s7 + $0x844] ss:$8 sps:$4 sm:$0xff]   ;;  %v6799_v26 = vld [vmem:[%s7951_s7 + $0x140] ss:$8 sps:$4 sm:$0xff]  }
  0x88   : > { %4530 = vmatpush1.bf16.msra.mxu0 %v6720_v30  ;;  %3964 = vmatprep.subr.bf16.mxu1 %v6721_v31  ;;  %v6847_v27 = vld [vmem:[%s7953_s8 + $0x1ec] ss:$108 sps:$4 sm:$0xff]   ;;  %v6843_v29 = vld [vmem:[%s7953_s8 + $0x1b0] ss:$108 sps:$4 sm:$0xff]   ;;  %v6852_v30 = vld [vmem:[%s7953_s8 + $0x1e8] ss:$108 sps:$4 sm:$0xff]  }
  0x89   : > { %4531 = vmatprep.subr.bf16.mxu0 %v6723_v32  ;;  %v6802_v28 = vld [vmem:[%s7951_s7 + $0x840] ss:$8 sps:$4 sm:$0xff]   ;;  %v6807_v31 = vld [vmem:[%s7951_s7 + $0x154] ss:$8 sps:$4 sm:$0xff]   ;;  %v6828_v50 = vld [vmem:[%s7951_s7 + $0x184] ss:$8 sps:$4 sm:$0xff]  }
  0x8a   : > { %v6810_v32 = vld [vmem:[%s7951_s7 + $0x854] ss:$8 sps:$4 sm:$0xff]  }
  0x8b   : > { %3965 = vmatpush1.bf16.msra.mxu1 %v6725_v33  ;;  %v6805_v33 = vld [vmem:[%s7951_s7 + $0x150] ss:$8 sps:$4 sm:$0xff]  }
  0x8c   : > { %4532 = vmatpush1.bf16.msra.mxu0 %v6726_v34  ;;  %3966 = vmatprep.subr.bf16.mxu1 %v6727_v35  ;;  %v6808_v34 = vld [vmem:[%s7951_s7 + $0x850] ss:$8 sps:$4 sm:$0xff]   ;;  %v6859_v35 = vld [vmem:[%s7953_s8 + $0x28c] ss:$108 sps:$4 sm:$0xff]  }
  0x8d   : > { %4533 = vmatprep.subr.bf16.mxu0 %v6729_v36  ;;  %v6813_v36 = vld [vmem:[%s7951_s7 + $0x164] ss:$8 sps:$4 sm:$0xff]  }
  0x8f   : > { %3967 = vmatpush1.bf16.msra.mxu1 %v6731_v37  ;;  %v6816_v37 = vld [vmem:[%s7951_s7 + $0x864] ss:$8 sps:$4 sm:$0xff]  }
  0x90   : > { %4534 = vmatpush1.bf16.msra.mxu0 %v6732_v38  ;;  %3968 = vmatprep.subr.bf16.mxu1 %v6733_v39  ;;  %v6811_v38 = vld [vmem:[%s7951_s7 + $0x160] ss:$8 sps:$4 sm:$0xff]  }
  0x91   : > { %4535 = vmatprep.subr.bf16.mxu0 %v6735_v40  ;;  %v6865_v39 = vld [vmem:[%s7953_s8 + $0x2c4] ss:$108 sps:$4 sm:$0xff]  }
  0x92   : > { %v6814_v40 = vld [vmem:[%s7951_s7 + $0x860] ss:$8 sps:$4 sm:$0xff]  }
  0x93   : > { %3969 = vmatpush1.bf16.msra.mxu1 %v6737_v41  ;;  %v6861_v41 = vld [vmem:[%s7953_s8 + $0x288] ss:$108 sps:$4 sm:$0xff]  }
  0x94   : > { %4536 = vmatpush1.bf16.msra.mxu0 %v6738_v42  ;;  %3970 = vmatprep.subr.bf16.mxu1 %v6739_v43  ;;  %v6870_v42 = vld [vmem:[%s7953_s8 + $0x2c0] ss:$108 sps:$4 sm:$0xff]  }
  0x95   : > { %4537 = vmatprep.subr.bf16.mxu0 %v6741_v44  ;;  %v6819_v43 = vld [vmem:[%s7951_s7 + $0x174] ss:$8 sps:$4 sm:$0xff]  }
  0x96   : > { %v6822_v44 = vld [vmem:[%s7951_s7 + $0x874] ss:$8 sps:$4 sm:$0xff]  }
  0x97   : > { %3971 = vmatpush1.bf16.msra.mxu1 %v6743_v45  ;;  %v703_v45 = vld [vmem:[%s7953_s8 + $0x360] sm:$0xff] }
  0x98   : > { %4538 = vmatpush1.bf16.msra.mxu0 %v6744_v46  ;;  %3972 = vmatprep.subr.bf16.mxu1 %v6745_v48  ;;  %v6817_v46 = vld [vmem:[%s7951_s7 + $0x170] ss:$8 sps:$4 sm:$0xff]   ;;  %v5935_v47 = vcombine.high %v703_v45, %v703_v45 }
  0x99   : > { %4539 = vmatprep.subr.bf16.mxu0 %v6747_v49  ;;  %v6820_v48 = vld [vmem:[%s7951_s7 + $0x870] ss:$8 sps:$4 sm:$0xff]  }
  0x9a   : > { %v710_v49 = vld [vmem:[%s7953_s8 + $0x398] sm:$0xff] }
  0x9b   : > { %3973 = vmatpush1.bf16.msra.mxu1 %v6749_v51  ;;  %v6833_v51 = vld [vmem:[%s7951_s7 + $0x884] ss:$8 sps:$4 sm:$0xff]  }
  0x9c   : > { %4540 = vmatpush1.bf16.msra.mxu0 %v6750_v52  ;;  %3974 = vmatprep.subr.bf16.mxu1 %v6751_v53  ;;  %v5949_v52 = vcombine.high %v710_v49, %v710_v49  ;;  %v5934_v53 = vcombine.low %v703_v45, %v703_v45  ;;  %v6920_v45 = vld [vmem:[%s7951_s7 + $0x230] ss:$8 sps:$4 sm:$0xff]  }
  0x9d   : > { %4541 = vmatprep.subr.bf16.mxu0 %v6753_v54  ;;  %v5948_v54 = vcombine.low %v710_v49, %v710_v49  ;;  %v6928_v49 = vld [vmem:[%s7953_s8 + $0x1b8] ss:$108 sps:$4 sm:$0xff]  }
  0x9f   : > { %3975 = vmatpush1.bf16.msra.mxu1 %v6755_v55  ;;  %v6826_v55 = vld [vmem:[%s7951_s7 + $0x180] ss:$8 sps:$4 sm:$0xff]  }
  0xa0   : > { %4542 = vmatpush1.bf16.msra.mxu0 %v6756_v56  ;;  %3976 = vmatprep.subr.bf16.mxu1 %v6757_v57  ;;  %v6831_v56 = vld [vmem:[%s7951_s7 + $0x880] ss:$8 sps:$4 sm:$0xff]   ;;  %v6837_v57 = vld [vmem:[%s7951_s7 + $0x194] ss:$8 sps:$4 sm:$0xff]  }
  0xa1   : > { %4543 = vmatprep.subr.bf16.mxu0 %v6759_v58  ;;  %v6840_v58 = vld [vmem:[%s7951_s7 + $0x894] ss:$8 sps:$4 sm:$0xff]  }
  0xa3   : > { %3977 = vmatpush1.bf16.msra.mxu1 %v6761_v59  ;;  %v6895_v59 = vld [vmem:[%s7953_s8 + $0xc] ss:$108 sps:$4 sm:$0xff]  }
  0xa4   : > { %4544 = vmatpush1.bf16.msra.mxu0 %v6762_v60  ;;  %3978 = vmatprep.subr.bf16.mxu1 %v6763_v61  ;;  %v6835_v60 = vld [vmem:[%s7951_s7 + $0x190] ss:$8 sps:$4 sm:$0xff]  }
  0xa5   : > { %4545 = vmatprep.subr.bf16.mxu0 %v6765_v62  ;;  %v6838_v61 = vld [vmem:[%s7951_s7 + $0x890] ss:$8 sps:$4 sm:$0xff]   ;;  %v6901_v62 = vld [vmem:[%s7953_s8 + $0x44] ss:$108 sps:$4 sm:$0xff]  }
  0xa7   : > { %3979 = vmatpush1.bf16.msra.mxu1 %v6767_v63  ;;  %v6846_v63 = vld [vmem:[%s7951_s7 + $0x1a4] ss:$8 sps:$4 sm:$0xff]  }
  0xa8   : > { %4546 = vmatpush1.bf16.msra.mxu0 %v6768_v0  ;;  %4029 = vmatprep.subr.bf16.mxu1 %v6774_v1  ;;  %v6851_v0 = vld [vmem:[%s7951_s7 + $0x8a4] ss:$8 sps:$4 sm:$0xff]   ;;  %v6844_v1 = vld [vmem:[%s7951_s7 + $0x1a0] ss:$8 sps:$4 sm:$0xff]  }
  0xa9   : > { %4596 = vmatprep.subr.bf16.mxu0 %v6780_v2  ;;  %v6849_v2 = vld [vmem:[%s7951_s7 + $0x8a0] ss:$8 sps:$4 sm:$0xff]  }
  0xaa   : > { %3981 = vmatmul.mubr.bf16.vlgmr.msra.gmra.mrb[0].mxu1 %v6769_v3  ;;  %v6855_v3 = vld [vmem:[%s7951_s7 + $0x1b4] ss:$8 sps:$4 sm:$0xff]  }
  0xab   : > { %4548 = vmatmul.mubr.bf16.vlgmr.msra.gmra.mrb[0].mxu0 %v6775_v5  ;;  %4030 = vmatpush1.bf16.msra.mxu1 %v6772_v4  ;;  %v6858_v4 = vld [vmem:[%s7951_s7 + $0x8b4] ss:$8 sps:$4 sm:$0xff]   ;;  %v6853_v5 = vld [vmem:[%s7951_s7 + $0x1b0] ss:$8 sps:$4 sm:$0xff]  }
  0xac   : > { %4597 = vmatpush1.bf16.msra.mxu0 %v6778_v6  ;;  %4031 = vmatprep.subr.bf16.mxu1 %v6783_v7  ;;  %v6856_v6 = vld [vmem:[%s7951_s7 + $0x8b0] ss:$8 sps:$4 sm:$0xff]   ;;  %v6864_v7 = vld [vmem:[%s7951_s7 + $0x1c4] ss:$8 sps:$4 sm:$0xff]  }
  0xad   : > { %4598 = vmatprep.subr.bf16.mxu0 %v6786_v8  ;;  %3990 = vmatprep.mubr.bf16.mxu1 %v6823_v11  ;;  %v6869_v8 = vld [vmem:[%s7951_s7 + $0x8c4] ss:$8 sps:$4 sm:$0xff]   ;;  %v6873_v11 = vld [vmem:[%s7951_s7 + $0x1d4] ss:$8 sps:$4 sm:$0xff]  }
  0xae   : > { %4557 = vmatprep.mubr.bf16.mxu0 %v6829_v15  ;;  %v6881_v15 = vld [vmem:[%s7951_s7 + $0x1e4] ss:$8 sps:$4 sm:$0xff]  }
  0xaf   : > { %4032 = vmatpush1.bf16.msra.mxu1 %v6781_v9  ;;  %v6862_v9 = vld [vmem:[%s7951_s7 + $0x1c0] ss:$8 sps:$4 sm:$0xff]  }
  0xb0   : > { %4599 = vmatpush1.bf16.msra.mxu0 %v6784_v10  ;;  %4033 = vmatprep.subr.bf16.mxu1 %v6789_v12  ;;  %v6867_v10 = vld [vmem:[%s7951_s7 + $0x8c0] ss:$8 sps:$4 sm:$0xff]   ;;  %v6876_v12 = vld [vmem:[%s7951_s7 + $0x8d4] ss:$8 sps:$4 sm:$0xff]  }
  0xb1   : > { %4600 = vmatprep.subr.bf16.mxu0 %v6792_v13  ;;  %v6871_v13 = vld [vmem:[%s7951_s7 + $0x1d0] ss:$8 sps:$4 sm:$0xff]  }
  0xb2   : > { %3991 = vmatmul.mubr.bf16.gmra.mrb[4].mxu1 %v6825_v17  ;;  %v6879_v17 = vld [vmem:[%s7951_s7 + $0x1e0] ss:$8 sps:$4 sm:$0xff]  }
  0xb3   : > { %4558 = vmatmul.mubr.bf16.gmra.mrb[4].mxu0 %v6834_v18  ;;  %4034 = vmatpush1.bf16.msra.mxu1 %v6787_v14  ;;  %v6874_v14 = vld [vmem:[%s7951_s7 + $0x8d0] ss:$8 sps:$4 sm:$0xff]   ;;  %v6883_v18 = vld [vmem:[%s7951_s7 + $0x8e0] ss:$8 sps:$4 sm:$0xff]  }
  0xb4   : > { %4601 = vmatpush1.bf16.msra.mxu0 %v6790_v16  ;;  %4035 = vmatprep.subr.bf16.mxu1 %v6795_v19  ;;  %v6885_v16 = vld [vmem:[%s7951_s7 + $0x8e4] ss:$8 sps:$4 sm:$0xff]   ;;  %v6889_v19 = vld [vmem:[%s7951_s7 + $0x1f4] ss:$8 sps:$4 sm:$0xff]  }
  0xb5   : > { %4602 = vmatprep.subr.bf16.mxu0 %v6798_v20  ;;  %4000 = vmatprep.mubr.bf16.mxu1 %v6841_v23  ;;  %v6892_v20 = vld [vmem:[%s7951_s7 + $0x8f4] ss:$8 sps:$4 sm:$0xff]   ;;  %v6898_v23 = vld [vmem:[%s7951_s7 + $0x204] ss:$8 sps:$4 sm:$0xff]  }
  0xb6   : > { %4567 = vmatprep.mubr.bf16.mxu0 %v6847_v27  ;;  %v6899_v27 = vld [vmem:[%s7953_s8 + $0x40] ss:$108 sps:$4 sm:$0xff]  }
  0xb7   : > { %4036 = vmatpush1.bf16.msra.mxu1 %v6793_v21  ;;  %v6887_v21 = vld [vmem:[%s7951_s7 + $0x1f0] ss:$8 sps:$4 sm:$0xff]  }
  0xb8   : > { %4603 = vmatpush1.bf16.msra.mxu0 %v6796_v22  ;;  %4037 = vmatprep.subr.bf16.mxu1 %v6801_v24  ;;  %v6890_v22 = vld [vmem:[%s7951_s7 + $0x8f0] ss:$8 sps:$4 sm:$0xff]  }
  0xb9   : > { %4604 = vmatprep.subr.bf16.mxu0 %v6804_v25  ;;  %v6893_v24 = vld [vmem:[%s7953_s8 + $0x8] ss:$108 sps:$4 sm:$0xff]  }
  0xba   : > { %4001 = vmatmul.mubr.bf16.gmra.mrb[8].mxu1 %v6843_v29  ;;  %v6904_v25 = vld [vmem:[%s7951_s7 + $0x904] ss:$8 sps:$4 sm:$0xff]   ;;  %v6907_v29 = vld [vmem:[%s7951_s7 + $0x214] ss:$8 sps:$4 sm:$0xff]  }
  0xbb   : > { %4568 = vmatmul.mubr.bf16.gmra.mrb[8].mxu0 %v6852_v30  ;;  %4038 = vmatpush1.bf16.msra.mxu1 %v6799_v26  ;;  %v6896_v26 = vld [vmem:[%s7951_s7 + $0x200] ss:$8 sps:$4 sm:$0xff]   ;;  %v6910_v30 = vld [vmem:[%s7951_s7 + $0x914] ss:$8 sps:$4 sm:$0xff]  }
  0xbc   : > { %4605 = vmatpush1.bf16.msra.mxu0 %v6802_v28  ;;  %4039 = vmatprep.subr.bf16.mxu1 %v6807_v31  ;;  %v6902_v28 = vld [vmem:[%s7951_s7 + $0x900] ss:$8 sps:$4 sm:$0xff]  }
  0xbd   : > { %4606 = vmatprep.subr.bf16.mxu0 %v6810_v32  ;;  %4010 = vmatprep.mubr.bf16.mxu1 %v6859_v35  ;;  %v6911_v31 = vld [vmem:[%s7953_s8 + $0xe4] ss:$108 sps:$4 sm:$0xff]   ;;  %v6961_v32 = vld [vmem:[%s7953_s8 + $0x11c] ss:$108 sps:$4 sm:$0xff]  }
  0xbe   : > { %4577 = vmatprep.mubr.bf16.mxu0 %v6865_v39  ;;  %v6916_v35 = vld [vmem:[%s7951_s7 + $0x224] ss:$8 sps:$4 sm:$0xff]   ;;  %v6917_v39 = vld [vmem:[%s7951_s7 + $0x920] ss:$8 sps:$4 sm:$0xff]  }
  0xbf   : > { %4040 = vmatpush1.bf16.msra.mxu1 %v6805_v33  ;;  %v6905_v33 = vld [vmem:[%s7951_s7 + $0x210] ss:$8 sps:$4 sm:$0xff]  }
  0xc0   : > { %4607 = vmatpush1.bf16.msra.mxu0 %v6808_v34  ;;  %4041 = vmatprep.subr.bf16.mxu1 %v6813_v36  ;;  %v6908_v34 = vld [vmem:[%s7951_s7 + $0x910] ss:$8 sps:$4 sm:$0xff]  }
  0xc1   : > { %4608 = vmatprep.subr.bf16.mxu0 %v6816_v37  ;;  %v6913_v36 = vld [vmem:[%s7953_s8 + $0xe0] ss:$108 sps:$4 sm:$0xff]   ;;  %v6919_v37 = vld [vmem:[%s7951_s7 + $0x924] ss:$8 sps:$4 sm:$0xff]  }
  0xc2   : > { %4011 = vmatmul.mubr.bf16.gmra.mrb[12].mxu1 %v6861_v41  ;;  %v6922_v41 = vld [vmem:[%s7951_s7 + $0x234] ss:$8 sps:$4 sm:$0xff]  }
  0xc3   : > { %4578 = vmatmul.mubr.bf16.gmra.mrb[12].mxu0 %v6870_v42  ;;  %4042 = vmatpush1.bf16.msra.mxu1 %v6811_v38  ;;  %v6914_v38 = vld [vmem:[%s7951_s7 + $0x220] ss:$8 sps:$4 sm:$0xff]   ;;  %v6925_v42 = vld [vmem:[%s7951_s7 + $0x934] ss:$8 sps:$4 sm:$0xff]  }
  0xc4   : > { %4609 = vmatpush1.bf16.msra.mxu0 %v6814_v40  ;;  %4043 = vmatprep.subr.bf16.mxu1 %v6819_v43  ;;  %v6966_v40 = vld [vmem:[%s7953_s8 + $0x118] ss:$108 sps:$4 sm:$0xff]   ;;  %v6926_v43 = vld [vmem:[%s7953_s8 + $0x1bc] ss:$108 sps:$4 sm:$0xff]  }
  0xc5   : > { %4610 = vmatprep.subr.bf16.mxu0 %v6822_v44  ;;  %4020 = vmatprep.mubr.bf16.mxu1 %v5935_v47  ;;  %v6976_v44 = vld [vmem:[%s7953_s8 + $0x1f4] ss:$108 sps:$4 sm:$0xff]  }
  0xc6   : > { %4587 = vmatprep.mubr.bf16.mxu0 %v5949_v52  ;;  %v6931_v47 = vld [vmem:[%s7951_s7 + $0x244] ss:$8 sps:$4 sm:$0xff]   ;;  %v6932_v52 = vld [vmem:[%s7951_s7 + $0x940] ss:$8 sps:$4 sm:$0xff]  }
  0xc7   : > { %4044 = vmatpush1.bf16.msra.mxu1 %v6817_v46  ;;  %v6923_v46 = vld [vmem:[%s7951_s7 + $0x930] ss:$8 sps:$4 sm:$0xff]  }
  0xc8   : > { %4611 = vmatpush1.bf16.msra.mxu0 %v6820_v48  ;;  %4045 = vmatprep.subr.bf16.mxu1 %v6828_v50  ;;  %v6934_v48 = vld [vmem:[%s7951_s7 + $0x944] ss:$8 sps:$4 sm:$0xff]   ;;  %v6929_v50 = vld [vmem:[%s7951_s7 + $0x240] ss:$8 sps:$4 sm:$0xff]  }
  0xc9   : > { %4612 = vmatprep.subr.bf16.mxu0 %v6833_v51  ;;  %v6981_v51 = vld [vmem:[%s7953_s8 + $0x1f0] ss:$108 sps:$4 sm:$0xff]  }
  0xca   : > { %4021 = vmatmul.mubr.bf16.gmra.mrb[16].mxu1 %v5934_v53  ;;  %v6937_v53 = vld [vmem:[%s7951_s7 + $0x254] ss:$8 sps:$4 sm:$0xff]  }
  0xcb   : > { %4588 = vmatmul.mubr.bf16.gmra.mrb[16].mxu0 %v5948_v54  ;;  %4046 = vmatpush1.bf16.msra.mxu1 %v6826_v55  ;;  %v6940_v54 = vld [vmem:[%s7951_s7 + $0x954] ss:$8 sps:$4 sm:$0xff]  }
  0xcc   : > { %4613 = vmatpush1.bf16.msra.mxu0 %v6831_v56  ;;  %4047 = vmatprep.subr.bf16.mxu1 %v6837_v57  ;;  %v6941_v55 = vld [vmem:[%s7953_s8 + $0x294] ss:$108 sps:$4 sm:$0xff]   ;;  %v6991_v56 = vld [vmem:[%s7953_s8 + $0x2cc] ss:$108 sps:$4 sm:$0xff]  }
  0xcd   : > { %4614 = vmatprep.subr.bf16.mxu0 %v6840_v58  ;;  %4061 = vmatprep.mubr.bf16.mxu1 %v6895_v59  ;;  %v6935_v57 = vld [vmem:[%s7951_s7 + $0x250] ss:$8 sps:$4 sm:$0xff]   ;;  %v6946_v59 = vld [vmem:[%s7951_s7 + $0x264] ss:$8 sps:$4 sm:$0xff]  }
  0xce   : > { %4628 = vmatprep.mubr.bf16.mxu0 %v6901_v62  ;;  %v6938_v58 = vld [vmem:[%s7951_s7 + $0x950] ss:$8 sps:$4 sm:$0xff]   ;;  %v6944_v62 = vld [vmem:[%s7951_s7 + $0x260] ss:$8 sps:$4 sm:$0xff]  }
  0xcf   : > { %4048 = vmatpush1.bf16.msra.mxu1 %v6835_v60  ;;  %v6943_v60 = vld [vmem:[%s7953_s8 + $0x290] ss:$108 sps:$4 sm:$0xff]  }
  0xd0   : > { %4615 = vmatpush1.bf16.msra.mxu0 %v6838_v61  ;;  %4049 = vmatprep.subr.bf16.mxu1 %v6846_v63  ;;  %v6949_v61 = vld [vmem:[%s7951_s7 + $0x964] ss:$8 sps:$4 sm:$0xff]   ;;  %v6947_v63 = vld [vmem:[%s7951_s7 + $0x960] ss:$8 sps:$4 sm:$0xff]  }
  0xd1   : > { %4616 = vmatprep.subr.bf16.mxu0 %v6851_v0  ;;  %v704_v0 = vld [vmem:[%s7953_s8 + $0x368] sm:$0xff] }
  0xd3   : > { %4050 = vmatpush1.bf16.msra.mxu1 %v6844_v1  ;;  %v6996_v1 = vld [vmem:[%s7953_s8 + $0x2c8] ss:$108 sps:$4 sm:$0xff]  }
  0xd4   : > { %4617 = vmatpush1.bf16.msra.mxu0 %v6849_v2  ;;  %4051 = vmatprep.subr.bf16.mxu1 %v6855_v3  ;;  %v711_v2 = vld [vmem:[%s7953_s8 + $0x3a0] sm:$0xff] }
  0xd5   : > { %4618 = vmatprep.subr.bf16.mxu0 %v6858_v4  ;;  %v6952_v3 = vld [vmem:[%s7951_s7 + $0x274] ss:$8 sps:$4 sm:$0xff]  }
  0xd6   : > { %v6955_v4 = vld [vmem:[%s7951_s7 + $0x974] ss:$8 sps:$4 sm:$0xff]  }
  0xd7   : > { %4052 = vmatpush1.bf16.msra.mxu1 %v6853_v5  ;;  %v5937_v5 = vcombine.high %v704_v0, %v704_v0 }
  0xd8   : > { %4619 = vmatpush1.bf16.msra.mxu0 %v6856_v6  ;;  %4053 = vmatprep.subr.bf16.mxu1 %v6864_v7  ;;  %v5951_v6 = vcombine.high %v711_v2, %v711_v2  ;;  %v6950_v7 = vld [vmem:[%s7951_s7 + $0x270] ss:$8 sps:$4 sm:$0xff]  }
  0xd9   : > { %4620 = vmatprep.subr.bf16.mxu0 %v6869_v8  ;;  %v6953_v8 = vld [vmem:[%s7951_s7 + $0x970] ss:$8 sps:$4 sm:$0xff]  }
  0xdb   : > { %4054 = vmatpush1.bf16.msra.mxu1 %v6862_v9  ;;  %v6960_v9 = vld [vmem:[%s7951_s7 + $0x284] ss:$8 sps:$4 sm:$0xff]  }
  0xdc   : > { %4621 = vmatpush1.bf16.msra.mxu0 %v6867_v10  ;;  %4055 = vmatprep.subr.bf16.mxu1 %v6873_v11  ;;  %v6965_v10 = vld [vmem:[%s7951_s7 + $0x984] ss:$8 sps:$4 sm:$0xff]   ;;  %v5936_v11 = vcombine.low %v704_v0, %v704_v0  ;;  %v7049_v0 = vld [vmem:[%s7951_s7 + $0xa34] ss:$8 sps:$4 sm:$0xff]  }
  0xdd   : > { %4622 = vmatprep.subr.bf16.mxu0 %v6876_v12  ;;  %v6958_v12 = vld [vmem:[%s7951_s7 + $0x280] ss:$8 sps:$4 sm:$0xff]  }
  0xdf   : > { %4056 = vmatpush1.bf16.msra.mxu1 %v6871_v13  ;;  %v6963_v13 = vld [vmem:[%s7951_s7 + $0x980] ss:$8 sps:$4 sm:$0xff]  }
  0xe0   : > { %4623 = vmatpush1.bf16.msra.mxu0 %v6874_v14  ;;  %4057 = vmatprep.subr.bf16.mxu1 %v6881_v15  ;;  %v5950_v14 = vcombine.low %v711_v2, %v711_v2  ;;  %v6969_v15 = vld [vmem:[%s7951_s7 + $0x294] ss:$8 sps:$4 sm:$0xff]   ;;  %v7100_v2 = vld [vmem:[%s7953_s8 + $0x1fc] ss:$108 sps:$4 sm:$0xff]  }
  0xe1   : > { %4624 = vmatprep.subr.bf16.mxu0 %v6885_v16  ;;  %v6972_v16 = vld [vmem:[%s7951_s7 + $0x994] ss:$8 sps:$4 sm:$0xff]  }
  0xe3   : > { %4058 = vmatpush1.bf16.msra.mxu1 %v6879_v17  ;;  %v7019_v17 = vld [vmem:[%s7953_s8 + $0x14] ss:$108 sps:$4 sm:$0xff]  }
  0xe4   : > { %4625 = vmatpush1.bf16.msra.mxu0 %v6883_v18  ;;  %4059 = vmatprep.subr.bf16.mxu1 %v6889_v19  ;;  %v7025_v18 = vld [vmem:[%s7953_s8 + $0x4c] ss:$108 sps:$4 sm:$0xff]   ;;  %v6967_v19 = vld [vmem:[%s7951_s7 + $0x290] ss:$8 sps:$4 sm:$0xff]  }
  0xe5   : > { %4626 = vmatprep.subr.bf16.mxu0 %v6892_v20  ;;  %v6970_v20 = vld [vmem:[%s7951_s7 + $0x990] ss:$8 sps:$4 sm:$0xff]  }
  0xe7   : > { %4060 = vmatpush1.bf16.msra.mxu1 %v6887_v21  ;;  %v6975_v21 = vld [vmem:[%s7951_s7 + $0x2a4] ss:$8 sps:$4 sm:$0xff]  }
  0xe8   : > { %4627 = vmatpush1.bf16.msra.mxu0 %v6890_v22  ;;  %4110 = vmatprep.subr.bf16.mxu1 %v6898_v23  ;;  %v6980_v22 = vld [vmem:[%s7951_s7 + $0x9a4] ss:$8 sps:$4 sm:$0xff]   ;;  %v6973_v23 = vld [vmem:[%s7951_s7 + $0x2a0] ss:$8 sps:$4 sm:$0xff]  }
  0xe9   : > { %4677 = vmatprep.subr.bf16.mxu0 %v6904_v25  ;;  %v6984_v25 = vld [vmem:[%s7951_s7 + $0x2b4] ss:$8 sps:$4 sm:$0xff]  }
  0xea   : > { %4062 = vmatmul.mubr.bf16.vlgmr.msra.gmra.mrb[0].mxu1 %v6893_v24  ;;  %v6978_v24 = vld [vmem:[%s7951_s7 + $0x9a0] ss:$8 sps:$4 sm:$0xff]  }
  0xeb   : > { %4629 = vmatmul.mubr.bf16.vlgmr.msra.gmra.mrb[0].mxu0 %v6899_v27  ;;  %4111 = vmatpush1.bf16.msra.mxu1 %v6896_v26  ;;  %v6987_v26 = vld [vmem:[%s7951_s7 + $0x9b4] ss:$8 sps:$4 sm:$0xff]   ;;  %v6982_v27 = vld [vmem:[%s7951_s7 + $0x2b0] ss:$8 sps:$4 sm:$0xff]  }
  0xec   : > { %4678 = vmatpush1.bf16.msra.mxu0 %v6902_v28  ;;  %4112 = vmatprep.subr.bf16.mxu1 %v6907_v29  ;;  %v6985_v28 = vld [vmem:[%s7951_s7 + $0x9b0] ss:$8 sps:$4 sm:$0xff]   ;;  %v6990_v29 = vld [vmem:[%s7951_s7 + $0x2c4] ss:$8 sps:$4 sm:$0xff]  }
  0xed   : > { %4679 = vmatprep.subr.bf16.mxu0 %v6910_v30  ;;  %4071 = vmatprep.mubr.bf16.mxu1 %v6911_v31  ;;  %v6995_v30 = vld [vmem:[%s7951_s7 + $0x9c4] ss:$8 sps:$4 sm:$0xff]   ;;  %v6988_v31 = vld [vmem:[%s7951_s7 + $0x2c0] ss:$8 sps:$4 sm:$0xff]  }
  0xee   : > { %4638 = vmatprep.mubr.bf16.mxu0 %v6961_v32  ;;  %v6993_v32 = vld [vmem:[%s7951_s7 + $0x9c0] ss:$8 sps:$4 sm:$0xff]  }
  0xef   : > { %4113 = vmatpush1.bf16.msra.mxu1 %v6905_v33  ;;  %v6999_v33 = vld [vmem:[%s7951_s7 + $0x2d4] ss:$8 sps:$4 sm:$0xff]  }
  0xf0   : > { %4680 = vmatpush1.bf16.msra.mxu0 %v6908_v34  ;;  %4114 = vmatprep.subr.bf16.mxu1 %v6916_v35  ;;  %v7002_v34 = vld [vmem:[%s7951_s7 + $0x9d4] ss:$8 sps:$4 sm:$0xff]   ;;  %v6997_v35 = vld [vmem:[%s7951_s7 + $0x2d0] ss:$8 sps:$4 sm:$0xff]  }
  0xf1   : > { %4681 = vmatprep.subr.bf16.mxu0 %v6919_v37  ;;  %v7005_v37 = vld [vmem:[%s7951_s7 + $0x2e4] ss:$8 sps:$4 sm:$0xff]  }
  0xf2   : > { %4072 = vmatmul.mubr.bf16.gmra.mrb[4].mxu1 %v6913_v36  ;;  %v7000_v36 = vld [vmem:[%s7951_s7 + $0x9d0] ss:$8 sps:$4 sm:$0xff]  }
  0xf3   : > { %4639 = vmatmul.mubr.bf16.gmra.mrb[4].mxu0 %v6966_v40  ;;  %4115 = vmatpush1.bf16.msra.mxu1 %v6914_v38  ;;  %v7009_v38 = vld [vmem:[%s7951_s7 + $0x9e4] ss:$8 sps:$4 sm:$0xff]   ;;  %v7007_v40 = vld [vmem:[%s7951_s7 + $0x9e0] ss:$8 sps:$4 sm:$0xff]  }
  0xf4   : > { %4682 = vmatpush1.bf16.msra.mxu0 %v6917_v39  ;;  %4116 = vmatprep.subr.bf16.mxu1 %v6922_v41  ;;  %v7003_v39 = vld [vmem:[%s7951_s7 + $0x2e0] ss:$8 sps:$4 sm:$0xff]   ;;  %v7013_v41 = vld [vmem:[%s7951_s7 + $0x2f4] ss:$8 sps:$4 sm:$0xff]  }
  0xf5   : > { %4683 = vmatprep.subr.bf16.mxu0 %v6925_v42  ;;  %4081 = vmatprep.mubr.bf16.mxu1 %v6926_v43  ;;  %v7016_v42 = vld [vmem:[%s7951_s7 + $0x9f4] ss:$8 sps:$4 sm:$0xff]   ;;  %v7011_v43 = vld [vmem:[%s7951_s7 + $0x2f0] ss:$8 sps:$4 sm:$0xff]  }
  0xf6   : > { %4648 = vmatprep.mubr.bf16.mxu0 %v6976_v44  ;;  %v7014_v44 = vld [vmem:[%s7951_s7 + $0x9f0] ss:$8 sps:$4 sm:$0xff]  }
  0xf7   : > { %4117 = vmatpush1.bf16.msra.mxu1 %v6920_v45  ;;  %v7017_v45 = vld [vmem:[%s7953_s8 + $0x10] ss:$108 sps:$4 sm:$0xff]  }
  0xf8   : > { %4684 = vmatpush1.bf16.msra.mxu0 %v6923_v46  ;;  %4118 = vmatprep.subr.bf16.mxu1 %v6931_v47  ;;  %v7022_v46 = vld [vmem:[%s7951_s7 + $0x304] ss:$8 sps:$4 sm:$0xff]  }
  0xf9   : > { %4685 = vmatprep.subr.bf16.mxu0 %v6934_v48  ;;  %v7028_v47 = vld [vmem:[%s7951_s7 + $0xa04] ss:$8 sps:$4 sm:$0xff]   ;;  %v7020_v48 = vld [vmem:[%s7951_s7 + $0x300] ss:$8 sps:$4 sm:$0xff]  }
  0xfa   : > { %4082 = vmatmul.mubr.bf16.gmra.mrb[8].mxu1 %v6928_v49  ;;  %v7023_v49 = vld [vmem:[%s7953_s8 + $0x48] ss:$108 sps:$4 sm:$0xff]  }
  0xfb   : > { %4649 = vmatmul.mubr.bf16.gmra.mrb[8].mxu0 %v6981_v51  ;;  %4119 = vmatpush1.bf16.msra.mxu1 %v6929_v50  ;;  %v7026_v50 = vld [vmem:[%s7951_s7 + $0xa00] ss:$8 sps:$4 sm:$0xff]   ;;  %v7031_v51 = vld [vmem:[%s7951_s7 + $0x314] ss:$8 sps:$4 sm:$0xff]  }
  0xfc   : > { %4686 = vmatpush1.bf16.msra.mxu0 %v6932_v52  ;;  %4120 = vmatprep.subr.bf16.mxu1 %v6937_v53  ;;  %v7034_v52 = vld [vmem:[%s7951_s7 + $0xa14] ss:$8 sps:$4 sm:$0xff]  }
  0xfd   : > { %4687 = vmatprep.subr.bf16.mxu0 %v6940_v54  ;;  %4091 = vmatprep.mubr.bf16.mxu1 %v6941_v55  ;;  %v7035_v53 = vld [vmem:[%s7953_s8 + $0xec] ss:$108 sps:$4 sm:$0xff]   ;;  %v7085_v54 = vld [vmem:[%s7953_s8 + $0x124] ss:$108 sps:$4 sm:$0xff]   ;;  %v7029_v55 = vld [vmem:[%s7951_s7 + $0x310] ss:$8 sps:$4 sm:$0xff]  }
  0xfe   : > { %4658 = vmatprep.mubr.bf16.mxu0 %v6991_v56  ;;  %v7032_v56 = vld [vmem:[%s7951_s7 + $0xa10] ss:$8 sps:$4 sm:$0xff]  }
  0xff   : > { %4121 = vmatpush1.bf16.msra.mxu1 %v6935_v57  ;;  %v7040_v57 = vld [vmem:[%s7951_s7 + $0x324] ss:$8 sps:$4 sm:$0xff]  }
 0x100   : > { %4688 = vmatpush1.bf16.msra.mxu0 %v6938_v58  ;;  %4122 = vmatprep.subr.bf16.mxu1 %v6946_v59  ;;  %v7043_v58 = vld [vmem:[%s7951_s7 + $0xa24] ss:$8 sps:$4 sm:$0xff]  }
 0x101   : > { %4689 = vmatprep.subr.bf16.mxu0 %v6949_v61  ;;  %v7037_v59 = vld [vmem:[%s7953_s8 + $0xe8] ss:$108 sps:$4 sm:$0xff]   ;;  %v7090_v61 = vld [vmem:[%s7953_s8 + $0x120] ss:$108 sps:$4 sm:$0xff]  }
 0x102   : > { %4092 = vmatmul.mubr.bf16.gmra.mrb[12].mxu1 %v6943_v60  ;;  %v7038_v60 = vld [vmem:[%s7951_s7 + $0x320] ss:$8 sps:$4 sm:$0xff]  }
 0x103   : > { %4659 = vmatmul.mubr.bf16.gmra.mrb[12].mxu0 %v6996_v1  ;;  %4123 = vmatpush1.bf16.msra.mxu1 %v6944_v62  ;;  %v7041_v62 = vld [vmem:[%s7951_s7 + $0xa20] ss:$8 sps:$4 sm:$0xff]  }
 0x104   : > { %4690 = vmatpush1.bf16.msra.mxu0 %v6947_v63  ;;  %4124 = vmatprep.subr.bf16.mxu1 %v6952_v3  ;;  %v7046_v63 = vld [vmem:[%s7951_s7 + $0x334] ss:$8 sps:$4 sm:$0xff]   ;;  %v7044_v3 = vld [vmem:[%s7951_s7 + $0x330] ss:$8 sps:$4 sm:$0xff]  }
 0x105   : > { %4691 = vmatprep.subr.bf16.mxu0 %v6955_v4  ;;  %4101 = vmatprep.mubr.bf16.mxu1 %v5937_v5  ;;  %v7050_v1 = vld [vmem:[%s7953_s8 + $0x1c4] ss:$108 sps:$4 sm:$0xff]   ;;  %v7047_v4 = vld [vmem:[%s7951_s7 + $0xa30] ss:$8 sps:$4 sm:$0xff]  }
 0x106   : > { %4668 = vmatprep.mubr.bf16.mxu0 %v5951_v6  ;;  %v7052_v5 = vld [vmem:[%s7953_s8 + $0x1c0] ss:$108 sps:$4 sm:$0xff]   ;;  %v7055_v6 = vld [vmem:[%s7951_s7 + $0x344] ss:$8 sps:$4 sm:$0xff]  }
 0x107   : > { %4125 = vmatpush1.bf16.msra.mxu1 %v6950_v7  ;;  %v7058_v7 = vld [vmem:[%s7951_s7 + $0xa44] ss:$8 sps:$4 sm:$0xff]  }
 0x108   : > { %4692 = vmatpush1.bf16.msra.mxu0 %v6953_v8  ;;  %4126 = vmatprep.subr.bf16.mxu1 %v6960_v9  ;;  %v7053_v8 = vld [vmem:[%s7951_s7 + $0x340] ss:$8 sps:$4 sm:$0xff]  }
 0x109   : > { %4693 = vmatprep.subr.bf16.mxu0 %v6965_v10  ;;  %v7105_v9 = vld [vmem:[%s7953_s8 + $0x1f8] ss:$108 sps:$4 sm:$0xff]  }
 0x10a   : > { %4102 = vmatmul.mubr.bf16.gmra.mrb[20].mxu1 %v5936_v11  ;;  %v7056_v10 = vld [vmem:[%s7951_s7 + $0xa40] ss:$8 sps:$4 sm:$0xff]   ;;  %v7061_v11 = vld [vmem:[%s7951_s7 + $0x354] ss:$8 sps:$4 sm:$0xff]  }
 0x10b   : > { %4669 = vmatmul.mubr.bf16.gmra.mrb[20].mxu0 %v5950_v14  ;;  %4127 = vmatpush1.bf16.msra.mxu1 %v6958_v12  ;;  %v7064_v12 = vld [vmem:[%s7951_s7 + $0xa54] ss:$8 sps:$4 sm:$0xff]  }
 0x10c   : > { %4694 = vmatpush1.bf16.msra.mxu0 %v6963_v13  ;;  %4128 = vmatprep.subr.bf16.mxu1 %v6969_v15  ;;  %v7065_v13 = vld [vmem:[%s7953_s8 + $0x29c] ss:$108 sps:$4 sm:$0xff]   ;;  %v7115_v14 = vld [vmem:[%s7953_s8 + $0x2d4] ss:$108 sps:$4 sm:$0xff]  }
 0x10d   : > { %4695 = vmatprep.subr.bf16.mxu0 %v6972_v16  ;;  %4142 = vmatprep.mubr.bf16.mxu1 %v7019_v17  ;;  %v7059_v15 = vld [vmem:[%s7951_s7 + $0x350] ss:$8 sps:$4 sm:$0xff]   ;;  %v7070_v17 = vld [vmem:[%s7951_s7 + $0x364] ss:$8 sps:$4 sm:$0xff]  }
 0x10e   : > { %4709 = vmatprep.mubr.bf16.mxu0 %v7025_v18  ;;  %v7062_v16 = vld [vmem:[%s7951_s7 + $0xa50] ss:$8 sps:$4 sm:$0xff]   ;;  %v7067_v18 = vld [vmem:[%s7953_s8 + $0x298] ss:$108 sps:$4 sm:$0xff]  }
 0x10f   : > { %4129 = vmatpush1.bf16.msra.mxu1 %v6967_v19  ;;  %v7073_v19 = vld [vmem:[%s7951_s7 + $0xa64] ss:$8 sps:$4 sm:$0xff]  }
 0x110   : > { %4696 = vmatpush1.bf16.msra.mxu0 %v6970_v20  ;;  %4130 = vmatprep.subr.bf16.mxu1 %v6975_v21  ;;  %v705_v20 = vld [vmem:[%s7953_s8 + $0x370] sm:$0xff] }
 0x111   : > { %4697 = vmatprep.subr.bf16.mxu0 %v6980_v22  ;;  %v7120_v21 = vld [vmem:[%s7953_s8 + $0x2d0] ss:$108 sps:$4 sm:$0xff]   ;;  %v712_v22 = vld [vmem:[%s7953_s8 + $0x3a8] sm:$0xff] }
 0x113   : > { %4131 = vmatpush1.bf16.msra.mxu1 %v6973_v23  ;;  %v7068_v23 = vld [vmem:[%s7951_s7 + $0x360] ss:$8 sps:$4 sm:$0xff]  }
 0x114   : > { %4698 = vmatpush1.bf16.msra.mxu0 %v6978_v24  ;;  %4132 = vmatprep.subr.bf16.mxu1 %v6984_v25  ;;  %v7071_v24 = vld [vmem:[%s7951_s7 + $0xa60] ss:$8 sps:$4 sm:$0xff]   ;;  %v7076_v25 = vld [vmem:[%s7951_s7 + $0x374] ss:$8 sps:$4 sm:$0xff]  }
 0x115   : > { %4699 = vmatprep.subr.bf16.mxu0 %v6987_v26  ;;  %v7079_v26 = vld [vmem:[%s7951_s7 + $0xa74] ss:$8 sps:$4 sm:$0xff]  }
 0x117   : > { %4133 = vmatpush1.bf16.msra.mxu1 %v6982_v27  ;;  %v5939_v27 = vcombine.high %v705_v20, %v705_v20 }
 0x118   : > { %4700 = vmatpush1.bf16.msra.mxu0 %v6985_v28  ;;  %4134 = vmatprep.subr.bf16.mxu1 %v6990_v29  ;;  %v5953_v28 = vcombine.high %v712_v22, %v712_v22  ;;  %v7074_v29 = vld [vmem:[%s7951_s7 + $0x370] ss:$8 sps:$4 sm:$0xff]  }
 0x119   : > { %4701 = vmatprep.subr.bf16.mxu0 %v6995_v30  ;;  %v7077_v30 = vld [vmem:[%s7951_s7 + $0xa70] ss:$8 sps:$4 sm:$0xff]  }
 0x11b   : > { %4135 = vmatpush1.bf16.msra.mxu1 %v6988_v31  ;;  %v7084_v31 = vld [vmem:[%s7951_s7 + $0x384] ss:$8 sps:$4 sm:$0xff]  }
 0x11c   : > { %4702 = vmatpush1.bf16.msra.mxu0 %v6993_v32  ;;  %4136 = vmatprep.subr.bf16.mxu1 %v6999_v33  ;;  %v7089_v32 = vld [vmem:[%s7951_s7 + $0xa84] ss:$8 sps:$4 sm:$0xff]   ;;  %v5938_v33 = vcombine.low %v705_v20, %v705_v20 }
 0x11d   : > { %4703 = vmatprep.subr.bf16.mxu0 %v7002_v34  ;;  %v7082_v34 = vld [vmem:[%s7951_s7 + $0x380] ss:$8 sps:$4 sm:$0xff]   ;;  %v7214_v20 = vld [vmem:[%s7953_s8 + $0x128] ss:$108 sps:$4 sm:$0xff]  }
 0x11f   : > { %4137 = vmatpush1.bf16.msra.mxu1 %v6997_v35  ;;  %v5952_v35 = vcombine.low %v712_v22, %v712_v22  ;;  %v7173_v22 = vld [vmem:[%s7951_s7 + $0xb34] ss:$8 sps:$4 sm:$0xff]  }
 0x120   : > { %4704 = vmatpush1.bf16.msra.mxu0 %v7000_v36  ;;  %4138 = vmatprep.subr.bf16.mxu1 %v7005_v37  ;;  %v7087_v36 = vld [vmem:[%s7951_s7 + $0xa80] ss:$8 sps:$4 sm:$0xff]   ;;  %v7093_v37 = vld [vmem:[%s7951_s7 + $0x394] ss:$8 sps:$4 sm:$0xff]  }
 0x121   : > { %4705 = vmatprep.subr.bf16.mxu0 %v7009_v38  ;;  %v7096_v38 = vld [vmem:[%s7951_s7 + $0xa94] ss:$8 sps:$4 sm:$0xff]  }
 0x123   : > { %4139 = vmatpush1.bf16.msra.mxu1 %v7003_v39  ;;  %v7143_v39 = vld [vmem:[%s7953_s8 + $0x1c] ss:$108 sps:$4 sm:$0xff]  }
 0x124   : > { %4706 = vmatpush1.bf16.msra.mxu0 %v7007_v40  ;;  %4140 = vmatprep.subr.bf16.mxu1 %v7013_v41  ;;  %v7149_v40 = vld [vmem:[%s7953_s8 + $0x54] ss:$108 sps:$4 sm:$0xff]  }
 0x125   : > { %4707 = vmatprep.subr.bf16.mxu0 %v7016_v42  ;;  %v7091_v41 = vld [vmem:[%s7951_s7 + $0x390] ss:$8 sps:$4 sm:$0xff]  }
 0x126   : > { %v7094_v42 = vld [vmem:[%s7951_s7 + $0xa90] ss:$8 sps:$4 sm:$0xff]  }
 0x127   : > { %4141 = vmatpush1.bf16.msra.mxu1 %v7011_v43  ;;  %v7099_v43 = vld [vmem:[%s7951_s7 + $0x3a4] ss:$8 sps:$4 sm:$0xff]  }
 0x128   : > { %4708 = vmatpush1.bf16.msra.mxu0 %v7014_v44  ;;  %4191 = vmatprep.subr.bf16.mxu1 %v7022_v46  ;;  %v7104_v44 = vld [vmem:[%s7951_s7 + $0xaa4] ss:$8 sps:$4 sm:$0xff]   ;;  %v7102_v46 = vld [vmem:[%s7951_s7 + $0xaa0] ss:$8 sps:$4 sm:$0xff]  }
 0x129   : > { %4758 = vmatprep.subr.bf16.mxu0 %v7028_v47  ;;  %v7108_v47 = vld [vmem:[%s7951_s7 + $0x3b4] ss:$8 sps:$4 sm:$0xff]  }
 0x12a   : > { %4143 = vmatmul.mubr.bf16.vlgmr.msra.gmra.mrb[0].mxu1 %v7017_v45  ;;  %v7097_v45 = vld [vmem:[%s7951_s7 + $0x3a0] ss:$8 sps:$4 sm:$0xff]  }
 0x12b   : > { %4710 = vmatmul.mubr.bf16.vlgmr.msra.gmra.mrb[0].mxu0 %v7023_v49  ;;  %4192 = vmatpush1.bf16.msra.mxu1 %v7020_v48  ;;  %v7111_v48 = vld [vmem:[%s7951_s7 + $0xab4] ss:$8 sps:$4 sm:$0xff]   ;;  %v7106_v49 = vld [vmem:[%s7951_s7 + $0x3b0] ss:$8 sps:$4 sm:$0xff]  }
 0x12c   : > { %4759 = vmatpush1.bf16.msra.mxu0 %v7026_v50  ;;  %4193 = vmatprep.subr.bf16.mxu1 %v7031_v51  ;;  %v7109_v50 = vld [vmem:[%s7951_s7 + $0xab0] ss:$8 sps:$4 sm:$0xff]   ;;  %v7114_v51 = vld [vmem:[%s7951_s7 + $0x3c4] ss:$8 sps:$4 sm:$0xff]  }
 0x12d   : > { %4760 = vmatprep.subr.bf16.mxu0 %v7034_v52  ;;  %4152 = vmatprep.mubr.bf16.mxu1 %v7035_v53  ;;  %v7119_v52 = vld [vmem:[%s7951_s7 + $0xac4] ss:$8 sps:$4 sm:$0xff]   ;;  %v7112_v53 = vld [vmem:[%s7951_s7 + $0x3c0] ss:$8 sps:$4 sm:$0xff]  }
 0x12e   : > { %4719 = vmatprep.mubr.bf16.mxu0 %v7085_v54  ;;  %v7117_v54 = vld [vmem:[%s7951_s7 + $0xac0] ss:$8 sps:$4 sm:$0xff]  }
 0x12f   : > { %4194 = vmatpush1.bf16.msra.mxu1 %v7029_v55  ;;  %v7123_v55 = vld [vmem:[%s7951_s7 + $0x3d4] ss:$8 sps:$4 sm:$0xff]  }
 0x130   : > { %4761 = vmatpush1.bf16.msra.mxu0 %v7032_v56  ;;  %4195 = vmatprep.subr.bf16.mxu1 %v7040_v57  ;;  %v7126_v56 = vld [vmem:[%s7951_s7 + $0xad4] ss:$8 sps:$4 sm:$0xff]   ;;  %v7121_v57 = vld [vmem:[%s7951_s7 + $0x3d0] ss:$8 sps:$4 sm:$0xff]  }
 0x131   : > { %4762 = vmatprep.subr.bf16.mxu0 %v7043_v58  ;;  %v7124_v58 = vld [vmem:[%s7951_s7 + $0xad0] ss:$8 sps:$4 sm:$0xff]  }
 0x132   : > { %4153 = vmatmul.mubr.bf16.gmra.mrb[4].mxu1 %v7037_v59  ;;  %v7129_v59 = vld [vmem:[%s7951_s7 + $0x3e4] ss:$8 sps:$4 sm:$0xff]  }
 0x133   : > { %4720 = vmatmul.mubr.bf16.gmra.mrb[4].mxu0 %v7090_v61  ;;  %4196 = vmatpush1.bf16.msra.mxu1 %v7038_v60  ;;  %v7133_v60 = vld [vmem:[%s7951_s7 + $0xae4] ss:$8 sps:$4 sm:$0xff]   ;;  %v7127_v61 = vld [vmem:[%s7951_s7 + $0x3e0] ss:$8 sps:$4 sm:$0xff]  }
 0x134   : > { %4763 = vmatpush1.bf16.msra.mxu0 %v7041_v62  ;;  %4197 = vmatprep.subr.bf16.mxu1 %v7046_v63  ;;  %v7131_v62 = vld [vmem:[%s7951_s7 + $0xae0] ss:$8 sps:$4 sm:$0xff]   ;;  %v7137_v63 = vld [vmem:[%s7951_s7 + $0x3f4] ss:$8 sps:$4 sm:$0xff]  }
 0x135   : > { %4764 = vmatprep.subr.bf16.mxu0 %v7049_v0  ;;  %4162 = vmatprep.mubr.bf16.mxu1 %v7050_v1  ;;  %v7140_v0 = vld [vmem:[%s7951_s7 + $0xaf4] ss:$8 sps:$4 sm:$0xff]   ;;  %v7135_v1 = vld [vmem:[%s7951_s7 + $0x3f0] ss:$8 sps:$4 sm:$0xff]  }
 0x136   : > { %4729 = vmatprep.mubr.bf16.mxu0 %v7100_v2  ;;  %v7138_v2 = vld [vmem:[%s7951_s7 + $0xaf0] ss:$8 sps:$4 sm:$0xff]  }
 0x137   : > { %4198 = vmatpush1.bf16.msra.mxu1 %v7044_v3  ;;  %v7146_v3 = vld [vmem:[%s7951_s7 + $0x404] ss:$8 sps:$4 sm:$0xff]  }
 0x138   : > { %4765 = vmatpush1.bf16.msra.mxu0 %v7047_v4  ;;  %4199 = vmatprep.subr.bf16.mxu1 %v7055_v6  ;;  %v7152_v4 = vld [vmem:[%s7951_s7 + $0xb04] ss:$8 sps:$4 sm:$0xff]   ;;  %v7144_v6 = vld [vmem:[%s7951_s7 + $0x400] ss:$8 sps:$4 sm:$0xff]  }
 0x139   : > { %4766 = vmatprep.subr.bf16.mxu0 %v7058_v7  ;;  %v7147_v7 = vld [vmem:[%s7953_s8 + $0x50] ss:$108 sps:$4 sm:$0xff]  }
 0x13a   : > { %4163 = vmatmul.mubr.bf16.gmra.mrb[8].mxu1 %v7052_v5  ;;  %v7141_v5 = vld [vmem:[%s7953_s8 + $0x18] ss:$108 sps:$4 sm:$0xff]  }
 0x13b   : > { %4730 = vmatmul.mubr.bf16.gmra.mrb[8].mxu0 %v7105_v9  ;;  %4200 = vmatpush1.bf16.msra.mxu1 %v7053_v8  ;;  %v7150_v8 = vld [vmem:[%s7951_s7 + $0xb00] ss:$8 sps:$4 sm:$0xff]   ;;  %v7155_v9 = vld [vmem:[%s7951_s7 + $0x414] ss:$8 sps:$4 sm:$0xff]  }
 0x13c   : > { %4767 = vmatpush1.bf16.msra.mxu0 %v7056_v10  ;;  %4201 = vmatprep.subr.bf16.mxu1 %v7061_v11  ;;  %v7158_v10 = vld [vmem:[%s7951_s7 + $0xb14] ss:$8 sps:$4 sm:$0xff]  }
 0x13d   : > { %4768 = vmatprep.subr.bf16.mxu0 %v7064_v12  ;;  %4172 = vmatprep.mubr.bf16.mxu1 %v7065_v13  ;;  %v7159_v11 = vld [vmem:[%s7953_s8 + $0xf4] ss:$108 sps:$4 sm:$0xff]   ;;  %v7209_v12 = vld [vmem:[%s7953_s8 + $0x12c] ss:$108 sps:$4 sm:$0xff]  }
 0x13e   : > { %4739 = vmatprep.mubr.bf16.mxu0 %v7115_v14  ;;  %v7153_v13 = vld [vmem:[%s7951_s7 + $0x410] ss:$8 sps:$4 sm:$0xff]  }
 0x13f   : > { %4202 = vmatpush1.bf16.msra.mxu1 %v7059_v15  ;;  %v7156_v14 = vld [vmem:[%s7951_s7 + $0xb10] ss:$8 sps:$4 sm:$0xff]   ;;  %v7164_v15 = vld [vmem:[%s7951_s7 + $0x424] ss:$8 sps:$4 sm:$0xff]  }
 0x140   : > { %4769 = vmatpush1.bf16.msra.mxu0 %v7062_v16  ;;  %4203 = vmatprep.subr.bf16.mxu1 %v7070_v17  ;;  %v7167_v16 = vld [vmem:[%s7951_s7 + $0xb24] ss:$8 sps:$4 sm:$0xff]  }
 0x141   : > { %4770 = vmatprep.subr.bf16.mxu0 %v7073_v19  ;;  %v7161_v17 = vld [vmem:[%s7953_s8 + $0xf0] ss:$108 sps:$4 sm:$0xff]  }
 0x142   : > { %4173 = vmatmul.mubr.bf16.gmra.mrb[12].mxu1 %v7067_v18  ;;  %v7162_v18 = vld [vmem:[%s7951_s7 + $0x420] ss:$8 sps:$4 sm:$0xff]  }
 0x143   : > { %4740 = vmatmul.mubr.bf16.gmra.mrb[12].mxu0 %v7120_v21  ;;  %4204 = vmatpush1.bf16.msra.mxu1 %v7068_v23  ;;  %v7165_v19 = vld [vmem:[%s7951_s7 + $0xb20] ss:$8 sps:$4 sm:$0xff]   ;;  %v7170_v21 = vld [vmem:[%s7951_s7 + $0x434] ss:$8 sps:$4 sm:$0xff]  }
 0x144   : > { %4771 = vmatpush1.bf16.msra.mxu0 %v7071_v24  ;;  %4205 = vmatprep.subr.bf16.mxu1 %v7076_v25  ;;  %v7174_v23 = vld [vmem:[%s7953_s8 + $0x1cc] ss:$108 sps:$4 sm:$0xff]   ;;  %v7224_v24 = vld [vmem:[%s7953_s8 + $0x204] ss:$108 sps:$4 sm:$0xff]   ;;  %v7168_v25 = vld [vmem:[%s7951_s7 + $0x430] ss:$8 sps:$4 sm:$0xff]  }
 0x145   : > { %4772 = vmatprep.subr.bf16.mxu0 %v7079_v26  ;;  %4182 = vmatprep.mubr.bf16.mxu1 %v5939_v27  ;;  %v7171_v26 = vld [vmem:[%s7951_s7 + $0xb30] ss:$8 sps:$4 sm:$0xff]   ;;  %v7179_v27 = vld [vmem:[%s7951_s7 + $0x444] ss:$8 sps:$4 sm:$0xff]  }
 0x146   : > { %4749 = vmatprep.mubr.bf16.mxu0 %v5953_v28  ;;  %v7182_v28 = vld [vmem:[%s7951_s7 + $0xb44] ss:$8 sps:$4 sm:$0xff]  }
 0x147   : > { %4206 = vmatpush1.bf16.msra.mxu1 %v7074_v29  ;;  %v7176_v29 = vld [vmem:[%s7953_s8 + $0x1c8] ss:$108 sps:$4 sm:$0xff]  }
 0x148   : > { %4773 = vmatpush1.bf16.msra.mxu0 %v7077_v30  ;;  %4207 = vmatprep.subr.bf16.mxu1 %v7084_v31  ;;  %v7177_v30 = vld [vmem:[%s7951_s7 + $0x440] ss:$8 sps:$4 sm:$0xff]  }
 0x149   : > { %4774 = vmatprep.subr.bf16.mxu0 %v7089_v32  ;;  %v7180_v31 = vld [vmem:[%s7951_s7 + $0xb40] ss:$8 sps:$4 sm:$0xff]  }
 0x14a   : > { %4183 = vmatmul.mubr.bf16.gmra.mrb[24].mxu1 %v5938_v33  ;;  %v7229_v32 = vld [vmem:[%s7953_s8 + $0x200] ss:$108 sps:$4 sm:$0xff]  }
 0x14b   : > { %4750 = vmatmul.mubr.bf16.gmra.mrb[24].mxu0 %v5952_v35  ;;  %4208 = vmatpush1.bf16.msra.mxu1 %v7082_v34  ;;  %v7185_v33 = vld [vmem:[%s7951_s7 + $0x454] ss:$8 sps:$4 sm:$0xff]  }
 0x14c   : > { %4775 = vmatpush1.bf16.msra.mxu0 %v7087_v36  ;;  %4209 = vmatprep.subr.bf16.mxu1 %v7093_v37  ;;  %v7188_v34 = vld [vmem:[%s7951_s7 + $0xb54] ss:$8 sps:$4 sm:$0xff]   ;;  %v7239_v36 = vld [vmem:[%s7953_s8 + $0x2dc] ss:$108 sps:$4 sm:$0xff]  }
 0x14d   : > { %4776 = vmatprep.subr.bf16.mxu0 %v7096_v38  ;;  %4223 = vmatprep.mubr.bf16.mxu1 %v7143_v39  ;;  %v7189_v35 = vld [vmem:[%s7953_s8 + $0x2a4] ss:$108 sps:$4 sm:$0xff]   ;;  %v7183_v37 = vld [vmem:[%s7951_s7 + $0x450] ss:$8 sps:$4 sm:$0xff]  }
 0x14e   : > { %4790 = vmatprep.mubr.bf16.mxu0 %v7149_v40  ;;  %v7186_v38 = vld [vmem:[%s7951_s7 + $0xb50] ss:$8 sps:$4 sm:$0xff]   ;;  %v7194_v39 = vld [vmem:[%s7951_s7 + $0x464] ss:$8 sps:$4 sm:$0xff]  }
 0x14f   : > { %4210 = vmatpush1.bf16.msra.mxu1 %v7091_v41  ;;  %v7191_v40 = vld [vmem:[%s7953_s8 + $0x2a0] ss:$108 sps:$4 sm:$0xff]   ;;  %v7197_v41 = vld [vmem:[%s7951_s7 + $0xb64] ss:$8 sps:$4 sm:$0xff]  }
 0x150   : > { %4777 = vmatpush1.bf16.msra.mxu0 %v7094_v42  ;;  %4211 = vmatprep.subr.bf16.mxu1 %v7099_v43  ;;  %v7192_v42 = vld [vmem:[%s7951_s7 + $0x460] ss:$8 sps:$4 sm:$0xff]  }
 0x151   : > { %4778 = vmatprep.subr.bf16.mxu0 %v7104_v44  ;;  %v7195_v43 = vld [vmem:[%s7951_s7 + $0xb60] ss:$8 sps:$4 sm:$0xff]  }
 0x152   : > { %v706_v44 = vld [vmem:[%s7953_s8 + $0x378] sm:$0xff] }
 0x153   : > { %4212 = vmatpush1.bf16.msra.mxu1 %v7097_v45  ;;  %v7244_v45 = vld [vmem:[%s7953_s8 + $0x2d8] ss:$108 sps:$4 sm:$0xff]  }
 0x154   : > { %4779 = vmatpush1.bf16.msra.mxu0 %v7102_v46  ;;  %4213 = vmatprep.subr.bf16.mxu1 %v7108_v47  ;;  %v713_v46 = vld [vmem:[%s7953_s8 + $0x3b0] sm:$0xff]  ;;  %v7200_v47 = vld [vmem:[%s7951_s7 + $0x474] ss:$8 sps:$4 sm:$0xff]  }
 0x155   : > { %4780 = vmatprep.subr.bf16.mxu0 %v7111_v48  ;;  %v7203_v48 = vld [vmem:[%s7951_s7 + $0xb74] ss:$8 sps:$4 sm:$0xff]  }
 0x157   : > { %4214 = vmatpush1.bf16.msra.mxu1 %v7106_v49  ;;  %v5941_v49 = vcombine.high %v706_v44, %v706_v44 }
 0x158   : > { %4781 = vmatpush1.bf16.msra.mxu0 %v7109_v50  ;;  %4215 = vmatprep.subr.bf16.mxu1 %v7114_v51  ;;  %v5955_v50 = vcombine.high %v713_v46, %v713_v46  ;;  %v7198_v51 = vld [vmem:[%s7951_s7 + $0x470] ss:$8 sps:$4 sm:$0xff]  }
 0x159   : > { %4782 = vmatprep.subr.bf16.mxu0 %v7119_v52  ;;  %v7201_v52 = vld [vmem:[%s7951_s7 + $0xb70] ss:$8 sps:$4 sm:$0xff]  }
 0x15b   : > { %4216 = vmatpush1.bf16.msra.mxu1 %v7112_v53  ;;  %v7208_v53 = vld [vmem:[%s7951_s7 + $0x484] ss:$8 sps:$4 sm:$0xff]  }
 0x15c   : > { %4783 = vmatpush1.bf16.msra.mxu0 %v7117_v54  ;;  %4217 = vmatprep.subr.bf16.mxu1 %v7123_v55  ;;  %v7213_v54 = vld [vmem:[%s7951_s7 + $0xb84] ss:$8 sps:$4 sm:$0xff]   ;;  %v5940_v55 = vcombine.low %v706_v44, %v706_v44  ;;  %v7280_v44 = vld [vmem:[%s7951_s7 + $0xc10] ss:$8 sps:$4 sm:$0xff]  }
 0x15d   : > { %4784 = vmatprep.subr.bf16.mxu0 %v7126_v56  ;;  %v7206_v56 = vld [vmem:[%s7951_s7 + $0x480] ss:$8 sps:$4 sm:$0xff]  }
 0x15f   : > { %4218 = vmatpush1.bf16.msra.mxu1 %v7121_v57  ;;  %v5954_v57 = vcombine.low %v713_v46, %v713_v46  ;;  %v7285_v46 = vld [vmem:[%s7953_s8 + $0xf8] ss:$108 sps:$4 sm:$0xff]  }
 0x160   : > { %4785 = vmatpush1.bf16.msra.mxu0 %v7124_v58  ;;  %4219 = vmatprep.subr.bf16.mxu1 %v7129_v59  ;;  %v7211_v58 = vld [vmem:[%s7951_s7 + $0xb80] ss:$8 sps:$4 sm:$0xff]   ;;  %v7217_v59 = vld [vmem:[%s7951_s7 + $0x494] ss:$8 sps:$4 sm:$0xff]  }
 0x161   : > { %4786 = vmatprep.subr.bf16.mxu0 %v7133_v60  ;;  %v7220_v60 = vld [vmem:[%s7951_s7 + $0xb94] ss:$8 sps:$4 sm:$0xff]  }
 0x163   : > { %4220 = vmatpush1.bf16.msra.mxu1 %v7127_v61  ;;  %v7267_v61 = vld [vmem:[%s7953_s8 + $0x24] ss:$108 sps:$4 sm:$0xff]  }
 0x164   : > { %4787 = vmatpush1.bf16.msra.mxu0 %v7131_v62  ;;  %4221 = vmatprep.subr.bf16.mxu1 %v7137_v63  ;;  %v7273_v62 = vld [vmem:[%s7953_s8 + $0x5c] ss:$108 sps:$4 sm:$0xff]  }
 0x165   : > { %4788 = vmatprep.subr.bf16.mxu0 %v7140_v0  ;;  %v7215_v63 = vld [vmem:[%s7951_s7 + $0x490] ss:$8 sps:$4 sm:$0xff]  }
 0x166   : > { %v7218_v0 = vld [vmem:[%s7951_s7 + $0xb90] ss:$8 sps:$4 sm:$0xff]  }
 0x167   : > { %4222 = vmatpush1.bf16.msra.mxu1 %v7135_v1  ;;  %v7223_v1 = vld [vmem:[%s7951_s7 + $0x4a4] ss:$8 sps:$4 sm:$0xff]  }
 0x168   : > { %4789 = vmatpush1.bf16.msra.mxu0 %v7138_v2  ;;  %4272 = vmatprep.subr.bf16.mxu1 %v7146_v3  ;;  %v7228_v2 = vld [vmem:[%s7951_s7 + $0xba4] ss:$8 sps:$4 sm:$0xff]   ;;  %v7221_v3 = vld [vmem:[%s7951_s7 + $0x4a0] ss:$8 sps:$4 sm:$0xff]  }
 0x169   : > { %4839 = vmatprep.subr.bf16.mxu0 %v7152_v4  ;;  %v7226_v4 = vld [vmem:[%s7951_s7 + $0xba0] ss:$8 sps:$4 sm:$0xff]  }
 0x16a   : > { %4224 = vmatmul.mubr.bf16.vlgmr.msra.gmra.mrb[0].mxu1 %v7141_v5  ;;  %v7232_v5 = vld [vmem:[%s7951_s7 + $0x4b4] ss:$8 sps:$4 sm:$0xff]  }
 0x16b   : > { %4791 = vmatmul.mubr.bf16.vlgmr.msra.gmra.mrb[0].mxu0 %v7147_v7  ;;  %4273 = vmatpush1.bf16.msra.mxu1 %v7144_v6  ;;  %v7235_v6 = vld [vmem:[%s7951_s7 + $0xbb4] ss:$8 sps:$4 sm:$0xff]   ;;  %v7230_v7 = vld [vmem:[%s7951_s7 + $0x4b0] ss:$8 sps:$4 sm:$0xff]  }
 0x16c   : > { %4840 = vmatpush1.bf16.msra.mxu0 %v7150_v8  ;;  %4274 = vmatprep.subr.bf16.mxu1 %v7155_v9  ;;  %v7233_v8 = vld [vmem:[%s7951_s7 + $0xbb0] ss:$8 sps:$4 sm:$0xff]   ;;  %v7238_v9 = vld [vmem:[%s7951_s7 + $0x4c4] ss:$8 sps:$4 sm:$0xff]  }
 0x16d   : > { %4841 = vmatprep.subr.bf16.mxu0 %v7158_v10  ;;  %4233 = vmatprep.mubr.bf16.mxu1 %v7159_v11  ;;  %v7243_v10 = vld [vmem:[%s7951_s7 + $0xbc4] ss:$8 sps:$4 sm:$0xff]   ;;  %v7236_v11 = vld [vmem:[%s7951_s7 + $0x4c0] ss:$8 sps:$4 sm:$0xff]  }
 0x16e   : > { %4800 = vmatprep.mubr.bf16.mxu0 %v7209_v12  ;;  %v7241_v12 = vld [vmem:[%s7951_s7 + $0xbc0] ss:$8 sps:$4 sm:$0xff]  }
 0x16f   : > { %4275 = vmatpush1.bf16.msra.mxu1 %v7153_v13  ;;  %v7247_v13 = vld [vmem:[%s7951_s7 + $0x4d4] ss:$8 sps:$4 sm:$0xff]  }
 0x170   : > { %4842 = vmatpush1.bf16.msra.mxu0 %v7156_v14  ;;  %4276 = vmatprep.subr.bf16.mxu1 %v7164_v15  ;;  %v7250_v14 = vld [vmem:[%s7951_s7 + $0xbd4] ss:$8 sps:$4 sm:$0xff]   ;;  %v7245_v15 = vld [vmem:[%s7951_s7 + $0x4d0] ss:$8 sps:$4 sm:$0xff]  }
 0x171   : > { %4843 = vmatprep.subr.bf16.mxu0 %v7167_v16  ;;  %v7248_v16 = vld [vmem:[%s7951_s7 + $0xbd0] ss:$8 sps:$4 sm:$0xff]  }
 0x172   : > { %4234 = vmatmul.mubr.bf16.gmra.mrb[4].mxu1 %v7161_v17  ;;  %v7253_v17 = vld [vmem:[%s7951_s7 + $0x4e4] ss:$8 sps:$4 sm:$0xff]  }
 0x173   : > { %4801 = vmatmul.mubr.bf16.gmra.mrb[4].mxu0 %v7214_v20  ;;  %4277 = vmatpush1.bf16.msra.mxu1 %v7162_v18  ;;  %v7257_v18 = vld [vmem:[%s7951_s7 + $0xbe4] ss:$8 sps:$4 sm:$0xff]  }
 0x174   : > { %4844 = vmatpush1.bf16.msra.mxu0 %v7165_v19  ;;  %4278 = vmatprep.subr.bf16.mxu1 %v7170_v21  ;;  %v7251_v21 = vld [vmem:[%s7951_s7 + $0x4e0] ss:$8 sps:$4 sm:$0xff]  }
 0x175   : > { %4845 = vmatprep.subr.bf16.mxu0 %v7173_v22  ;;  %4243 = vmatprep.mubr.bf16.mxu1 %v7174_v23 }
 0x176   : > { %4810 = vmatprep.mubr.bf16.mxu0 %v7224_v24  ;;  %v7255_v24 = vld [vmem:[%s7951_s7 + $0xbe0] ss:$8 sps:$4 sm:$0xff]  }
 0x177   : > { %4279 = vmatpush1.bf16.msra.mxu1 %v7168_v25  ;;  %v7261_v25 = vld [vmem:[%s7951_s7 + $0x4f4] ss:$8 sps:$4 sm:$0xff]  }
 0x178   : > { %4846 = vmatpush1.bf16.msra.mxu0 %v7171_v26  ;;  %4280 = vmatprep.subr.bf16.mxu1 %v7179_v27 }
 0x179   : > { %4847 = vmatprep.subr.bf16.mxu0 %v7182_v28  ;;  %v7264_v28 = vld [vmem:[%s7951_s7 + $0xbf4] ss:$8 sps:$4 sm:$0xff]  }
 0x17a   : > { %4244 = vmatmul.mubr.bf16.gmra.mrb[8].mxu1 %v7176_v29 }
 0x17b   : > { %4811 = vmatmul.mubr.bf16.gmra.mrb[8].mxu0 %v7229_v32  ;;  %4281 = vmatpush1.bf16.msra.mxu1 %v7177_v30  ;;  %v7262_v32 = vld [vmem:[%s7951_s7 + $0xbf0] ss:$8 sps:$4 sm:$0xff]  }
 0x17c   : > { %4848 = vmatpush1.bf16.msra.mxu0 %v7180_v31  ;;  %4282 = vmatprep.subr.bf16.mxu1 %v7185_v33  ;;  %v7259_v31 = vld [vmem:[%s7951_s7 + $0x4f0] ss:$8 sps:$4 sm:$0xff]   ;;  %v7270_v33 = vld [vmem:[%s7951_s7 + $0x504] ss:$8 sps:$4 sm:$0xff]  }
 0x17d   : > { %4849 = vmatprep.subr.bf16.mxu0 %v7188_v34  ;;  %4253 = vmatprep.mubr.bf16.mxu1 %v7189_v35  ;;  %v7265_v34 = vld [vmem:[%s7953_s8 + $0x20] ss:$108 sps:$4 sm:$0xff]   ;;  %v7276_v35 = vld [vmem:[%s7951_s7 + $0xc04] ss:$8 sps:$4 sm:$0xff]  }
 0x17e   : > { %4820 = vmatprep.mubr.bf16.mxu0 %v7239_v36  ;;  %v7268_v36 = vld [vmem:[%s7951_s7 + $0x500] ss:$8 sps:$4 sm:$0xff]  }
 0x17f   : > { %4283 = vmatpush1.bf16.msra.mxu1 %v7183_v37  ;;  %v7271_v37 = vld [vmem:[%s7953_s8 + $0x58] ss:$108 sps:$4 sm:$0xff]  }
 0x180   : > { %4850 = vmatpush1.bf16.msra.mxu0 %v7186_v38  ;;  %4284 = vmatprep.subr.bf16.mxu1 %v7194_v39  ;;  %v7274_v38 = vld [vmem:[%s7951_s7 + $0xc00] ss:$8 sps:$4 sm:$0xff]   ;;  %v7279_v39 = vld [vmem:[%s7951_s7 + $0x514] ss:$8 sps:$4 sm:$0xff]  }
 0x181   : > { %4851 = vmatprep.subr.bf16.mxu0 %v7197_v41  ;;  %v7283_v41 = vld [vmem:[%s7953_s8 + $0xfc] ss:$108 sps:$4 sm:$0xff]  }
 0x182   : > { %4254 = vmatmul.mubr.bf16.gmra.mrb[12].mxu1 %v7191_v40  ;;  %v7282_v40 = vld [vmem:[%s7951_s7 + $0xc14] ss:$8 sps:$4 sm:$0xff]  }
 0x183   : > { %4821 = vmatmul.mubr.bf16.gmra.mrb[12].mxu0 %v7244_v45  ;;  %4285 = vmatpush1.bf16.msra.mxu1 %v7192_v42  ;;  %v7329_v42 = vld [vmem:[%s7953_s8 + $0x134] ss:$108 sps:$4 sm:$0xff]  }
 0x184   : > { %4852 = vmatpush1.bf16.msra.mxu0 %v7195_v43  ;;  %4286 = vmatprep.subr.bf16.mxu1 %v7200_v47  ;;  %v7277_v43 = vld [vmem:[%s7951_s7 + $0x510] ss:$8 sps:$4 sm:$0xff]   ;;  %v7288_v45 = vld [vmem:[%s7951_s7 + $0x524] ss:$8 sps:$4 sm:$0xff]  }
 0x185   : > { %4853 = vmatprep.subr.bf16.mxu0 %v7203_v48  ;;  %4263 = vmatprep.mubr.bf16.mxu1 %v5941_v49  ;;  %v7291_v47 = vld [vmem:[%s7951_s7 + $0xc24] ss:$8 sps:$4 sm:$0xff]   ;;  %v7286_v48 = vld [vmem:[%s7951_s7 + $0x520] ss:$8 sps:$4 sm:$0xff]  }
 0x186   : > { %4830 = vmatprep.mubr.bf16.mxu0 %v5955_v50  ;;  %v7335_v49 = vld [vmem:[%s7953_s8 + $0x130] ss:$108 sps:$4 sm:$0xff]  }
 0x187   : > { %4287 = vmatpush1.bf16.msra.mxu1 %v7198_v51  ;;  %v7289_v50 = vld [vmem:[%s7951_s7 + $0xc20] ss:$8 sps:$4 sm:$0xff]   ;;  %v7294_v51 = vld [vmem:[%s7951_s7 + $0x534] ss:$8 sps:$4 sm:$0xff]  }
 0x188   : > { %4854 = vmatpush1.bf16.msra.mxu0 %v7201_v52  ;;  %4288 = vmatprep.subr.bf16.mxu1 %v7208_v53  ;;  %v7297_v52 = vld [vmem:[%s7951_s7 + $0xc34] ss:$8 sps:$4 sm:$0xff]  }
 0x189   : > { %4855 = vmatprep.subr.bf16.mxu0 %v7213_v54  ;;  %v7298_v53 = vld [vmem:[%s7953_s8 + $0x1d4] ss:$108 sps:$4 sm:$0xff]   ;;  %v7345_v54 = vld [vmem:[%s7953_s8 + $0x20c] ss:$108 sps:$4 sm:$0xff]  }
 0x18a   : > { %4264 = vmatmul.mubr.bf16.gmra.mrb[28].mxu1 %v5940_v55  ;;  %v7292_v55 = vld [vmem:[%s7951_s7 + $0x530] ss:$8 sps:$4 sm:$0xff]  }
 0x18b   : > { %4831 = vmatmul.mubr.bf16.gmra.mrb[28].mxu0 %v5954_v57  ;;  %4289 = vmatpush1.bf16.msra.mxu1 %v7206_v56  ;;  %v7295_v56 = vld [vmem:[%s7951_s7 + $0xc30] ss:$8 sps:$4 sm:$0xff]   ;;  %v7303_v57 = vld [vmem:[%s7951_s7 + $0x544] ss:$8 sps:$4 sm:$0xff]  }
 0x18c   : > { %4856 = vmatpush1.bf16.msra.mxu0 %v7211_v58  ;;  %4290 = vmatprep.subr.bf16.mxu1 %v7217_v59  ;;  %v7300_v58 = vld [vmem:[%s7953_s8 + $0x1d0] ss:$108 sps:$4 sm:$0xff]  }
 0x18d   : > { %4857 = vmatprep.subr.bf16.mxu0 %v7220_v60  ;;  %4304 = vmatprep.mubr.bf16.mxu1 %v7267_v61  ;;  %v7306_v59 = vld [vmem:[%s7951_s7 + $0xc44] ss:$8 sps:$4 sm:$0xff]   ;;  %v7301_v60 = vld [vmem:[%s7951_s7 + $0x540] ss:$8 sps:$4 sm:$0xff]  }
 0x18e   : > { %4871 = vmatprep.mubr.bf16.mxu0 %v7273_v62  ;;  %v7350_v61 = vld [vmem:[%s7953_s8 + $0x208] ss:$108 sps:$4 sm:$0xff]   ;;  %v7304_v62 = vld [vmem:[%s7951_s7 + $0xc40] ss:$8 sps:$4 sm:$0xff]  }
 0x18f   : > { %4291 = vmatpush1.bf16.msra.mxu1 %v7215_v63  ;;  %v7309_v63 = vld [vmem:[%s7951_s7 + $0x554] ss:$8 sps:$4 sm:$0xff]  }
 0x190   : > { %4858 = vmatpush1.bf16.msra.mxu0 %v7218_v0  ;;  %4292 = vmatprep.subr.bf16.mxu1 %v7223_v1  ;;  %v7312_v0 = vld [vmem:[%s7951_s7 + $0xc54] ss:$8 sps:$4 sm:$0xff]  }
 0x191   : > { %4859 = vmatprep.subr.bf16.mxu0 %v7228_v2  ;;  %v7313_v1 = vld [vmem:[%s7953_s8 + $0x2ac] ss:$108 sps:$4 sm:$0xff]   ;;  %v7360_v2 = vld [vmem:[%s7953_s8 + $0x2e4] ss:$108 sps:$4 sm:$0xff]  }
 0x193   : > { %4293 = vmatpush1.bf16.msra.mxu1 %v7221_v3  ;;  %v7307_v3 = vld [vmem:[%s7951_s7 + $0x550] ss:$8 sps:$4 sm:$0xff]  }
 0x194   : > { %4860 = vmatpush1.bf16.msra.mxu0 %v7226_v4  ;;  %4294 = vmatprep.subr.bf16.mxu1 %v7232_v5  ;;  %v7310_v4 = vld [vmem:[%s7951_s7 + $0xc50] ss:$8 sps:$4 sm:$0xff]   ;;  %v7318_v5 = vld [vmem:[%s7951_s7 + $0x564] ss:$8 sps:$4 sm:$0xff]  }
 0x195   : > { %4861 = vmatprep.subr.bf16.mxu0 %v7235_v6  ;;  %v7315_v6 = vld [vmem:[%s7953_s8 + $0x2a8] ss:$108 sps:$4 sm:$0xff]  }
 0x197   : > { %4295 = vmatpush1.bf16.msra.mxu1 %v7230_v7  ;;  %v7321_v7 = vld [vmem:[%s7951_s7 + $0xc64] ss:$8 sps:$4 sm:$0xff]  }
 0x198   : > { %4862 = vmatpush1.bf16.msra.mxu0 %v7233_v8  ;;  %4296 = vmatprep.subr.bf16.mxu1 %v7238_v9  ;;  %v7316_v8 = vld [vmem:[%s7951_s7 + $0x560] ss:$8 sps:$4 sm:$0xff]  }
 0x199   : > { %4863 = vmatprep.subr.bf16.mxu0 %v7243_v10  ;;  %v707_v9 = vld [vmem:[%s7953_s8 + $0x380] sm:$0xff] }
 0x19a   : > { %v7365_v10 = vld [vmem:[%s7953_s8 + $0x2e0] ss:$108 sps:$4 sm:$0xff]  }
 0x19b   : > { %4297 = vmatpush1.bf16.msra.mxu1 %v7236_v11  ;;  %v714_v11 = vld [vmem:[%s7953_s8 + $0x3b8] sm:$0xff] }
 0x19c   : > { %4864 = vmatpush1.bf16.msra.mxu0 %v7241_v12  ;;  %4298 = vmatprep.subr.bf16.mxu1 %v7247_v13  ;;  %v7319_v12 = vld [vmem:[%s7951_s7 + $0xc60] ss:$8 sps:$4 sm:$0xff]   ;;  %v7324_v13 = vld [vmem:[%s7951_s7 + $0x574] ss:$8 sps:$4 sm:$0xff]  }
 0x19d   : > { %4865 = vmatprep.subr.bf16.mxu0 %v7250_v14  ;;  %v8344_v19 = vpop.f32.mrb[16].mxu1  ;;  %v7327_v14 = vld [vmem:[%s7951_s7 + $0xc74] ss:$8 sps:$4 sm:$0xff]  }
 0x19e   : > { %v8346_v20 = vpop.f32.mrb[16].mxu0  ;;  %v8349_v22 = vpop.f32.mrb[17].mxu1 }
 0x19f   : > { %v8351_v23 = vpop.f32.mrb[17].mxu0  ;;  %4299 = vmatpush1.bf16.msra.mxu1 %v7245_v15  ;;  %v4026_v26 = vpop.f32.mrb[18].mxu1  ;;  %v5943_v15 = vcombine.high %v707_v9, %v707_v9 }
 0x1a0   : > { %4866 = vmatpush1.bf16.msra.mxu0 %v7248_v16  ;;  %v4593_v27 = vpop.f32.mrb[18].mxu0  ;;  %4300 = vmatprep.subr.bf16.mxu1 %v7253_v17  ;;  %v4027_v29 = vpop.f32.mrb[19].mxu1  ;;  %v5957_v16 = vcombine.high %v714_v11, %v714_v11  ;;  %v7322_v17 = vld [vmem:[%s7951_s7 + $0x570] ss:$8 sps:$4 sm:$0xff]   ;;  %v5942_v26 = vcombine.low %v707_v9, %v707_v9  ;;  %v7400_v9 = vld [vmem:[%s7951_s7 + $0x614] ss:$8 sps:$4 sm:$0xff]  }
 0x1a1   : > { %4867 = vmatprep.subr.bf16.mxu0 %v7257_v18  ;;  %v4594_v30 = vpop.f32.mrb[19].mxu0  ;;  %v7325_v18 = vld [vmem:[%s7951_s7 + $0xc70] ss:$8 sps:$4 sm:$0xff]   ;;  %v7336_v27 = vld [vmem:[%s7951_s7 + $0xc80] ss:$8 sps:$4 sm:$0xff]   ;;  %v5956_v29 = vcombine.low %v714_v11, %v714_v11 }
 0x1a2   : > { %v7344_v30 = vld [vmem:[%s7951_s7 + $0xc94] ss:$8 sps:$4 sm:$0xff]   ;;  %v7410_v11 = vld [vmem:[%s7951_s7 + $0xd00] ss:$8 sps:$4 sm:$0xff]  }
 0x1a3   : > { %4301 = vmatpush1.bf16.msra.mxu1 %v7251_v21  ;;  %v7334_v21 = vld [vmem:[%s7951_s7 + $0x584] ss:$8 sps:$4 sm:$0xff]  }
 0x1a4   : > { %4868 = vmatpush1.bf16.msra.mxu0 %v7255_v24  ;;  %4302 = vmatprep.subr.bf16.mxu1 %v7261_v25  ;;  %v7338_v24 = vld [vmem:[%s7951_s7 + $0xc84] ss:$8 sps:$4 sm:$0xff]   ;;  %v7332_v25 = vld [vmem:[%s7951_s7 + $0x580] ss:$8 sps:$4 sm:$0xff]  }
 0x1a5   : > { %4869 = vmatprep.subr.bf16.mxu0 %v7264_v28  ;;  %v7341_v28 = vld [vmem:[%s7951_s7 + $0x594] ss:$8 sps:$4 sm:$0xff]  }
 0x1a7   : > { %4303 = vmatpush1.bf16.msra.mxu1 %v7259_v31  ;;  %v7391_v31 = vld [vmem:[%s7953_s8 + $0x2c] ss:$108 sps:$4 sm:$0xff]  }
 0x1a8   : > { %4870 = vmatpush1.bf16.msra.mxu0 %v7262_v32  ;;  %4353 = vmatprep.subr.bf16.mxu1 %v7270_v33  ;;  %v7394_v32 = vld [vmem:[%s7953_s8 + $0x64] ss:$108 sps:$4 sm:$0xff]   ;;  %v7339_v33 = vld [vmem:[%s7951_s7 + $0x590] ss:$8 sps:$4 sm:$0xff]  }
 0x1a9   : > { %4920 = vmatprep.subr.bf16.mxu0 %v7276_v35  ;;  %v7349_v35 = vld [vmem:[%s7951_s7 + $0x5a4] ss:$8 sps:$4 sm:$0xff]  }
 0x1aa   : > { %4305 = vmatmul.mubr.bf16.vlgmr.msra.gmra.mrb[0].mxu1 %v7265_v34  ;;  %v7342_v34 = vld [vmem:[%s7951_s7 + $0xc90] ss:$8 sps:$4 sm:$0xff]  }
 0x1ab   : > { %4872 = vmatmul.mubr.bf16.vlgmr.msra.gmra.mrb[0].mxu0 %v7271_v37  ;;  %4354 = vmatpush1.bf16.msra.mxu1 %v7268_v36  ;;  %v7353_v36 = vld [vmem:[%s7951_s7 + $0xca4] ss:$8 sps:$4 sm:$0xff]   ;;  %v7347_v37 = vld [vmem:[%s7951_s7 + $0x5a0] ss:$8 sps:$4 sm:$0xff]  }
 0x1ac   : > { %4921 = vmatpush1.bf16.msra.mxu0 %v7274_v38  ;;  %4355 = vmatprep.subr.bf16.mxu1 %v7279_v39  ;;  %v7351_v38 = vld [vmem:[%s7951_s7 + $0xca0] ss:$8 sps:$4 sm:$0xff]   ;;  %v7356_v39 = vld [vmem:[%s7951_s7 + $0x5b4] ss:$8 sps:$4 sm:$0xff]  }
 0x1ad   : > { %4922 = vmatprep.subr.bf16.mxu0 %v7282_v40  ;;  %4314 = vmatprep.mubr.bf16.mxu1 %v7283_v41  ;;  %v7359_v40 = vld [vmem:[%s7951_s7 + $0xcb4] ss:$8 sps:$4 sm:$0xff]   ;;  %v7354_v41 = vld [vmem:[%s7951_s7 + $0x5b0] ss:$8 sps:$4 sm:$0xff]  }
 0x1ae   : > { %4881 = vmatprep.mubr.bf16.mxu0 %v7329_v42  ;;  %v7357_v42 = vld [vmem:[%s7951_s7 + $0xcb0] ss:$8 sps:$4 sm:$0xff]  }
 0x1af   : > { %4356 = vmatpush1.bf16.msra.mxu1 %v7277_v43  ;;  %v7364_v43 = vld [vmem:[%s7951_s7 + $0x5c4] ss:$8 sps:$4 sm:$0xff]  }
 0x1b0   : > { %4923 = vmatpush1.bf16.msra.mxu0 %v7280_v44  ;;  %4357 = vmatprep.subr.bf16.mxu1 %v7288_v45  ;;  %v7368_v44 = vld [vmem:[%s7951_s7 + $0xcc4] ss:$8 sps:$4 sm:$0xff]   ;;  %v7362_v45 = vld [vmem:[%s7951_s7 + $0x5c0] ss:$8 sps:$4 sm:$0xff]  }
 0x1b1   : > { %4924 = vmatprep.subr.bf16.mxu0 %v7291_v47  ;;  %v7371_v47 = vld [vmem:[%s7951_s7 + $0x5d4] ss:$8 sps:$4 sm:$0xff]  }
 0x1b2   : > { %4315 = vmatmul.mubr.bf16.gmra.mrb[4].mxu1 %v7285_v46  ;;  %v7366_v46 = vld [vmem:[%s7951_s7 + $0xcc0] ss:$8 sps:$4 sm:$0xff]  }
 0x1b3   : > { %4882 = vmatmul.mubr.bf16.gmra.mrb[4].mxu0 %v7335_v49  ;;  %4358 = vmatpush1.bf16.msra.mxu1 %v7286_v48  ;;  %v7374_v48 = vld [vmem:[%s7951_s7 + $0xcd4] ss:$8 sps:$4 sm:$0xff]   ;;  %v7369_v49 = vld [vmem:[%s7951_s7 + $0x5d0] ss:$8 sps:$4 sm:$0xff]  }
 0x1b4   : > { %4925 = vmatpush1.bf16.msra.mxu0 %v7289_v50  ;;  %4359 = vmatprep.subr.bf16.mxu1 %v7294_v51  ;;  %v7372_v50 = vld [vmem:[%s7951_s7 + $0xcd0] ss:$8 sps:$4 sm:$0xff]   ;;  %v7378_v51 = vld [vmem:[%s7951_s7 + $0x5e4] ss:$8 sps:$4 sm:$0xff]  }
 0x1b5   : > { %4926 = vmatprep.subr.bf16.mxu0 %v7297_v52  ;;  %4324 = vmatprep.mubr.bf16.mxu1 %v7298_v53  ;;  %v7382_v52 = vld [vmem:[%s7951_s7 + $0xce4] ss:$8 sps:$4 sm:$0xff]  }
 0x1b6   : > { %4891 = vmatprep.mubr.bf16.mxu0 %v7345_v54 }
 0x1b7   : > { %4360 = vmatpush1.bf16.msra.mxu1 %v7292_v55 }
 0x1b8   : > { %4927 = vmatpush1.bf16.msra.mxu0 %v7295_v56  ;;  %4361 = vmatprep.subr.bf16.mxu1 %v7303_v57 }
 0x1b9   : > { %4928 = vmatprep.subr.bf16.mxu0 %v7306_v59  ;;  %v7376_v59 = vld [vmem:[%s7951_s7 + $0x5e0] ss:$8 sps:$4 sm:$0xff]  }
 0x1ba   : > { %4325 = vmatmul.mubr.bf16.gmra.mrb[8].mxu1 %v7300_v58 }
 0x1bb   : > { %4892 = vmatmul.mubr.bf16.gmra.mrb[8].mxu0 %v7350_v61  ;;  %4362 = vmatpush1.bf16.msra.mxu1 %v7301_v60  ;;  %v7380_v60 = vld [vmem:[%s7951_s7 + $0xce0] ss:$8 sps:$4 sm:$0xff]  }
 0x1bc   : > { %4929 = vmatpush1.bf16.msra.mxu0 %v7304_v62  ;;  %4363 = vmatprep.subr.bf16.mxu1 %v7309_v63  ;;  %v7388_v63 = vld [vmem:[%s7951_s7 + $0xcf4] ss:$8 sps:$4 sm:$0xff]  }
 0x1bd   : > { %4930 = vmatprep.subr.bf16.mxu0 %v7312_v0  ;;  %4334 = vmatprep.mubr.bf16.mxu1 %v7313_v1  ;;  %v7383_v1 = vld [vmem:[%s7951_s7 + $0x5f0] ss:$8 sps:$4 sm:$0xff]  }
 0x1be   : > { %4901 = vmatprep.mubr.bf16.mxu0 %v7360_v2  ;;  %v7386_v2 = vld [vmem:[%s7951_s7 + $0xcf0] ss:$8 sps:$4 sm:$0xff]  }
 0x1bf   : > { %4364 = vmatpush1.bf16.msra.mxu1 %v7307_v3  ;;  %v7397_v3 = vld [vmem:[%s7951_s7 + $0x604] ss:$8 sps:$4 sm:$0xff]  }
 0x1c0   : > { %4931 = vmatpush1.bf16.msra.mxu0 %v7310_v4  ;;  %4365 = vmatprep.subr.bf16.mxu1 %v7318_v5  ;;  %v7412_v4 = vld [vmem:[%s7951_s7 + $0xd04] ss:$8 sps:$4 sm:$0xff]  }
 0x1c1   : > { %4932 = vmatprep.subr.bf16.mxu0 %v7321_v7  ;;  %v7389_v5 = vld [vmem:[%s7953_s8 + $0x28] ss:$108 sps:$4 sm:$0xff]   ;;  %v7395_v7 = vld [vmem:[%s7951_s7 + $0x600] ss:$8 sps:$4 sm:$0xff]  }
 0x1c2   : > { %4335 = vmatmul.mubr.bf16.gmra.mrb[12].mxu1 %v7315_v6  ;;  %v7392_v6 = vld [vmem:[%s7953_s8 + $0x60] ss:$108 sps:$4 sm:$0xff]  }
 0x1c3   : > { %4902 = vmatmul.mubr.bf16.gmra.mrb[12].mxu0 %v7365_v10  ;;  %4366 = vmatpush1.bf16.msra.mxu1 %v7316_v8  ;;  %v7401_v8 = vld [vmem:[%s7953_s8 + $0x104] ss:$108 sps:$4 sm:$0xff]   ;;  %v7403_v10 = vld [vmem:[%s7953_s8 + $0x13c] ss:$108 sps:$4 sm:$0xff]  }
 0x1c4   : > { %4933 = vmatpush1.bf16.msra.mxu0 %v7319_v12  ;;  %4367 = vmatprep.subr.bf16.mxu1 %v7324_v13  ;;  %v7418_v12 = vld [vmem:[%s7951_s7 + $0xd14] ss:$8 sps:$4 sm:$0xff]   ;;  %v7398_v13 = vld [vmem:[%s7951_s7 + $0x610] ss:$8 sps:$4 sm:$0xff]  }
 0x1c5   : > { %4934 = vmatprep.subr.bf16.mxu0 %v7327_v14  ;;  %4344 = vmatprep.mubr.bf16.mxu1 %v5943_v15  ;;  %v7408_v14 = vld [vmem:[%s7951_s7 + $0x624] ss:$8 sps:$4 sm:$0xff]   ;;  %v7416_v15 = vld [vmem:[%s7951_s7 + $0xd10] ss:$8 sps:$4 sm:$0xff]  }
 0x1c6   : > { %4911 = vmatprep.mubr.bf16.mxu0 %v5957_v16  ;;  %v7405_v16 = vld [vmem:[%s7953_s8 + $0x100] ss:$108 sps:$4 sm:$0xff]  }
 0x1c7   : > { %4368 = vmatpush1.bf16.msra.mxu1 %v7322_v17  ;;  %v7409_v17 = vld [vmem:[%s7953_s8 + $0x138] ss:$108 sps:$4 sm:$0xff]  }
 0x1c8   : > { %4935 = vmatpush1.bf16.msra.mxu0 %v7325_v18  ;;  %4369 = vmatprep.subr.bf16.mxu1 %v7334_v21  ;;  %v7406_v18 = vld [vmem:[%s7951_s7 + $0x620] ss:$8 sps:$4 sm:$0xff]   ;;  %v7419_v21 = vld [vmem:[%s7953_s8 + $0x1dc] ss:$108 sps:$4 sm:$0xff]  }
 0x1c9   : > { %4936 = vmatprep.subr.bf16.mxu0 %v7338_v24  ;;  %v7415_v24 = vld [vmem:[%s7951_s7 + $0x634] ss:$8 sps:$4 sm:$0xff]  }
 0x1ca   : > { %4345 = vmatmul.mubr.bf16.gmra.mrb[32].mxu1 %v5942_v26  ;;  %v7430_v26 = vld [vmem:[%s7951_s7 + $0xd24] ss:$8 sps:$4 sm:$0xff]  }
 0x1cb   : > { %4912 = vmatmul.mubr.bf16.gmra.mrb[32].mxu0 %v5956_v29  ;;  %4370 = vmatpush1.bf16.msra.mxu1 %v7332_v25  ;;  %v7421_v25 = vld [vmem:[%s7953_s8 + $0x214] ss:$108 sps:$4 sm:$0xff]  }
 0x1cc   : > { %4937 = vmatpush1.bf16.msra.mxu0 %v7336_v27  ;;  %4371 = vmatprep.subr.bf16.mxu1 %v7341_v28  ;;  %v7428_v27 = vld [vmem:[%s7951_s7 + $0xd20] ss:$8 sps:$4 sm:$0xff]   ;;  %v7413_v28 = vld [vmem:[%s7951_s7 + $0x630] ss:$8 sps:$4 sm:$0xff]   ;;  %v7436_v29 = vld [vmem:[%s7951_s7 + $0xd34] ss:$8 sps:$4 sm:$0xff]  }
 0x1cd   : > { %4938 = vmatprep.subr.bf16.mxu0 %v7344_v30  ;;  %4385 = vmatprep.mubr.bf16.mxu1 %v7391_v31  ;;  %v7426_v30 = vld [vmem:[%s7951_s7 + $0x644] ss:$8 sps:$4 sm:$0xff]   ;;  %v7423_v31 = vld [vmem:[%s7953_s8 + $0x1d8] ss:$108 sps:$4 sm:$0xff]  }
 0x1ce   : > { %4952 = vmatprep.mubr.bf16.mxu0 %v7394_v32  ;;  %v7427_v32 = vld [vmem:[%s7953_s8 + $0x210] ss:$108 sps:$4 sm:$0xff]  }
 0x1cf   : > { %4372 = vmatpush1.bf16.msra.mxu1 %v7339_v33  ;;  %v7424_v33 = vld [vmem:[%s7951_s7 + $0x640] ss:$8 sps:$4 sm:$0xff]  }
 0x1d0   : > { %4939 = vmatpush1.bf16.msra.mxu0 %v7342_v34  ;;  %4373 = vmatprep.subr.bf16.mxu1 %v7349_v35  ;;  %v7434_v34 = vld [vmem:[%s7951_s7 + $0xd30] ss:$8 sps:$4 sm:$0xff]   ;;  %v7433_v35 = vld [vmem:[%s7951_s7 + $0x654] ss:$8 sps:$4 sm:$0xff]  }
 0x1d1   : > { %4940 = vmatprep.subr.bf16.mxu0 %v7353_v36  ;;  %v7437_v36 = vld [vmem:[%s7953_s8 + $0x2b4] ss:$108 sps:$4 sm:$0xff]  }
 0x1d3   : > { %4374 = vmatpush1.bf16.msra.mxu1 %v7347_v37  ;;  %v7439_v37 = vld [vmem:[%s7953_s8 + $0x2ec] ss:$108 sps:$4 sm:$0xff]  }
 0x1d4   : > { %4941 = vmatpush1.bf16.msra.mxu0 %v7351_v38  ;;  %4375 = vmatprep.subr.bf16.mxu1 %v7356_v39  ;;  %v7448_v38 = vld [vmem:[%s7951_s7 + $0xd44] ss:$8 sps:$4 sm:$0xff]   ;;  %v7431_v39 = vld [vmem:[%s7951_s7 + $0x650] ss:$8 sps:$4 sm:$0xff]  }
 0x1d5   : > { %4942 = vmatprep.subr.bf16.mxu0 %v7359_v40  ;;  %v7446_v40 = vld [vmem:[%s7951_s7 + $0xd40] ss:$8 sps:$4 sm:$0xff]  }
 0x1d7   : > { %4376 = vmatpush1.bf16.msra.mxu1 %v7354_v41  ;;  %v7444_v41 = vld [vmem:[%s7951_s7 + $0x664] ss:$8 sps:$4 sm:$0xff]  }
 0x1d8   : > { %4943 = vmatpush1.bf16.msra.mxu0 %v7357_v42  ;;  %4377 = vmatprep.subr.bf16.mxu1 %v7364_v43  ;;  %v7454_v42 = vld [vmem:[%s7951_s7 + $0xd54] ss:$8 sps:$4 sm:$0xff]  }
 0x1d9   : > { %4944 = vmatprep.subr.bf16.mxu0 %v7368_v44  ;;  %v708_v43 = vld [vmem:[%s7953_s8 + $0x388] sm:$0xff]  ;;  %v7441_v44 = vld [vmem:[%s7953_s8 + $0x2b0] ss:$108 sps:$4 sm:$0xff]  }
 0x1db   : > { %4378 = vmatpush1.bf16.msra.mxu1 %v7362_v45  ;;  %v7445_v45 = vld [vmem:[%s7953_s8 + $0x2e8] ss:$108 sps:$4 sm:$0xff]  }
 0x1dc   : > { %4945 = vmatpush1.bf16.msra.mxu0 %v7366_v46  ;;  %4379 = vmatprep.subr.bf16.mxu1 %v7371_v47  ;;  %v715_v46 = vld [vmem:[%s7953_s8 + $0x3c0] sm:$0xff] }
 0x1dd   : > { %4946 = vmatprep.subr.bf16.mxu0 %v7374_v48  ;;  %v4103_v53 = vpop.f32.mrb[20].mxu1  ;;  %v7442_v47 = vld [vmem:[%s7951_s7 + $0x660] ss:$8 sps:$4 sm:$0xff]   ;;  %v7452_v48 = vld [vmem:[%s7951_s7 + $0xd50] ss:$8 sps:$4 sm:$0xff]  }
 0x1de   : > { %v8434_v54 = vpop.f32.mrb[20].mxu0  ;;  %v8437_v55 = vadd.f32 %v4103_v53, %v8344_v19  ;;  %v4105_v56 = vpop.f32.mrb[21].mxu1  ;;  %v7385_v19 = vld [vmem:[%s7951_s7 + $0x5f4] ss:$8 sps:$4 sm:$0xff]   ;;  %v7449_v53 = vld [vmem:[%s7951_s7 + $0x670] ss:$8 sps:$4 sm:$0xff]  }
 0x1df   : > { %v8439_v57 = vpop.f32.mrb[21].mxu0  ;;  %v8442_v58 = vadd.f32 %v4105_v56, %v8349_v22  ;;  %4380 = vmatpush1.bf16.msra.mxu1 %v7369_v49  ;;  %v4107_v61 = vpop.f32.mrb[22].mxu1  ;;  %v7451_v49 = vld [vmem:[%s7951_s7 + $0x674] ss:$8 sps:$4 sm:$0xff]   ;;  %v7462_v56 = vld [vmem:[%s7951_s7 + $0xd60] ss:$8 sps:$4 sm:$0xff]  }
 0x1e0   : > { %4947 = vmatpush1.bf16.msra.mxu0 %v7372_v50  ;;  %v4674_v62 = vpop.f32.mrb[22].mxu0  ;;  %4381 = vmatprep.subr.bf16.mxu1 %v7378_v51  ;;  %v4108_v0 = vpop.f32.mrb[23].mxu1  ;;  %v5945_v50 = vcombine.high %v708_v43, %v708_v43  ;;  %v5959_v51 = vcombine.high %v715_v46, %v715_v46  ;;  %v5944_v61 = vcombine.low %v708_v43, %v708_v43 }
 0x1e1   : > { %4948 = vmatprep.subr.bf16.mxu0 %v7382_v52  ;;  %v4675_v22 = vpop.f32.mrb[23].mxu0  ;;  %v7464_v52 = vld [vmem:[%s7951_s7 + $0xd64] ss:$8 sps:$4 sm:$0xff]   ;;  %v5958_v62 = vcombine.low %v715_v46, %v715_v46  ;;  %v7467_v0 = vld [vmem:[%s7951_s7 + $0x694] ss:$8 sps:$4 sm:$0xff]  }
 0x1e2   : > { %v7494_v22 = vld [vmem:[%s7953_s8 + $0x34] ss:$108 sps:$4 sm:$0xff]  }
 0x1e3   : > { %4382 = vmatpush1.bf16.msra.mxu1 %v7376_v59  ;;  %v7460_v59 = vld [vmem:[%s7951_s7 + $0x684] ss:$8 sps:$4 sm:$0xff]  }
 0x1e4   : > { %4949 = vmatpush1.bf16.msra.mxu0 %v7380_v60  ;;  %4383 = vmatprep.subr.bf16.mxu1 %v7385_v19  ;;  %v7470_v60 = vld [vmem:[%s7951_s7 + $0xd74] ss:$8 sps:$4 sm:$0xff]   ;;  %v7458_v19 = vld [vmem:[%s7951_s7 + $0x680] ss:$8 sps:$4 sm:$0xff]  }
 0x1e5   : > { %4950 = vmatprep.subr.bf16.mxu0 %v7388_v63  ;;  %v7468_v63 = vld [vmem:[%s7951_s7 + $0xd70] ss:$8 sps:$4 sm:$0xff]  }
 0x1e7   : > { %4384 = vmatpush1.bf16.msra.mxu1 %v7383_v1  ;;  %v7465_v1 = vld [vmem:[%s7951_s7 + $0x690] ss:$8 sps:$4 sm:$0xff]  }
 0x1e8   : > { %4951 = vmatpush1.bf16.msra.mxu0 %v7386_v2  ;;  %4434 = vmatprep.subr.bf16.mxu1 %v7397_v3  ;;  %v7621_v2 = vmov 0   ;;  %v7473_v3 = vld [vmem:[%s7951_s7 + $0x6a4] ss:$8 sps:$4 sm:$0xff]  }
 0x1e9   : > { %5001 = vmatprep.subr.bf16.mxu0 %v7412_v4  ;;  %v7474_v4 = vld [vmem:[%s7953_s8 + $0x68] ss:$108 sps:$4 sm:$0xff]  }
 0x1ea   : > { %4386 = vmatmul.mubr.bf16.vlgmr.msra.gmra.mrb[0].mxu1 %v7389_v5  ;;  %v7471_v5 = vld [vmem:[%s7951_s7 + $0x6a0] ss:$8 sps:$4 sm:$0xff]  }
 0x1eb   : > { %4953 = vmatmul.mubr.bf16.vlgmr.msra.gmra.mrb[0].mxu0 %v7392_v6  ;;  %4435 = vmatpush1.bf16.msra.mxu1 %v7395_v7  ;;  %v7477_v6 = vld [vmem:[%s7951_s7 + $0x6b4] ss:$8 sps:$4 sm:$0xff]   ;;  %v7475_v7 = vld [vmem:[%s7951_s7 + $0x6b0] ss:$8 sps:$4 sm:$0xff]  }
 0x1ec   : > { %4395 = vmatprep.mubr.bf16.mxu1 %v7401_v8  ;;  %4436 = vmatprep.subr.bf16.mxu1 %v7400_v9  ;;  %v7480_v8 = vld [vmem:[%s7951_s7 + $0x6c4] ss:$8 sps:$4 sm:$0xff]   ;;  %v7481_v9 = vld [vmem:[%s7953_s8 + $0x140] ss:$108 sps:$4 sm:$0xff]  }
 0x1ed   : > { %4962 = vmatprep.mubr.bf16.mxu0 %v7403_v10  ;;  %5002 = vmatpush1.bf16.msra.mxu0 %v7410_v11  ;;  %v7478_v10 = vld [vmem:[%s7951_s7 + $0x6c0] ss:$8 sps:$4 sm:$0xff]   ;;  %v7484_v11 = vld [vmem:[%s7951_s7 + $0x6d4] ss:$8 sps:$4 sm:$0xff]  }
 0x1ee   : > { %5003 = vmatprep.subr.bf16.mxu0 %v7418_v12  ;;  %v7482_v12 = vld [vmem:[%s7951_s7 + $0x6d0] ss:$8 sps:$4 sm:$0xff]  }
 0x1ef   : > { %4437 = vmatpush1.bf16.msra.mxu1 %v7398_v13  ;;  %v7487_v13 = vld [vmem:[%s7951_s7 + $0x6e4] ss:$8 sps:$4 sm:$0xff]  }
 0x1f0   : > { %4438 = vmatprep.subr.bf16.mxu1 %v7408_v14 }
 0x1f1   : > { %5004 = vmatpush1.bf16.msra.mxu0 %v7416_v15 }
 0x1f2   : > { %4396 = vmatmul.mubr.bf16.gmra.mrb[4].mxu1 %v7405_v16  ;;  %5005 = vmatprep.subr.bf16.mxu0 %v7430_v26 }
 0x1f3   : > { %4963 = vmatmul.mubr.bf16.gmra.mrb[4].mxu0 %v7409_v17  ;;  %4439 = vmatpush1.bf16.msra.mxu1 %v7406_v18  ;;  %v7488_v18 = vld [vmem:[%s7953_s8 + $0x218] ss:$108 sps:$4 sm:$0xff]  }
 0x1f4   : > { %4405 = vmatprep.mubr.bf16.mxu1 %v7419_v21  ;;  %4440 = vmatprep.subr.bf16.mxu1 %v7415_v24 }
 0x1f5   : > { %4972 = vmatprep.mubr.bf16.mxu0 %v7421_v25  ;;  %5006 = vmatpush1.bf16.msra.mxu0 %v7428_v27  ;;  %v7485_v25 = vld [vmem:[%s7951_s7 + $0x6e0] ss:$8 sps:$4 sm:$0xff]  }
 0x1f6   : > { %5007 = vmatprep.subr.bf16.mxu0 %v7436_v29 }
 0x1f7   : > { %4441 = vmatpush1.bf16.msra.mxu1 %v7413_v28  ;;  %v7491_v28 = vld [vmem:[%s7951_s7 + $0x6f4] ss:$8 sps:$4 sm:$0xff]  }
 0x1f8   : > { %4442 = vmatprep.subr.bf16.mxu1 %v7426_v30 }
 0x1f9   : > { %5008 = vmatpush1.bf16.msra.mxu0 %v7434_v34  ;;  %v7507_v34 = vld [vmem:[%s7953_s8 + $0x3c8] ss:$0 sps:$4 sm:$0xff]  }
 0x1fa   : > { %4406 = vmatmul.mubr.bf16.gmra.mrb[8].mxu1 %v7423_v31  ;;  %5009 = vmatprep.subr.bf16.mxu0 %v7448_v38  ;;  %v7495_v31 = vld [vmem:[%s7953_s8 + $0x2f0] ss:$108 sps:$4 sm:$0xff]  }
 0x1fb   : > { %4973 = vmatmul.mubr.bf16.gmra.mrb[8].mxu0 %v7427_v32  ;;  %4443 = vmatpush1.bf16.msra.mxu1 %v7424_v33  ;;  %v7496_v32 = vld [vmem:[%s7953_s8 + $0x10c] ss:$108 sps:$4 sm:$0xff]   ;;  %v7498_v33 = vld [vmem:[%s7953_s8 + $0x108] ss:$108 sps:$4 sm:$0xff]  }
 0x1fc   : > { %4444 = vmatprep.subr.bf16.mxu1 %v7433_v35  ;;  %4415 = vmatprep.mubr.bf16.mxu1 %v7437_v36  ;;  %v7499_v35 = vld [vmem:[%s7953_s8 + $0x1e4] ss:$108 sps:$4 sm:$0xff]   ;;  %v7501_v36 = vld [vmem:[%s7953_s8 + $0x1e0] ss:$108 sps:$4 sm:$0xff]  }
 0x1fd   : > { %4982 = vmatprep.mubr.bf16.mxu0 %v7439_v37  ;;  %5010 = vmatpush1.bf16.msra.mxu0 %v7446_v40  ;;  %v7502_v37 = vld [vmem:[%s7953_s8 + $0x2bc] ss:$108 sps:$4 sm:$0xff]   ;;  %v709_v38 = vld [vmem:[%s7953_s8 + $0x390] sm:$0xff] }
 0x1fe   : > { %5011 = vmatprep.subr.bf16.mxu0 %v7454_v42  ;;  %v5947_v40 = vcombine.high %v709_v38, %v709_v38 }
 0x1ff   : > { %4445 = vmatpush1.bf16.msra.mxu1 %v7431_v39  ;;  %v7504_v39 = vld [vmem:[%s7953_s8 + $0x2b8] ss:$108 sps:$4 sm:$0xff]  }
 0x200   : > { %4446 = vmatprep.subr.bf16.mxu1 %v7444_v41  ;;  %v5946_v41 = vcombine.low %v709_v38, %v709_v38 }
 0x201   : > { %5012 = vmatpush1.bf16.msra.mxu0 %v7452_v48 }
 0x202   : > { %4416 = vmatmul.mubr.bf16.gmra.mrb[12].mxu1 %v7441_v44  ;;  %5013 = vmatprep.subr.bf16.mxu0 %v7464_v52 }
 0x203   : > { %4983 = vmatmul.mubr.bf16.gmra.mrb[12].mxu0 %v7445_v45  ;;  %4447 = vmatpush1.bf16.msra.mxu1 %v7442_v47 }
 0x204   : > { %4448 = vmatprep.subr.bf16.mxu1 %v7451_v49  ;;  %4425 = vmatprep.mubr.bf16.mxu1 %v5945_v50 }
 0x205   : > { %4992 = vmatprep.mubr.bf16.mxu0 %v5959_v51  ;;  %5014 = vmatpush1.bf16.msra.mxu0 %v7462_v56 }
 0x206   : > { %5015 = vmatprep.subr.bf16.mxu0 %v7470_v60 }
 0x207   : > { %4449 = vmatpush1.bf16.msra.mxu1 %v7449_v53 }
 0x208   : > { %4450 = vmatprep.subr.bf16.mxu1 %v7460_v59 }
 0x209   : > { %5016 = vmatpush1.bf16.msra.mxu0 %v7468_v63 }
 0x20a   : > { %4426 = vmatmul.mubr.bf16.gmra.mrb[36].mxu1 %v5944_v61 }
 0x20b   : > { %4993 = vmatmul.mubr.bf16.gmra.mrb[36].mxu0 %v5958_v62  ;;  %4451 = vmatpush1.bf16.msra.mxu1 %v7458_v19 }
 0x20c   : > { %4452 = vmatprep.subr.bf16.mxu1 %v7467_v0  ;;  %5033 = vmatprep.mubr.bf16.mxu0 %v7621_v2 }
 0x20d   : > { %4466 = vmatprep.mubr.bf16.mxu1 %v7494_v22 }
 0x20f   : > { %4453 = vmatpush1.bf16.msra.mxu1 %v7465_v1 }
 0x210   : > { %4454 = vmatprep.subr.bf16.mxu1 %v7473_v3 }
 0x213   : > { %5034 = vmatmul.mubr.bf16.vlgmr.msra.gmra.mrb[0].mxu0 %v7474_v4  ;;  %4455 = vmatpush1.bf16.msra.mxu1 %v7471_v5 }
 0x214   : > { %5043 = vmatprep.mubr.bf16.mxu0 %v7621_v2  ;;  %4456 = vmatprep.subr.bf16.mxu1 %v7477_v6 }
 0x217   : > { %4457 = vmatpush1.bf16.msra.mxu1 %v7475_v7 }
 0x218   : > { %4458 = vmatprep.subr.bf16.mxu1 %v7480_v8 }
 0x21b   : > { %5044 = vmatmul.mubr.bf16.gmra.mrb[4].mxu0 %v7481_v9  ;;  %4459 = vmatpush1.bf16.msra.mxu1 %v7478_v10 }
 0x21c   : > { %5053 = vmatprep.mubr.bf16.mxu0 %v7621_v2  ;;  %4460 = vmatprep.subr.bf16.mxu1 %v7484_v11 }
 0x21d   : > { %v4184_v14 = vpop.f32.mrb[24].mxu1 }
 0x21e   : > { %v8514_v15 = vpop.f32.mrb[24].mxu0  ;;  %v4185_v16 = vadd.f32 %v4184_v14, %v8437_v55  ;;  %v4186_v17 = vpop.f32.mrb[25].mxu1  ;;  %v7489_v55 = vld [vmem:[%s7951_s7 + $0x6f0] ss:$8 sps:$4 sm:$0xff]  }
 0x21f   : > { %v8518_v21 = vpop.f32.mrb[25].mxu0  ;;  %v4187_v24 = vadd.f32 %v4186_v17, %v8442_v58  ;;  %4461 = vmatpush1.bf16.msra.mxu1 %v7482_v12  ;;  %v4188_v26 = vpop.f32.mrb[26].mxu1  ;;  %v7492_v58 = vld [vmem:[%s7953_s8 + $0x30] ss:$108 sps:$4 sm:$0xff]  }
 0x220   : > { %v4755_v27 = vpop.f32.mrb[26].mxu0  ;;  %4462 = vmatprep.subr.bf16.mxu1 %v7487_v13  ;;  %v4189_v29 = vpop.f32.mrb[27].mxu1 }
 0x221   : > { %v4756_v30 = vpop.f32.mrb[27].mxu0 }
 0x223   : > { %5054 = vmatmul.mubr.bf16.gmra.mrb[8].mxu0 %v7488_v18  ;;  %4463 = vmatpush1.bf16.msra.mxu1 %v7485_v25 }
 0x224   : > { %5063 = vmatprep.mubr.bf16.mxu0 %v7621_v2  ;;  %4464 = vmatprep.subr.bf16.mxu1 %v7491_v28  ;;  %v573_v28 = vld [vmem:[#allocation2] sm:$0xff] }
 0x227   : > { %4465 = vmatpush1.bf16.msra.mxu1 %v7489_v55 }
 0x22a   : > { %4467 = vmatmul.mubr.bf16.vlgmr.msra.gmra.mrb[0].mxu1 %v7492_v58  ;;  %v574_v58 = vld [vmem:[#allocation2 + $0x8] sm:$0xff] }
 0x22b   : > { %5064 = vmatmul.mubr.bf16.gmra.mrb[12].mxu0 %v7495_v31  ;;  %4476 = vmatprep.mubr.bf16.mxu1 %v7496_v32 }
 0x22c   : > { %5073 = vmatprep.mubr.bf16.mxu0 %v7621_v2 }
 0x232   : > { %4477 = vmatmul.mubr.bf16.gmra.mrb[4].mxu1 %v7498_v33 }
 0x233   : > { %5074 = vmatmul.mubr.bf16.gmra.mrb[40].mxu0 %v7507_v34  ;;  %4486 = vmatprep.mubr.bf16.mxu1 %v7499_v35  ;;  %v575_v34 = vld [vmem:[#allocation2 + $0x10] sm:$0xff] }
 0x23a   : > { %4487 = vmatmul.mubr.bf16.gmra.mrb[8].mxu1 %v7501_v36 }
 0x23b   : > { %4496 = vmatprep.mubr.bf16.mxu1 %v7502_v37 }
 0x242   : > { %4497 = vmatmul.mubr.bf16.gmra.mrb[12].mxu1 %v7504_v39  ;;  %v576_v39 = vld [vmem:[#allocation2 + $0x18] sm:$0xff] }
 0x243   : > { %4506 = vmatprep.mubr.bf16.mxu1 %v5947_v40 }
 0x24a   : > { %4507 = vmatmul.mubr.bf16.gmra.mrb[40].mxu1 %v5946_v41 }
 0x25d   : > { %v4265_v42 = vpop.f32.mrb[28].mxu1 }
 0x25e   : > { %v8534_v43 = vpop.f32.mrb[28].mxu0  ;;  %v4266_v44 = vadd.f32 %v4265_v42, %v4185_v16  ;;  %v4267_v45 = vpop.f32.mrb[29].mxu1 }
 0x25f   : > { %v8536_v46 = vpop.f32.mrb[29].mxu0  ;;  %v4268_v47 = vadd.f32 %v4267_v45, %v4187_v24  ;;  %v4269_v48 = vpop.f32.mrb[30].mxu1 }
 0x260   : > { %v4836_v49 = vpop.f32.mrb[30].mxu0  ;;  %v4270_v50 = vpop.f32.mrb[31].mxu1  ;;  %v577_v48 = vld [vmem:[#allocation2 + $0x20] sm:$0xff] }
 0x261   : > { %v4837_v51 = vpop.f32.mrb[31].mxu0 }
 0x29d   : > { %v4346_v52 = vpop.f32.mrb[32].mxu1 }
 0x29e   : > { %v8538_v53 = vpop.f32.mrb[32].mxu0  ;;  %v4347_v56 = vadd.f32 %v4346_v52, %v4266_v44  ;;  %v4348_v59 = vpop.f32.mrb[33].mxu1  ;;  %v578_v52 = vld [vmem:[#allocation2 + $0x28] sm:$0xff] }
 0x29f   : > { %v8540_v60 = vpop.f32.mrb[33].mxu0  ;;  %v4349_v61 = vadd.f32 %v4348_v59, %v4268_v47  ;;  %v4350_v62 = vpop.f32.mrb[34].mxu1 }
 0x2a0   : > { %v4917_v19 = vpop.f32.mrb[34].mxu0  ;;  %v4351_v63 = vpop.f32.mrb[35].mxu1  ;;  %v579_v62 = vld [vmem:[#allocation2 + $0x30] sm:$0xff] }
 0x2a1   : > { %v4918_v0 = vpop.f32.mrb[35].mxu0 }
 0x2dd   : > { %v4427_v22 = vpop.f32.mrb[36].mxu1 }
 0x2de   : > { %v8542_v1 = vpop.f32.mrb[36].mxu0  ;;  %v8544_v2 = vadd.f32 %v4427_v22, %v4347_v56  ;;  %v4429_v3 = vpop.f32.mrb[37].mxu1 }
 0x2df   : > { %v8546_v4 = vpop.f32.mrb[37].mxu0  ;;  %v8548_v5 = vadd.f32 %v4429_v3, %v4349_v61  ;;  %v4431_v7 = vpop.f32.mrb[38].mxu1  ;;  %v580_v3 = vld [vmem:[#allocation2 + $0x38] sm:$0xff] }
 0x2e0   : > { %v4998_v6 = vpop.f32.mrb[38].mxu0  ;;  %v4432_v9 = vpop.f32.mrb[39].mxu1 }
 0x2e1   : > { %v4999_v8 = vpop.f32.mrb[39].mxu0 }
 0x2e6   : > { %v5035_v10 = vpop.f32.mrb[0].mxu0 }
 0x2e7   : > { %v5037_v11 = vpop.f32.mrb[1].mxu0 }
 0x2e8   : > { %v5039_v12 = vpop.f32.mrb[2].mxu0 }
 0x2e9   : > { %v5041_v13 = vpop.f32.mrb[3].mxu0 }
 0x2ee   : > { %v5045_v14 = vpop.f32.mrb[4].mxu0 }
 0x2ef   : > { %v5047_v16 = vpop.f32.mrb[5].mxu0 }
 0x2f0   : > { %v5049_v17 = vpop.f32.mrb[6].mxu0 }
 0x2f1   : > { %v5051_v18 = vpop.f32.mrb[7].mxu0 }
 0x2f6   : > { %v5055_v24 = vpop.f32.mrb[8].mxu0 }
 0x2f7   : > { %v5057_v25 = vpop.f32.mrb[9].mxu0 }
 0x2f8   : > { %v5059_v26 = vpop.f32.mrb[10].mxu0 }
 0x2f9   : > { %v5061_v27 = vpop.f32.mrb[11].mxu0 }
 0x2fd   : > { %v4468_v29 = vpop.f32.mrb[0].mxu1 }
 0x2fe   : > { %v8550_v30 = vpop.f32.mrb[12].mxu0  ;;  %v6418_v55 = vadd.f32 %v5035_v10, %v4468_v29  ;;  %v4470_v31 = vpop.f32.mrb[1].mxu1 }
 0x2ff   : > { %v8552_v32 = vpop.f32.mrb[13].mxu0  ;;  %v6419_v33 = vadd.f32 %v5037_v11, %v4470_v31  ;;  %v4472_v35 = vpop.f32.mrb[2].mxu1 }
 0x300   : > { %v8554_v36 = vpop.f32.mrb[14].mxu0  ;;  %v5082_v37 = vadd.f32 %v6418_v55, %v573_v28  ;;  %v6420_v38 = vadd.f32 %v5039_v12, %v4472_v35  ;;  %v4474_v40 = vpop.f32.mrb[3].mxu1  ;;  %v581_v12 = vld [vmem:[#allocation2 + $0x40] sm:$0xff]  ;;  %v583_v55 = vld [vmem:[#allocation2 + $0x50] sm:$0xff] }
 0x301   : > { %v8556_v41 = vpop.f32.mrb[15].mxu0  ;;  %v5083_v42 = vadd.f32 %v6419_v33, %v574_v58  ;;  %v6421_v44 = vadd.f32 %v5041_v13, %v4474_v40  ;;  %v584_v33 = vld [vmem:[#allocation2 + $0x58] sm:$0xff] }
 0x302   : > { %5100 = vst [vmem:[#allocation2] sm:$0xff] %v5082_v37  ;;  %v5084_v45 = vadd.f32 %v6420_v38, %v575_v34 }
 0x303   : > { %5101 = vst [vmem:[#allocation2 + $0x8] sm:$0xff] %v5083_v42  ;;  %v5085_v47 = vadd.f32 %v6421_v44, %v576_v39  ;;  %v585_v39 = vld [vmem:[#allocation2 + $0x60] sm:$0xff]  ;;  %v586_v42 = vld [vmem:[#allocation2 + $0x68] sm:$0xff] }
 0x304   : > { %5102 = vst [vmem:[#allocation2 + $0x10] sm:$0xff] %v5084_v45  ;;  %v587_v45 = vld [vmem:[#allocation2 + $0x70] sm:$0xff] }
 0x305   : > { %5103 = vst [vmem:[#allocation2 + $0x18] sm:$0xff] %v5085_v47  ;;  %v4478_v49 = vpop.f32.mrb[4].mxu1 }
 0x306   : > { %v8558_v50 = vpop.f32.mrb[40].mxu0  ;;  %v6422_v51 = vadd.f32 %v5045_v14, %v4478_v49  ;;  %v4480_v56 = vpop.f32.mrb[5].mxu1 }
 0x307   : > { %v8560_v59 = vpop.f32.mrb[41].mxu0  ;;  %v6423_v61 = vadd.f32 %v5047_v16, %v4480_v56  ;;  %v4482_v19 = vpop.f32.mrb[6].mxu1  ;;  %v582_v16 = vld [vmem:[#allocation2 + $0x48] sm:$0xff] }
 0x308   : > { %v5079_v63 = vpop.f32.mrb[42].mxu0  ;;  %v5086_v0 = vadd.f32 %v6422_v51, %v577_v48  ;;  %v6424_v22 = vadd.f32 %v5049_v17, %v4482_v19  ;;  %v4484_v6 = vpop.f32.mrb[7].mxu1 }
 0x309   : > { %v5080_v7 = vpop.f32.mrb[43].mxu0  ;;  %v5087_v8 = vadd.f32 %v6423_v61, %v578_v52  ;;  %v6425_v9 = vadd.f32 %v5051_v18, %v4484_v6 }
 0x30a   : > { %5104 = vst [vmem:[#allocation2 + $0x20] sm:$0xff] %v5086_v0  ;;  %v5088_v10 = vadd.f32 %v6424_v22, %v579_v62 }
 0x30b   : > { %5105 = vst [vmem:[#allocation2 + $0x28] sm:$0xff] %v5087_v8  ;;  %v5089_v11 = vadd.f32 %v6425_v9, %v580_v3 }
 0x30c   : > { %5106 = vst [vmem:[#allocation2 + $0x30] sm:$0xff] %v5088_v10  ;;  %v589_v10 = vld [vmem:[#allocation2 + $0x80] sm:$0xff] }
 0x30d   : > { %5107 = vst [vmem:[#allocation2 + $0x38] sm:$0xff] %v5089_v11  ;;  %v4488_v13 = vpop.f32.mrb[8].mxu1 }
 0x30e   : > { %v6426_v14 = vadd.f32 %v5055_v24, %v4488_v13  ;;  %v4490_v28 = vpop.f32.mrb[9].mxu1 }
 0x30f   : > { %v6427_v29 = vadd.f32 %v5057_v25, %v4490_v28  ;;  %v4492_v58 = vpop.f32.mrb[10].mxu1 }
 0x310   : > { %v5090_v17 = vadd.f32 %v6426_v14, %v581_v12  ;;  %v6428_v31 = vadd.f32 %v5059_v26, %v4492_v58  ;;  %v4494_v34 = vpop.f32.mrb[11].mxu1 }
 0x311   : > { %v5091_v35 = vadd.f32 %v6427_v29, %v582_v16  ;;  %v6429_v18 = vadd.f32 %v5061_v27, %v4494_v34  ;;  %v588_v27 = vld [vmem:[#allocation2 + $0x78] sm:$0xff] }
 0x312   : > { %5108 = vst [vmem:[#allocation2 + $0x40] sm:$0xff] %v5090_v17  ;;  %v5092_v37 = vadd.f32 %v6428_v31, %v583_v55 }
 0x313   : > { %5109 = vst [vmem:[#allocation2 + $0x48] sm:$0xff] %v5091_v35  ;;  %v5093_v38 = vadd.f32 %v6429_v18, %v584_v33 }
 0x314   : > { %5110 = vst [vmem:[#allocation2 + $0x50] sm:$0xff] %v5092_v37 }
 0x315   : > { %5111 = vst [vmem:[#allocation2 + $0x58] sm:$0xff] %v5093_v38  ;;  %v4498_v40 = vpop.f32.mrb[12].mxu1 }
 0x316   : > { %v6430_v24 = vadd.f32 %v8550_v30, %v4498_v40  ;;  %v4500_v25 = vpop.f32.mrb[13].mxu1 }
 0x317   : > { %v6431_v44 = vadd.f32 %v8552_v32, %v4500_v25  ;;  %v4502_v26 = vpop.f32.mrb[14].mxu1 }
 0x318   : > { %v5094_v47 = vadd.f32 %v6430_v24, %v585_v39  ;;  %v6432_v48 = vadd.f32 %v8554_v36, %v4502_v26  ;;  %v4504_v49 = vpop.f32.mrb[15].mxu1 }
 0x319   : > { %v5095_v51 = vadd.f32 %v6431_v44, %v586_v42  ;;  %v6433_v52 = vadd.f32 %v8556_v41, %v4504_v49 }
 0x31a   : > { %5112 = vst [vmem:[#allocation2 + $0x60] sm:$0xff] %v5094_v47  ;;  %v5096_v56 = vadd.f32 %v6432_v48, %v587_v45 }
 0x31b   : > { %5113 = vst [vmem:[#allocation2 + $0x68] sm:$0xff] %v5095_v51  ;;  %v5097_v61 = vadd.f32 %v6433_v52, %v588_v27 }
 0x31c   : > { %5114 = vst [vmem:[#allocation2 + $0x70] sm:$0xff] %v5096_v56 }
 0x31d   : > { %5115 = vst [vmem:[#allocation2 + $0x78] sm:$0xff] %v5097_v61  ;;  %v4508_v30 = vpop.f32.mrb[40].mxu1 }
 0x31e   : > { %v4509_v62 = vadd.f32 %v4508_v30, %v8544_v2  ;;  %v4510_v32 = vpop.f32.mrb[41].mxu1 }
 0x31f   : > { %v4511_v19 = vadd.f32 %v4510_v32, %v8548_v5  ;;  %v4512_v63 = vpop.f32.mrb[42].mxu1 }
 0x320   : > { %v4590_v36 = vadd.f32 %v8346_v20, %v4509_v62  ;;  %v4513_v0 = vpop.f32.mrb[43].mxu1 }
 0x321   : > { %v4592_v22 = vadd.f32 %v8351_v23, %v4511_v19 }
 0x322   : > { %v4671_v41 = vadd.f32 %v8434_v54, %v4590_v36 }
 0x323   : > { %v4673_v3 = vadd.f32 %v8439_v57, %v4592_v22  ;;  %v590_v57 = vld [vmem:[#allocation2 + $0x88] sm:$0xff] }
 0x324   : > { %v4752_v6 = vadd.f32 %v8514_v15, %v4671_v41 }
 0x325   : > { %v4754_v7 = vadd.f32 %v8518_v21, %v4673_v3 }
 0x326   : > { %v4833_v8 = vadd.f32 %v8534_v43, %v4752_v6 }
 0x327   : > { %v4835_v2 = vadd.f32 %v8536_v46, %v4754_v7 }
 0x328   : > { %v4914_v5 = vadd.f32 %v8538_v53, %v4833_v8 }
 0x329   : > { %v4916_v9 = vadd.f32 %v8540_v60, %v4835_v2 }
 0x32a   : > { %v4995_v20 = vadd.f32 %v8542_v1, %v4914_v5 }
 0x32b   : > { %v4997_v23 = vadd.f32 %v8546_v4, %v4916_v9  ;;  %5121 = sbr.rel (%p6393_p11) target bundleno = 1115 (0x45b), region = 66 }
 0x32c   : > { %v5076_v54 = vadd.f32 %v8558_v50, %v4995_v20 }
 0x32d   : > { %v5078_v15 = vadd.f32 %v8560_v59, %v4997_v23 }
 0x32e   : > { %v5098_v11 = vadd.f32 %v5076_v54, %v589_v10 }
 0x32f   : > { %v5099_v21 = vadd.f32 %v5078_v15, %v590_v57 }
 0x330   : > { %5116 = vst [vmem:[#allocation2 + $0x80] sm:$0xff] %v5098_v11 }
 0x331   : > { %5117 = vst [vmem:[#allocation2 + $0x88] sm:$0xff] %v5099_v21 }
 0x332   : > { %v5142_v43 = vlaneseq  ;;  %v5140_v53 = vld [vmem:[%s9277_s2] sm:$0x3]  ;;  %v5128_v50 = vld [vmem:[#allocation2 + $0x30] sm:$0xff]  ;;  %s7622_s11 = smov 32   ;;  %v5123_v44 = vld [vmem:[#allocation2 + $0x8] sm:$0xff]  ;;  %s7623_s12 = smov 64  }
 0x333   : > { %v5126_v60 = vld [vmem:[#allocation2 + $0x20] sm:$0xff]  ;;  %v5124_v12 = vld [vmem:[#allocation2 + $0x10] sm:$0xff]  ;;  %v5127_v49 = vld [vmem:[#allocation2 + $0x28] sm:$0xff]  ;;  %s7624_s14 = smov 96  }
 0x334   : > { %v5143_v46 = vshrl.u32 %v5142_v43, 7  ;;  %v5122_v4 = vld [vmem:[#allocation2] sm:$0xff]  ;;  %v5132_v29 = vld [vmem:[#allocation2 + $0x50] sm:$0xff]  ;;  %v5125_v51 = vld [vmem:[#allocation2 + $0x18] sm:$0xff] }
 0x335   : > { %v5130_v55 = vld [vmem:[#allocation2 + $0x40] sm:$0xff]  ;;  %v5136_v37 = vld [vmem:[#allocation2 + $0x70] sm:$0xff]  ;;  %v5131_v62 = vld [vmem:[#allocation2 + $0x48] sm:$0xff] }
 0x336   : > { %v5144_v1 = vsub.s32 0, %v5143_v46  ;;  %v5148_v33 = vsub.s32 1, %v5143_v46  ;;  %v5134_v38 = vld [vmem:[#allocation2 + $0x60] sm:$0xff]  ;;  %v5129_v32 = vld [vmem:[#allocation2 + $0x38] sm:$0xff]  ;;  %v5135_v22 = vld [vmem:[#allocation2 + $0x68] sm:$0xff] }
 0x337   : > { %v5138_v45 = vld [vmem:[#allocation2 + $0x80] sm:$0xff]  ;;  %v5133_v41 = vld [vmem:[#allocation2 + $0x58] sm:$0xff] }
 0x338   : > { %v5145_v59 = vrot.slane %v5140_v53, %v5144_v1  ;;  %v5149_v40 = vrot.slane %v5140_v53, %v5148_v33  ;;  %v5139_v2 = vld [vmem:[#allocation2 + $0x88] sm:$0xff]  ;;  %v5137_v5 = vld [vmem:[#allocation2 + $0x78] sm:$0xff]  ;;  %v8768_v1 = vand.u32 127, %v5142_v43 }
 0x33a   : > { %v8587_v13 = vadd.f32 %v5145_v59, %v5126_v60  ;;  %v8589_v14 = vadd.f32 %v5145_v59, %v5122_v4  ;;  %v8591_v16 = vadd.f32 %v5145_v59, %v5128_v50  ;;  %v8593_v28 = vadd.f32 %v5145_v59, %v5124_v12 }
 0x33b   : > { %v8603_v31 = vadd.f32 %v5145_v59, %v5132_v29  ;;  %v8617_v18 = vadd.f32 %v5145_v59, %v5130_v55  ;;  %v8619_v39 = vadd.f32 %v5145_v59, %v5136_v37  ;;  %v8633_v25 = vadd.f32 %v5145_v59, %v5134_v38 }
 0x33c   : > { %9323 = vst [vmem:[#allocation4_spill] sm:$0xff] %v8587_v13  ;;  %9324 = vst [vmem:[#allocation5_spill] sm:$0xff] %v8589_v14  ;;  %v8597_v58 = vmul.f32 %v8587_v13, %v8587_v13  ;;  %v8601_v17 = vmul.f32 %v8589_v14, %v8589_v14  ;;  %v8611_v34 = vmul.f32 %v8591_v16, %v8591_v16  ;;  %vm5226_vm0 = vcmp.lt.s32.totalorder %v8768_v1, 32 }
 0x33d   : > { %9325 = vst [vmem:[#allocation6_spill] sm:$0xff] %v8591_v16  ;;  %9326 = vst [vmem:[#allocation7_spill] sm:$0xff] %v8593_v28  ;;  %v8615_v35 = vmul.f32 %v8593_v28, %v8593_v28  ;;  %v8627_v24 = vmul.f32 %v8603_v31, %v8603_v31  ;;  %v8631_v42 = vmul.f32 %v8617_v18, %v8617_v18  ;;  %vm5299_vm1 = vcmp.lt.s32.totalorder %v8768_v1, 64 }
 0x33e   : > { %9327 = vst [vmem:[#allocation8_spill] sm:$0xff] %v8603_v31  ;;  %5192 = vrot.lane.b32.xlu1 %v8597_v58, %s7622_s11  ;;  %5188 = vrot.lane.b32.xlu0 %v8601_v17, %s7622_s11  ;;  %9328 = vst [vmem:[#allocation9_spill] sm:$0xff] %v8611_v34  ;;  %v8637_v26 = vmul.f32 %v8619_v39, %v8619_v39  ;;  %v8645_v47 = vmul.f32 %v8633_v25, %v8633_v25  ;;  %vm5372_vm2 = vcmp.lt.s32.totalorder %v8768_v1, 96 }
 0x33f   : > { %9329 = vst [vmem:[#allocation10_spill] sm:$0xff] %v8617_v18  ;;  %9330 = vst [vmem:[#allocation11_spill] sm:$0xff] %v8619_v39  ;;  %v8647_v48 = vadd.f32 %v5149_v40, %v5123_v44  ;;  %v8649_v27 = vadd.f32 %v5145_v59, %v5138_v45  ;;  %v8651_v52 = vadd.f32 %v5149_v40, %v5127_v49 }
 0x340   : > { %9331 = vst [vmem:[#allocation12_spill] sm:$0xff] %v8627_v24  ;;  %9332 = vst [vmem:[#allocation13_spill] sm:$0xff] %v8633_v25  ;;  %v8665_v30 = vadd.f32 %v5149_v40, %v5125_v51  ;;  %v8667_v19 = vadd.f32 %v5149_v40, %v5131_v62  ;;  %v8681_v0 = vadd.f32 %v5149_v40, %v5129_v32 }
 0x341   : > { %9333 = vst [vmem:[#allocation14_spill] sm:$0xff] %v8637_v26  ;;  %9334 = vst [vmem:[#allocation15_spill] sm:$0xff] %v8647_v48  ;;  %v8659_v56 = vmul.f32 %v8647_v48, %v8647_v48  ;;  %v8663_v61 = vmul.f32 %v8649_v27, %v8649_v27  ;;  %v8675_v63 = vmul.f32 %v8651_v52, %v8651_v52 }
 0x342   : > { %5194 = vrot.lane.b32.xlu1 %v8611_v34, %s7622_s11  ;;  %5190 = vrot.lane.b32.xlu0 %v8615_v35, %s7622_s11  ;;  %9335 = vst [vmem:[#allocation16_spill] sm:$0xff] %v8649_v27  ;;  %9336 = vst [vmem:[#allocation17_spill] sm:$0xff] %v8651_v52  ;;  %v8679_v36 = vmul.f32 %v8665_v30, %v8665_v30  ;;  %v8683_v3 = vadd.f32 %v5149_v40, %v5135_v22 }
 0x343   : > { %9337 = vst [vmem:[#allocation18_spill] sm:$0xff] %v8663_v61  ;;  %9338 = vst [vmem:[#allocation19_spill] sm:$0xff] %v8665_v30  ;;  %v8691_v6 = vmul.f32 %v8667_v19, %v8667_v19  ;;  %v8695_v7 = vmul.f32 %v8681_v0, %v8681_v0  ;;  %v8697_v8 = vadd.f32 %v5149_v40, %v5133_v41 }
 0x344   : > { %9339 = vst [vmem:[#allocation20_spill] sm:$0xff] %v8667_v19  ;;  %9340 = vst [vmem:[#allocation21_spill] sm:$0xff] %v8681_v0  ;;  %v8701_v9 = vmul.f32 %v8683_v3, %v8683_v3  ;;  %v8711_v10 = vadd.f32 %v5149_v40, %v5139_v2  ;;  %v8713_v23 = vadd.f32 %v5149_v40, %v5137_v5 }
 0x345   : > { %9341 = vst [vmem:[#allocation22_spill] sm:$0xff] %v8683_v3  ;;  %9342 = vst [vmem:[#allocation23_spill] sm:$0xff] %v8695_v7  ;;  %v8709_v20 = vmul.f32 %v8697_v8, %v8697_v8 }
 0x346   : > { %5198 = vrot.lane.b32.xlu1 %v8627_v24, %s7622_s11  ;;  %5196 = vrot.lane.b32.xlu0 %v8631_v42, %s7622_s11  ;;  %9343 = vst [vmem:[#allocation24_spill] sm:$0xff] %v8697_v8  ;;  %9345 = vst [vmem:[#allocation26_spill] sm:$0xff] %v8711_v10  ;;  %v8721_v54 = vmul.f32 %v8711_v10, %v8711_v10  ;;  %v8725_v57 = vmul.f32 %v8713_v23, %v8713_v23 }
 0x347   : > { %9344 = vst [vmem:[#allocation25_spill] sm:$0xff] %v8709_v20  ;;  %9346 = vst [vmem:[#allocation27_spill] sm:$0xff] %v8713_v23 }
 0x348   : > { %9347 = vst [vmem:[#allocation28_spill] sm:$0xff] %v8721_v54  ;;  %9348 = vst [vmem:[#allocation29_spill] sm:$0xff] %v8725_v57 }
 0x34a   : > { %5202 = vrot.lane.b32.xlu1 %v8637_v26, %s7622_s11  ;;  %5200 = vrot.lane.b32.xlu0 %v8645_v47, %s7622_s11 }
 0x34e   : > { %5206 = vrot.lane.b32.xlu1 %v8659_v56, %s7622_s11  ;;  %5204 = vrot.lane.b32.xlu0 %v8663_v61, %s7622_s11 }
 0x352   : > { %5210 = vrot.lane.b32.xlu1 %v8675_v63, %s7622_s11  ;;  %5208 = vrot.lane.b32.xlu0 %v8679_v36, %s7622_s11 }
 0x356   : > { %5214 = vrot.lane.b32.xlu1 %v8691_v6, %s7622_s11  ;;  %5212 = vrot.lane.b32.xlu0 %v8695_v7, %s7622_s11 }
 0x35a   : > { %5218 = vrot.lane.b32.xlu1 %v8701_v9, %s7622_s11  ;;  %5216 = vrot.lane.b32.xlu0 %v8709_v20, %s7622_s11 }
 0x35e   : > { %5222 = vrot.lane.b32.xlu1 %v8721_v54, %s7622_s11  ;;  %5220 = vrot.lane.b32.xlu0 %v8725_v57, %s7622_s11 }
 0x362   : > { %5265 = vrot.lane.b32.xlu1 %v8615_v35, %s7623_s12  ;;  %5263 = vrot.lane.b32.xlu0 %v8601_v17, %s7623_s12 }
 0x366   : > { %5269 = vrot.lane.b32.xlu1 %v8611_v34, %s7623_s12  ;;  %5267 = vrot.lane.b32.xlu0 %v8597_v58, %s7623_s12 }
 0x36a   : > { %5273 = vrot.lane.b32.xlu1 %v8627_v24, %s7623_s12  ;;  %5271 = vrot.lane.b32.xlu0 %v8631_v42, %s7623_s12 }
 0x36e   : > { %5277 = vrot.lane.b32.xlu1 %v8637_v26, %s7623_s12  ;;  %5275 = vrot.lane.b32.xlu0 %v8645_v47, %s7623_s12 }
 0x372   : > { %5281 = vrot.lane.b32.xlu1 %v8659_v56, %s7623_s12  ;;  %5279 = vrot.lane.b32.xlu0 %v8663_v61, %s7623_s12 }
 0x376   : > { %5285 = vrot.lane.b32.xlu1 %v8675_v63, %s7623_s12  ;;  %5283 = vrot.lane.b32.xlu0 %v8679_v36, %s7623_s12 }
 0x37a   : > { %5289 = vrot.lane.b32.xlu1 %v8691_v6, %s7623_s12  ;;  %5287 = vrot.lane.b32.xlu0 %v8695_v7, %s7623_s12 }
 0x37e   : > { %5293 = vrot.lane.b32.xlu1 %v8701_v9, %s7623_s12  ;;  %5291 = vrot.lane.b32.xlu0 %v8709_v20, %s7623_s12 }
 0x382   : > { %5297 = vrot.lane.b32.xlu1 %v8721_v54, %s7623_s12  ;;  %5295 = vrot.lane.b32.xlu0 %v8725_v57, %s7623_s12 }
 0x386   : > { %5338 = vrot.lane.b32.xlu1 %v8615_v35, %s7624_s14  ;;  %5336 = vrot.lane.b32.xlu0 %v8601_v17, %s7624_s14 }
 0x38a   : > { %5342 = vrot.lane.b32.xlu1 %v8611_v34, %s7624_s14  ;;  %5340 = vrot.lane.b32.xlu0 %v8597_v58, %s7624_s14 }
 0x38e   : > { %5346 = vrot.lane.b32.xlu1 %v8627_v24, %s7624_s14  ;;  %5344 = vrot.lane.b32.xlu0 %v8631_v42, %s7624_s14 }
 0x392   : > { %5350 = vrot.lane.b32.xlu1 %v8637_v26, %s7624_s14  ;;  %5348 = vrot.lane.b32.xlu0 %v8645_v47, %s7624_s14 }
 0x396   : > { %5354 = vrot.lane.b32.xlu1 %v8659_v56, %s7624_s14  ;;  %5352 = vrot.lane.b32.xlu0 %v8663_v61, %s7624_s14 }
 0x39a   : > { %5358 = vrot.lane.b32.xlu1 %v8675_v63, %s7624_s14  ;;  %5356 = vrot.lane.b32.xlu0 %v8679_v36, %s7624_s14 }
 0x39e   : > { %5362 = vrot.lane.b32.xlu1 %v8691_v6, %s7624_s14  ;;  %5360 = vrot.lane.b32.xlu0 %v8695_v7, %s7624_s14 }
 0x3a2   : > { %5366 = vrot.lane.b32.xlu1 %v8701_v9, %s7624_s14  ;;  %5364 = vrot.lane.b32.xlu0 %v8709_v20, %s7624_s14 }
 0x3a6   : > { %5370 = vrot.lane.b32.xlu1 %v8721_v54, %s7624_s14  ;;  %5368 = vrot.lane.b32.xlu0 %v8725_v57, %s7624_s14 }
 0x3b0   : > { %v5193_v15 = vpop.permute.xlu1 %5192  ;;  %v5189_v11 = vpop.permute.xlu0 %5188 }
 0x3b4   : > { %v5195_v21 = vpop.permute.xlu1 %5194  ;;  %v5191_v46 = vpop.permute.xlu0 %5190 }
 0x3b8   : > { %v5199_v53 = vpop.permute.xlu1 %5198  ;;  %v5197_v60 = vpop.permute.xlu0 %5196 }
 0x3bc   : > { %v5203_v4 = vpop.permute.xlu1 %5202  ;;  %v5201_v50 = vpop.permute.xlu0 %5200 }
 0x3c0   : > { %v5207_v12 = vpop.permute.xlu1 %5206  ;;  %v5205_v59 = vpop.permute.xlu0 %5204 }
 0x3c1   : > { %v8773_v29 = vsel %vm5226_vm0, %v5189_v11, %v5207_v12  ;;  %v8777_v55 = vsel %vm5226_vm0, %v5207_v12, %v5189_v11 }
 0x3c4   : > { %v5211_v33 = vpop.permute.xlu1 %5210  ;;  %v5209_v37 = vpop.permute.xlu0 %5208 }
 0x3c5   : > { %v8781_v43 = vsel %vm5226_vm0, %v5193_v15, %v5211_v33  ;;  %v8785_v38 = vsel %vm5226_vm0, %v5211_v33, %v5193_v15  ;;  %v8789_v40 = vsel %vm5226_vm0, %v5191_v46, %v5209_v37  ;;  %v8793_v44 = vsel %vm5226_vm0, %v5209_v37, %v5191_v46 }
 0x3c6   : > { %v5249_v25 = vadd.f32 %v8785_v38, %v8597_v58  ;;  %v5250_v0 = vadd.f32 %v8781_v43, %v8675_v63  ;;  %v5247_v16 = vadd.f32 %v8793_v44, %v8615_v35  ;;  %v5248_v19 = vadd.f32 %v8789_v40, %v8679_v36 }
 0x3c8   : > { %v5215_v45 = vpop.permute.xlu1 %5214  ;;  %v5213_v49 = vpop.permute.xlu0 %5212 }
 0x3c9   : > { %v8797_v51 = vsel %vm5226_vm0, %v5197_v60, %v5215_v45  ;;  %v8801_v62 = vsel %vm5226_vm0, %v5215_v45, %v5197_v60  ;;  %v8805_v32 = vsel %vm5226_vm0, %v5195_v21, %v5213_v49  ;;  %v8809_v22 = vsel %vm5226_vm0, %v5213_v49, %v5195_v21 }
 0x3ca   : > { %9349 = vst [vmem:[#allocation30_spill] sm:$0xff] %v8801_v62  ;;  %9350 = vst [vmem:[#allocation31_spill] sm:$0xff] %v8805_v32  ;;  %v5254_v48 = vadd.f32 %v8797_v51, %v8691_v6 }
 0x3cb   : > { %9351 = vst [vmem:[#allocation32_spill] sm:$0xff] %v8809_v22 }
 0x3cc   : > { %v5219_v41 = vpop.permute.xlu1 %5218  ;;  %v5217_v2 = vpop.permute.xlu0 %5216 }
 0x3cd   : > { %v8813_v5 = vsel %vm5226_vm0, %v5201_v50, %v5219_v41  ;;  %v8817_v15 = vsel %vm5226_vm0, %v5219_v41, %v5201_v50  ;;  %v8821_v11 = vsel %vm5226_vm0, %v5199_v53, %v5217_v2  ;;  %v8825_v46 = vsel %vm5226_vm0, %v5217_v2, %v5199_v53 }
 0x3ce   : > { %9352 = vst [vmem:[#allocation33_spill] sm:$0xff] %v8813_v5  ;;  %9353 = vst [vmem:[#allocation34_spill] sm:$0xff] %v8821_v11 }
 0x3cf   : > { %9354 = vst [vmem:[#allocation35_spill] sm:$0xff] %v8825_v46 }
 0x3d0   : > { %v5223_v21 = vpop.permute.xlu1 %5222  ;;  %v5221_v60 = vpop.permute.xlu0 %5220 }
 0x3d1   : > { %v8829_v12 = vsel %vm5226_vm0, %v5205_v59, %v5223_v21  ;;  %v8833_v33 = vsel %vm5226_vm0, %v5223_v21, %v5205_v59  ;;  %v8837_v50 = vsel %vm5226_vm0, %v5203_v4, %v5221_v60  ;;  %v8841_v37 = vsel %vm5226_vm0, %v5221_v60, %v5203_v4 }
 0x3d2   : > { %9355 = vst [vmem:[#allocation36_spill] sm:$0xff] %v8829_v12  ;;  %9356 = vst [vmem:[#allocation37_spill] sm:$0xff] %v8833_v33  ;;  %v5245_v59 = vadd.f32 %v8777_v55, %v8601_v17  ;;  %v5246_v21 = vadd.f32 %v8773_v29, %v8659_v56 }
 0x3d3   : > { %9357 = vst [vmem:[#allocation38_spill] sm:$0xff] %v8837_v50  ;;  %9358 = vst [vmem:[#allocation39_spill] sm:$0xff] %v8841_v37 }
 0x3d4   : > { %v5266_v53 = vpop.permute.xlu1 %5265  ;;  %v5264_v45 = vpop.permute.xlu0 %5263 }
 0x3d8   : > { %v5270_v49 = vpop.permute.xlu1 %5269  ;;  %v5268_v41 = vpop.permute.xlu0 %5267 }
 0x3dc   : > { %v5274_v2 = vpop.permute.xlu1 %5273  ;;  %v5272_v23 = vpop.permute.xlu0 %5271 }
 0x3e0   : > { %v8843_v39 = vpop.permute.xlu1 %5277  ;;  %v5276_v10 = vpop.permute.xlu0 %5275 }
 0x3e4   : > { %v5282_v27 = vpop.permute.xlu1 %5281  ;;  %v5280_v4 = vpop.permute.xlu0 %5279 }
 0x3e5   : > { %v8852_v60 = vsel %vm5299_vm1, %v5264_v45, %v5282_v27  ;;  %v8856_v8 = vsel %vm5299_vm1, %v5282_v27, %v5264_v45 }
 0x3e6   : > { %v8859_v31 = vadd.f32 %v8856_v8, %v5245_v59  ;;  %v8862_v3 = vadd.f32 %v8852_v60, %v5246_v21 }
 0x3e8   : > { %v5286_v27 = vpop.permute.xlu1 %5285  ;;  %v5284_v45 = vpop.permute.xlu0 %5283 }
 0x3e9   : > { %v8874_v59 = vsel %vm5299_vm1, %v5268_v41, %v5286_v27  ;;  %v8878_v21 = vsel %vm5299_vm1, %v5286_v27, %v5268_v41  ;;  %v8882_v18 = vsel %vm5299_vm1, %v5266_v53, %v5284_v45  ;;  %v8886_v30 = vsel %vm5299_vm1, %v5284_v45, %v5266_v53 }
 0x3ea   : > { %v8889_v28 = vadd.f32 %v8878_v21, %v5249_v25  ;;  %v8892_v52 = vadd.f32 %v8874_v59, %v5250_v0  ;;  %v8895_v13 = vadd.f32 %v8886_v30, %v5247_v16  ;;  %v8898_v41 = vadd.f32 %v8882_v18, %v5248_v19 }
 0x3eb   : > { %v5253_v27 = vadd.f32 %v8801_v62, %v8631_v42  ;;  %v5251_v53 = vadd.f32 %v8809_v22, %v8611_v34  ;;  %v5252_v25 = vadd.f32 %v8805_v32, %v8695_v7  ;;  %v5258_v62 = vadd.f32 %v8813_v5, %v8701_v9 }
 0x3ec   : > { %v5290_v0 = vpop.permute.xlu1 %5289  ;;  %v5288_v45 = vpop.permute.xlu0 %5287  ;;  %v5262_v5 = vadd.f32 %v8829_v12, %v8721_v54 }
 0x3ed   : > { %v8910_v16 = vsel %vm5299_vm1, %v5272_v23, %v5290_v0  ;;  %v8914_v19 = vsel %vm5299_vm1, %v5290_v0, %v5272_v23  ;;  %v8918_v14 = vsel %vm5299_vm1, %v5270_v49, %v5288_v45  ;;  %v8922_v22 = vsel %vm5299_vm1, %v5288_v45, %v5270_v49 }
 0x3ee   : > { %9359 = vst [vmem:[#allocation40_spill] sm:$0xff] %v8918_v14  ;;  %v8925_v32 = vadd.f32 %v8914_v19, %v5253_v27  ;;  %v8928_v7 = vadd.f32 %v8910_v16, %v5254_v48  ;;  %v8931_v34 = vadd.f32 %v8922_v22, %v5251_v53  ;;  %v8934_v23 = vadd.f32 %v8918_v14, %v5252_v25 }
 0x3ef   : > { %v5257_v0 = vadd.f32 %v8817_v15, %v8645_v47  ;;  %v5255_v49 = vadd.f32 %v8825_v46, %v8627_v24  ;;  %v5256_v27 = vadd.f32 %v8821_v11, %v8709_v20 }
 0x3f0   : > { %v5294_v48 = vpop.permute.xlu1 %5293  ;;  %v5292_v45 = vpop.permute.xlu0 %5291 }
 0x3f1   : > { %v8946_v53 = vsel %vm5299_vm1, %v5276_v10, %v5294_v48  ;;  %v8950_v25 = vsel %vm5299_vm1, %v5294_v48, %v5276_v10  ;;  %v8954_v14 = vsel %vm5299_vm1, %v5274_v2, %v5292_v45  ;;  %v8958_v46 = vsel %vm5299_vm1, %v5292_v45, %v5274_v2 }
 0x3f2   : > { %9360 = vst [vmem:[#allocation41_spill] sm:$0xff] %v8954_v14  ;;  %9361 = vst [vmem:[#allocation42_spill] sm:$0xff] %v8958_v46  ;;  %v8961_v11 = vadd.f32 %v8950_v25, %v5257_v0  ;;  %v8964_v24 = vadd.f32 %v8946_v53, %v5258_v62  ;;  %v8967_v20 = vadd.f32 %v8958_v46, %v5255_v49 }
 0x3f3   : > { %v8970_v10 = vadd.f32 %v8954_v14, %v5256_v27  ;;  %v5261_v48 = vadd.f32 %v8833_v33, %v8663_v61  ;;  %v5259_v2 = vadd.f32 %v8841_v37, %v8637_v26  ;;  %v5260_v0 = vadd.f32 %v8837_v50, %v8725_v57 }
 0x3f4   : > { %v5298_v62 = vpop.permute.xlu1 %5297  ;;  %v5296_v45 = vpop.permute.xlu0 %5295 }
 0x3f5   : > { %v8982_v49 = vsel %vm5299_vm1, %v5280_v4, %v5298_v62  ;;  %v8986_v27 = vsel %vm5299_vm1, %v5298_v62, %v5280_v4  ;;  %v8991_v33 = vsel %vm5299_vm1, %v8843_v39, %v5296_v45  ;;  %v8996_v37 = vsel %vm5299_vm1, %v5296_v45, %v8843_v39 }
 0x3f6   : > { %9362 = vst [vmem:[#allocation43_spill] sm:$0xff] %v8982_v49  ;;  %9363 = vst [vmem:[#allocation44_spill] sm:$0xff] %v8986_v27  ;;  %v8999_v50 = vadd.f32 %v8986_v27, %v5261_v48  ;;  %v9002_v26 = vadd.f32 %v8982_v49, %v5262_v5  ;;  %v9005_v57 = vadd.f32 %v8996_v37, %v5259_v2 }
 0x3f7   : > { %9364 = vst [vmem:[#allocation45_spill] sm:$0xff] %v8991_v33  ;;  %9365 = vst [vmem:[#allocation46_spill] sm:$0xff] %v8996_v37  ;;  %v9008_v4 = vadd.f32 %v8991_v33, %v5260_v0 }
 0x3f8   : > { %9366 = vst [vmem:[#allocation47_spill] sm:$0xff] %v8999_v50  ;;  %9367 = vst [vmem:[#allocation48_spill] sm:$0xff] %v9002_v26  ;;  %v5339_v62 = vpop.permute.xlu1 %5338  ;;  %v5337_v12 = vpop.permute.xlu0 %5336 }
 0x3f9   : > { %9368 = vst [vmem:[#allocation49_spill] sm:$0xff] %v9005_v57  ;;  %9369 = vst [vmem:[#allocation50_spill] sm:$0xff] %v9008_v4 }
 0x3fc   : > { %v9010_v46 = vpop.permute.xlu1 %5342  ;;  %v5341_v14 = vpop.permute.xlu0 %5340 }
 0x400   : > { %v9012_v61 = vpop.permute.xlu1 %5346  ;;  %v5345_v39 = vpop.permute.xlu0 %5344 }
 0x404   : > { %v9014_v45 = vpop.permute.xlu1 %5350  ;;  %v9016_v48 = vpop.permute.xlu0 %5348 }
 0x405   : > { %9370 = vst [vmem:[#allocation51_spill] sm:$0xff] %v9014_v45 }
 0x408   : > { %v5355_v5 = vpop.permute.xlu1 %5354  ;;  %v9019_v2 = vpop.permute.xlu0 %5352 }
 0x409   : > { %v5373_v0 = vsel %vm5372_vm2, %v5337_v12, %v5355_v5  ;;  %v5382_v37 = vsel %vm5372_vm2, %v5355_v5, %v5337_v12 }
 0x40a   : > { %v5391_v33 = vadd.f32 %v5382_v37, %v8859_v31  ;;  %v5392_v27 = vadd.f32 %v5373_v0, %v8862_v3 }
 0x40c   : > { %v5409_v49 = vadd.f32 %v5391_v33, %v8659_v56  ;;  %v5410_v4 = vadd.f32 %v5392_v27, %v8601_v17  ;;  %v5359_v57 = vpop.permute.xlu1 %5358  ;;  %v5357_v54 = vpop.permute.xlu0 %5356 }
 0x40d   : > { %v5375_v45 = vsel %vm5372_vm2, %v5341_v14, %v5359_v57  ;;  %v5384_v26 = vsel %vm5372_vm2, %v5359_v57, %v5341_v14  ;;  %v5374_v50 = vsel %vm5372_vm2, %v5339_v62, %v5357_v54  ;;  %v5383_v31 = vsel %vm5372_vm2, %v5357_v54, %v5339_v62 }
 0x40e   : > { %v5427_v3 = vadd.f32 %v5409_v49, %v8773_v29  ;;  %v5428_v56 = vadd.f32 %v5410_v4, %v8777_v55  ;;  %v5395_v17 = vadd.f32 %v5384_v26, %v8889_v28  ;;  %v5396_v12 = vadd.f32 %v5375_v45, %v8892_v52 }
 0x40f   : > { %v5393_v33 = vadd.f32 %v5383_v31, %v8895_v13  ;;  %v5394_v27 = vadd.f32 %v5374_v50, %v8898_v41 }
 0x410   : > { %v5445_v14 = vadd.f32 %v5427_v3, %v8852_v60  ;;  %v5446_v57 = vadd.f32 %v5428_v56, %v8856_v8  ;;  %v5413_v5 = vadd.f32 %v5395_v17, %v8675_v63  ;;  %v5414_v54 = vadd.f32 %v5396_v12, %v8597_v58  ;;  %v5363_v62 = vpop.permute.xlu1 %5362  ;;  %v5361_v49 = vpop.permute.xlu0 %5360 }
 0x411   : > { %v5411_v29 = vadd.f32 %v5393_v33, %v8679_v36  ;;  %v5412_v55 = vadd.f32 %v5394_v27, %v8615_v35  ;;  %v5377_v28 = vsel %vm5372_vm2, %v5345_v39, %v5363_v62  ;;  %v5386_v13 = vsel %vm5372_vm2, %v5363_v62, %v5345_v39 }
 0x412   : > { %v9053_v52 = vadd.f32 %v5445_v14, %v5373_v0  ;;  %v9055_v60 = vadd.f32 %v5446_v57, %v5382_v37  ;;  %v5431_v8 = vadd.f32 %v5413_v5, %v8781_v43  ;;  %v5432_v63 = vadd.f32 %v5414_v54, %v8785_v38 }
 0x413   : > { %v5429_v58 = vadd.f32 %v5411_v29, %v8789_v40  ;;  %v5430_v36 = vadd.f32 %v5412_v55, %v8793_v44  ;;  %v5399_v35 = vadd.f32 %v5386_v13, %v8925_v32  ;;  %v5400_v41 = vadd.f32 %v5377_v28, %v8928_v7 }
 0x414   : > { %v5481_v4 = vadd.f32 1.0, %v9053_v52  ;;  %v5482_v39 = vadd.f32 1.0, %v9055_v60  ;;  %v5535_v37 = vadd.f32 1e-08, %v9053_v52  ;;  %v5536_v0 = vadd.f32 1e-08, %v9055_v60 }
 0x415   : > { %v5449_v43 = vadd.f32 %v5431_v8, %v8874_v59  ;;  %v5450_v38 = vadd.f32 %v5432_v63, %v8878_v21  ;;  %v5447_v40 = vadd.f32 %v5429_v58, %v8882_v18  ;;  %v5448_v44 = vadd.f32 %v5430_v36, %v8886_v30  ;;  %v9373_v36 = vld [vmem:[#allocation23_spill] sm:$0xff] }
 0x416   : > { %7508 = vrcp.f32 %v5481_v4  ;;  %v5417_v7 = vadd.f32 %v5399_v35, %v8691_v6  ;;  %v5418_v32 = vadd.f32 %v5400_v41, %v8631_v42  ;;  %v9076_v3 = vsel %vm5372_vm2, %v9010_v46, %v5361_v49  ;;  %v9371_v6 = vld [vmem:[#allocation30_spill] sm:$0xff]  ;;  %v9374_v41 = vld [vmem:[#allocation32_spill] sm:$0xff] }
 0x417   : > { %7510 = vrcp.f32 %v5482_v39  ;;  %v9078_v56 = vadd.f32 %v5449_v43, %v5375_v45  ;;  %v9080_v59 = vadd.f32 %v5450_v38, %v5384_v26  ;;  %v9082_v21 = vadd.f32 %v5447_v40, %v5374_v50  ;;  %v5367_v45 = vpop.permute.xlu1 %5366  ;;  %v9375_v43 = vld [vmem:[#allocation31_spill] sm:$0xff] }
 0x418   : > { %7512 = vrsqrt.f32 %v5535_v37  ;;  %v9084_v18 = vadd.f32 %v5448_v44, %v5383_v31  ;;  %v5435_v30 = vadd.f32 %v5417_v7, %v8797_v51  ;;  %v5436_v17 = vadd.f32 %v5418_v32, %v9371_v6 }
 0x419   : > { %7514 = vrsqrt.f32 %v5536_v0  ;;  %v5485_v42 = vadd.f32 1.0, %v9078_v56  ;;  %v5486_v12 = vadd.f32 1.0, %v9080_v59  ;;  %v5539_v33 = vadd.f32 1e-08, %v9078_v56 }
 0x41a   : > { %v5540_v26 = vadd.f32 1e-08, %v9080_v59  ;;  %v5483_v50 = vadd.f32 1.0, %v9082_v21  ;;  %v5484_v27 = vadd.f32 1.0, %v9084_v18  ;;  %v5537_v31 = vadd.f32 1e-08, %v9082_v21 }
 0x41b   : > { %7516 = vrcp.f32 %v5485_v42  ;;  %v5538_v51 = vadd.f32 1e-08, %v9084_v18  ;;  %v5453_v14 = vadd.f32 %v5435_v30, %v8910_v16  ;;  %v5454_v57 = vadd.f32 %v5436_v17, %v8914_v19  ;;  %v9372_v19 = vld [vmem:[#allocation9_spill] sm:$0xff] }
 0x41c   : > { %7518 = vrcp.f32 %v5486_v12  ;;  %v5385_v5 = vsel %vm5372_vm2, %v5361_v49, %v9010_v46  ;;  %v5398_v54 = vadd.f32 %v9076_v3, %v8934_v23  ;;  %v5379_v62 = vsel %vm5372_vm2, %v9016_v48, %v5367_v45  ;;  %v9378_v12 = vld [vmem:[#allocation33_spill] sm:$0xff] }
 0x41d   : > { %7520 = vrsqrt.f32 %v5539_v33  ;;  %v9106_v29 = vadd.f32 %v5453_v14, %v5377_v28  ;;  %v9108_v55 = vadd.f32 %v5454_v57, %v5386_v13  ;;  %v5397_v16 = vadd.f32 %v5385_v5, %v8931_v34 }
 0x41e   : > { %7522 = vrsqrt.f32 %v5540_v26  ;;  %v5416_v8 = vadd.f32 %v5398_v54, %v9372_v19  ;;  %v5388_v46 = vsel %vm5372_vm2, %v5367_v45, %v9016_v48  ;;  %v5404_v23 = vadd.f32 %v5379_v62, %v8964_v24  ;;  %v9379_v26 = vld [vmem:[#allocation15_spill] sm:$0xff] }
 0x41f   : > { %7524 = vrcp.f32 %v5483_v50  ;;  %v5489_v63 = vadd.f32 1.0, %v9106_v29  ;;  %v5490_v58 = vadd.f32 1.0, %v9108_v55  ;;  %v5543_v28 = vadd.f32 1e-08, %v9106_v29 }
 0x420   : > { %v7509_v13 = vpop.eup %7508  ;;  %7526 = vrcp.f32 %v5484_v27  ;;  %v5544_v34 = vadd.f32 1e-08, %v9108_v55  ;;  %v5415_v35 = vadd.f32 %v5397_v16, %v9373_v36  ;;  %v5434_v49 = vadd.f32 %v5416_v8, %v9374_v41 }
 0x421   : > { %v7511_v4 = vpop.eup %7510  ;;  %v5517_v48 = vmul.f32 %v7509_v13, %v9053_v52  ;;  %7528 = vrsqrt.f32 %v5537_v31  ;;  %v5403_v24 = vadd.f32 %v5388_v46, %v8961_v11  ;;  %v5422_v39 = vadd.f32 %v5404_v23, %v8645_v47  ;;  %v9376_v11 = vld [vmem:[#allocation40_spill] sm:$0xff] }
 0x422   : > { %v7513_v37 = vpop.eup %7512  ;;  %v5518_v0 = vmul.f32 %v7511_v4, %v9055_v60  ;;  %7530 = vrsqrt.f32 %v5538_v51  ;;  %v5433_v38 = vadd.f32 %v5415_v35, %v9375_v43  ;;  %v5452_v40 = vadd.f32 %v5434_v49, %v8922_v22  ;;  %v9377_v60 = vld [vmem:[#allocation5_spill] sm:$0xff] }
 0x423   : > { %v7515_v44 = vpop.eup %7514  ;;  %v5571_v7 = vmul.f32 %v7513_v37, %v5517_v48  ;;  %7532 = vrcp.f32 %v5489_v63  ;;  %v5421_v32 = vadd.f32 %v5403_v24, %v8701_v9  ;;  %v5440_v52 = vadd.f32 %v5422_v39, %v8817_v15 }
 0x424   : > { %v5572_v30 = vmul.f32 %v7515_v44, %v5518_v0  ;;  %7534 = vrcp.f32 %v5490_v58  ;;  %v5451_v6 = vadd.f32 %v5433_v38, %v9376_v11  ;;  %v9131_v47 = vadd.f32 %v5452_v40, %v5385_v5  ;;  %v5365_v5 = vpop.permute.xlu0 %5364  ;;  %v5371_v0 = vpop.permute.xlu1 %5370  ;;  %v9382_v38 = vld [vmem:[#allocation7_spill] sm:$0xff] }
 0x425   : > { %v7517_v17 = vpop.eup %7516  ;;  %v5589_v42 = vmul.f32 %v5571_v7, %v9377_v60  ;;  %7536 = vrsqrt.f32 %v5543_v28  ;;  %v5439_v33 = vadd.f32 %v5421_v32, %v9378_v12  ;;  %v5458_v22 = vadd.f32 %v5440_v52, %v8950_v25  ;;  %v9383_v32 = vld [vmem:[#allocation19_spill] sm:$0xff] }
 0x426   : > { %v7519_v45 = vpop.eup %7518  ;;  %v5590_v50 = vmul.f32 %v5572_v30, %v9379_v26  ;;  %v5521_v9 = vmul.f32 %v7517_v17, %v9078_v56  ;;  %7538 = vrsqrt.f32 %v5544_v34  ;;  %v9139_v15 = vadd.f32 %v5451_v6, %v9076_v3  ;;  %v9386_v26 = vld [vmem:[#allocation12_spill] sm:$0xff] }
 0x427   : > { %v7521_v27 = vpop.eup %7520  ;;  %v5522_v31 = vmul.f32 %v7519_v45, %v9080_v59  ;;  %v5488_v51 = vadd.f32 1.0, %v9131_v47  ;;  %v5542_v14 = vadd.f32 1e-08, %v9131_v47  ;;  %v5457_v57 = vadd.f32 %v5439_v33, %v8946_v53  ;;  %v9380_v53 = vld [vmem:[#allocation4_spill] sm:$0xff]  ;;  %v9384_v33 = vld [vmem:[#allocation25_spill] sm:$0xff] }
 0x428   : > { %v7523_v25 = vpop.eup %7522  ;;  %v6409_v54 = vpack.c.bf16 %v5590_v50, %v5589_v42  ;;  %v5575_v16 = vmul.f32 %v7521_v27, %v5521_v9  ;;  %v5487_v19 = vadd.f32 1.0, %v9139_v15  ;;  %v5541_v56 = vadd.f32 1e-08, %v9139_v15  ;;  %v5369_v60 = vpop.permute.xlu0 %5368  ;;  %v9387_v9 = vld [vmem:[#allocation47_spill] sm:$0xff] }
 0x429   : > { %v7525_v8 = vpop.eup %7524  ;;  %v5576_v3 = vmul.f32 %v7523_v25, %v5522_v31  ;;  %7540 = vrcp.f32 %v5488_v51  ;;  %v9147_v23 = vadd.f32 %v5457_v57, %v5379_v62  ;;  %v9149_v59 = vadd.f32 %v5458_v22, %v5388_v46  ;;  %v9381_v62 = vld [vmem:[#allocation17_spill] sm:$0xff] }
 0x42a   : > { %v7527_v63 = vpop.eup %7526  ;;  %5663 = vst [vmem:[%s9278_s3] sm:$0xff] %v6409_v54  ;;  %v5593_v58 = vmul.f32 %v5575_v16, %v9380_v53  ;;  %v5519_v28 = vmul.f32 %v7525_v8, %v9082_v21  ;;  %7542 = vrcp.f32 %v5487_v19  ;;  %v9159_v13 = vsel %vm5372_vm2, %v9012_v61, %v5365_v5  ;;  %v9391_v54 = vld [vmem:[#allocation51_spill] sm:$0xff] }
 0x42b   : > { %v7529_v34 = vpop.eup %7528  ;;  %v5594_v36 = vmul.f32 %v5576_v3, %v9381_v62  ;;  %v5520_v46 = vmul.f32 %v7527_v63, %v9084_v18  ;;  %7544 = vrsqrt.f32 %v5541_v56  ;;  %v5493_v35 = vadd.f32 1.0, %v9147_v23  ;;  %v9392_v8 = vld [vmem:[#allocation35_spill] sm:$0xff]  ;;  %v9393_v63 = vld [vmem:[#allocation28_spill] sm:$0xff] }
 0x42c   : > { %v7531_v41 = vpop.eup %7530  ;;  %v5573_v49 = vmul.f32 %v7529_v34, %v5519_v28  ;;  %7546 = vrsqrt.f32 %v5542_v14  ;;  %v5494_v4 = vadd.f32 1.0, %v9149_v59  ;;  %v5547_v21 = vadd.f32 1e-08, %v9147_v23  ;;  %v9389_v14 = vld [vmem:[#allocation20_spill] sm:$0xff] }
 0x42d   : > { %v7533_v48 = vpop.eup %7532  ;;  %v6411_v24 = vpack.c.bf16 %v5594_v36, %v5593_v58  ;;  %v5574_v39 = vmul.f32 %v7531_v41, %v5520_v46  ;;  %7548 = vrcp.f32 %v5493_v35  ;;  %v5548_v37 = vadd.f32 1e-08, %v9149_v59  ;;  %v9394_v58 = vld [vmem:[#allocation18_spill] sm:$0xff]  ;;  %v9395_v46 = vld [vmem:[#allocation41_spill] sm:$0xff] }
 0x42e   : > { %v7535_v43 = vpop.eup %7534  ;;  %v5591_v18 = vmul.f32 %v5573_v49, %v9382_v38  ;;  %v5525_v40 = vmul.f32 %v7533_v48, %v9106_v29  ;;  %7550 = vrcp.f32 %v5494_v4  ;;  %v5387_v44 = vsel %vm5372_vm2, %v5365_v5, %v9012_v61  ;;  %v9390_v5 = vld [vmem:[#allocation34_spill] sm:$0xff]  ;;  %v9396_v41 = vld [vmem:[#allocation49_spill] sm:$0xff]  ;;  %v9398_v48 = vld [vmem:[#allocation36_spill] sm:$0xff] }
 0x42f   : > { %v7537_v7 = vpop.eup %7536  ;;  %5665 = vst [vmem:[%s9278_s3 + $0x10] sm:$0xff] %v6411_v24  ;;  %v5592_v52 = vmul.f32 %v5574_v39, %v9383_v32  ;;  %v5526_v30 = vmul.f32 %v7535_v43, %v9108_v55  ;;  %7552 = vrsqrt.f32 %v5547_v21  ;;  %v5401_v11 = vadd.f32 %v5387_v44, %v8967_v20  ;;  %v9385_v20 = vld [vmem:[#allocation10_spill] sm:$0xff]  ;;  %v9399_v24 = vld [vmem:[#allocation37_spill] sm:$0xff] }
 0x430   : > { %v7539_v6 = vpop.eup %7538  ;;  %v5579_v17 = vmul.f32 %v7537_v7, %v5525_v40  ;;  %7554 = vrsqrt.f32 %v5548_v37  ;;  %v5402_v29 = vadd.f32 %v9159_v13, %v8970_v10  ;;  %v5381_v61 = vsel %vm5372_vm2, %v9019_v2, %v5371_v0  ;;  %v9388_v10 = vld [vmem:[#allocation48_spill] sm:$0xff]  ;;  %v9397_v4 = vld [vmem:[#allocation42_spill] sm:$0xff]  ;;  %v9401_v40 = vld [vmem:[#allocation29_spill] sm:$0xff] }
 0x431   : > { %v6410_v42 = vpack.c.bf16 %v5592_v52, %v5591_v18  ;;  %v5580_v12 = vmul.f32 %v7539_v6, %v5526_v30  ;;  %v5419_v22 = vadd.f32 %v5401_v11, %v9384_v33  ;;  %v5390_v55 = vsel %vm5372_vm2, %v5371_v0, %v9019_v2  ;;  %v9400_v37 = vld [vmem:[#allocation50_spill] sm:$0xff]  ;;  %v9402_v11 = vld [vmem:[#allocation43_spill] sm:$0xff]  ;;  %v9405_v33 = vld [vmem:[#allocation21_spill] sm:$0xff] }
 0x432   : > { %v5597_v45 = vmul.f32 %v5579_v17, %v9385_v20  ;;  %v5420_v50 = vadd.f32 %v5402_v29, %v9386_v26  ;;  %v5407_v27 = vadd.f32 %v5390_v55, %v9387_v9  ;;  %v5408_v31 = vadd.f32 %v5381_v61, %v9388_v10  ;;  %v9403_v17 = vld [vmem:[#allocation44_spill] sm:$0xff] }
 0x433   : > { %v7541_v51 = vpop.eup %7540  ;;  %5664 = vst [vmem:[%s9278_s3 + $0x8] sm:$0xff] %v6410_v42  ;;  %v5598_v57 = vmul.f32 %v5580_v12, %v9389_v14  ;;  %v5437_v25 = vadd.f32 %v5419_v22, %v9390_v5  ;;  %v9199_v2 = vsel %vm5372_vm2, %v9391_v54, %v5369_v60  ;;  %v9204_v16 = vsel %vm5372_vm2, %v5369_v60, %v9391_v54  ;;  %v9404_v42 = vld [vmem:[#allocation6_spill] sm:$0xff] }
 0x434   : > { %v7543_v19 = vpop.eup %7542  ;;  %v5524_v56 = vmul.f32 %v7541_v51, %v9131_v47  ;;  %v5438_v3 = vadd.f32 %v5420_v50, %v9392_v8  ;;  %v5425_v53 = vadd.f32 %v5407_v27, %v9393_v63  ;;  %v5426_v28 = vadd.f32 %v5408_v31, %v9394_v58  ;;  %v9406_v31 = vld [vmem:[#allocation13_spill] sm:$0xff] }
 0x435   : > { %v7545_v34 = vpop.eup %7544  ;;  %v6413_v62 = vpack.c.bf16 %v5598_v57, %v5597_v45  ;;  %v5523_v36 = vmul.f32 %v7543_v19, %v9139_v15  ;;  %v5455_v35 = vadd.f32 %v5437_v25, %v9395_v46  ;;  %v5405_v1 = vadd.f32 %v9204_v16, %v9396_v41  ;;  %v9407_v57 = vld [vmem:[#allocation14_spill] sm:$0xff]  ;;  %v9411_v58 = vld [vmem:[#allocation45_spill] sm:$0xff] }
 0x436   : > { %v7547_v49 = vpop.eup %7546  ;;  %v5456_v21 = vadd.f32 %v5438_v3, %v9397_v4  ;;  %v5443_v47 = vadd.f32 %v5425_v53, %v9398_v48  ;;  %v5444_v39 = vadd.f32 %v5426_v28, %v9399_v24  ;;  %v5406_v0 = vadd.f32 %v9199_v2, %v9400_v37  ;;  %v9409_v3 = vld [vmem:[#allocation38_spill] sm:$0xff]  ;;  %v9410_v53 = vld [vmem:[#allocation39_spill] sm:$0xff] }
 0x437   : > { %v7549_v43 = vpop.eup %7548  ;;  %5667 = vst [vmem:[%s9278_s3 + $0x20] sm:$0xff] %v6413_v62  ;;  %v5577_v15 = vmul.f32 %v7545_v34, %v5523_v36  ;;  %v5578_v38 = vmul.f32 %v7547_v49, %v5524_v56  ;;  %v5473_v18 = vadd.f32 %v5455_v35, %v9159_v13  ;;  %v5423_v7 = vadd.f32 %v5405_v1, %v9401_v40  ;;  %v9412_v34 = vld [vmem:[#allocation46_spill] sm:$0xff] }
 0x438   : > { %v7551_v32 = vpop.eup %7550  ;;  %v5529_v52 = vmul.f32 %v7549_v43, %v9147_v23  ;;  %v5474_v30 = vadd.f32 %v5456_v21, %v5387_v44  ;;  %v5461_v6 = vadd.f32 %v5443_v47, %v9402_v11  ;;  %v5462_v29 = vadd.f32 %v5444_v39, %v9403_v17 }
 0x439   : > { %v7553_v60 = vpop.eup %7552  ;;  %v5595_v12 = vmul.f32 %v5577_v15, %v9404_v42  ;;  %v5596_v22 = vmul.f32 %v5578_v38, %v9405_v33  ;;  %v5530_v20 = vmul.f32 %v7551_v32, %v9149_v59  ;;  %v5491_v45 = vadd.f32 1.0, %v5473_v18  ;;  %v9408_v59 = vld [vmem:[#allocation22_spill] sm:$0xff]  ;;  %v9413_v15 = vld [vmem:[#allocation8_spill] sm:$0xff] }
 0x43a   : > { %v7555_v26 = vpop.eup %7554  ;;  %v5583_v13 = vmul.f32 %v7553_v60, %v5529_v52  ;;  %v5492_v50 = vadd.f32 1.0, %v5474_v30  ;;  %v5545_v9 = vadd.f32 1e-08, %v5473_v18  ;;  %v5546_v27 = vadd.f32 1e-08, %v5474_v30  ;;  %v9416_v60 = vld [vmem:[#allocation26_spill] sm:$0xff] }
 0x43b   : > { %v6412_v10 = vpack.c.bf16 %v5596_v22, %v5595_v12  ;;  %v5584_v23 = vmul.f32 %v7555_v26, %v5530_v20  ;;  %7556 = vrcp.f32 %v5491_v45  ;;  %v5479_v44 = vadd.f32 %v5461_v6, %v5381_v61 }
 0x43c   : > { %v5601_v51 = vmul.f32 %v5583_v13, %v9406_v31  ;;  %7558 = vrcp.f32 %v5492_v50  ;;  %v5480_v14 = vadd.f32 %v5462_v29, %v5390_v55  ;;  %v5424_v5 = vadd.f32 %v5406_v0, %v9407_v57 }
 0x43d   : > { %5666 = vst [vmem:[%s9278_s3 + $0x18] sm:$0xff] %v6412_v10  ;;  %v5602_v25 = vmul.f32 %v5584_v23, %v9408_v59  ;;  %7560 = vrsqrt.f32 %v5545_v9  ;;  %v5497_v54 = vadd.f32 1.0, %v5479_v44  ;;  %v5551_v19 = vadd.f32 1e-08, %v5479_v44  ;;  %v9418_v23 = vld [vmem:[#allocation27_spill] sm:$0xff] }
 0x43e   : > { %7562 = vrsqrt.f32 %v5546_v27  ;;  %v5498_v56 = vadd.f32 1.0, %v5480_v14  ;;  %v5552_v8 = vadd.f32 1e-08, %v5480_v14  ;;  %v5441_v61 = vadd.f32 %v5423_v7, %v9409_v3  ;;  %v9414_v7 = vld [vmem:[#allocation24_spill] sm:$0xff]  ;;  %v9417_v27 = vld [vmem:[#allocation11_spill] sm:$0xff] }
 0x43f   : > { %v6415_v63 = vpack.c.bf16 %v5602_v25, %v5601_v51  ;;  %7564 = vrcp.f32 %v5497_v54  ;;  %v5442_v55 = vadd.f32 %v5424_v5, %v9410_v53 }
 0x440   : > { %7566 = vrcp.f32 %v5498_v56  ;;  %v5459_v28 = vadd.f32 %v5441_v61, %v9411_v58 }
 0x441   : > { %5669 = vst [vmem:[%s9278_s3 + $0x30] sm:$0xff] %v6415_v63  ;;  %7568 = vrsqrt.f32 %v5551_v19  ;;  %v5460_v62 = vadd.f32 %v5442_v55, %v9412_v34 }
 0x442   : > { %7570 = vrsqrt.f32 %v5552_v8  ;;  %v5477_v36 = vadd.f32 %v5459_v28, %v9199_v2 }
 0x443   : > { %v5478_v46 = vadd.f32 %v5460_v62, %v9204_v16 }
 0x444   : > { %v5495_v35 = vadd.f32 1.0, %v5477_v36  ;;  %v5549_v41 = vadd.f32 1e-08, %v5477_v36 }
 0x445   : > { %v7557_v1 = vpop.eup %7556  ;;  %v5496_v49 = vadd.f32 1.0, %v5478_v46  ;;  %v5550_v4 = vadd.f32 1e-08, %v5478_v46 }
 0x446   : > { %v7559_v21 = vpop.eup %7558  ;;  %v5527_v48 = vmul.f32 %v7557_v1, %v5473_v18  ;;  %7572 = vrcp.f32 %v5495_v35 }
 0x447   : > { %v7561_v47 = vpop.eup %7560  ;;  %v5528_v24 = vmul.f32 %v7559_v21, %v5474_v30  ;;  %7574 = vrcp.f32 %v5496_v49  ;;  %v9415_v30 = vld [vmem:[#allocation16_spill] sm:$0xff] }
 0x448   : > { %v7563_v39 = vpop.eup %7562  ;;  %v5581_v37 = vmul.f32 %v7561_v47, %v5527_v48  ;;  %7576 = vrsqrt.f32 %v5549_v41 }
 0x449   : > { %v7565_v0 = vpop.eup %7564  ;;  %v5582_v43 = vmul.f32 %v7563_v39, %v5528_v24  ;;  %7578 = vrsqrt.f32 %v5550_v4 }
 0x44a   : > { %v7567_v2 = vpop.eup %7566  ;;  %v5599_v16 = vmul.f32 %v5581_v37, %v9413_v15  ;;  %v5533_v38 = vmul.f32 %v7565_v0, %v5479_v44 }
 0x44b   : > { %v7569_v40 = vpop.eup %7568  ;;  %v5600_v32 = vmul.f32 %v5582_v43, %v9414_v7  ;;  %v5534_v52 = vmul.f32 %v7567_v2, %v5480_v14 }
 0x44c   : > { %v7571_v11 = vpop.eup %7570  ;;  %v5587_v18 = vmul.f32 %v7569_v40, %v5533_v38 }
 0x44d   : > { %v6414_v6 = vpack.c.bf16 %v5600_v32, %v5599_v16  ;;  %v5588_v17 = vmul.f32 %v7571_v11, %v5534_v52 }
 0x44e   : > { %v5605_v29 = vmul.f32 %v5587_v18, %v9415_v30 }
 0x44f   : > { %5668 = vst [vmem:[%s9278_s3 + $0x28] sm:$0xff] %v6414_v6  ;;  %v5606_v42 = vmul.f32 %v5588_v17, %v9416_v60 }
 0x450   : > { %v7573_v12 = vpop.eup %7572 }
 0x451   : > { %v7575_v33 = vpop.eup %7574  ;;  %v6417_v22 = vpack.c.bf16 %v5606_v42, %v5605_v29  ;;  %v5531_v20 = vmul.f32 %v7573_v12, %v5477_v36 }
 0x452   : > { %v7577_v45 = vpop.eup %7576  ;;  %v5532_v26 = vmul.f32 %v7575_v33, %v5478_v46 }
 0x453   : > { %v7579_v13 = vpop.eup %7578  ;;  %5671 = vst [vmem:[%s9278_s3 + $0x40] sm:$0xff] %v6417_v22  ;;  %v5585_v50 = vmul.f32 %v7577_v45, %v5531_v20 }
 0x454   : > { %v5586_v9 = vmul.f32 %v7579_v13, %v5532_v26 }
 0x455   : > { %v5603_v10 = vmul.f32 %v5585_v50, %v9417_v27 }
 0x456   : > { %v5604_v44 = vmul.f32 %v5586_v9, %v9418_v23 }
 0x458   : > { %v6416_v31 = vpack.c.bf16 %v5604_v44, %v5603_v10 }
 0x45a   : > { %5670 = vst [vmem:[%s9278_s3 + $0x38] sm:$0xff] %v6416_v31 }
 0x45b PF: > { %s13_s16 = sadd.s32 1, %s7618_s16   ;;  %s9419_s12 = smov %s7606_s13 }
 0x45c   : > { %p10_p12 = scmp.ge.s32.totalorder %s13_s16, 8   ;;  %s9420_s13 = smov %s7680_s20 }
 0x45d   : > { %s9421_s14 = smov %s7614_s15  ;;  %s9422_s15 = smov %s9424_s17 }
 0x45e   :  { %12 = sbr.rel (!%p10_p12) target bundleno = 3 (0x3), region = 113 }

// kernel: capsule_net_forward.9
= control target key start
LH: loop header
LB: loop body
LE: loop exit
PB: predicated region body
PF: predicated region fallthrough
CT: control target
= control target key end

     0   :  { %s4417_s12 = smov 0   ;;  %s4419_s13 = smov 0   ;;  %s4939_s0 = inlined_call_operand.vmem [shape: bf16[8,9216], index: 0, kind: input, shape index: {}]   ;;  %s4940_s1 = inlined_call_operand.vmem [shape: bf16[9216,160], index: 1, kind: input, shape index: {}]   ;;  %s4941_s2 = inlined_call_operand.vmem [shape: f32[1,160], index: 2, kind: input, shape index: {}]   ;;  %s4942_s3 = inlined_call_operand.vmem [shape: f32[8,160], index: 3, kind: output, shape index: {}]  }
   0x1   :  { %s4421_s14 = smov 0  }
   0x2 LB: > { %s25_s15 = sadd.s32 1, %s4390_s13  ;;  %p3328_p0 = scmp.ge.s32.totalorder %s4394_s14, 1  ;;  %s4394_s14 = sphi %s4421_s14, %s13_s14   ;;  %s4390_s13 = sphi %s4419_s13, %s4944_s13   ;;  %s4386_s12 = sphi %s4417_s12, %s4943_s12  }
   0x3   : > { %p26_p1 = scmp.ge.s32.totalorder %s25_s15, 3  ;;  %p194_p2 = scmp.lt.s32.totalorder %s4394_s14, 4 }
   0x5   : > { %s4946_s15 = smov (%p26_p1, %s25_s15), 0  ;;  %p195_p3 = pnand %p3328_p0, %p194_p2 }
   0x6   : > { %s240_s16 = smul.u32 (!%p195_p3), 24, %s4386_s12  ;;  %p3332_p6 = scmp.ne.s32.totalorder (!%p195_p3), %s4386_s12, 0 }
   0x7   : > { %198 = sbr.rel (%p195_p3) target bundleno = 641 (0x281), region = 32 }
   0x8   : > { %s250_s17 = smul.u32 (!%p195_p3), 384, %s4386_s12  ;;  %p243_p4 = scmp.lt.s32.totalorder (!%p195_p3), %s240_s16, 71 }
   0xa   : > { %p252_p5 = scmp.lt.s32.totalorder (!%p195_p3), %s250_s17, 1151 }
   0xe   : > { %s4948_s16 = smov (!%p243_p4, %s240_s16), 71  ;;  %s4950_s17 = smov (!%p252_p5, %s250_s17), 1151 }
   0xf   : > { %s3329_s18 = sshll.u32 %s4948_s16, 2  ;;  %s3746_s22 = sshll.u32 %s4950_s17, 3  ;;  %vm282_vm0 = vcmask (!%p3332_p6), 261120   ;;  %v4396_v0 = vmov (!%p3332_p6), 0.0  }
  0x10   : > { %s4442_s21 = scalar_lea.vmem %s4939_s0, %s3329_s18  ;;  %s4447_s25 = scalar_lea.vmem %s4940_s1, %s3746_s22  ;;  %281 = vst [vmem:[#allocation2] sm:$0xff] (!%p3332_p6), %v4396_v0  ;;  %283 = vst.msk [vmem:[#allocation2 + $0x8] sm:$0xff] (!%p3332_p6), %vm282_vm0, %v4396_v0 }
  0x11   : > { %280 = sbr.rel (%p3332_p6) target bundleno = 24 (0x18), region = 36 }
  0x18 PF: > { %v3772_v1 = vld [vmem:[%s4447_s25 + $0x4] ss:$8 sps:$4 sm:$0xff]   ;;  %v3776_v3 = vld [vmem:[%s4447_s25] ss:$8 sps:$4 sm:$0xff]   ;;  %v3778_v5 = vld [vmem:[%s4447_s25 + $0x14] ss:$8 sps:$4 sm:$0xff]  }
  0x19   : > { %v3774_v2 = vld [vmem:[%s4447_s25 + $0x104] ss:$8 sps:$4 sm:$0xff]   ;;  %2686 = vmatprep.subr.bf16.mxu0 %v3772_v1  ;;  %v3777_v4 = vld [vmem:[%s4447_s25 + $0x100] ss:$8 sps:$4 sm:$0xff]   ;;  %v3780_v6 = vld [vmem:[%s4447_s25 + $0x114] ss:$8 sps:$4 sm:$0xff]  }
  0x1a   : > { %2727 = vmatprep.subr.bf16.mxu1 %v3774_v2  ;;  %2687 = vmatpush1.bf16.msra.mxu0 %v3776_v3  ;;  %v3782_v7 = vld [vmem:[%s4447_s25 + $0x10] ss:$8 sps:$4 sm:$0xff]   ;;  %v3784_v9 = vld [vmem:[%s4447_s25 + $0x24] ss:$8 sps:$4 sm:$0xff]   ;;  %v3788_v11 = vld [vmem:[%s4447_s25 + $0x20] ss:$8 sps:$4 sm:$0xff]  }
  0x1b   : > { %2728 = vmatpush1.bf16.msra.mxu1 %v3777_v4  ;;  %2688 = vmatprep.subr.bf16.mxu0 %v3778_v5  ;;  %v3783_v8 = vld [vmem:[%s4447_s25 + $0x110] ss:$8 sps:$4 sm:$0xff]   ;;  %v3786_v10 = vld [vmem:[%s4447_s25 + $0x124] ss:$8 sps:$4 sm:$0xff]   ;;  %v3789_v12 = vld [vmem:[%s4447_s25 + $0x120] ss:$8 sps:$4 sm:$0xff]  }
  0x1c   : > { %2729 = vmatprep.subr.bf16.mxu1 %v3780_v6  ;;  %v3790_v13 = vld [vmem:[%s4447_s25 + $0x34] ss:$8 sps:$4 sm:$0xff]   ;;  %v3794_v15 = vld [vmem:[%s4447_s25 + $0x30] ss:$8 sps:$4 sm:$0xff]   ;;  %v3796_v17 = vld [vmem:[%s4447_s25 + $0x44] ss:$8 sps:$4 sm:$0xff]  }
  0x1d   : > { %v3792_v14 = vld [vmem:[%s4447_s25 + $0x134] ss:$8 sps:$4 sm:$0xff]   ;;  %v3795_v16 = vld [vmem:[%s4447_s25 + $0x130] ss:$8 sps:$4 sm:$0xff]   ;;  %v3798_v18 = vld [vmem:[%s4447_s25 + $0x144] ss:$8 sps:$4 sm:$0xff]  }
  0x1e   : > { %2689 = vmatpush1.bf16.msra.mxu0 %v3782_v7  ;;  %v3800_v19 = vld [vmem:[%s4447_s25 + $0x40] ss:$8 sps:$4 sm:$0xff]   ;;  %v3802_v21 = vld [vmem:[%s4447_s25 + $0x54] ss:$8 sps:$4 sm:$0xff]   ;;  %v3806_v23 = vld [vmem:[%s4447_s25 + $0x50] ss:$8 sps:$4 sm:$0xff]  }
  0x1f   : > { %2730 = vmatpush1.bf16.msra.mxu1 %v3783_v8  ;;  %2690 = vmatprep.subr.bf16.mxu0 %v3784_v9  ;;  %v3801_v20 = vld [vmem:[%s4447_s25 + $0x140] ss:$8 sps:$4 sm:$0xff]   ;;  %v3804_v22 = vld [vmem:[%s4447_s25 + $0x154] ss:$8 sps:$4 sm:$0xff]   ;;  %v3807_v24 = vld [vmem:[%s4447_s25 + $0x150] ss:$8 sps:$4 sm:$0xff]  }
  0x20   : > { %2731 = vmatprep.subr.bf16.mxu1 %v3786_v10  ;;  %v3808_v25 = vld [vmem:[%s4447_s25 + $0x64] ss:$8 sps:$4 sm:$0xff]   ;;  %v3812_v27 = vld [vmem:[%s4447_s25 + $0x60] ss:$8 sps:$4 sm:$0xff]   ;;  %v3814_v29 = vld [vmem:[%s4447_s25 + $0x74] ss:$8 sps:$4 sm:$0xff]  }
  0x21   : > { %v3810_v26 = vld [vmem:[%s4447_s25 + $0x164] ss:$8 sps:$4 sm:$0xff]   ;;  %v3813_v28 = vld [vmem:[%s4447_s25 + $0x160] ss:$8 sps:$4 sm:$0xff]   ;;  %v3816_v30 = vld [vmem:[%s4447_s25 + $0x174] ss:$8 sps:$4 sm:$0xff]  }
  0x22   : > { %2691 = vmatpush1.bf16.msra.mxu0 %v3788_v11  ;;  %v3818_v31 = vld [vmem:[%s4447_s25 + $0x70] ss:$8 sps:$4 sm:$0xff]   ;;  %v3820_v33 = vld [vmem:[%s4447_s25 + $0x84] ss:$8 sps:$4 sm:$0xff]   ;;  %v3824_v35 = vld [vmem:[%s4447_s25 + $0x80] ss:$8 sps:$4 sm:$0xff]  }
  0x23   : > { %2732 = vmatpush1.bf16.msra.mxu1 %v3789_v12  ;;  %2692 = vmatprep.subr.bf16.mxu0 %v3790_v13  ;;  %v3819_v32 = vld [vmem:[%s4447_s25 + $0x170] ss:$8 sps:$4 sm:$0xff]   ;;  %v3822_v34 = vld [vmem:[%s4447_s25 + $0x184] ss:$8 sps:$4 sm:$0xff]   ;;  %v3825_v36 = vld [vmem:[%s4447_s25 + $0x180] ss:$8 sps:$4 sm:$0xff]  }
  0x24   : > { %2733 = vmatprep.subr.bf16.mxu1 %v3792_v14  ;;  %v3826_v37 = vld [vmem:[%s4447_s25 + $0x94] ss:$8 sps:$4 sm:$0xff]   ;;  %v3830_v39 = vld [vmem:[%s4447_s25 + $0x90] ss:$8 sps:$4 sm:$0xff]   ;;  %v3832_v41 = vld [vmem:[%s4447_s25 + $0xa4] ss:$8 sps:$4 sm:$0xff]  }
  0x25   : > { %v3828_v38 = vld [vmem:[%s4447_s25 + $0x194] ss:$8 sps:$4 sm:$0xff]   ;;  %v3831_v40 = vld [vmem:[%s4447_s25 + $0x190] ss:$8 sps:$4 sm:$0xff]   ;;  %v3834_v42 = vld [vmem:[%s4447_s25 + $0x1a4] ss:$8 sps:$4 sm:$0xff]  }
  0x26   : > { %2693 = vmatpush1.bf16.msra.mxu0 %v3794_v15  ;;  %v3836_v43 = vld [vmem:[%s4447_s25 + $0xa0] ss:$8 sps:$4 sm:$0xff]   ;;  %v3838_v45 = vld [vmem:[%s4447_s25 + $0xb4] ss:$8 sps:$4 sm:$0xff]   ;;  %v3842_v50 = vld [vmem:[%s4447_s25 + $0xb0] ss:$8 sps:$4 sm:$0xff]  }
  0x27   : > { %2734 = vmatpush1.bf16.msra.mxu1 %v3795_v16  ;;  %2694 = vmatprep.subr.bf16.mxu0 %v3796_v17  ;;  %v3837_v44 = vld [vmem:[%s4447_s25 + $0x1a0] ss:$8 sps:$4 sm:$0xff]   ;;  %v3840_v46 = vld [vmem:[%s4447_s25 + $0x1b4] ss:$8 sps:$4 sm:$0xff]   ;;  %v3843_v51 = vld [vmem:[%s4447_s25 + $0x1b0] ss:$8 sps:$4 sm:$0xff]  }
  0x28   : > { %2735 = vmatprep.subr.bf16.mxu1 %v3798_v18  ;;  %v286_v47 = vld [vmem:[%s4442_s21] sm:$0xff]  ;;  %v287_v49 = vld [vmem:[%s4442_s21 + $0x8] sm:$0xff]  ;;  %v3850_v57 = vld [vmem:[%s4447_s25 + $0xd4] ss:$8 sps:$4 sm:$0xff]   ;;  %vm3181_vm1 = vcmask 261120   ;;  %p3741_p7 = scmp.ne.s32.totalorder %s4386_s12, 2 }
  0x29   : > { %v3334_v48 = vcombine.high %v286_v47, %v286_v47  ;;  %v3336_v52 = vcombine.high %v287_v49, %v287_v49  ;;  %v3844_v53 = vld [vmem:[%s4447_s25 + $0xc4] ss:$8 sps:$4 sm:$0xff]   ;;  %v3848_v55 = vld [vmem:[%s4447_s25 + $0xc0] ss:$8 sps:$4 sm:$0xff]   ;;  %v3852_v58 = vld [vmem:[%s4447_s25 + $0x1d4] ss:$8 sps:$4 sm:$0xff]   ;;  %v3333_v7 = vcombine.low %v286_v47, %v286_v47  ;;  %v3335_v8 = vcombine.low %v287_v49, %v287_v49 }
  0x2a   : > { %2695 = vmatpush1.bf16.msra.mxu0 %v3800_v19  ;;  %v3846_v54 = vld [vmem:[%s4447_s25 + $0x1c4] ss:$8 sps:$4 sm:$0xff]   ;;  %v3849_v56 = vld [vmem:[%s4447_s25 + $0x1c0] ss:$8 sps:$4 sm:$0xff]   ;;  %v3854_v59 = vld [vmem:[%s4447_s25 + $0xd0] ss:$8 sps:$4 sm:$0xff]  }
  0x2b   : > { %2736 = vmatpush1.bf16.msra.mxu1 %v3801_v20  ;;  %2696 = vmatprep.subr.bf16.mxu0 %v3802_v21  ;;  %v3855_v60 = vld [vmem:[%s4447_s25 + $0x1d0] ss:$8 sps:$4 sm:$0xff]   ;;  %v3856_v61 = vld [vmem:[%s4447_s25 + $0xe4] ss:$8 sps:$4 sm:$0xff]   ;;  %v3860_v63 = vld [vmem:[%s4447_s25 + $0xe0] ss:$8 sps:$4 sm:$0xff]  }
  0x2c   : > { %2737 = vmatprep.subr.bf16.mxu1 %v3804_v22  ;;  %2718 = vmatprep.mubr.bf16.mxu0 %v3334_v48  ;;  %v3858_v62 = vld [vmem:[%s4447_s25 + $0x1e4] ss:$8 sps:$4 sm:$0xff]   ;;  %v3861_v0 = vld [vmem:[%s4447_s25 + $0x1e0] ss:$8 sps:$4 sm:$0xff]   ;;  %v3862_v1 = vld [vmem:[%s4447_s25 + $0xf4] ss:$8 sps:$4 sm:$0xff]  }
  0x2d   : > { %2759 = vmatprep.mubr.bf16.mxu1 %v3336_v52  ;;  %v3864_v2 = vld [vmem:[%s4447_s25 + $0x1f4] ss:$8 sps:$4 sm:$0xff]   ;;  %v3866_v3 = vld [vmem:[%s4447_s25 + $0xf0] ss:$8 sps:$4 sm:$0xff]   ;;  %v3874_v5 = vld [vmem:[%s4447_s25 + $0x204] ss:$8 sps:$4 sm:$0xff]  }
  0x2e   : > { %2697 = vmatpush1.bf16.msra.mxu0 %v3806_v23  ;;  %v3867_v4 = vld [vmem:[%s4447_s25 + $0x1f0] ss:$8 sps:$4 sm:$0xff]   ;;  %v3877_v6 = vld [vmem:[%s4447_s25 + $0x304] ss:$8 sps:$4 sm:$0xff]   ;;  %v3872_v9 = vld [vmem:[%s4447_s25 + $0x200] ss:$8 sps:$4 sm:$0xff]  }
  0x2f   : > { %2738 = vmatpush1.bf16.msra.mxu1 %v3807_v24  ;;  %2698 = vmatprep.subr.bf16.mxu0 %v3808_v25  ;;  %v3875_v10 = vld [vmem:[%s4447_s25 + $0x300] ss:$8 sps:$4 sm:$0xff]   ;;  %v3880_v11 = vld [vmem:[%s4447_s25 + $0x214] ss:$8 sps:$4 sm:$0xff]   ;;  %v3878_v13 = vld [vmem:[%s4447_s25 + $0x210] ss:$8 sps:$4 sm:$0xff]  }
  0x30   : > { %2739 = vmatprep.subr.bf16.mxu1 %v3810_v26  ;;  %v3883_v12 = vld [vmem:[%s4447_s25 + $0x314] ss:$8 sps:$4 sm:$0xff]   ;;  %v3881_v14 = vld [vmem:[%s4447_s25 + $0x310] ss:$8 sps:$4 sm:$0xff]   ;;  %v3886_v15 = vld [vmem:[%s4447_s25 + $0x224] ss:$8 sps:$4 sm:$0xff]  }
  0x31   : > { %v3889_v16 = vld [vmem:[%s4447_s25 + $0x324] ss:$8 sps:$4 sm:$0xff]   ;;  %v3884_v17 = vld [vmem:[%s4447_s25 + $0x220] ss:$8 sps:$4 sm:$0xff]   ;;  %v3892_v19 = vld [vmem:[%s4447_s25 + $0x234] ss:$8 sps:$4 sm:$0xff]  }
  0x32   : > { %2699 = vmatpush1.bf16.msra.mxu0 %v3812_v27  ;;  %v3887_v18 = vld [vmem:[%s4447_s25 + $0x320] ss:$8 sps:$4 sm:$0xff]   ;;  %v3895_v20 = vld [vmem:[%s4447_s25 + $0x334] ss:$8 sps:$4 sm:$0xff]   ;;  %v3890_v21 = vld [vmem:[%s4447_s25 + $0x230] ss:$8 sps:$4 sm:$0xff]  }
  0x33   : > { %2740 = vmatpush1.bf16.msra.mxu1 %v3813_v28  ;;  %2700 = vmatprep.subr.bf16.mxu0 %v3814_v29  ;;  %v3893_v22 = vld [vmem:[%s4447_s25 + $0x330] ss:$8 sps:$4 sm:$0xff]   ;;  %v3898_v23 = vld [vmem:[%s4447_s25 + $0x244] ss:$8 sps:$4 sm:$0xff]   ;;  %v3896_v25 = vld [vmem:[%s4447_s25 + $0x240] ss:$8 sps:$4 sm:$0xff]  }
  0x34   : > { %2741 = vmatprep.subr.bf16.mxu1 %v3816_v30  ;;  %v3901_v24 = vld [vmem:[%s4447_s25 + $0x344] ss:$8 sps:$4 sm:$0xff]   ;;  %v3899_v26 = vld [vmem:[%s4447_s25 + $0x340] ss:$8 sps:$4 sm:$0xff]   ;;  %v3904_v27 = vld [vmem:[%s4447_s25 + $0x254] ss:$8 sps:$4 sm:$0xff]  }
  0x35   : > { %v3907_v28 = vld [vmem:[%s4447_s25 + $0x354] ss:$8 sps:$4 sm:$0xff]   ;;  %v3902_v29 = vld [vmem:[%s4447_s25 + $0x250] ss:$8 sps:$4 sm:$0xff]   ;;  %v3937_v52 = vld [vmem:[%s4447_s25 + $0x3a4] ss:$8 sps:$4 sm:$0xff]  }
  0x36   : > { %2701 = vmatpush1.bf16.msra.mxu0 %v3818_v31  ;;  %v3905_v30 = vld [vmem:[%s4447_s25 + $0x350] ss:$8 sps:$4 sm:$0xff]   ;;  %v3910_v31 = vld [vmem:[%s4447_s25 + $0x264] ss:$8 sps:$4 sm:$0xff]   ;;  %v3928_v47 = vld [vmem:[%s4447_s25 + $0x294] ss:$8 sps:$4 sm:$0xff]  }
  0x37   : > { %2742 = vmatpush1.bf16.msra.mxu1 %v3819_v32  ;;  %2702 = vmatprep.subr.bf16.mxu0 %v3820_v33  ;;  %v3913_v32 = vld [vmem:[%s4447_s25 + $0x364] ss:$8 sps:$4 sm:$0xff]   ;;  %v4543_v33 = vld [vmem:[%s4442_s21 + $0x10] sm:$0xff] }
  0x38   : > { %2743 = vmatprep.subr.bf16.mxu1 %v3822_v34  ;;  %v4546_v34 = vld [vmem:[%s4442_s21 + $0x18] sm:$0xff] }
  0x39   : > { %v3931_v48 = vld [vmem:[%s4447_s25 + $0x394] ss:$8 sps:$4 sm:$0xff]   ;;  %v3926_v49 = vld [vmem:[%s4447_s25 + $0x290] ss:$8 sps:$4 sm:$0xff]  }
  0x3a   : > { %2703 = vmatpush1.bf16.msra.mxu0 %v3824_v35  ;;  %v3908_v35 = vld [vmem:[%s4447_s25 + $0x260] ss:$8 sps:$4 sm:$0xff]  }
  0x3b   : > { %2744 = vmatpush1.bf16.msra.mxu1 %v3825_v36  ;;  %2704 = vmatprep.subr.bf16.mxu0 %v3826_v37  ;;  %v3911_v36 = vld [vmem:[%s4447_s25 + $0x360] ss:$8 sps:$4 sm:$0xff]   ;;  %v3338_v37 = vcombine.high %v4543_v33, %v4543_v33 }
  0x3c   : > { %2745 = vmatprep.subr.bf16.mxu1 %v3828_v38  ;;  %v3340_v38 = vcombine.high %v4546_v34, %v4546_v34 }
  0x3e   : > { %2705 = vmatpush1.bf16.msra.mxu0 %v3830_v39  ;;  %v3916_v39 = vld [vmem:[%s4447_s25 + $0x274] ss:$8 sps:$4 sm:$0xff]  }
  0x3f   : > { %2746 = vmatpush1.bf16.msra.mxu1 %v3831_v40  ;;  %2706 = vmatprep.subr.bf16.mxu0 %v3832_v41  ;;  %v3919_v40 = vld [vmem:[%s4447_s25 + $0x374] ss:$8 sps:$4 sm:$0xff]   ;;  %v3914_v41 = vld [vmem:[%s4447_s25 + $0x270] ss:$8 sps:$4 sm:$0xff]  }
  0x40   : > { %2747 = vmatprep.subr.bf16.mxu1 %v3834_v42  ;;  %v3917_v42 = vld [vmem:[%s4447_s25 + $0x370] ss:$8 sps:$4 sm:$0xff]  }
  0x42   : > { %2707 = vmatpush1.bf16.msra.mxu0 %v3836_v43  ;;  %v3922_v43 = vld [vmem:[%s4447_s25 + $0x284] ss:$8 sps:$4 sm:$0xff]  }
  0x43   : > { %2748 = vmatpush1.bf16.msra.mxu1 %v3837_v44  ;;  %2708 = vmatprep.subr.bf16.mxu0 %v3838_v45  ;;  %v3925_v44 = vld [vmem:[%s4447_s25 + $0x384] ss:$8 sps:$4 sm:$0xff]   ;;  %v3920_v45 = vld [vmem:[%s4447_s25 + $0x280] ss:$8 sps:$4 sm:$0xff]  }
  0x44   : > { %2749 = vmatprep.subr.bf16.mxu1 %v3840_v46  ;;  %v3923_v46 = vld [vmem:[%s4447_s25 + $0x380] ss:$8 sps:$4 sm:$0xff]  }
  0x46   : > { %2709 = vmatpush1.bf16.msra.mxu0 %v3842_v50  ;;  %v3929_v50 = vld [vmem:[%s4447_s25 + $0x390] ss:$8 sps:$4 sm:$0xff]  }
  0x47   : > { %2750 = vmatpush1.bf16.msra.mxu1 %v3843_v51  ;;  %2710 = vmatprep.subr.bf16.mxu0 %v3844_v53  ;;  %v3934_v51 = vld [vmem:[%s4447_s25 + $0x2a4] ss:$8 sps:$4 sm:$0xff]   ;;  %v3932_v53 = vld [vmem:[%s4447_s25 + $0x2a0] ss:$8 sps:$4 sm:$0xff]  }
  0x48   : > { %2751 = vmatprep.subr.bf16.mxu1 %v3846_v54  ;;  %v3935_v54 = vld [vmem:[%s4447_s25 + $0x3a0] ss:$8 sps:$4 sm:$0xff]  }
  0x4a   : > { %2711 = vmatpush1.bf16.msra.mxu0 %v3848_v55  ;;  %v3940_v55 = vld [vmem:[%s4447_s25 + $0x2b4] ss:$8 sps:$4 sm:$0xff]  }
  0x4b   : > { %2752 = vmatpush1.bf16.msra.mxu1 %v3849_v56  ;;  %2712 = vmatprep.subr.bf16.mxu0 %v3850_v57  ;;  %v3943_v56 = vld [vmem:[%s4447_s25 + $0x3b4] ss:$8 sps:$4 sm:$0xff]   ;;  %v3938_v57 = vld [vmem:[%s4447_s25 + $0x2b0] ss:$8 sps:$4 sm:$0xff]  }
  0x4c   : > { %2753 = vmatprep.subr.bf16.mxu1 %v3852_v58  ;;  %v3941_v58 = vld [vmem:[%s4447_s25 + $0x3b0] ss:$8 sps:$4 sm:$0xff]  }
  0x4e   : > { %2713 = vmatpush1.bf16.msra.mxu0 %v3854_v59  ;;  %v3946_v59 = vld [vmem:[%s4447_s25 + $0x2c4] ss:$8 sps:$4 sm:$0xff]  }
  0x4f   : > { %2754 = vmatpush1.bf16.msra.mxu1 %v3855_v60  ;;  %2714 = vmatprep.subr.bf16.mxu0 %v3856_v61  ;;  %v3949_v60 = vld [vmem:[%s4447_s25 + $0x3c4] ss:$8 sps:$4 sm:$0xff]   ;;  %v3944_v61 = vld [vmem:[%s4447_s25 + $0x2c0] ss:$8 sps:$4 sm:$0xff]  }
  0x50   : > { %2755 = vmatprep.subr.bf16.mxu1 %v3858_v62  ;;  %v3947_v62 = vld [vmem:[%s4447_s25 + $0x3c0] ss:$8 sps:$4 sm:$0xff]  }
  0x52   : > { %2715 = vmatpush1.bf16.msra.mxu0 %v3860_v63  ;;  %v3952_v63 = vld [vmem:[%s4447_s25 + $0x2d4] ss:$8 sps:$4 sm:$0xff]  }
  0x53   : > { %2756 = vmatpush1.bf16.msra.mxu1 %v3861_v0  ;;  %2716 = vmatprep.subr.bf16.mxu0 %v3862_v1  ;;  %v3955_v0 = vld [vmem:[%s4447_s25 + $0x3d4] ss:$8 sps:$4 sm:$0xff]   ;;  %v3950_v1 = vld [vmem:[%s4447_s25 + $0x2d0] ss:$8 sps:$4 sm:$0xff]  }
  0x54   : > { %2757 = vmatprep.subr.bf16.mxu1 %v3864_v2  ;;  %v3953_v2 = vld [vmem:[%s4447_s25 + $0x3d0] ss:$8 sps:$4 sm:$0xff]  }
  0x56   : > { %2717 = vmatpush1.bf16.msra.mxu0 %v3866_v3  ;;  %v3958_v3 = vld [vmem:[%s4447_s25 + $0x2e4] ss:$8 sps:$4 sm:$0xff]  }
  0x57   : > { %2758 = vmatpush1.bf16.msra.mxu1 %v3867_v4  ;;  %2768 = vmatprep.subr.bf16.mxu0 %v3874_v5  ;;  %v3961_v4 = vld [vmem:[%s4447_s25 + $0x3e4] ss:$8 sps:$4 sm:$0xff]   ;;  %v3956_v5 = vld [vmem:[%s4447_s25 + $0x2e0] ss:$8 sps:$4 sm:$0xff]  }
  0x58   : > { %2809 = vmatprep.subr.bf16.mxu1 %v3877_v6  ;;  %v3959_v6 = vld [vmem:[%s4447_s25 + $0x3e0] ss:$8 sps:$4 sm:$0xff]  }
  0x59   : > { %2719 = vmatmul.mubr.bf16.vlgmr.msra.gmra.mrb[0].mxu0 %v3333_v7  ;;  %v3964_v7 = vld [vmem:[%s4447_s25 + $0x2f4] ss:$8 sps:$4 sm:$0xff]  }
  0x5a   : > { %2760 = vmatmul.mubr.bf16.vlgmr.msra.gmra.mrb[0].mxu1 %v3335_v8  ;;  %2769 = vmatpush1.bf16.msra.mxu0 %v3872_v9  ;;  %v3967_v8 = vld [vmem:[%s4447_s25 + $0x3f4] ss:$8 sps:$4 sm:$0xff]   ;;  %v3962_v9 = vld [vmem:[%s4447_s25 + $0x2f0] ss:$8 sps:$4 sm:$0xff]  }
  0x5b   : > { %2810 = vmatpush1.bf16.msra.mxu1 %v3875_v10  ;;  %2770 = vmatprep.subr.bf16.mxu0 %v3880_v11  ;;  %v3965_v10 = vld [vmem:[%s4447_s25 + $0x3f0] ss:$8 sps:$4 sm:$0xff]   ;;  %v3974_v11 = vld [vmem:[%s4447_s25 + $0x404] ss:$8 sps:$4 sm:$0xff]  }
  0x5c   : > { %2811 = vmatprep.subr.bf16.mxu1 %v3883_v12  ;;  %2800 = vmatprep.mubr.bf16.mxu0 %v3338_v37  ;;  %v3977_v12 = vld [vmem:[%s4447_s25 + $0x504] ss:$8 sps:$4 sm:$0xff]   ;;  %v4004_v37 = vld [vmem:[%s4447_s25 + $0x454] ss:$8 sps:$4 sm:$0xff]  }
  0x5d   : > { %2841 = vmatprep.mubr.bf16.mxu1 %v3340_v38  ;;  %v4007_v38 = vld [vmem:[%s4447_s25 + $0x554] ss:$8 sps:$4 sm:$0xff]  }
  0x5e   : > { %2771 = vmatpush1.bf16.msra.mxu0 %v3878_v13  ;;  %v3337_v13 = vcombine.low %v4543_v33, %v4543_v33  ;;  %v3998_v33 = vld [vmem:[%s4447_s25 + $0x444] ss:$8 sps:$4 sm:$0xff]  }
  0x5f   : > { %2812 = vmatpush1.bf16.msra.mxu1 %v3881_v14  ;;  %2772 = vmatprep.subr.bf16.mxu0 %v3886_v15  ;;  %v3339_v14 = vcombine.low %v4546_v34, %v4546_v34  ;;  %v3972_v15 = vld [vmem:[%s4447_s25 + $0x400] ss:$8 sps:$4 sm:$0xff]   ;;  %v4001_v34 = vld [vmem:[%s4447_s25 + $0x544] ss:$8 sps:$4 sm:$0xff]  }
  0x60   : > { %2813 = vmatprep.subr.bf16.mxu1 %v3889_v16  ;;  %v3975_v16 = vld [vmem:[%s4447_s25 + $0x500] ss:$8 sps:$4 sm:$0xff]  }
  0x62   : > { %2773 = vmatpush1.bf16.msra.mxu0 %v3884_v17  ;;  %v3980_v17 = vld [vmem:[%s4447_s25 + $0x414] ss:$8 sps:$4 sm:$0xff]  }
  0x63   : > { %2814 = vmatpush1.bf16.msra.mxu1 %v3887_v18  ;;  %2774 = vmatprep.subr.bf16.mxu0 %v3892_v19  ;;  %v3983_v18 = vld [vmem:[%s4447_s25 + $0x514] ss:$8 sps:$4 sm:$0xff]   ;;  %v4601_v19 = vld [vmem:[%s4442_s21 + $0x20] sm:$0xff] }
  0x64   : > { %2815 = vmatprep.subr.bf16.mxu1 %v3895_v20  ;;  %v4604_v20 = vld [vmem:[%s4442_s21 + $0x28] sm:$0xff] }
  0x66   : > { %2775 = vmatpush1.bf16.msra.mxu0 %v3890_v21  ;;  %v3342_v21 = vcombine.high %v4601_v19, %v4601_v19 }
  0x67   : > { %2816 = vmatpush1.bf16.msra.mxu1 %v3893_v22  ;;  %2776 = vmatprep.subr.bf16.mxu0 %v3898_v23  ;;  %v3344_v22 = vcombine.high %v4604_v20, %v4604_v20  ;;  %v3978_v23 = vld [vmem:[%s4447_s25 + $0x410] ss:$8 sps:$4 sm:$0xff]  }
  0x68   : > { %2817 = vmatprep.subr.bf16.mxu1 %v3901_v24  ;;  %v3981_v24 = vld [vmem:[%s4447_s25 + $0x510] ss:$8 sps:$4 sm:$0xff]  }
  0x6a   : > { %2777 = vmatpush1.bf16.msra.mxu0 %v3896_v25  ;;  %v3986_v25 = vld [vmem:[%s4447_s25 + $0x424] ss:$8 sps:$4 sm:$0xff]  }
  0x6b   : > { %2818 = vmatpush1.bf16.msra.mxu1 %v3899_v26  ;;  %2778 = vmatprep.subr.bf16.mxu0 %v3904_v27  ;;  %v3989_v26 = vld [vmem:[%s4447_s25 + $0x524] ss:$8 sps:$4 sm:$0xff]   ;;  %v3984_v27 = vld [vmem:[%s4447_s25 + $0x420] ss:$8 sps:$4 sm:$0xff]  }
  0x6c   : > { %2819 = vmatprep.subr.bf16.mxu1 %v3907_v28  ;;  %v3987_v28 = vld [vmem:[%s4447_s25 + $0x520] ss:$8 sps:$4 sm:$0xff]  }
  0x6e   : > { %2779 = vmatpush1.bf16.msra.mxu0 %v3902_v29  ;;  %v3992_v29 = vld [vmem:[%s4447_s25 + $0x434] ss:$8 sps:$4 sm:$0xff]  }
  0x6f   : > { %2820 = vmatpush1.bf16.msra.mxu1 %v3905_v30  ;;  %2780 = vmatprep.subr.bf16.mxu0 %v3910_v31  ;;  %v3995_v30 = vld [vmem:[%s4447_s25 + $0x534] ss:$8 sps:$4 sm:$0xff]   ;;  %v3990_v31 = vld [vmem:[%s4447_s25 + $0x430] ss:$8 sps:$4 sm:$0xff]  }
  0x70   : > { %2821 = vmatprep.subr.bf16.mxu1 %v3913_v32  ;;  %v3993_v32 = vld [vmem:[%s4447_s25 + $0x530] ss:$8 sps:$4 sm:$0xff]  }
  0x72   : > { %2781 = vmatpush1.bf16.msra.mxu0 %v3908_v35  ;;  %v3996_v35 = vld [vmem:[%s4447_s25 + $0x440] ss:$8 sps:$4 sm:$0xff]  }
  0x73   : > { %2822 = vmatpush1.bf16.msra.mxu1 %v3911_v36  ;;  %2782 = vmatprep.subr.bf16.mxu0 %v3916_v39  ;;  %v3999_v36 = vld [vmem:[%s4447_s25 + $0x540] ss:$8 sps:$4 sm:$0xff]   ;;  %v4002_v39 = vld [vmem:[%s4447_s25 + $0x450] ss:$8 sps:$4 sm:$0xff]  }
  0x74   : > { %2823 = vmatprep.subr.bf16.mxu1 %v3919_v40  ;;  %v4005_v40 = vld [vmem:[%s4447_s25 + $0x550] ss:$8 sps:$4 sm:$0xff]  }
  0x76   : > { %2783 = vmatpush1.bf16.msra.mxu0 %v3914_v41  ;;  %v4010_v41 = vld [vmem:[%s4447_s25 + $0x464] ss:$8 sps:$4 sm:$0xff]  }
  0x77   : > { %2824 = vmatpush1.bf16.msra.mxu1 %v3917_v42  ;;  %2784 = vmatprep.subr.bf16.mxu0 %v3922_v43  ;;  %v4013_v42 = vld [vmem:[%s4447_s25 + $0x564] ss:$8 sps:$4 sm:$0xff]   ;;  %v4008_v43 = vld [vmem:[%s4447_s25 + $0x460] ss:$8 sps:$4 sm:$0xff]  }
  0x78   : > { %2825 = vmatprep.subr.bf16.mxu1 %v3925_v44  ;;  %v4011_v44 = vld [vmem:[%s4447_s25 + $0x560] ss:$8 sps:$4 sm:$0xff]  }
  0x7a   : > { %2785 = vmatpush1.bf16.msra.mxu0 %v3920_v45  ;;  %v4016_v45 = vld [vmem:[%s4447_s25 + $0x474] ss:$8 sps:$4 sm:$0xff]  }
  0x7b   : > { %2826 = vmatpush1.bf16.msra.mxu1 %v3923_v46  ;;  %2786 = vmatprep.subr.bf16.mxu0 %v3928_v47  ;;  %v4019_v46 = vld [vmem:[%s4447_s25 + $0x574] ss:$8 sps:$4 sm:$0xff]   ;;  %v4014_v47 = vld [vmem:[%s4447_s25 + $0x470] ss:$8 sps:$4 sm:$0xff]  }
  0x7c   : > { %2827 = vmatprep.subr.bf16.mxu1 %v3931_v48  ;;  %v4017_v48 = vld [vmem:[%s4447_s25 + $0x570] ss:$8 sps:$4 sm:$0xff]  }
  0x7e   : > { %2787 = vmatpush1.bf16.msra.mxu0 %v3926_v49  ;;  %v4022_v49 = vld [vmem:[%s4447_s25 + $0x484] ss:$8 sps:$4 sm:$0xff]  }
  0x7f   : > { %2828 = vmatpush1.bf16.msra.mxu1 %v3929_v50  ;;  %2788 = vmatprep.subr.bf16.mxu0 %v3934_v51  ;;  %v4025_v50 = vld [vmem:[%s4447_s25 + $0x584] ss:$8 sps:$4 sm:$0xff]   ;;  %v4020_v51 = vld [vmem:[%s4447_s25 + $0x480] ss:$8 sps:$4 sm:$0xff]  }
  0x80   : > { %2829 = vmatprep.subr.bf16.mxu1 %v3937_v52  ;;  %v4023_v52 = vld [vmem:[%s4447_s25 + $0x580] ss:$8 sps:$4 sm:$0xff]  }
  0x82   : > { %2789 = vmatpush1.bf16.msra.mxu0 %v3932_v53  ;;  %v4028_v53 = vld [vmem:[%s4447_s25 + $0x494] ss:$8 sps:$4 sm:$0xff]  }
  0x83   : > { %2830 = vmatpush1.bf16.msra.mxu1 %v3935_v54  ;;  %2790 = vmatprep.subr.bf16.mxu0 %v3940_v55  ;;  %v4031_v54 = vld [vmem:[%s4447_s25 + $0x594] ss:$8 sps:$4 sm:$0xff]   ;;  %v4026_v55 = vld [vmem:[%s4447_s25 + $0x490] ss:$8 sps:$4 sm:$0xff]  }
  0x84   : > { %2831 = vmatprep.subr.bf16.mxu1 %v3943_v56  ;;  %v4029_v56 = vld [vmem:[%s4447_s25 + $0x590] ss:$8 sps:$4 sm:$0xff]  }
  0x86   : > { %2791 = vmatpush1.bf16.msra.mxu0 %v3938_v57  ;;  %v4034_v57 = vld [vmem:[%s4447_s25 + $0x4a4] ss:$8 sps:$4 sm:$0xff]  }
  0x87   : > { %2832 = vmatpush1.bf16.msra.mxu1 %v3941_v58  ;;  %2792 = vmatprep.subr.bf16.mxu0 %v3946_v59  ;;  %v4037_v58 = vld [vmem:[%s4447_s25 + $0x5a4] ss:$8 sps:$4 sm:$0xff]   ;;  %v4032_v59 = vld [vmem:[%s4447_s25 + $0x4a0] ss:$8 sps:$4 sm:$0xff]  }
  0x88   : > { %2833 = vmatprep.subr.bf16.mxu1 %v3949_v60  ;;  %v4035_v60 = vld [vmem:[%s4447_s25 + $0x5a0] ss:$8 sps:$4 sm:$0xff]  }
  0x8a   : > { %2793 = vmatpush1.bf16.msra.mxu0 %v3944_v61  ;;  %v4040_v61 = vld [vmem:[%s4447_s25 + $0x4b4] ss:$8 sps:$4 sm:$0xff]  }
  0x8b   : > { %2834 = vmatpush1.bf16.msra.mxu1 %v3947_v62  ;;  %2794 = vmatprep.subr.bf16.mxu0 %v3952_v63  ;;  %v4043_v62 = vld [vmem:[%s4447_s25 + $0x5b4] ss:$8 sps:$4 sm:$0xff]   ;;  %v4038_v63 = vld [vmem:[%s4447_s25 + $0x4b0] ss:$8 sps:$4 sm:$0xff]  }
  0x8c   : > { %2835 = vmatprep.subr.bf16.mxu1 %v3955_v0  ;;  %v4041_v0 = vld [vmem:[%s4447_s25 + $0x5b0] ss:$8 sps:$4 sm:$0xff]  }
  0x8e   : > { %2795 = vmatpush1.bf16.msra.mxu0 %v3950_v1  ;;  %v4046_v1 = vld [vmem:[%s4447_s25 + $0x4c4] ss:$8 sps:$4 sm:$0xff]  }
  0x8f   : > { %2836 = vmatpush1.bf16.msra.mxu1 %v3953_v2  ;;  %2796 = vmatprep.subr.bf16.mxu0 %v3958_v3  ;;  %v4049_v2 = vld [vmem:[%s4447_s25 + $0x5c4] ss:$8 sps:$4 sm:$0xff]   ;;  %v4044_v3 = vld [vmem:[%s4447_s25 + $0x4c0] ss:$8 sps:$4 sm:$0xff]  }
  0x90   : > { %2837 = vmatprep.subr.bf16.mxu1 %v3961_v4  ;;  %v4047_v4 = vld [vmem:[%s4447_s25 + $0x5c0] ss:$8 sps:$4 sm:$0xff]  }
  0x92   : > { %2797 = vmatpush1.bf16.msra.mxu0 %v3956_v5  ;;  %v4052_v5 = vld [vmem:[%s4447_s25 + $0x4d4] ss:$8 sps:$4 sm:$0xff]  }
  0x93   : > { %2838 = vmatpush1.bf16.msra.mxu1 %v3959_v6  ;;  %2798 = vmatprep.subr.bf16.mxu0 %v3964_v7  ;;  %v4055_v6 = vld [vmem:[%s4447_s25 + $0x5d4] ss:$8 sps:$4 sm:$0xff]   ;;  %v4050_v7 = vld [vmem:[%s4447_s25 + $0x4d0] ss:$8 sps:$4 sm:$0xff]  }
  0x94   : > { %2839 = vmatprep.subr.bf16.mxu1 %v3967_v8  ;;  %v4053_v8 = vld [vmem:[%s4447_s25 + $0x5d0] ss:$8 sps:$4 sm:$0xff]  }
  0x96   : > { %2799 = vmatpush1.bf16.msra.mxu0 %v3962_v9  ;;  %v4058_v9 = vld [vmem:[%s4447_s25 + $0x4e4] ss:$8 sps:$4 sm:$0xff]  }
  0x97   : > { %2840 = vmatpush1.bf16.msra.mxu1 %v3965_v10  ;;  %2850 = vmatprep.subr.bf16.mxu0 %v3974_v11  ;;  %v4061_v10 = vld [vmem:[%s4447_s25 + $0x5e4] ss:$8 sps:$4 sm:$0xff]   ;;  %v4056_v11 = vld [vmem:[%s4447_s25 + $0x4e0] ss:$8 sps:$4 sm:$0xff]  }
  0x98   : > { %2891 = vmatprep.subr.bf16.mxu1 %v3977_v12  ;;  %v4059_v12 = vld [vmem:[%s4447_s25 + $0x5e0] ss:$8 sps:$4 sm:$0xff]  }
  0x99   : > { %2801 = vmatmul.mubr.bf16.vlgmr.msra.gmra.mrb[4].mxu0 %v3337_v13  ;;  %v4064_v13 = vld [vmem:[%s4447_s25 + $0x4f4] ss:$8 sps:$4 sm:$0xff]  }
  0x9a   : > { %2842 = vmatmul.mubr.bf16.vlgmr.msra.gmra.mrb[4].mxu1 %v3339_v14  ;;  %2851 = vmatpush1.bf16.msra.mxu0 %v3972_v15  ;;  %v4067_v14 = vld [vmem:[%s4447_s25 + $0x5f4] ss:$8 sps:$4 sm:$0xff]   ;;  %v4062_v15 = vld [vmem:[%s4447_s25 + $0x4f0] ss:$8 sps:$4 sm:$0xff]  }
  0x9b   : > { %2892 = vmatpush1.bf16.msra.mxu1 %v3975_v16  ;;  %2852 = vmatprep.subr.bf16.mxu0 %v3980_v17  ;;  %v4065_v16 = vld [vmem:[%s4447_s25 + $0x5f0] ss:$8 sps:$4 sm:$0xff]   ;;  %v4074_v17 = vld [vmem:[%s4447_s25 + $0x604] ss:$8 sps:$4 sm:$0xff]  }
  0x9c   : > { %2893 = vmatprep.subr.bf16.mxu1 %v3983_v18  ;;  %2882 = vmatprep.mubr.bf16.mxu0 %v3342_v21  ;;  %v4077_v18 = vld [vmem:[%s4447_s25 + $0x704] ss:$8 sps:$4 sm:$0xff]   ;;  %v4072_v21 = vld [vmem:[%s4447_s25 + $0x600] ss:$8 sps:$4 sm:$0xff]  }
  0x9d   : > { %2923 = vmatprep.mubr.bf16.mxu1 %v3344_v22  ;;  %v4075_v22 = vld [vmem:[%s4447_s25 + $0x700] ss:$8 sps:$4 sm:$0xff]  }
  0x9e   : > { %2853 = vmatpush1.bf16.msra.mxu0 %v3978_v23  ;;  %v3341_v23 = vcombine.low %v4601_v19, %v4601_v19 }
  0x9f   : > { %2894 = vmatpush1.bf16.msra.mxu1 %v3981_v24  ;;  %2854 = vmatprep.subr.bf16.mxu0 %v3986_v25  ;;  %v3343_v24 = vcombine.low %v4604_v20, %v4604_v20  ;;  %v4677_v25 = vld [vmem:[%s4442_s21 + $0x30] sm:$0xff] }
  0xa0   : > { %2895 = vmatprep.subr.bf16.mxu1 %v3989_v26  ;;  %v4680_v26 = vld [vmem:[%s4442_s21 + $0x38] sm:$0xff]  ;;  %v3346_v19 = vcombine.high %v4677_v25, %v4677_v25 }
  0xa1   : > { %v3348_v20 = vcombine.high %v4680_v26, %v4680_v26 }
  0xa2   : > { %2855 = vmatpush1.bf16.msra.mxu0 %v3984_v27  ;;  %v4080_v27 = vld [vmem:[%s4447_s25 + $0x614] ss:$8 sps:$4 sm:$0xff]  }
  0xa3   : > { %2896 = vmatpush1.bf16.msra.mxu1 %v3987_v28  ;;  %2856 = vmatprep.subr.bf16.mxu0 %v3992_v29  ;;  %v4083_v28 = vld [vmem:[%s4447_s25 + $0x714] ss:$8 sps:$4 sm:$0xff]   ;;  %v4078_v29 = vld [vmem:[%s4447_s25 + $0x610] ss:$8 sps:$4 sm:$0xff]  }
  0xa4   : > { %2897 = vmatprep.subr.bf16.mxu1 %v3995_v30  ;;  %v4081_v30 = vld [vmem:[%s4447_s25 + $0x710] ss:$8 sps:$4 sm:$0xff]  }
  0xa6   : > { %2857 = vmatpush1.bf16.msra.mxu0 %v3990_v31  ;;  %v4086_v31 = vld [vmem:[%s4447_s25 + $0x624] ss:$8 sps:$4 sm:$0xff]  }
  0xa7   : > { %2898 = vmatpush1.bf16.msra.mxu1 %v3993_v32  ;;  %2858 = vmatprep.subr.bf16.mxu0 %v3998_v33  ;;  %v4089_v32 = vld [vmem:[%s4447_s25 + $0x724] ss:$8 sps:$4 sm:$0xff]   ;;  %v4084_v33 = vld [vmem:[%s4447_s25 + $0x620] ss:$8 sps:$4 sm:$0xff]  }
  0xa8   : > { %2899 = vmatprep.subr.bf16.mxu1 %v4001_v34  ;;  %v4087_v34 = vld [vmem:[%s4447_s25 + $0x720] ss:$8 sps:$4 sm:$0xff]  }
  0xaa   : > { %2859 = vmatpush1.bf16.msra.mxu0 %v3996_v35  ;;  %v4092_v35 = vld [vmem:[%s4447_s25 + $0x634] ss:$8 sps:$4 sm:$0xff]  }
  0xab   : > { %2900 = vmatpush1.bf16.msra.mxu1 %v3999_v36  ;;  %2860 = vmatprep.subr.bf16.mxu0 %v4004_v37  ;;  %v4095_v36 = vld [vmem:[%s4447_s25 + $0x734] ss:$8 sps:$4 sm:$0xff]   ;;  %v4090_v37 = vld [vmem:[%s4447_s25 + $0x630] ss:$8 sps:$4 sm:$0xff]  }
  0xac   : > { %2901 = vmatprep.subr.bf16.mxu1 %v4007_v38  ;;  %v4093_v38 = vld [vmem:[%s4447_s25 + $0x730] ss:$8 sps:$4 sm:$0xff]  }
  0xae   : > { %2861 = vmatpush1.bf16.msra.mxu0 %v4002_v39  ;;  %v4098_v39 = vld [vmem:[%s4447_s25 + $0x644] ss:$8 sps:$4 sm:$0xff]  }
  0xaf   : > { %2902 = vmatpush1.bf16.msra.mxu1 %v4005_v40  ;;  %2862 = vmatprep.subr.bf16.mxu0 %v4010_v41  ;;  %v4101_v40 = vld [vmem:[%s4447_s25 + $0x744] ss:$8 sps:$4 sm:$0xff]   ;;  %v4096_v41 = vld [vmem:[%s4447_s25 + $0x640] ss:$8 sps:$4 sm:$0xff]  }
  0xb0   : > { %2903 = vmatprep.subr.bf16.mxu1 %v4013_v42  ;;  %v4099_v42 = vld [vmem:[%s4447_s25 + $0x740] ss:$8 sps:$4 sm:$0xff]  }
  0xb2   : > { %2863 = vmatpush1.bf16.msra.mxu0 %v4008_v43  ;;  %v4104_v43 = vld [vmem:[%s4447_s25 + $0x654] ss:$8 sps:$4 sm:$0xff]  }
  0xb3   : > { %2904 = vmatpush1.bf16.msra.mxu1 %v4011_v44  ;;  %2864 = vmatprep.subr.bf16.mxu0 %v4016_v45  ;;  %v4107_v44 = vld [vmem:[%s4447_s25 + $0x754] ss:$8 sps:$4 sm:$0xff]   ;;  %v4102_v45 = vld [vmem:[%s4447_s25 + $0x650] ss:$8 sps:$4 sm:$0xff]  }
  0xb4   : > { %2905 = vmatprep.subr.bf16.mxu1 %v4019_v46  ;;  %v4105_v46 = vld [vmem:[%s4447_s25 + $0x750] ss:$8 sps:$4 sm:$0xff]  }
  0xb6   : > { %2865 = vmatpush1.bf16.msra.mxu0 %v4014_v47  ;;  %v4110_v47 = vld [vmem:[%s4447_s25 + $0x664] ss:$8 sps:$4 sm:$0xff]  }
  0xb7   : > { %2906 = vmatpush1.bf16.msra.mxu1 %v4017_v48  ;;  %2866 = vmatprep.subr.bf16.mxu0 %v4022_v49  ;;  %v4113_v48 = vld [vmem:[%s4447_s25 + $0x764] ss:$8 sps:$4 sm:$0xff]   ;;  %v4108_v49 = vld [vmem:[%s4447_s25 + $0x660] ss:$8 sps:$4 sm:$0xff]  }
  0xb8   : > { %2907 = vmatprep.subr.bf16.mxu1 %v4025_v50  ;;  %v4111_v50 = vld [vmem:[%s4447_s25 + $0x760] ss:$8 sps:$4 sm:$0xff]  }
  0xba   : > { %2867 = vmatpush1.bf16.msra.mxu0 %v4020_v51  ;;  %v4116_v51 = vld [vmem:[%s4447_s25 + $0x674] ss:$8 sps:$4 sm:$0xff]  }
  0xbb   : > { %2908 = vmatpush1.bf16.msra.mxu1 %v4023_v52  ;;  %2868 = vmatprep.subr.bf16.mxu0 %v4028_v53  ;;  %v4119_v52 = vld [vmem:[%s4447_s25 + $0x774] ss:$8 sps:$4 sm:$0xff]   ;;  %v4114_v53 = vld [vmem:[%s4447_s25 + $0x670] ss:$8 sps:$4 sm:$0xff]  }
  0xbc   : > { %2909 = vmatprep.subr.bf16.mxu1 %v4031_v54  ;;  %v4117_v54 = vld [vmem:[%s4447_s25 + $0x770] ss:$8 sps:$4 sm:$0xff]  }
  0xbe   : > { %2869 = vmatpush1.bf16.msra.mxu0 %v4026_v55  ;;  %v4122_v55 = vld [vmem:[%s4447_s25 + $0x684] ss:$8 sps:$4 sm:$0xff]  }
  0xbf   : > { %2910 = vmatpush1.bf16.msra.mxu1 %v4029_v56  ;;  %2870 = vmatprep.subr.bf16.mxu0 %v4034_v57  ;;  %v4125_v56 = vld [vmem:[%s4447_s25 + $0x784] ss:$8 sps:$4 sm:$0xff]   ;;  %v4120_v57 = vld [vmem:[%s4447_s25 + $0x680] ss:$8 sps:$4 sm:$0xff]  }
  0xc0   : > { %2911 = vmatprep.subr.bf16.mxu1 %v4037_v58  ;;  %v4123_v58 = vld [vmem:[%s4447_s25 + $0x780] ss:$8 sps:$4 sm:$0xff]  }
  0xc2   : > { %2871 = vmatpush1.bf16.msra.mxu0 %v4032_v59  ;;  %v4128_v59 = vld [vmem:[%s4447_s25 + $0x694] ss:$8 sps:$4 sm:$0xff]  }
  0xc3   : > { %2912 = vmatpush1.bf16.msra.mxu1 %v4035_v60  ;;  %2872 = vmatprep.subr.bf16.mxu0 %v4040_v61  ;;  %v4131_v60 = vld [vmem:[%s4447_s25 + $0x794] ss:$8 sps:$4 sm:$0xff]   ;;  %v4126_v61 = vld [vmem:[%s4447_s25 + $0x690] ss:$8 sps:$4 sm:$0xff]  }
  0xc4   : > { %2913 = vmatprep.subr.bf16.mxu1 %v4043_v62  ;;  %v4129_v62 = vld [vmem:[%s4447_s25 + $0x790] ss:$8 sps:$4 sm:$0xff]  }
  0xc6   : > { %2873 = vmatpush1.bf16.msra.mxu0 %v4038_v63  ;;  %v4134_v63 = vld [vmem:[%s4447_s25 + $0x6a4] ss:$8 sps:$4 sm:$0xff]  }
  0xc7   : > { %2914 = vmatpush1.bf16.msra.mxu1 %v4041_v0  ;;  %2874 = vmatprep.subr.bf16.mxu0 %v4046_v1  ;;  %v4137_v0 = vld [vmem:[%s4447_s25 + $0x7a4] ss:$8 sps:$4 sm:$0xff]   ;;  %v4132_v1 = vld [vmem:[%s4447_s25 + $0x6a0] ss:$8 sps:$4 sm:$0xff]  }
  0xc8   : > { %2915 = vmatprep.subr.bf16.mxu1 %v4049_v2  ;;  %v4135_v2 = vld [vmem:[%s4447_s25 + $0x7a0] ss:$8 sps:$4 sm:$0xff]  }
  0xca   : > { %2875 = vmatpush1.bf16.msra.mxu0 %v4044_v3  ;;  %v4140_v3 = vld [vmem:[%s4447_s25 + $0x6b4] ss:$8 sps:$4 sm:$0xff]  }
  0xcb   : > { %2916 = vmatpush1.bf16.msra.mxu1 %v4047_v4  ;;  %2876 = vmatprep.subr.bf16.mxu0 %v4052_v5  ;;  %v4143_v4 = vld [vmem:[%s4447_s25 + $0x7b4] ss:$8 sps:$4 sm:$0xff]   ;;  %v4138_v5 = vld [vmem:[%s4447_s25 + $0x6b0] ss:$8 sps:$4 sm:$0xff]  }
  0xcc   : > { %2917 = vmatprep.subr.bf16.mxu1 %v4055_v6  ;;  %v4141_v6 = vld [vmem:[%s4447_s25 + $0x7b0] ss:$8 sps:$4 sm:$0xff]  }
  0xce   : > { %2877 = vmatpush1.bf16.msra.mxu0 %v4050_v7  ;;  %v4146_v7 = vld [vmem:[%s4447_s25 + $0x6c4] ss:$8 sps:$4 sm:$0xff]  }
  0xcf   : > { %2918 = vmatpush1.bf16.msra.mxu1 %v4053_v8  ;;  %2878 = vmatprep.subr.bf16.mxu0 %v4058_v9  ;;  %v4149_v8 = vld [vmem:[%s4447_s25 + $0x7c4] ss:$8 sps:$4 sm:$0xff]   ;;  %v4144_v9 = vld [vmem:[%s4447_s25 + $0x6c0] ss:$8 sps:$4 sm:$0xff]  }
  0xd0   : > { %2919 = vmatprep.subr.bf16.mxu1 %v4061_v10  ;;  %v4147_v10 = vld [vmem:[%s4447_s25 + $0x7c0] ss:$8 sps:$4 sm:$0xff]  }
  0xd2   : > { %2879 = vmatpush1.bf16.msra.mxu0 %v4056_v11  ;;  %v4152_v11 = vld [vmem:[%s4447_s25 + $0x6d4] ss:$8 sps:$4 sm:$0xff]  }
  0xd3   : > { %2920 = vmatpush1.bf16.msra.mxu1 %v4059_v12  ;;  %2880 = vmatprep.subr.bf16.mxu0 %v4064_v13  ;;  %v4155_v12 = vld [vmem:[%s4447_s25 + $0x7d4] ss:$8 sps:$4 sm:$0xff]   ;;  %v4150_v13 = vld [vmem:[%s4447_s25 + $0x6d0] ss:$8 sps:$4 sm:$0xff]  }
  0xd4   : > { %2921 = vmatprep.subr.bf16.mxu1 %v4067_v14  ;;  %v4153_v14 = vld [vmem:[%s4447_s25 + $0x7d0] ss:$8 sps:$4 sm:$0xff]  }
  0xd6   : > { %2881 = vmatpush1.bf16.msra.mxu0 %v4062_v15  ;;  %v4158_v15 = vld [vmem:[%s4447_s25 + $0x6e4] ss:$8 sps:$4 sm:$0xff]  }
  0xd7   : > { %2922 = vmatpush1.bf16.msra.mxu1 %v4065_v16  ;;  %2932 = vmatprep.subr.bf16.mxu0 %v4074_v17  ;;  %v4161_v16 = vld [vmem:[%s4447_s25 + $0x7e4] ss:$8 sps:$4 sm:$0xff]   ;;  %v4156_v17 = vld [vmem:[%s4447_s25 + $0x6e0] ss:$8 sps:$4 sm:$0xff]  }
  0xd8   : > { %2973 = vmatprep.subr.bf16.mxu1 %v4077_v18  ;;  %v4159_v18 = vld [vmem:[%s4447_s25 + $0x7e0] ss:$8 sps:$4 sm:$0xff]  }
  0xd9   : > { %2883 = vmatmul.mubr.bf16.vlgmr.msra.gmra.mrb[8].mxu0 %v3341_v23  ;;  %v4162_v23 = vld [vmem:[%s4447_s25 + $0x6f0] ss:$8 sps:$4 sm:$0xff]  }
  0xda   : > { %2924 = vmatmul.mubr.bf16.vlgmr.msra.gmra.mrb[8].mxu1 %v3343_v24  ;;  %2933 = vmatpush1.bf16.msra.mxu0 %v4072_v21  ;;  %v4164_v21 = vld [vmem:[%s4447_s25 + $0x6f4] ss:$8 sps:$4 sm:$0xff]   ;;  %v4165_v24 = vld [vmem:[%s4447_s25 + $0x7f0] ss:$8 sps:$4 sm:$0xff]  }
  0xdb   : > { %2974 = vmatpush1.bf16.msra.mxu1 %v4075_v22  ;;  %2934 = vmatprep.subr.bf16.mxu0 %v4080_v27  ;;  %v4167_v22 = vld [vmem:[%s4447_s25 + $0x7f4] ss:$8 sps:$4 sm:$0xff]   ;;  %v4174_v27 = vld [vmem:[%s4447_s25 + $0x804] ss:$8 sps:$4 sm:$0xff]  }
  0xdc   : > { %2975 = vmatprep.subr.bf16.mxu1 %v4083_v28  ;;  %2964 = vmatprep.mubr.bf16.mxu0 %v3346_v19  ;;  %v4177_v28 = vld [vmem:[%s4447_s25 + $0x904] ss:$8 sps:$4 sm:$0xff]  }
  0xdd   : > { %3005 = vmatprep.mubr.bf16.mxu1 %v3348_v20  ;;  %v4749_v19 = vld [vmem:[%s4442_s21 + $0x40] sm:$0xff]  ;;  %v3345_v20 = vcombine.low %v4677_v25, %v4677_v25 }
  0xde   : > { %2935 = vmatpush1.bf16.msra.mxu0 %v4078_v29  ;;  %v3347_v29 = vcombine.low %v4680_v26, %v4680_v26  ;;  %v3350_v25 = vcombine.high %v4749_v19, %v4749_v19 }
  0xdf   : > { %2976 = vmatpush1.bf16.msra.mxu1 %v4081_v30  ;;  %2936 = vmatprep.subr.bf16.mxu0 %v4086_v31  ;;  %v4756_v30 = vld [vmem:[%s4442_s21 + $0x48] sm:$0xff] }
  0xe0   : > { %2977 = vmatprep.subr.bf16.mxu1 %v4089_v32  ;;  %v4172_v31 = vld [vmem:[%s4447_s25 + $0x800] ss:$8 sps:$4 sm:$0xff]   ;;  %v3352_v26 = vcombine.high %v4756_v30, %v4756_v30 }
  0xe1   : > { %v4175_v32 = vld [vmem:[%s4447_s25 + $0x900] ss:$8 sps:$4 sm:$0xff]  }
  0xe2   : > { %2937 = vmatpush1.bf16.msra.mxu0 %v4084_v33  ;;  %v4180_v33 = vld [vmem:[%s4447_s25 + $0x814] ss:$8 sps:$4 sm:$0xff]  }
  0xe3   : > { %2978 = vmatpush1.bf16.msra.mxu1 %v4087_v34  ;;  %2938 = vmatprep.subr.bf16.mxu0 %v4092_v35  ;;  %v4183_v34 = vld [vmem:[%s4447_s25 + $0x914] ss:$8 sps:$4 sm:$0xff]   ;;  %v4178_v35 = vld [vmem:[%s4447_s25 + $0x810] ss:$8 sps:$4 sm:$0xff]  }
  0xe4   : > { %2979 = vmatprep.subr.bf16.mxu1 %v4095_v36  ;;  %v4181_v36 = vld [vmem:[%s4447_s25 + $0x910] ss:$8 sps:$4 sm:$0xff]  }
  0xe6   : > { %2939 = vmatpush1.bf16.msra.mxu0 %v4090_v37  ;;  %v4186_v37 = vld [vmem:[%s4447_s25 + $0x824] ss:$8 sps:$4 sm:$0xff]  }
  0xe7   : > { %2980 = vmatpush1.bf16.msra.mxu1 %v4093_v38  ;;  %2940 = vmatprep.subr.bf16.mxu0 %v4098_v39  ;;  %v4189_v38 = vld [vmem:[%s4447_s25 + $0x924] ss:$8 sps:$4 sm:$0xff]   ;;  %v4184_v39 = vld [vmem:[%s4447_s25 + $0x820] ss:$8 sps:$4 sm:$0xff]  }
  0xe8   : > { %2981 = vmatprep.subr.bf16.mxu1 %v4101_v40  ;;  %v4187_v40 = vld [vmem:[%s4447_s25 + $0x920] ss:$8 sps:$4 sm:$0xff]  }
  0xea   : > { %2941 = vmatpush1.bf16.msra.mxu0 %v4096_v41  ;;  %v4192_v41 = vld [vmem:[%s4447_s25 + $0x834] ss:$8 sps:$4 sm:$0xff]  }
  0xeb   : > { %2982 = vmatpush1.bf16.msra.mxu1 %v4099_v42  ;;  %2942 = vmatprep.subr.bf16.mxu0 %v4104_v43  ;;  %v4195_v42 = vld [vmem:[%s4447_s25 + $0x934] ss:$8 sps:$4 sm:$0xff]   ;;  %v4190_v43 = vld [vmem:[%s4447_s25 + $0x830] ss:$8 sps:$4 sm:$0xff]  }
  0xec   : > { %2983 = vmatprep.subr.bf16.mxu1 %v4107_v44  ;;  %v4193_v44 = vld [vmem:[%s4447_s25 + $0x930] ss:$8 sps:$4 sm:$0xff]  }
  0xee   : > { %2943 = vmatpush1.bf16.msra.mxu0 %v4102_v45  ;;  %v4198_v45 = vld [vmem:[%s4447_s25 + $0x844] ss:$8 sps:$4 sm:$0xff]  }
  0xef   : > { %2984 = vmatpush1.bf16.msra.mxu1 %v4105_v46  ;;  %2944 = vmatprep.subr.bf16.mxu0 %v4110_v47  ;;  %v4201_v46 = vld [vmem:[%s4447_s25 + $0x944] ss:$8 sps:$4 sm:$0xff]   ;;  %v4196_v47 = vld [vmem:[%s4447_s25 + $0x840] ss:$8 sps:$4 sm:$0xff]  }
  0xf0   : > { %2985 = vmatprep.subr.bf16.mxu1 %v4113_v48  ;;  %v4199_v48 = vld [vmem:[%s4447_s25 + $0x940] ss:$8 sps:$4 sm:$0xff]  }
  0xf2   : > { %2945 = vmatpush1.bf16.msra.mxu0 %v4108_v49  ;;  %v4204_v49 = vld [vmem:[%s4447_s25 + $0x854] ss:$8 sps:$4 sm:$0xff]  }
  0xf3   : > { %2986 = vmatpush1.bf16.msra.mxu1 %v4111_v50  ;;  %2946 = vmatprep.subr.bf16.mxu0 %v4116_v51  ;;  %v4207_v50 = vld [vmem:[%s4447_s25 + $0x954] ss:$8 sps:$4 sm:$0xff]   ;;  %v4202_v51 = vld [vmem:[%s4447_s25 + $0x850] ss:$8 sps:$4 sm:$0xff]  }
  0xf4   : > { %2987 = vmatprep.subr.bf16.mxu1 %v4119_v52  ;;  %v4205_v52 = vld [vmem:[%s4447_s25 + $0x950] ss:$8 sps:$4 sm:$0xff]  }
  0xf6   : > { %2947 = vmatpush1.bf16.msra.mxu0 %v4114_v53  ;;  %v4210_v53 = vld [vmem:[%s4447_s25 + $0x864] ss:$8 sps:$4 sm:$0xff]  }
  0xf7   : > { %2988 = vmatpush1.bf16.msra.mxu1 %v4117_v54  ;;  %2948 = vmatprep.subr.bf16.mxu0 %v4122_v55  ;;  %v4213_v54 = vld [vmem:[%s4447_s25 + $0x964] ss:$8 sps:$4 sm:$0xff]  }
  0xf8   : > { %2989 = vmatprep.subr.bf16.mxu1 %v4125_v56 }
  0xfa   : > { %2949 = vmatpush1.bf16.msra.mxu0 %v4120_v57 }
  0xfb   : > { %2990 = vmatpush1.bf16.msra.mxu1 %v4123_v58  ;;  %2950 = vmatprep.subr.bf16.mxu0 %v4128_v59 }
  0xfc   : > { %2991 = vmatprep.subr.bf16.mxu1 %v4131_v60 }
  0xfe   : > { %2951 = vmatpush1.bf16.msra.mxu0 %v4126_v61 }
  0xff   : > { %2992 = vmatpush1.bf16.msra.mxu1 %v4129_v62  ;;  %2952 = vmatprep.subr.bf16.mxu0 %v4134_v63  ;;  %v4208_v63 = vld [vmem:[%s4447_s25 + $0x860] ss:$8 sps:$4 sm:$0xff]  }
 0x100   : > { %2993 = vmatprep.subr.bf16.mxu1 %v4137_v0  ;;  %v4211_v0 = vld [vmem:[%s4447_s25 + $0x960] ss:$8 sps:$4 sm:$0xff]  }
 0x102   : > { %2953 = vmatpush1.bf16.msra.mxu0 %v4132_v1 }
 0x103   : > { %2994 = vmatpush1.bf16.msra.mxu1 %v4135_v2  ;;  %2954 = vmatprep.subr.bf16.mxu0 %v4140_v3  ;;  %v4216_v3 = vld [vmem:[%s4447_s25 + $0x874] ss:$8 sps:$4 sm:$0xff]  }
 0x104   : > { %2995 = vmatprep.subr.bf16.mxu1 %v4143_v4  ;;  %v4219_v4 = vld [vmem:[%s4447_s25 + $0x974] ss:$8 sps:$4 sm:$0xff]  }
 0x106   : > { %2955 = vmatpush1.bf16.msra.mxu0 %v4138_v5  ;;  %v4214_v5 = vld [vmem:[%s4447_s25 + $0x870] ss:$8 sps:$4 sm:$0xff]  }
 0x107   : > { %2996 = vmatpush1.bf16.msra.mxu1 %v4141_v6  ;;  %2956 = vmatprep.subr.bf16.mxu0 %v4146_v7  ;;  %v4217_v6 = vld [vmem:[%s4447_s25 + $0x970] ss:$8 sps:$4 sm:$0xff]   ;;  %v4222_v7 = vld [vmem:[%s4447_s25 + $0x884] ss:$8 sps:$4 sm:$0xff]  }
 0x108   : > { %2997 = vmatprep.subr.bf16.mxu1 %v4149_v8  ;;  %v4225_v8 = vld [vmem:[%s4447_s25 + $0x984] ss:$8 sps:$4 sm:$0xff]  }
 0x10a   : > { %2957 = vmatpush1.bf16.msra.mxu0 %v4144_v9  ;;  %v4220_v9 = vld [vmem:[%s4447_s25 + $0x880] ss:$8 sps:$4 sm:$0xff]  }
 0x10b   : > { %2998 = vmatpush1.bf16.msra.mxu1 %v4147_v10  ;;  %2958 = vmatprep.subr.bf16.mxu0 %v4152_v11  ;;  %v4223_v10 = vld [vmem:[%s4447_s25 + $0x980] ss:$8 sps:$4 sm:$0xff]   ;;  %v4228_v11 = vld [vmem:[%s4447_s25 + $0x894] ss:$8 sps:$4 sm:$0xff]  }
 0x10c   : > { %2999 = vmatprep.subr.bf16.mxu1 %v4155_v12  ;;  %v4231_v12 = vld [vmem:[%s4447_s25 + $0x994] ss:$8 sps:$4 sm:$0xff]  }
 0x10e   : > { %2959 = vmatpush1.bf16.msra.mxu0 %v4150_v13  ;;  %v4226_v13 = vld [vmem:[%s4447_s25 + $0x890] ss:$8 sps:$4 sm:$0xff]  }
 0x10f   : > { %3000 = vmatpush1.bf16.msra.mxu1 %v4153_v14  ;;  %2960 = vmatprep.subr.bf16.mxu0 %v4158_v15  ;;  %v4229_v14 = vld [vmem:[%s4447_s25 + $0x990] ss:$8 sps:$4 sm:$0xff]   ;;  %v4234_v15 = vld [vmem:[%s4447_s25 + $0x8a4] ss:$8 sps:$4 sm:$0xff]  }
 0x110   : > { %3001 = vmatprep.subr.bf16.mxu1 %v4161_v16  ;;  %v4237_v16 = vld [vmem:[%s4447_s25 + $0x9a4] ss:$8 sps:$4 sm:$0xff]  }
 0x112   : > { %2961 = vmatpush1.bf16.msra.mxu0 %v4156_v17  ;;  %v4232_v17 = vld [vmem:[%s4447_s25 + $0x8a0] ss:$8 sps:$4 sm:$0xff]  }
 0x113   : > { %3002 = vmatpush1.bf16.msra.mxu1 %v4159_v18  ;;  %2962 = vmatprep.subr.bf16.mxu0 %v4164_v21  ;;  %v4235_v18 = vld [vmem:[%s4447_s25 + $0x9a0] ss:$8 sps:$4 sm:$0xff]   ;;  %v4240_v21 = vld [vmem:[%s4447_s25 + $0x8b4] ss:$8 sps:$4 sm:$0xff]  }
 0x114   : > { %3003 = vmatprep.subr.bf16.mxu1 %v4167_v22  ;;  %v4243_v22 = vld [vmem:[%s4447_s25 + $0x9b4] ss:$8 sps:$4 sm:$0xff]  }
 0x116   : > { %2963 = vmatpush1.bf16.msra.mxu0 %v4162_v23  ;;  %v4238_v23 = vld [vmem:[%s4447_s25 + $0x8b0] ss:$8 sps:$4 sm:$0xff]  }
 0x117   : > { %3004 = vmatpush1.bf16.msra.mxu1 %v4165_v24  ;;  %3014 = vmatprep.subr.bf16.mxu0 %v4174_v27  ;;  %v4241_v24 = vld [vmem:[%s4447_s25 + $0x9b0] ss:$8 sps:$4 sm:$0xff]   ;;  %v4246_v27 = vld [vmem:[%s4447_s25 + $0x8c4] ss:$8 sps:$4 sm:$0xff]  }
 0x118   : > { %3055 = vmatprep.subr.bf16.mxu1 %v4177_v28  ;;  %v4249_v28 = vld [vmem:[%s4447_s25 + $0x9c4] ss:$8 sps:$4 sm:$0xff]  }
 0x119   : > { %2965 = vmatmul.mubr.bf16.vlgmr.msra.gmra.mrb[12].mxu0 %v3345_v20  ;;  %v4244_v20 = vld [vmem:[%s4447_s25 + $0x8c0] ss:$8 sps:$4 sm:$0xff]  }
 0x11a   : > { %3006 = vmatmul.mubr.bf16.vlgmr.msra.gmra.mrb[12].mxu1 %v3347_v29  ;;  %3015 = vmatpush1.bf16.msra.mxu0 %v4172_v31  ;;  %v4247_v29 = vld [vmem:[%s4447_s25 + $0x9c0] ss:$8 sps:$4 sm:$0xff]   ;;  %v4252_v31 = vld [vmem:[%s4447_s25 + $0x8d4] ss:$8 sps:$4 sm:$0xff]  }
 0x11b   : > { %3056 = vmatpush1.bf16.msra.mxu1 %v4175_v32  ;;  %3016 = vmatprep.subr.bf16.mxu0 %v4180_v33  ;;  %v4255_v32 = vld [vmem:[%s4447_s25 + $0x9d4] ss:$8 sps:$4 sm:$0xff]   ;;  %v4250_v33 = vld [vmem:[%s4447_s25 + $0x8d0] ss:$8 sps:$4 sm:$0xff]  }
 0x11c   : > { %3057 = vmatprep.subr.bf16.mxu1 %v4183_v34  ;;  %3046 = vmatprep.mubr.bf16.mxu0 %v3350_v25  ;;  %v4253_v34 = vld [vmem:[%s4447_s25 + $0x9d0] ss:$8 sps:$4 sm:$0xff]   ;;  %v4258_v25 = vld [vmem:[%s4447_s25 + $0x8e4] ss:$8 sps:$4 sm:$0xff]  }
 0x11d   : > { %3087 = vmatprep.mubr.bf16.mxu1 %v3352_v26  ;;  %v4261_v26 = vld [vmem:[%s4447_s25 + $0x9e4] ss:$8 sps:$4 sm:$0xff]  }
 0x11e   : > { %3017 = vmatpush1.bf16.msra.mxu0 %v4178_v35  ;;  %v4256_v35 = vld [vmem:[%s4447_s25 + $0x8e0] ss:$8 sps:$4 sm:$0xff]  }
 0x11f   : > { %3058 = vmatpush1.bf16.msra.mxu1 %v4181_v36  ;;  %3018 = vmatprep.subr.bf16.mxu0 %v4186_v37  ;;  %v4259_v36 = vld [vmem:[%s4447_s25 + $0x9e0] ss:$8 sps:$4 sm:$0xff]   ;;  %v4264_v37 = vld [vmem:[%s4447_s25 + $0x8f4] ss:$8 sps:$4 sm:$0xff]  }
 0x120   : > { %3059 = vmatprep.subr.bf16.mxu1 %v4189_v38  ;;  %v4267_v38 = vld [vmem:[%s4447_s25 + $0x9f4] ss:$8 sps:$4 sm:$0xff]  }
 0x122   : > { %3019 = vmatpush1.bf16.msra.mxu0 %v4184_v39  ;;  %v4262_v39 = vld [vmem:[%s4447_s25 + $0x8f0] ss:$8 sps:$4 sm:$0xff]  }
 0x123   : > { %3060 = vmatpush1.bf16.msra.mxu1 %v4187_v40  ;;  %3020 = vmatprep.subr.bf16.mxu0 %v4192_v41  ;;  %v4265_v40 = vld [vmem:[%s4447_s25 + $0x9f0] ss:$8 sps:$4 sm:$0xff]   ;;  %v4274_v41 = vld [vmem:[%s4447_s25 + $0xa04] ss:$8 sps:$4 sm:$0xff]  }
 0x124   : > { %3061 = vmatprep.subr.bf16.mxu1 %v4195_v42  ;;  %v4277_v42 = vld [vmem:[%s4447_s25 + $0xb04] ss:$8 sps:$4 sm:$0xff]  }
 0x126   : > { %3021 = vmatpush1.bf16.msra.mxu0 %v4190_v43  ;;  %v3349_v43 = vcombine.low %v4749_v19, %v4749_v19 }
 0x127   : > { %3062 = vmatpush1.bf16.msra.mxu1 %v4193_v44  ;;  %3022 = vmatprep.subr.bf16.mxu0 %v4198_v45  ;;  %v3351_v44 = vcombine.low %v4756_v30, %v4756_v30  ;;  %v4835_v45 = vld [vmem:[%s4442_s21 + $0x50] sm:$0xff] }
 0x128   : > { %3063 = vmatprep.subr.bf16.mxu1 %v4201_v46  ;;  %v4838_v46 = vld [vmem:[%s4442_s21 + $0x58] sm:$0xff]  ;;  %v3354_v19 = vcombine.high %v4835_v45, %v4835_v45 }
 0x129   : > { %v3356_v30 = vcombine.high %v4838_v46, %v4838_v46 }
 0x12a   : > { %3023 = vmatpush1.bf16.msra.mxu0 %v4196_v47  ;;  %v4272_v47 = vld [vmem:[%s4447_s25 + $0xa00] ss:$8 sps:$4 sm:$0xff]  }
 0x12b   : > { %3064 = vmatpush1.bf16.msra.mxu1 %v4199_v48  ;;  %3024 = vmatprep.subr.bf16.mxu0 %v4204_v49  ;;  %v4275_v48 = vld [vmem:[%s4447_s25 + $0xb00] ss:$8 sps:$4 sm:$0xff]   ;;  %v4280_v49 = vld [vmem:[%s4447_s25 + $0xa14] ss:$8 sps:$4 sm:$0xff]  }
 0x12c   : > { %3065 = vmatprep.subr.bf16.mxu1 %v4207_v50  ;;  %v2720_v55 = vpop.f32.mrb[0].mxu0  ;;  %v4283_v50 = vld [vmem:[%s4447_s25 + $0xb14] ss:$8 sps:$4 sm:$0xff]  }
 0x12d   : > { %v2761_v56 = vpop.f32.mrb[0].mxu1  ;;  %v2722_v58 = vpop.f32.mrb[1].mxu0 }
 0x12e   : > { %v4786_v57 = vadd.f32 %v2761_v56, %v2720_v55  ;;  %v2763_v59 = vpop.f32.mrb[1].mxu1  ;;  %v2724_v61 = vpop.f32.mrb[2].mxu0  ;;  %3025 = vmatpush1.bf16.msra.mxu0 %v4202_v51  ;;  %v4278_v51 = vld [vmem:[%s4447_s25 + $0xa10] ss:$8 sps:$4 sm:$0xff]   ;;  %v4284_v55 = vld [vmem:[%s4447_s25 + $0xa20] ss:$8 sps:$4 sm:$0xff]  }
 0x12f   : > { %v4788_v60 = vadd.f32 %v2763_v59, %v2722_v58  ;;  %v2765_v62 = vpop.f32.mrb[2].mxu1  ;;  %3066 = vmatpush1.bf16.msra.mxu1 %v4205_v52  ;;  %v2725_v1 = vpop.f32.mrb[3].mxu0  ;;  %3026 = vmatprep.subr.bf16.mxu0 %v4210_v53  ;;  %v4281_v52 = vld [vmem:[%s4447_s25 + $0xb10] ss:$8 sps:$4 sm:$0xff]   ;;  %v4286_v53 = vld [vmem:[%s4447_s25 + $0xa24] ss:$8 sps:$4 sm:$0xff]  }
 0x130   : > { %v2766_v2 = vpop.f32.mrb[3].mxu1  ;;  %3067 = vmatprep.subr.bf16.mxu1 %v4213_v54  ;;  %v4289_v54 = vld [vmem:[%s4447_s25 + $0xb24] ss:$8 sps:$4 sm:$0xff]   ;;  %v4287_v56 = vld [vmem:[%s4447_s25 + $0xb20] ss:$8 sps:$4 sm:$0xff]  }
 0x131   : > { %v4292_v58 = vld [vmem:[%s4447_s25 + $0xa34] ss:$8 sps:$4 sm:$0xff]   ;;  %v4290_v61 = vld [vmem:[%s4447_s25 + $0xa30] ss:$8 sps:$4 sm:$0xff]   ;;  %v4296_v1 = vld [vmem:[%s4447_s25 + $0xa40] ss:$8 sps:$4 sm:$0xff]  }
 0x132   : > { %3027 = vmatpush1.bf16.msra.mxu0 %v4208_v63  ;;  %v4295_v59 = vld [vmem:[%s4447_s25 + $0xb34] ss:$8 sps:$4 sm:$0xff]   ;;  %v4293_v62 = vld [vmem:[%s4447_s25 + $0xb30] ss:$8 sps:$4 sm:$0xff]   ;;  %v4298_v63 = vld [vmem:[%s4447_s25 + $0xa44] ss:$8 sps:$4 sm:$0xff]  }
 0x133   : > { %3068 = vmatpush1.bf16.msra.mxu1 %v4211_v0  ;;  %3028 = vmatprep.subr.bf16.mxu0 %v4216_v3  ;;  %v4301_v0 = vld [vmem:[%s4447_s25 + $0xb44] ss:$8 sps:$4 sm:$0xff]   ;;  %v4299_v2 = vld [vmem:[%s4447_s25 + $0xb40] ss:$8 sps:$4 sm:$0xff]   ;;  %v4304_v3 = vld [vmem:[%s4447_s25 + $0xa54] ss:$8 sps:$4 sm:$0xff]  }
 0x134   : > { %3069 = vmatprep.subr.bf16.mxu1 %v4219_v4  ;;  %v4307_v4 = vld [vmem:[%s4447_s25 + $0xb54] ss:$8 sps:$4 sm:$0xff]  }
 0x136   : > { %3029 = vmatpush1.bf16.msra.mxu0 %v4214_v5  ;;  %v4302_v5 = vld [vmem:[%s4447_s25 + $0xa50] ss:$8 sps:$4 sm:$0xff]  }
 0x137   : > { %3070 = vmatpush1.bf16.msra.mxu1 %v4217_v6  ;;  %3030 = vmatprep.subr.bf16.mxu0 %v4222_v7  ;;  %v4305_v6 = vld [vmem:[%s4447_s25 + $0xb50] ss:$8 sps:$4 sm:$0xff]   ;;  %v4310_v7 = vld [vmem:[%s4447_s25 + $0xa64] ss:$8 sps:$4 sm:$0xff]  }
 0x138   : > { %3071 = vmatprep.subr.bf16.mxu1 %v4225_v8  ;;  %v4313_v8 = vld [vmem:[%s4447_s25 + $0xb64] ss:$8 sps:$4 sm:$0xff]  }
 0x13a   : > { %3031 = vmatpush1.bf16.msra.mxu0 %v4220_v9 }
 0x13b   : > { %3072 = vmatpush1.bf16.msra.mxu1 %v4223_v10  ;;  %3032 = vmatprep.subr.bf16.mxu0 %v4228_v11 }
 0x13c   : > { %3073 = vmatprep.subr.bf16.mxu1 %v4231_v12 }
 0x13e   : > { %3033 = vmatpush1.bf16.msra.mxu0 %v4226_v13 }
 0x13f   : > { %3074 = vmatpush1.bf16.msra.mxu1 %v4229_v14  ;;  %3034 = vmatprep.subr.bf16.mxu0 %v4234_v15 }
 0x140   : > { %3075 = vmatprep.subr.bf16.mxu1 %v4237_v16 }
 0x142   : > { %3035 = vmatpush1.bf16.msra.mxu0 %v4232_v17  ;;  %v4308_v17 = vld [vmem:[%s4447_s25 + $0xa60] ss:$8 sps:$4 sm:$0xff]  }
 0x143   : > { %3076 = vmatpush1.bf16.msra.mxu1 %v4235_v18  ;;  %3036 = vmatprep.subr.bf16.mxu0 %v4240_v21  ;;  %v4311_v18 = vld [vmem:[%s4447_s25 + $0xb60] ss:$8 sps:$4 sm:$0xff]  }
 0x144   : > { %3077 = vmatprep.subr.bf16.mxu1 %v4243_v22 }
 0x146   : > { %3037 = vmatpush1.bf16.msra.mxu0 %v4238_v23 }
 0x147   : > { %3078 = vmatpush1.bf16.msra.mxu1 %v4241_v24  ;;  %3038 = vmatprep.subr.bf16.mxu0 %v4246_v27  ;;  %v4314_v27 = vld [vmem:[%s4447_s25 + $0xa70] ss:$8 sps:$4 sm:$0xff]  }
 0x148   : > { %3079 = vmatprep.subr.bf16.mxu1 %v4249_v28  ;;  %v4317_v28 = vld [vmem:[%s4447_s25 + $0xb70] ss:$8 sps:$4 sm:$0xff]  }
 0x14a   : > { %3039 = vmatpush1.bf16.msra.mxu0 %v4244_v20  ;;  %v4322_v20 = vld [vmem:[%s4447_s25 + $0xa84] ss:$8 sps:$4 sm:$0xff]  }
 0x14b   : > { %3080 = vmatpush1.bf16.msra.mxu1 %v4247_v29  ;;  %3040 = vmatprep.subr.bf16.mxu0 %v4252_v31  ;;  %v4325_v29 = vld [vmem:[%s4447_s25 + $0xb84] ss:$8 sps:$4 sm:$0xff]   ;;  %v4320_v31 = vld [vmem:[%s4447_s25 + $0xa80] ss:$8 sps:$4 sm:$0xff]  }
 0x14c   : > { %3081 = vmatprep.subr.bf16.mxu1 %v4255_v32  ;;  %v4323_v32 = vld [vmem:[%s4447_s25 + $0xb80] ss:$8 sps:$4 sm:$0xff]  }
 0x14e   : > { %3041 = vmatpush1.bf16.msra.mxu0 %v4250_v33  ;;  %v4328_v33 = vld [vmem:[%s4447_s25 + $0xa94] ss:$8 sps:$4 sm:$0xff]  }
 0x14f   : > { %3082 = vmatpush1.bf16.msra.mxu1 %v4253_v34  ;;  %3042 = vmatprep.subr.bf16.mxu0 %v4258_v25  ;;  %v4331_v34 = vld [vmem:[%s4447_s25 + $0xb94] ss:$8 sps:$4 sm:$0xff]   ;;  %v4326_v25 = vld [vmem:[%s4447_s25 + $0xa90] ss:$8 sps:$4 sm:$0xff]  }
 0x150   : > { %3083 = vmatprep.subr.bf16.mxu1 %v4261_v26  ;;  %v4329_v26 = vld [vmem:[%s4447_s25 + $0xb90] ss:$8 sps:$4 sm:$0xff]  }
 0x152   : > { %3043 = vmatpush1.bf16.msra.mxu0 %v4256_v35  ;;  %v4334_v35 = vld [vmem:[%s4447_s25 + $0xaa4] ss:$8 sps:$4 sm:$0xff]  }
 0x153   : > { %3084 = vmatpush1.bf16.msra.mxu1 %v4259_v36  ;;  %3044 = vmatprep.subr.bf16.mxu0 %v4264_v37  ;;  %v4337_v36 = vld [vmem:[%s4447_s25 + $0xba4] ss:$8 sps:$4 sm:$0xff]   ;;  %v4332_v37 = vld [vmem:[%s4447_s25 + $0xaa0] ss:$8 sps:$4 sm:$0xff]  }
 0x154   : > { %3085 = vmatprep.subr.bf16.mxu1 %v4267_v38  ;;  %v4335_v38 = vld [vmem:[%s4447_s25 + $0xba0] ss:$8 sps:$4 sm:$0xff]  }
 0x156   : > { %3045 = vmatpush1.bf16.msra.mxu0 %v4262_v39  ;;  %v4340_v39 = vld [vmem:[%s4447_s25 + $0xab4] ss:$8 sps:$4 sm:$0xff]  }
 0x157   : > { %3086 = vmatpush1.bf16.msra.mxu1 %v4265_v40  ;;  %3096 = vmatprep.subr.bf16.mxu0 %v4274_v41  ;;  %v4343_v40 = vld [vmem:[%s4447_s25 + $0xbb4] ss:$8 sps:$4 sm:$0xff]   ;;  %v4338_v41 = vld [vmem:[%s4447_s25 + $0xab0] ss:$8 sps:$4 sm:$0xff]  }
 0x158   : > { %3137 = vmatprep.subr.bf16.mxu1 %v4277_v42  ;;  %v4341_v42 = vld [vmem:[%s4447_s25 + $0xbb0] ss:$8 sps:$4 sm:$0xff]  }
 0x159   : > { %3047 = vmatmul.mubr.bf16.vlgmr.msra.gmra.mrb[16].mxu0 %v3349_v43  ;;  %v4346_v43 = vld [vmem:[%s4447_s25 + $0xac4] ss:$8 sps:$4 sm:$0xff]  }
 0x15a   : > { %3088 = vmatmul.mubr.bf16.vlgmr.msra.gmra.mrb[16].mxu1 %v3351_v44  ;;  %3097 = vmatpush1.bf16.msra.mxu0 %v4272_v47  ;;  %v4349_v44 = vld [vmem:[%s4447_s25 + $0xbc4] ss:$8 sps:$4 sm:$0xff]   ;;  %v4344_v47 = vld [vmem:[%s4447_s25 + $0xac0] ss:$8 sps:$4 sm:$0xff]  }
 0x15b   : > { %3138 = vmatpush1.bf16.msra.mxu1 %v4275_v48  ;;  %3098 = vmatprep.subr.bf16.mxu0 %v4280_v49  ;;  %v4347_v48 = vld [vmem:[%s4447_s25 + $0xbc0] ss:$8 sps:$4 sm:$0xff]   ;;  %v4352_v49 = vld [vmem:[%s4447_s25 + $0xad4] ss:$8 sps:$4 sm:$0xff]  }
 0x15c   : > { %3139 = vmatprep.subr.bf16.mxu1 %v4283_v50  ;;  %3128 = vmatprep.mubr.bf16.mxu0 %v3354_v19  ;;  %v4355_v50 = vld [vmem:[%s4447_s25 + $0xbd4] ss:$8 sps:$4 sm:$0xff]   ;;  %v4350_v19 = vld [vmem:[%s4447_s25 + $0xad0] ss:$8 sps:$4 sm:$0xff]  }
 0x15d   : > { %3169 = vmatprep.mubr.bf16.mxu1 %v3356_v30  ;;  %v4353_v30 = vld [vmem:[%s4447_s25 + $0xbd0] ss:$8 sps:$4 sm:$0xff]  }
 0x15e   : > { %3099 = vmatpush1.bf16.msra.mxu0 %v4278_v51  ;;  %v4358_v51 = vld [vmem:[%s4447_s25 + $0xae4] ss:$8 sps:$4 sm:$0xff]  }
 0x15f   : > { %3140 = vmatpush1.bf16.msra.mxu1 %v4281_v52  ;;  %3100 = vmatprep.subr.bf16.mxu0 %v4286_v53  ;;  %v4361_v52 = vld [vmem:[%s4447_s25 + $0xbe4] ss:$8 sps:$4 sm:$0xff]   ;;  %v4356_v53 = vld [vmem:[%s4447_s25 + $0xae0] ss:$8 sps:$4 sm:$0xff]  }
 0x160   : > { %3141 = vmatprep.subr.bf16.mxu1 %v4289_v54  ;;  %v4359_v54 = vld [vmem:[%s4447_s25 + $0xbe0] ss:$8 sps:$4 sm:$0xff]  }
 0x162   : > { %3101 = vmatpush1.bf16.msra.mxu0 %v4284_v55  ;;  %v4364_v55 = vld [vmem:[%s4447_s25 + $0xaf4] ss:$8 sps:$4 sm:$0xff]  }
 0x163   : > { %3142 = vmatpush1.bf16.msra.mxu1 %v4287_v56  ;;  %3102 = vmatprep.subr.bf16.mxu0 %v4292_v58  ;;  %v4367_v56 = vld [vmem:[%s4447_s25 + $0xbf4] ss:$8 sps:$4 sm:$0xff]   ;;  %v4362_v58 = vld [vmem:[%s4447_s25 + $0xaf0] ss:$8 sps:$4 sm:$0xff]  }
 0x164   : > { %3143 = vmatprep.subr.bf16.mxu1 %v4295_v59  ;;  %v4365_v59 = vld [vmem:[%s4447_s25 + $0xbf0] ss:$8 sps:$4 sm:$0xff]  }
 0x166   : > { %3103 = vmatpush1.bf16.msra.mxu0 %v4290_v61  ;;  %v3353_v61 = vcombine.low %v4835_v45, %v4835_v45 }
 0x167   : > { %3144 = vmatpush1.bf16.msra.mxu1 %v4293_v62  ;;  %3104 = vmatprep.subr.bf16.mxu0 %v4298_v63  ;;  %v3355_v62 = vcombine.low %v4838_v46, %v4838_v46 }
 0x168   : > { %3145 = vmatprep.subr.bf16.mxu1 %v4301_v0 }
 0x16a   : > { %3105 = vmatpush1.bf16.msra.mxu0 %v4296_v1 }
 0x16b   : > { %3146 = vmatpush1.bf16.msra.mxu1 %v4299_v2  ;;  %3106 = vmatprep.subr.bf16.mxu0 %v4304_v3 }
 0x16c   : > { %3147 = vmatprep.subr.bf16.mxu1 %v4307_v4  ;;  %v2802_v9 = vpop.f32.mrb[4].mxu0 }
 0x16d   : > { %v2843_v10 = vpop.f32.mrb[4].mxu1  ;;  %v2803_v11 = vadd.f32 %v2802_v9, %v4786_v57  ;;  %v2804_v12 = vpop.f32.mrb[5].mxu0  ;;  %v4316_v57 = vld [vmem:[%s4447_s25 + $0xa74] ss:$8 sps:$4 sm:$0xff]  }
 0x16e   : > { %v2845_v13 = vpop.f32.mrb[5].mxu1  ;;  %v2805_v14 = vadd.f32 %v2804_v12, %v4788_v60  ;;  %v2806_v15 = vpop.f32.mrb[6].mxu0  ;;  %3107 = vmatpush1.bf16.msra.mxu0 %v4302_v5  ;;  %v4319_v60 = vld [vmem:[%s4447_s25 + $0xb74] ss:$8 sps:$4 sm:$0xff]  }
 0x16f   : > { %v2847_v16 = vpop.f32.mrb[6].mxu1  ;;  %3148 = vmatpush1.bf16.msra.mxu1 %v4305_v6  ;;  %v4872_v21 = vadd.f32 %v2843_v10, %v2803_v11  ;;  %v2807_v22 = vpop.f32.mrb[7].mxu0  ;;  %3108 = vmatprep.subr.bf16.mxu0 %v4310_v7 }
 0x170   : > { %v2848_v23 = vpop.f32.mrb[7].mxu1  ;;  %3149 = vmatprep.subr.bf16.mxu1 %v4313_v8  ;;  %v4876_v24 = vadd.f32 %v2845_v13, %v2805_v14 }
 0x172   : > { %3109 = vmatpush1.bf16.msra.mxu0 %v4308_v17 }
 0x173   : > { %3150 = vmatpush1.bf16.msra.mxu1 %v4311_v18  ;;  %3110 = vmatprep.subr.bf16.mxu0 %v4316_v57 }
 0x174   : > { %3151 = vmatprep.subr.bf16.mxu1 %v4319_v60 }
 0x176   : > { %3111 = vmatpush1.bf16.msra.mxu0 %v4314_v27 }
 0x177   : > { %3152 = vmatpush1.bf16.msra.mxu1 %v4317_v28  ;;  %3112 = vmatprep.subr.bf16.mxu0 %v4322_v20 }
 0x178   : > { %3153 = vmatprep.subr.bf16.mxu1 %v4325_v29 }
 0x17a   : > { %3113 = vmatpush1.bf16.msra.mxu0 %v4320_v31 }
 0x17b   : > { %3154 = vmatpush1.bf16.msra.mxu1 %v4323_v32  ;;  %3114 = vmatprep.subr.bf16.mxu0 %v4328_v33 }
 0x17c   : > { %3155 = vmatprep.subr.bf16.mxu1 %v4331_v34 }
 0x17e   : > { %3115 = vmatpush1.bf16.msra.mxu0 %v4326_v25 }
 0x17f   : > { %3156 = vmatpush1.bf16.msra.mxu1 %v4329_v26  ;;  %3116 = vmatprep.subr.bf16.mxu0 %v4334_v35 }
 0x180   : > { %3157 = vmatprep.subr.bf16.mxu1 %v4337_v36 }
 0x182   : > { %3117 = vmatpush1.bf16.msra.mxu0 %v4332_v37 }
 0x183   : > { %3158 = vmatpush1.bf16.msra.mxu1 %v4335_v38  ;;  %3118 = vmatprep.subr.bf16.mxu0 %v4340_v39  ;;  %v284_v38 = vld [vmem:[#allocation2] sm:$0xff] }
 0x184   : > { %3159 = vmatprep.subr.bf16.mxu1 %v4343_v40 }
 0x186   : > { %3119 = vmatpush1.bf16.msra.mxu0 %v4338_v41 }
 0x187   : > { %3160 = vmatpush1.bf16.msra.mxu1 %v4341_v42  ;;  %3120 = vmatprep.subr.bf16.mxu0 %v4346_v43  ;;  %v285_v43 = vld [vmem:[#allocation2 + $0x8] sm:$0xff] }
 0x188   : > { %3161 = vmatprep.subr.bf16.mxu1 %v4349_v44 }
 0x18a   : > { %3121 = vmatpush1.bf16.msra.mxu0 %v4344_v47 }
 0x18b   : > { %3162 = vmatpush1.bf16.msra.mxu1 %v4347_v48  ;;  %3122 = vmatprep.subr.bf16.mxu0 %v4352_v49 }
 0x18c   : > { %3163 = vmatprep.subr.bf16.mxu1 %v4355_v50 }
 0x18e   : > { %3123 = vmatpush1.bf16.msra.mxu0 %v4350_v19  ;;  %v3193_v19 = vlaneseq (!%p3741_p7) }
 0x18f   : > { %3164 = vmatpush1.bf16.msra.mxu1 %v4353_v30  ;;  %3124 = vmatprep.subr.bf16.mxu0 %v4358_v51 }
 0x190   : > { %3165 = vmatprep.subr.bf16.mxu1 %v4361_v52  ;;  %v3194_v52 = vshrl.u32 (!%p3741_p7), %v3193_v19, 7 }
 0x192   : > { %3125 = vmatpush1.bf16.msra.mxu0 %v4356_v53  ;;  %v3191_v53 = vld [vmem:[%s4941_s2] sm:$0x3] (!%p3741_p7) }
 0x193   : > { %3166 = vmatpush1.bf16.msra.mxu1 %v4359_v54  ;;  %3126 = vmatprep.subr.bf16.mxu0 %v4364_v55  ;;  %v3195_v55 = vsub.s32 (!%p3741_p7), 0, %v3194_v52 }
 0x194   : > { %3167 = vmatprep.subr.bf16.mxu1 %v4367_v56 }
 0x196   : > { %3127 = vmatpush1.bf16.msra.mxu0 %v4362_v58  ;;  %v3199_v58 = vsub.s32 (!%p3741_p7), 1, %v3194_v52 }
 0x197   : > { %3168 = vmatpush1.bf16.msra.mxu1 %v4365_v59  ;;  %v3196_v59 = vrot.slane (!%p3741_p7), %v3191_v53, %v3195_v55 }
 0x199   : > { %3129 = vmatmul.mubr.bf16.vlgmr.msra.gmra.mrb[20].mxu0 %v3353_v61  ;;  %v3200_v61 = vrot.slane (!%p3741_p7), %v3191_v53, %v3199_v58 }
 0x19a   : > { %3170 = vmatmul.mubr.bf16.vlgmr.msra.gmra.mrb[20].mxu1 %v3355_v62 }
 0x1ac   : > { %v2884_v63 = vpop.f32.mrb[8].mxu0 }
 0x1ad   : > { %v2925_v0 = vpop.f32.mrb[8].mxu1  ;;  %v2885_v1 = vadd.f32 %v2884_v63, %v4872_v21  ;;  %v2886_v2 = vpop.f32.mrb[9].mxu0 }
 0x1ae   : > { %v2927_v3 = vpop.f32.mrb[9].mxu1  ;;  %v2887_v4 = vadd.f32 %v2886_v2, %v4876_v24  ;;  %v2888_v5 = vpop.f32.mrb[10].mxu0 }
 0x1af   : > { %v2929_v6 = vpop.f32.mrb[10].mxu1  ;;  %v2926_v7 = vadd.f32 %v2925_v0, %v2885_v1  ;;  %v2889_v8 = vpop.f32.mrb[11].mxu0 }
 0x1b0   : > { %v2930_v45 = vpop.f32.mrb[11].mxu1  ;;  %v2928_v9 = vadd.f32 %v2927_v3, %v2887_v4 }
 0x1ec   : > { %v2966_v10 = vpop.f32.mrb[12].mxu0 }
 0x1ed   : > { %v3007_v46 = vpop.f32.mrb[12].mxu1  ;;  %v2967_v11 = vadd.f32 %v2966_v10, %v2926_v7  ;;  %v2968_v12 = vpop.f32.mrb[13].mxu0 }
 0x1ee   : > { %v3009_v13 = vpop.f32.mrb[13].mxu1  ;;  %v2969_v14 = vadd.f32 %v2968_v12, %v2928_v9  ;;  %v2970_v15 = vpop.f32.mrb[14].mxu0 }
 0x1ef   : > { %v3011_v16 = vpop.f32.mrb[14].mxu1  ;;  %v3008_v17 = vadd.f32 %v3007_v46, %v2967_v11  ;;  %v2971_v18 = vpop.f32.mrb[15].mxu0 }
 0x1f0   : > { %v3012_v21 = vpop.f32.mrb[15].mxu1  ;;  %v3010_v22 = vadd.f32 %v3009_v13, %v2969_v14 }
 0x22c   : > { %v3048_v23 = vpop.f32.mrb[16].mxu0 }
 0x22d   : > { %v3089_v57 = vpop.f32.mrb[16].mxu1  ;;  %v3049_v60 = vadd.f32 %v3048_v23, %v3008_v17  ;;  %v3050_v24 = vpop.f32.mrb[17].mxu0 }
 0x22e   : > { %v3091_v27 = vpop.f32.mrb[17].mxu1  ;;  %v3051_v28 = vadd.f32 %v3050_v24, %v3010_v22  ;;  %v3052_v20 = vpop.f32.mrb[18].mxu0 }
 0x22f   : > { %v3093_v29 = vpop.f32.mrb[18].mxu1  ;;  %v3090_v31 = vadd.f32 %v3089_v57, %v3049_v60  ;;  %v3053_v32 = vpop.f32.mrb[19].mxu0 }
 0x230   : > { %v3094_v33 = vpop.f32.mrb[19].mxu1  ;;  %v3092_v34 = vadd.f32 %v3091_v27, %v3051_v28 }
 0x26c   : > { %v3130_v25 = vpop.f32.mrb[20].mxu0 }
 0x26d   : > { %v3171_v26 = vpop.f32.mrb[20].mxu1  ;;  %v3131_v35 = vadd.f32 %v3130_v25, %v3090_v31  ;;  %v3132_v36 = vpop.f32.mrb[21].mxu0 }
 0x26e   : > { %v3173_v37 = vpop.f32.mrb[21].mxu1  ;;  %v3133_v39 = vadd.f32 %v3132_v36, %v3092_v34  ;;  %v3134_v40 = vpop.f32.mrb[22].mxu0  ;;  %3186 = sbr.rel (%p3741_p7) target bundleno = 641 (0x281), region = 40 }
 0x26f   : > { %v3175_v41 = vpop.f32.mrb[22].mxu1  ;;  %v3172_v42 = vadd.f32 %v3171_v26, %v3131_v35  ;;  %v3135_v44 = vpop.f32.mrb[23].mxu0 }
 0x270   : > { %v3176_v47 = vpop.f32.mrb[23].mxu1  ;;  %v3174_v48 = vadd.f32 %v3173_v37, %v3133_v39 }
 0x271   : > { %v3178_v49 = vadd.f32 %v3172_v42, %v284_v38 }
 0x272   : > { %v3179_v50 = vadd.f32 %v3174_v48, %v285_v43 }
 0x273   : > { %3180 = vst [vmem:[#allocation2] sm:$0xff] %v3178_v49 }
 0x274   : > { %3182 = vst.msk [vmem:[#allocation2 + $0x8] sm:$0xff] %vm3181_vm1, %v3179_v50 }
 0x27a   : > { %v3187_v30 = vld [vmem:[#allocation2] sm:$0xff] }
 0x27b   : > { %v3188_v51 = vld [vmem:[#allocation2 + $0x8] sm:$0xff]  ;;  %v3189_v54 = vmul.f32 0.00086805556, %v3187_v30 }
 0x27c   : > { %v3190_v56 = vmul.f32 0.00086805556, %v3188_v51 }
 0x27d   : > { %v3203_v62 = vadd.f32 %v3196_v59, %v3189_v54 }
 0x27e   : > { %v3204_v63 = vadd.f32 %v3200_v61, %v3190_v56 }
 0x27f   : > { %3205 = vst [vmem:[%s4942_s3] sm:$0xff] %v3203_v62 }
 0x280   : > { %3206 = vst.msk [vmem:[%s4942_s3 + $0x8] sm:$0xff] %vm3181_vm1, %v3204_v63 }
 0x281 PF: > { %s13_s14 = sadd.s32 1, %s4394_s14   ;;  %s4943_s12 = smov %s4390_s13 }
 0x282   : > { %p10_p8 = scmp.ge.s32.totalorder %s13_s14, 5   ;;  %s4944_s13 = smov %s4946_s15 }
 0x284   :  { %12 = sbr.rel (!%p10_p8) target bundleno = 2 (0x2), region = 76 }

// kernel: capsule_net_forward.10
= control target key start
LH: loop header
LB: loop body
LE: loop exit
PB: predicated region body
PF: predicated region fallthrough
CT: control target
= control target key end

     0   :  { %vm21_vm0 = vcmask 125952   ;;  %vm14_vm1 = vcmask 130048   ;;  %s99_s0 = inlined_call_operand.vmem [shape: f32[20,16], index: 0, kind: input, shape index: {}]   ;;  %s100_s1 = inlined_call_operand.vmem [shape: f32[20,16], index: 1, kind: output, shape index: {}]  }
   0x1   :  { %v10_v0 = vld [vmem:[%s99_s0 + $0x10] sm:$0xf]  ;;  %v8_v1 = vld [vmem:[%s99_s0] sm:$0xff]  ;;  %v9_v2 = vld [vmem:[%s99_s0 + $0x8] sm:$0xff] }
   0x2   :  { %v13_v3 = vmul.f32 %v10_v0, %v10_v0  ;;  %v11_v4 = vmul.f32 %v8_v1, %v8_v1  ;;  %v12_v5 = vmul.f32 %v9_v2, %v9_v2 }
   0x4   :  { %v22_v6 = vsel %vm21_vm0, %v13_v3, 0.0  ;;  %v15_v7 = vsel %vm14_vm1, %v11_v4, 0.0  ;;  %v18_v8 = vsel %vm14_vm1, %v12_v5, 0.0 }
   0x5   :  { %23 = vadd.xlane.f32.xlu1 %v22_v6  ;;  %16 = vadd.xlane.f32.xlu0 %v15_v7 }
   0x9   :  { %19 = vadd.xlane.f32.xlu0 %v18_v8 }
  0x92   :  { %v24_v9 = vpop.xlane.xlu1 %23  ;;  %v17_v10 = vpop.xlane.xlu0 %16 }
  0x93   :  { %v27_v11 = vadd.f32 1.0, %v24_v9  ;;  %v39_v12 = vadd.f32 1e-08, %v24_v9  ;;  %v25_v13 = vadd.f32 1.0, %v17_v10  ;;  %v37_v15 = vadd.f32 1e-08, %v17_v10 }
  0x95   :  { %53 = vrcp.f32 %v27_v11 }
  0x96   :  { %55 = vrsqrt.f32 %v39_v12  ;;  %v20_v14 = vpop.xlane.xlu0 %19 }
  0x97   :  { %57 = vrcp.f32 %v25_v13  ;;  %v26_v16 = vadd.f32 1.0, %v20_v14  ;;  %v38_v17 = vadd.f32 1e-08, %v20_v14 }
  0x99   :  { %59 = vrcp.f32 %v26_v16 }
  0x9a   :  { %61 = vrsqrt.f32 %v37_v15 }
  0x9b   :  { %63 = vrsqrt.f32 %v38_v17 }
  0x9f   :  { %v54_v18 = vpop.eup %53 }
  0xa0   :  { %v56_v19 = vpop.eup %55  ;;  %v33_v20 = vmul.f32 %v54_v18, %v24_v9 }
  0xa1   :  { %v58_v21 = vpop.eup %57 }
  0xa2   :  { %v36_v22 = vmul.f32 %v33_v20, %v10_v0  ;;  %v29_v23 = vmul.f32 %v58_v21, %v17_v10 }
  0xa3   :  { %v60_v24 = vpop.eup %59 }
  0xa4   :  { %v45_v25 = vmul.f32 %v56_v19, %v36_v22  ;;  %v34_v26 = vmul.f32 %v29_v23, %v8_v1  ;;  %v31_v27 = vmul.f32 %v60_v24, %v20_v14  ;;  %v62_v28 = vpop.eup %61 }
  0xa5   :  { %v64_v31 = vpop.eup %63 }
  0xa6   :  { %48 = vst.msk [vmem:[%s100_s1 + $0x10] sm:$0xf] %vm21_vm0, %v45_v25  ;;  %v43_v29 = vmul.f32 %v62_v28, %v34_v26  ;;  %v35_v30 = vmul.f32 %v31_v27, %v9_v2 }
  0xa8   :  { %46 = vst.msk [vmem:[%s100_s1] sm:$0xff] %vm14_vm1, %v43_v29  ;;  %v44_v32 = vmul.f32 %v64_v31, %v35_v30 }
  0xaa   :  { %47 = vst.msk [vmem:[%s100_s1 + $0x8] sm:$0xff] %vm14_vm1, %v44_v32 }

// kernel: capsule_net_forward.11
= control target key start
LH: loop header
LB: loop body
LE: loop exit
PB: predicated region body
PF: predicated region fallthrough
CT: control target
= control target key end

     0   :  { %vm274_vm0 = vcmask 261120   ;;  %v377_v43 = vlaneseq  ;;  %s689_s1 = inlined_call_operand.vmem [shape: bf16[160,512], index: 1, kind: input, shape index: {}]   ;;  %s690_s0 = inlined_call_operand.vmem [shape: bf16[8,160], index: 0, kind: input, shape index: {}]   ;;  %s691_s2 = inlined_call_operand.vmem [shape: f32[1,512], index: 2, kind: input, shape index: {}]   ;;  %s692_s3 = inlined_call_operand.vmem [shape: bf16[8,512], index: 3, kind: output, shape index: {}]  }
   0x1   :  { %v475_v0 = vld [vmem:[%s689_s1 + $0x4] ss:$16 sps:$4 sm:$0xff]   ;;  %v477_v1 = vld [vmem:[%s689_s1 + $0xc] ss:$16 sps:$4 sm:$0xff]   ;;  %v479_v2 = vld [vmem:[%s689_s1] ss:$16 sps:$4 sm:$0xff]  }
   0x2   :  { %278 = vmatprep.subr.bf16.mxu0 %v475_v0  ;;  %v480_v3 = vld [vmem:[%s689_s1 + $0x8] ss:$16 sps:$4 sm:$0xff]   ;;  %319 = vmatprep.subr.bf16.mxu1 %v477_v1  ;;  %v481_v4 = vld [vmem:[%s689_s1 + $0x24] ss:$16 sps:$4 sm:$0xff]   ;;  %v483_v5 = vld [vmem:[%s689_s1 + $0x2c] ss:$16 sps:$4 sm:$0xff]  }
   0x3   :  { %279 = vmatpush1.bf16.msra.mxu0 %v479_v2  ;;  %320 = vmatpush1.bf16.msra.mxu1 %v480_v3  ;;  %v485_v6 = vld [vmem:[%s689_s1 + $0x20] ss:$16 sps:$4 sm:$0xff]   ;;  %v486_v7 = vld [vmem:[%s689_s1 + $0x28] ss:$16 sps:$4 sm:$0xff]   ;;  %v487_v8 = vld [vmem:[%s689_s1 + $0x44] ss:$16 sps:$4 sm:$0xff]  }
   0x4   :  { %280 = vmatprep.subr.bf16.mxu0 %v481_v4  ;;  %321 = vmatprep.subr.bf16.mxu1 %v483_v5  ;;  %v489_v9 = vld [vmem:[%s689_s1 + $0x4c] ss:$16 sps:$4 sm:$0xff]   ;;  %v491_v10 = vld [vmem:[%s689_s1 + $0x40] ss:$16 sps:$4 sm:$0xff]   ;;  %v492_v11 = vld [vmem:[%s689_s1 + $0x48] ss:$16 sps:$4 sm:$0xff]  }
   0x5   :  { %v493_v12 = vld [vmem:[%s689_s1 + $0x64] ss:$16 sps:$4 sm:$0xff]   ;;  %v495_v13 = vld [vmem:[%s689_s1 + $0x6c] ss:$16 sps:$4 sm:$0xff]   ;;  %v497_v14 = vld [vmem:[%s689_s1 + $0x60] ss:$16 sps:$4 sm:$0xff]  }
   0x6   :  { %v498_v15 = vld [vmem:[%s689_s1 + $0x68] ss:$16 sps:$4 sm:$0xff]   ;;  %v499_v16 = vld [vmem:[%s689_s1 + $0x84] ss:$16 sps:$4 sm:$0xff]   ;;  %v501_v17 = vld [vmem:[%s689_s1 + $0x8c] ss:$16 sps:$4 sm:$0xff]  }
   0x7   :  { %281 = vmatpush1.bf16.msra.mxu0 %v485_v6  ;;  %322 = vmatpush1.bf16.msra.mxu1 %v486_v7  ;;  %v503_v18 = vld [vmem:[%s689_s1 + $0x80] ss:$16 sps:$4 sm:$0xff]   ;;  %v504_v19 = vld [vmem:[%s689_s1 + $0x88] ss:$16 sps:$4 sm:$0xff]   ;;  %v505_v20 = vld [vmem:[%s689_s1 + $0xa4] ss:$16 sps:$4 sm:$0xff]  }
   0x8   :  { %282 = vmatprep.subr.bf16.mxu0 %v487_v8  ;;  %323 = vmatprep.subr.bf16.mxu1 %v489_v9  ;;  %v507_v21 = vld [vmem:[%s689_s1 + $0xac] ss:$16 sps:$4 sm:$0xff]   ;;  %v509_v22 = vld [vmem:[%s689_s1 + $0xa0] ss:$16 sps:$4 sm:$0xff]   ;;  %v510_v23 = vld [vmem:[%s689_s1 + $0xa8] ss:$16 sps:$4 sm:$0xff]  }
   0x9   :  { %v511_v24 = vld [vmem:[%s689_s1 + $0xc4] ss:$16 sps:$4 sm:$0xff]   ;;  %v513_v25 = vld [vmem:[%s689_s1 + $0xcc] ss:$16 sps:$4 sm:$0xff]   ;;  %v515_v26 = vld [vmem:[%s689_s1 + $0xc0] ss:$16 sps:$4 sm:$0xff]  }
   0xa   :  { %v516_v27 = vld [vmem:[%s689_s1 + $0xc8] ss:$16 sps:$4 sm:$0xff]   ;;  %v517_v28 = vld [vmem:[%s689_s1 + $0xe4] ss:$16 sps:$4 sm:$0xff]   ;;  %v519_v29 = vld [vmem:[%s689_s1 + $0xec] ss:$16 sps:$4 sm:$0xff]  }
   0xb   :  { %283 = vmatpush1.bf16.msra.mxu0 %v491_v10  ;;  %324 = vmatpush1.bf16.msra.mxu1 %v492_v11  ;;  %v27_v30 = vld [vmem:[%s690_s0] sm:$0xff]  ;;  %v522_v33 = vld [vmem:[%s689_s1 + $0xe8] ss:$16 sps:$4 sm:$0xff]   ;;  %v525_v35 = vld [vmem:[%s689_s1 + $0x10c] ss:$16 sps:$4 sm:$0xff]   ;;  %v378_v44 = vshrl.u32 %v377_v43, 7 }
   0xc   :  { %284 = vmatprep.subr.bf16.mxu0 %v493_v12  ;;  %325 = vmatprep.subr.bf16.mxu1 %v495_v13  ;;  %v428_v31 = vcombine.high %v27_v30, %v27_v30  ;;  %v521_v32 = vld [vmem:[%s689_s1 + $0xe0] ss:$16 sps:$4 sm:$0xff]   ;;  %v523_v34 = vld [vmem:[%s689_s1 + $0x104] ss:$16 sps:$4 sm:$0xff]   ;;  %v528_v37 = vld [vmem:[%s689_s1 + $0x108] ss:$16 sps:$4 sm:$0xff]   ;;  %v427_v42 = vcombine.low %v27_v30, %v27_v30 }
   0xd   :  { %v527_v36 = vld [vmem:[%s689_s1 + $0x100] ss:$16 sps:$4 sm:$0xff]   ;;  %v529_v38 = vld [vmem:[%s689_s1 + $0x124] ss:$16 sps:$4 sm:$0xff]   ;;  %v531_v39 = vld [vmem:[%s689_s1 + $0x12c] ss:$16 sps:$4 sm:$0xff]  }
   0xe   :  { %469 = vmatprep.mubr.msk.bf16.mxu0 %vm274_vm0, %v428_v31  ;;  %470 = vmatprep.mubr.msk.bf16.mxu1 %vm274_vm0, %v428_v31  ;;  %v533_v40 = vld [vmem:[%s689_s1 + $0x120] ss:$16 sps:$4 sm:$0xff]   ;;  %v534_v41 = vld [vmem:[%s689_s1 + $0x128] ss:$16 sps:$4 sm:$0xff]   ;;  %v379_v45 = vsub.s32 0, %v378_v44  ;;  %v387_v46 = vsub.s32 2, %v378_v44 }
   0xf   :  { %285 = vmatpush1.bf16.msra.mxu0 %v497_v14  ;;  %326 = vmatpush1.bf16.msra.mxu1 %v498_v15  ;;  %v375_v47 = vld [vmem:[%s691_s2] sm:$0xf]  ;;  %v383_v48 = vsub.s32 1, %v378_v44  ;;  %v391_v49 = vsub.s32 3, %v378_v44 }
  0x10   :  { %286 = vmatprep.subr.bf16.mxu0 %v499_v16  ;;  %327 = vmatprep.subr.bf16.mxu1 %v501_v17  ;;  %v380_v50 = vrot.slane %v375_v47, %v379_v45  ;;  %v388_v51 = vrot.slane %v375_v47, %v387_v46 }
  0x11   :  { %v384_v52 = vrot.slane %v375_v47, %v383_v48  ;;  %v392_v53 = vrot.slane %v375_v47, %v391_v49 }
  0x13   :  { %287 = vmatpush1.bf16.msra.mxu0 %v503_v18  ;;  %328 = vmatpush1.bf16.msra.mxu1 %v504_v19 }
  0x14   :  { %288 = vmatprep.subr.bf16.mxu0 %v505_v20  ;;  %329 = vmatprep.subr.bf16.mxu1 %v507_v21 }
  0x17   :  { %289 = vmatpush1.bf16.msra.mxu0 %v509_v22  ;;  %330 = vmatpush1.bf16.msra.mxu1 %v510_v23 }
  0x18   :  { %290 = vmatprep.subr.bf16.mxu0 %v511_v24  ;;  %331 = vmatprep.subr.bf16.mxu1 %v513_v25 }
  0x1b   :  { %291 = vmatpush1.bf16.msra.mxu0 %v515_v26  ;;  %332 = vmatpush1.bf16.msra.mxu1 %v516_v27 }
  0x1c   :  { %292 = vmatprep.subr.bf16.mxu0 %v517_v28  ;;  %333 = vmatprep.subr.bf16.mxu1 %v519_v29 }
  0x1f   :  { %293 = vmatpush1.bf16.msra.mxu0 %v521_v32  ;;  %334 = vmatpush1.bf16.msra.mxu1 %v522_v33 }
  0x20   :  { %294 = vmatprep.subr.bf16.mxu0 %v523_v34  ;;  %335 = vmatprep.subr.bf16.mxu1 %v525_v35 }
  0x23   :  { %295 = vmatpush1.bf16.msra.mxu0 %v527_v36  ;;  %336 = vmatpush1.bf16.msra.mxu1 %v528_v37 }
  0x24   :  { %296 = vmatprep.subr.bf16.mxu0 %v529_v38  ;;  %337 = vmatprep.subr.bf16.mxu1 %v531_v39 }
  0x27   :  { %297 = vmatpush1.bf16.msra.mxu0 %v533_v40  ;;  %338 = vmatpush1.bf16.msra.mxu1 %v534_v41 }
  0x2a   :  { %311 = vmatmul.mubr.bf16.vlgmr.msra.gmra.mrb[0].mxu0 %v427_v42  ;;  %352 = vmatmul.mubr.bf16.vlgmr.msra.gmra.mrb[0].mxu1 %v427_v42 }
  0xfd   :  { %v312_v54 = vpop.f32.mrb[0].mxu0  ;;  %v353_v55 = vpop.f32.mrb[0].mxu1 }
  0xfe   :  { %v397_v56 = vadd.f32 %v380_v50, %v312_v54  ;;  %v399_v57 = vadd.f32 %v388_v51, %v353_v55  ;;  %v314_v58 = vpop.f32.mrb[1].mxu0  ;;  %v355_v59 = vpop.f32.mrb[1].mxu1 }
  0xff   :  { %v398_v60 = vadd.f32 %v384_v52, %v314_v58  ;;  %v400_v61 = vadd.f32 %v392_v53, %v355_v59  ;;  %v316_v62 = vpop.f32.mrb[2].mxu0  ;;  %v357_v63 = vpop.f32.mrb[2].mxu1 }
 0x100   :  { %v401_v0 = vmax.f32 %v397_v56, 0.0  ;;  %v403_v1 = vmax.f32 %v399_v57, 0.0  ;;  %v317_v2 = vpop.f32.mrb[3].mxu0  ;;  %v358_v3 = vpop.f32.mrb[3].mxu1 }
 0x101   :  { %v402_v4 = vmax.f32 %v398_v60, 0.0  ;;  %v404_v5 = vmax.f32 %v400_v61, 0.0 }
 0x103   :  { %v473_v6 = vpack.c.bf16 %v402_v4, %v401_v0  ;;  %v474_v7 = vpack.c.bf16 %v404_v5, %v403_v1 }
 0x105   :  { %421 = vst [vmem:[%s692_s3] sm:$0xff] %v473_v6  ;;  %422 = vst [vmem:[%s692_s3 + $0x8] sm:$0xff] %v474_v7 }

// kernel: capsule_net_forward.12
= control target key start
LH: loop header
LB: loop body
LE: loop exit
PB: predicated region body
PF: predicated region fallthrough
CT: control target
= control target key end

     0   :  { %s3176_s1 = inlined_call_operand.vmem [shape: bf16[512,1024], index: 1, kind: input, shape index: {}]   ;;  %s3177_s0 = inlined_call_operand.vmem [shape: bf16[8,512], index: 0, kind: input, shape index: {}]   ;;  %s3178_s2 = inlined_call_operand.vmem [shape: f32[1,1024], index: 2, kind: input, shape index: {}]   ;;  %s3179_s3 = inlined_call_operand.vmem [shape: bf16[8,1024], index: 3, kind: output, shape index: {}]  }
   0x1   :  { %v36_v0 = vld [vmem:[%s3176_s1] sm:$0xff]  ;;  %v2423_v54 = vld [vmem:[%s3177_s0 + $0x8] sm:$0xff] }
   0x2   :  { %v40_v1 = vld [vmem:[%s3176_s1 + $0x20] sm:$0xff]  ;;  %v2437_v59 = vcombine.high %v2423_v54, %v2423_v54 }
   0x3   :  { %v164_v2 = vld [vmem:[%s3176_s1 + $0x400] sm:$0xff]  ;;  %v2044_v3 = vcombine.high %v36_v0, %v40_v1  ;;  %v2043_v5 = vcombine.low %v36_v0, %v40_v1 }
   0x4   :  { %v168_v4 = vld [vmem:[%s3176_s1 + $0x420] sm:$0xff]  ;;  %1659 = vmatprep.mubr.bf16.mxu1 %v2437_v59 }
   0x5   :  { %v44_v6 = vld [vmem:[%s3176_s1 + $0x40] sm:$0xff]  ;;  %v2172_v8 = vcombine.high %v164_v2, %v168_v4  ;;  %v2171_v9 = vcombine.low %v164_v2, %v168_v4  ;;  %1586 = vmatprep.subr.bf16.mxu0 %v2044_v3 }
   0x6   :  { %v48_v7 = vld [vmem:[%s3176_s1 + $0x60] sm:$0xff]  ;;  %1587 = vmatpush1.bf16.msra.mxu0 %v2043_v5 }
   0x7   :  { %v2052_v10 = vcombine.high %v44_v6, %v48_v7  ;;  %v172_v11 = vld [vmem:[%s3176_s1 + $0x440] sm:$0xff]  ;;  %1627 = vmatprep.subr.bf16.mxu1 %v2172_v8  ;;  %v2051_v18 = vcombine.low %v44_v6, %v48_v7 }
   0x8   :  { %v176_v12 = vld [vmem:[%s3176_s1 + $0x460] sm:$0xff]  ;;  %1628 = vmatpush1.bf16.msra.mxu1 %v2171_v9 }
   0x9   :  { %v52_v13 = vld [vmem:[%s3176_s1 + $0x80] sm:$0xff]  ;;  %v2180_v14 = vcombine.high %v172_v11, %v176_v12  ;;  %1588 = vmatprep.subr.bf16.mxu0 %v2052_v10  ;;  %v2179_v19 = vcombine.low %v172_v11, %v176_v12 }
   0xa   :  { %v56_v15 = vld [vmem:[%s3176_s1 + $0xa0] sm:$0xff]  ;;  %1589 = vmatpush1.bf16.msra.mxu0 %v2051_v18 }
   0xb   :  { %v180_v16 = vld [vmem:[%s3176_s1 + $0x480] sm:$0xff]  ;;  %v2060_v20 = vcombine.high %v52_v13, %v56_v15  ;;  %1629 = vmatprep.subr.bf16.mxu1 %v2180_v14  ;;  %v2059_v26 = vcombine.low %v52_v13, %v56_v15 }
   0xc   :  { %v184_v17 = vld [vmem:[%s3176_s1 + $0x4a0] sm:$0xff]  ;;  %1630 = vmatpush1.bf16.msra.mxu1 %v2179_v19 }
   0xd   :  { %v2188_v21 = vcombine.high %v180_v16, %v184_v17  ;;  %v60_v22 = vld [vmem:[%s3176_s1 + $0xc0] sm:$0xff]  ;;  %1590 = vmatprep.subr.bf16.mxu0 %v2060_v20  ;;  %v2187_v27 = vcombine.low %v180_v16, %v184_v17 }
   0xe   :  { %v64_v23 = vld [vmem:[%s3176_s1 + $0xe0] sm:$0xff]  ;;  %1591 = vmatpush1.bf16.msra.mxu0 %v2059_v26 }
   0xf   :  { %v188_v24 = vld [vmem:[%s3176_s1 + $0x4c0] sm:$0xff]  ;;  %v2068_v28 = vcombine.high %v60_v22, %v64_v23  ;;  %1631 = vmatprep.subr.bf16.mxu1 %v2188_v21  ;;  %v2067_v34 = vcombine.low %v60_v22, %v64_v23 }
  0x10   :  { %v192_v25 = vld [vmem:[%s3176_s1 + $0x4e0] sm:$0xff]  ;;  %1632 = vmatpush1.bf16.msra.mxu1 %v2187_v27 }
  0x11   :  { %v2196_v29 = vcombine.high %v188_v24, %v192_v25  ;;  %v68_v30 = vld [vmem:[%s3176_s1 + $0x100] sm:$0xff]  ;;  %1592 = vmatprep.subr.bf16.mxu0 %v2068_v28  ;;  %v2195_v35 = vcombine.low %v188_v24, %v192_v25 }
  0x12   :  { %v72_v31 = vld [vmem:[%s3176_s1 + $0x120] sm:$0xff]  ;;  %1593 = vmatpush1.bf16.msra.mxu0 %v2067_v34 }
  0x13   :  { %v196_v32 = vld [vmem:[%s3176_s1 + $0x500] sm:$0xff]  ;;  %v2076_v36 = vcombine.high %v68_v30, %v72_v31  ;;  %1633 = vmatprep.subr.bf16.mxu1 %v2196_v29  ;;  %v2075_v42 = vcombine.low %v68_v30, %v72_v31 }
  0x14   :  { %v200_v33 = vld [vmem:[%s3176_s1 + $0x520] sm:$0xff]  ;;  %1634 = vmatpush1.bf16.msra.mxu1 %v2195_v35 }
  0x15   :  { %v2204_v37 = vcombine.high %v196_v32, %v200_v33  ;;  %v76_v38 = vld [vmem:[%s3176_s1 + $0x140] sm:$0xff]  ;;  %1594 = vmatprep.subr.bf16.mxu0 %v2076_v36  ;;  %v2203_v43 = vcombine.low %v196_v32, %v200_v33 }
  0x16   :  { %v80_v39 = vld [vmem:[%s3176_s1 + $0x160] sm:$0xff]  ;;  %1595 = vmatpush1.bf16.msra.mxu0 %v2075_v42 }
  0x17   :  { %v204_v40 = vld [vmem:[%s3176_s1 + $0x540] sm:$0xff]  ;;  %v2084_v44 = vcombine.high %v76_v38, %v80_v39  ;;  %1635 = vmatprep.subr.bf16.mxu1 %v2204_v37  ;;  %v2083_v50 = vcombine.low %v76_v38, %v80_v39 }
  0x18   :  { %v208_v41 = vld [vmem:[%s3176_s1 + $0x560] sm:$0xff]  ;;  %1636 = vmatpush1.bf16.msra.mxu1 %v2203_v43 }
  0x19   :  { %v2212_v45 = vcombine.high %v204_v40, %v208_v41  ;;  %v84_v46 = vld [vmem:[%s3176_s1 + $0x180] sm:$0xff]  ;;  %1596 = vmatprep.subr.bf16.mxu0 %v2084_v44  ;;  %v2211_v51 = vcombine.low %v204_v40, %v208_v41 }
  0x1a   :  { %v88_v47 = vld [vmem:[%s3176_s1 + $0x1a0] sm:$0xff]  ;;  %1597 = vmatpush1.bf16.msra.mxu0 %v2083_v50 }
  0x1b   :  { %v212_v48 = vld [vmem:[%s3176_s1 + $0x580] sm:$0xff]  ;;  %v2092_v52 = vcombine.high %v84_v46, %v88_v47  ;;  %1637 = vmatprep.subr.bf16.mxu1 %v2212_v45  ;;  %v2091_v62 = vcombine.low %v84_v46, %v88_v47 }
  0x1c   :  { %v216_v49 = vld [vmem:[%s3176_s1 + $0x5a0] sm:$0xff]  ;;  %1638 = vmatpush1.bf16.msra.mxu1 %v2211_v51 }
  0x1d   :  { %v2418_v53 = vld [vmem:[%s3177_s0] sm:$0xff]  ;;  %v2220_v55 = vcombine.high %v212_v48, %v216_v49  ;;  %1598 = vmatprep.subr.bf16.mxu0 %v2092_v52  ;;  %v2219_v63 = vcombine.low %v212_v48, %v216_v49 }
  0x1e   :  { %v92_v56 = vld [vmem:[%s3176_s1 + $0x1c0] sm:$0xff]  ;;  %v2433_v58 = vcombine.high %v2418_v53, %v2418_v53  ;;  %1599 = vmatpush1.bf16.msra.mxu0 %v2091_v62 }
  0x1f   :  { %v96_v57 = vld [vmem:[%s3176_s1 + $0x1e0] sm:$0xff]  ;;  %1639 = vmatprep.subr.bf16.mxu1 %v2220_v55 }
  0x20   :  { %v220_v60 = vld [vmem:[%s3176_s1 + $0x5c0] sm:$0xff]  ;;  %1618 = vmatprep.mubr.bf16.mxu0 %v2433_v58  ;;  %v2100_v0 = vcombine.high %v92_v56, %v96_v57  ;;  %v2099_v6 = vcombine.low %v92_v56, %v96_v57  ;;  %1640 = vmatpush1.bf16.msra.mxu1 %v2219_v63 }
  0x21   :  { %v224_v61 = vld [vmem:[%s3176_s1 + $0x5e0] sm:$0xff] }
  0x22   :  { %v2228_v1 = vcombine.high %v220_v60, %v224_v61  ;;  %v100_v2 = vld [vmem:[%s3176_s1 + $0x200] sm:$0xff]  ;;  %1600 = vmatprep.subr.bf16.mxu0 %v2100_v0  ;;  %v2227_v7 = vcombine.low %v220_v60, %v224_v61 }
  0x23   :  { %v104_v3 = vld [vmem:[%s3176_s1 + $0x220] sm:$0xff]  ;;  %1601 = vmatpush1.bf16.msra.mxu0 %v2099_v6  ;;  %v37_v6 = vld [vmem:[%s3176_s1 + $0x8] sm:$0xff] }
  0x24   :  { %v228_v4 = vld [vmem:[%s3176_s1 + $0x600] sm:$0xff]  ;;  %v2108_v8 = vcombine.high %v100_v2, %v104_v3  ;;  %1641 = vmatprep.subr.bf16.mxu1 %v2228_v1  ;;  %v2107_v14 = vcombine.low %v100_v2, %v104_v3 }
  0x25   :  { %v232_v5 = vld [vmem:[%s3176_s1 + $0x620] sm:$0xff]  ;;  %1642 = vmatpush1.bf16.msra.mxu1 %v2227_v7  ;;  %v41_v7 = vld [vmem:[%s3176_s1 + $0x28] sm:$0xff] }
  0x26   :  { %v2236_v9 = vcombine.high %v228_v4, %v232_v5  ;;  %v108_v10 = vld [vmem:[%s3176_s1 + $0x240] sm:$0xff]  ;;  %1602 = vmatprep.subr.bf16.mxu0 %v2108_v8  ;;  %v2235_v15 = vcombine.low %v228_v4, %v232_v5  ;;  %v165_v8 = vld [vmem:[%s3176_s1 + $0x408] sm:$0xff] }
  0x27   :  { %v112_v11 = vld [vmem:[%s3176_s1 + $0x260] sm:$0xff]  ;;  %1603 = vmatpush1.bf16.msra.mxu0 %v2107_v14  ;;  %v45_v14 = vld [vmem:[%s3176_s1 + $0x48] sm:$0xff] }
  0x28   :  { %v236_v12 = vld [vmem:[%s3176_s1 + $0x640] sm:$0xff]  ;;  %v2116_v16 = vcombine.high %v108_v10, %v112_v11  ;;  %1643 = vmatprep.subr.bf16.mxu1 %v2236_v9  ;;  %v2115_v22 = vcombine.low %v108_v10, %v112_v11  ;;  %v169_v9 = vld [vmem:[%s3176_s1 + $0x428] sm:$0xff] }
  0x29   :  { %v240_v13 = vld [vmem:[%s3176_s1 + $0x660] sm:$0xff]  ;;  %1644 = vmatpush1.bf16.msra.mxu1 %v2235_v15  ;;  %v49_v15 = vld [vmem:[%s3176_s1 + $0x68] sm:$0xff] }
  0x2a   :  { %v2244_v17 = vcombine.high %v236_v12, %v240_v13  ;;  %v116_v18 = vld [vmem:[%s3176_s1 + $0x280] sm:$0xff]  ;;  %1604 = vmatprep.subr.bf16.mxu0 %v2116_v16  ;;  %v2243_v23 = vcombine.low %v236_v12, %v240_v13  ;;  %v2046_v12 = vcombine.high %v37_v6, %v41_v7  ;;  %v2174_v13 = vcombine.high %v165_v8, %v169_v9 }
  0x2b   :  { %v120_v19 = vld [vmem:[%s3176_s1 + $0x2a0] sm:$0xff]  ;;  %1605 = vmatpush1.bf16.msra.mxu0 %v2115_v22  ;;  %v2563_v16 = vcombine.low %v2418_v53, %v2418_v53  ;;  %v2054_v22 = vcombine.high %v45_v14, %v49_v15 }
  0x2c   :  { %v244_v20 = vld [vmem:[%s3176_s1 + $0x680] sm:$0xff]  ;;  %v2124_v24 = vcombine.high %v116_v18, %v120_v19  ;;  %1645 = vmatprep.subr.bf16.mxu1 %v2244_v17  ;;  %v2123_v30 = vcombine.low %v116_v18, %v120_v19  ;;  %v173_v17 = vld [vmem:[%s3176_s1 + $0x448] sm:$0xff]  ;;  %v2573_v19 = vcombine.low %v2423_v54, %v2423_v54 }
  0x2d   :  { %v248_v21 = vld [vmem:[%s3176_s1 + $0x6a0] sm:$0xff]  ;;  %1646 = vmatpush1.bf16.msra.mxu1 %v2243_v23  ;;  %v177_v18 = vld [vmem:[%s3176_s1 + $0x468] sm:$0xff] }
  0x2e   :  { %v2252_v25 = vcombine.high %v244_v20, %v248_v21  ;;  %v124_v26 = vld [vmem:[%s3176_s1 + $0x2c0] sm:$0xff]  ;;  %1606 = vmatprep.subr.bf16.mxu0 %v2124_v24  ;;  %v2251_v31 = vcombine.low %v244_v20, %v248_v21  ;;  %v2045_v20 = vcombine.low %v37_v6, %v41_v7  ;;  %v2173_v21 = vcombine.low %v165_v8, %v169_v9  ;;  %v53_v23 = vld [vmem:[%s3176_s1 + $0x88] sm:$0xff] }
  0x2f   :  { %v128_v27 = vld [vmem:[%s3176_s1 + $0x2e0] sm:$0xff]  ;;  %1607 = vmatpush1.bf16.msra.mxu0 %v2123_v30  ;;  %v2182_v53 = vcombine.high %v173_v17, %v177_v18  ;;  %v57_v24 = vld [vmem:[%s3176_s1 + $0xa8] sm:$0xff] }
  0x30   :  { %v252_v28 = vld [vmem:[%s3176_s1 + $0x6c0] sm:$0xff]  ;;  %v2132_v32 = vcombine.high %v124_v26, %v128_v27  ;;  %1647 = vmatprep.subr.bf16.mxu1 %v2252_v25  ;;  %v2131_v38 = vcombine.low %v124_v26, %v128_v27  ;;  %v181_v54 = vld [vmem:[%s3176_s1 + $0x488] sm:$0xff]  ;;  %v2053_v26 = vcombine.low %v45_v14, %v49_v15  ;;  %v2181_v27 = vcombine.low %v173_v17, %v177_v18 }
  0x31   :  { %v256_v29 = vld [vmem:[%s3176_s1 + $0x6e0] sm:$0xff]  ;;  %1648 = vmatpush1.bf16.msra.mxu1 %v2251_v31  ;;  %v185_v25 = vld [vmem:[%s3176_s1 + $0x4a8] sm:$0xff] }
  0x32   :  { %v2260_v33 = vcombine.high %v252_v28, %v256_v29  ;;  %v132_v34 = vld [vmem:[%s3176_s1 + $0x300] sm:$0xff]  ;;  %1608 = vmatprep.subr.bf16.mxu0 %v2132_v32  ;;  %v2259_v39 = vcombine.low %v252_v28, %v256_v29  ;;  %v2062_v28 = vcombine.high %v53_v23, %v57_v24  ;;  %v2190_v29 = vcombine.high %v181_v54, %v185_v25  ;;  %v61_v30 = vld [vmem:[%s3176_s1 + $0xc8] sm:$0xff] }
  0x33   :  { %v136_v35 = vld [vmem:[%s3176_s1 + $0x320] sm:$0xff]  ;;  %1609 = vmatpush1.bf16.msra.mxu0 %v2131_v38  ;;  %v65_v31 = vld [vmem:[%s3176_s1 + $0xe8] sm:$0xff] }
  0x34   :  { %v260_v36 = vld [vmem:[%s3176_s1 + $0x700] sm:$0xff]  ;;  %v2140_v40 = vcombine.high %v132_v34, %v136_v35  ;;  %1649 = vmatprep.subr.bf16.mxu1 %v2260_v33  ;;  %v2139_v46 = vcombine.low %v132_v34, %v136_v35  ;;  %v189_v32 = vld [vmem:[%s3176_s1 + $0x4c8] sm:$0xff]  ;;  %v2061_v34 = vcombine.low %v53_v23, %v57_v24  ;;  %v2189_v35 = vcombine.low %v181_v54, %v185_v25 }
  0x35   :  { %v264_v37 = vld [vmem:[%s3176_s1 + $0x720] sm:$0xff]  ;;  %1650 = vmatpush1.bf16.msra.mxu1 %v2259_v39  ;;  %v193_v33 = vld [vmem:[%s3176_s1 + $0x4e8] sm:$0xff] }
  0x36   :  { %v2268_v41 = vcombine.high %v260_v36, %v264_v37  ;;  %v140_v42 = vld [vmem:[%s3176_s1 + $0x340] sm:$0xff]  ;;  %1610 = vmatprep.subr.bf16.mxu0 %v2140_v40  ;;  %v2267_v47 = vcombine.low %v260_v36, %v264_v37  ;;  %v2070_v36 = vcombine.high %v61_v30, %v65_v31  ;;  %v2198_v37 = vcombine.high %v189_v32, %v193_v33  ;;  %v69_v38 = vld [vmem:[%s3176_s1 + $0x108] sm:$0xff] }
  0x37   :  { %v144_v43 = vld [vmem:[%s3176_s1 + $0x360] sm:$0xff]  ;;  %1611 = vmatpush1.bf16.msra.mxu0 %v2139_v46  ;;  %v73_v39 = vld [vmem:[%s3176_s1 + $0x128] sm:$0xff] }
  0x38   :  { %v268_v44 = vld [vmem:[%s3176_s1 + $0x740] sm:$0xff]  ;;  %v2148_v48 = vcombine.high %v140_v42, %v144_v43  ;;  %1651 = vmatprep.subr.bf16.mxu1 %v2268_v41  ;;  %v2147_v56 = vcombine.low %v140_v42, %v144_v43  ;;  %v197_v40 = vld [vmem:[%s3176_s1 + $0x508] sm:$0xff]  ;;  %v2069_v42 = vcombine.low %v61_v30, %v65_v31  ;;  %v2197_v43 = vcombine.low %v189_v32, %v193_v33 }
  0x39   :  { %v272_v45 = vld [vmem:[%s3176_s1 + $0x760] sm:$0xff]  ;;  %1652 = vmatpush1.bf16.msra.mxu1 %v2267_v47  ;;  %v201_v41 = vld [vmem:[%s3176_s1 + $0x528] sm:$0xff] }
  0x3a   :  { %v2276_v49 = vcombine.high %v268_v44, %v272_v45  ;;  %v148_v50 = vld [vmem:[%s3176_s1 + $0x380] sm:$0xff]  ;;  %1612 = vmatprep.subr.bf16.mxu0 %v2148_v48  ;;  %v2275_v57 = vcombine.low %v268_v44, %v272_v45  ;;  %v2078_v44 = vcombine.high %v69_v38, %v73_v39  ;;  %v2206_v45 = vcombine.high %v197_v40, %v201_v41  ;;  %v77_v46 = vld [vmem:[%s3176_s1 + $0x148] sm:$0xff] }
  0x3b   :  { %v152_v51 = vld [vmem:[%s3176_s1 + $0x3a0] sm:$0xff]  ;;  %1613 = vmatpush1.bf16.msra.mxu0 %v2147_v56  ;;  %v81_v47 = vld [vmem:[%s3176_s1 + $0x168] sm:$0xff] }
  0x3c   :  { %v276_v52 = vld [vmem:[%s3176_s1 + $0x780] sm:$0xff]  ;;  %v2156_v60 = vcombine.high %v148_v50, %v152_v51  ;;  %1653 = vmatprep.subr.bf16.mxu1 %v2276_v49  ;;  %v2155_v2 = vcombine.low %v148_v50, %v152_v51  ;;  %v205_v48 = vld [vmem:[%s3176_s1 + $0x548] sm:$0xff]  ;;  %v2077_v50 = vcombine.low %v69_v38, %v73_v39  ;;  %v2205_v51 = vcombine.low %v197_v40, %v201_v41 }
  0x3d   :  { %v280_v55 = vld [vmem:[%s3176_s1 + $0x7a0] sm:$0xff]  ;;  %1654 = vmatpush1.bf16.msra.mxu1 %v2275_v57  ;;  %v209_v49 = vld [vmem:[%s3176_s1 + $0x568] sm:$0xff] }
  0x3e   :  { %v2284_v61 = vcombine.high %v276_v52, %v280_v55  ;;  %v156_v62 = vld [vmem:[%s3176_s1 + $0x3c0] sm:$0xff]  ;;  %1614 = vmatprep.subr.bf16.mxu0 %v2156_v60  ;;  %v2283_v3 = vcombine.low %v276_v52, %v280_v55  ;;  %v2086_v52 = vcombine.high %v77_v46, %v81_v47  ;;  %v2214_v55 = vcombine.high %v205_v48, %v209_v49  ;;  %v85_v56 = vld [vmem:[%s3176_s1 + $0x188] sm:$0xff] }
  0x3f   :  { %v160_v63 = vld [vmem:[%s3176_s1 + $0x3e0] sm:$0xff]  ;;  %1615 = vmatpush1.bf16.msra.mxu0 %v2155_v2  ;;  %v89_v57 = vld [vmem:[%s3176_s1 + $0x1a8] sm:$0xff] }
  0x40   :  { %v284_v0 = vld [vmem:[%s3176_s1 + $0x7c0] sm:$0xff]  ;;  %v2164_v4 = vcombine.high %v156_v62, %v160_v63  ;;  %1655 = vmatprep.subr.bf16.mxu1 %v2284_v61  ;;  %v2163_v10 = vcombine.low %v156_v62, %v160_v63  ;;  %v213_v60 = vld [vmem:[%s3176_s1 + $0x588] sm:$0xff]  ;;  %v2085_v62 = vcombine.low %v77_v46, %v81_v47  ;;  %v2213_v63 = vcombine.low %v205_v48, %v209_v49 }
  0x41   :  { %v288_v1 = vld [vmem:[%s3176_s1 + $0x7e0] sm:$0xff]  ;;  %1656 = vmatpush1.bf16.msra.mxu1 %v2283_v3  ;;  %v217_v61 = vld [vmem:[%s3176_s1 + $0x5a8] sm:$0xff]  ;;  %v2093_v6 = vcombine.low %v85_v56, %v89_v57 }
  0x42   :  { %v2292_v5 = vcombine.high %v284_v0, %v288_v1  ;;  %1616 = vmatprep.subr.bf16.mxu0 %v2164_v4  ;;  %v2291_v11 = vcombine.low %v284_v0, %v288_v1  ;;  %v2094_v0 = vcombine.high %v85_v56, %v89_v57  ;;  %v2222_v1 = vcombine.high %v213_v60, %v217_v61  ;;  %v93_v2 = vld [vmem:[%s3176_s1 + $0x1c8] sm:$0xff] }
  0x43   :  { %1617 = vmatpush1.bf16.msra.mxu0 %v2163_v10  ;;  %v97_v3 = vld [vmem:[%s3176_s1 + $0x1e8] sm:$0xff]  ;;  %v2221_v7 = vcombine.low %v213_v60, %v217_v61 }
  0x44   :  { %1657 = vmatprep.subr.bf16.mxu1 %v2292_v5  ;;  %1668 = vmatprep.subr.bf16.mxu0 %v2046_v12  ;;  %v221_v4 = vld [vmem:[%s3176_s1 + $0x5c8] sm:$0xff]  ;;  %v2102_v8 = vcombine.high %v93_v2, %v97_v3  ;;  %v2101_v14 = vcombine.low %v93_v2, %v97_v3 }
  0x45   :  { %1658 = vmatpush1.bf16.msra.mxu1 %v2291_v11  ;;  %v225_v5 = vld [vmem:[%s3176_s1 + $0x5e8] sm:$0xff] }
  0x46   :  { %1709 = vmatprep.subr.bf16.mxu1 %v2174_v13  ;;  %1619 = vmatmul.mubr.bf16.vlgmr.msra.gmra.mrb[0].mxu0 %v2563_v16  ;;  %v2230_v9 = vcombine.high %v221_v4, %v225_v5  ;;  %v101_v10 = vld [vmem:[%s3176_s1 + $0x208] sm:$0xff]  ;;  %v2229_v15 = vcombine.low %v221_v4, %v225_v5 }
  0x47   :  { %1669 = vmatpush1.bf16.msra.mxu0 %v2045_v20  ;;  %1700 = vmatprep.mubr.bf16.mxu0 %v2433_v58  ;;  %v105_v11 = vld [vmem:[%s3176_s1 + $0x228] sm:$0xff] }
  0x48   :  { %1660 = vmatmul.mubr.bf16.vlgmr.msra.gmra.mrb[0].mxu1 %v2573_v19  ;;  %1670 = vmatprep.subr.bf16.mxu0 %v2054_v22  ;;  %v229_v12 = vld [vmem:[%s3176_s1 + $0x608] sm:$0xff]  ;;  %v2110_v17 = vcombine.high %v101_v10, %v105_v11  ;;  %v2109_v23 = vcombine.low %v101_v10, %v105_v11 }
  0x49   :  { %1710 = vmatpush1.bf16.msra.mxu1 %v2173_v21  ;;  %1741 = vmatprep.mubr.bf16.mxu1 %v2437_v59  ;;  %v233_v13 = vld [vmem:[%s3176_s1 + $0x628] sm:$0xff] }
  0x4a   :  { %1711 = vmatprep.subr.bf16.mxu1 %v2182_v53  ;;  %v2238_v18 = vcombine.high %v229_v12, %v233_v13  ;;  %v109_v20 = vld [vmem:[%s3176_s1 + $0x248] sm:$0xff]  ;;  %v2237_v24 = vcombine.low %v229_v12, %v233_v13 }
  0x4b   :  { %1671 = vmatpush1.bf16.msra.mxu0 %v2053_v26  ;;  %v113_v21 = vld [vmem:[%s3176_s1 + $0x268] sm:$0xff] }
  0x4c   :  { %1672 = vmatprep.subr.bf16.mxu0 %v2062_v28  ;;  %v237_v22 = vld [vmem:[%s3176_s1 + $0x648] sm:$0xff]  ;;  %v2118_v54 = vcombine.high %v109_v20, %v113_v21  ;;  %v2117_v30 = vcombine.low %v109_v20, %v113_v21 }
  0x4d   :  { %1712 = vmatpush1.bf16.msra.mxu1 %v2181_v27  ;;  %v241_v53 = vld [vmem:[%s3176_s1 + $0x668] sm:$0xff] }
  0x4e   :  { %1713 = vmatprep.subr.bf16.mxu1 %v2190_v29  ;;  %v2246_v25 = vcombine.high %v237_v22, %v241_v53  ;;  %v117_v26 = vld [vmem:[%s3176_s1 + $0x288] sm:$0xff]  ;;  %v2245_v31 = vcombine.low %v237_v22, %v241_v53 }
  0x4f   :  { %1673 = vmatpush1.bf16.msra.mxu0 %v2061_v34  ;;  %v121_v27 = vld [vmem:[%s3176_s1 + $0x2a8] sm:$0xff] }
  0x50   :  { %1674 = vmatprep.subr.bf16.mxu0 %v2070_v36  ;;  %v245_v28 = vld [vmem:[%s3176_s1 + $0x688] sm:$0xff]  ;;  %v2126_v32 = vcombine.high %v117_v26, %v121_v27  ;;  %v2125_v38 = vcombine.low %v117_v26, %v121_v27 }
  0x51   :  { %1714 = vmatpush1.bf16.msra.mxu1 %v2189_v35  ;;  %v249_v29 = vld [vmem:[%s3176_s1 + $0x6a8] sm:$0xff] }
  0x52   :  { %1715 = vmatprep.subr.bf16.mxu1 %v2198_v37  ;;  %v2254_v33 = vcombine.high %v245_v28, %v249_v29  ;;  %v125_v34 = vld [vmem:[%s3176_s1 + $0x2c8] sm:$0xff]  ;;  %v2253_v39 = vcombine.low %v245_v28, %v249_v29 }
  0x53   :  { %1675 = vmatpush1.bf16.msra.mxu0 %v2069_v42  ;;  %v129_v35 = vld [vmem:[%s3176_s1 + $0x2e8] sm:$0xff] }
  0x54   :  { %1676 = vmatprep.subr.bf16.mxu0 %v2078_v44  ;;  %v253_v36 = vld [vmem:[%s3176_s1 + $0x6c8] sm:$0xff]  ;;  %v2134_v40 = vcombine.high %v125_v34, %v129_v35  ;;  %v2133_v46 = vcombine.low %v125_v34, %v129_v35 }
  0x55   :  { %1716 = vmatpush1.bf16.msra.mxu1 %v2197_v43  ;;  %v257_v37 = vld [vmem:[%s3176_s1 + $0x6e8] sm:$0xff] }
  0x56   :  { %1717 = vmatprep.subr.bf16.mxu1 %v2206_v45  ;;  %v2262_v41 = vcombine.high %v253_v36, %v257_v37  ;;  %v133_v42 = vld [vmem:[%s3176_s1 + $0x308] sm:$0xff]  ;;  %v2261_v47 = vcombine.low %v253_v36, %v257_v37 }
  0x57   :  { %1677 = vmatpush1.bf16.msra.mxu0 %v2077_v50  ;;  %v137_v43 = vld [vmem:[%s3176_s1 + $0x328] sm:$0xff] }
  0x58   :  { %1678 = vmatprep.subr.bf16.mxu0 %v2086_v52  ;;  %v261_v44 = vld [vmem:[%s3176_s1 + $0x708] sm:$0xff]  ;;  %v2142_v48 = vcombine.high %v133_v42, %v137_v43  ;;  %v2141_v56 = vcombine.low %v133_v42, %v137_v43 }
  0x59   :  { %1718 = vmatpush1.bf16.msra.mxu1 %v2205_v51  ;;  %v265_v45 = vld [vmem:[%s3176_s1 + $0x728] sm:$0xff] }
  0x5a   :  { %1719 = vmatprep.subr.bf16.mxu1 %v2214_v55  ;;  %v2270_v49 = vcombine.high %v261_v44, %v265_v45  ;;  %v141_v50 = vld [vmem:[%s3176_s1 + $0x348] sm:$0xff]  ;;  %v2269_v57 = vcombine.low %v261_v44, %v265_v45 }
  0x5b   :  { %1679 = vmatpush1.bf16.msra.mxu0 %v2085_v62  ;;  %v145_v51 = vld [vmem:[%s3176_s1 + $0x368] sm:$0xff] }
  0x5c   :  { %1680 = vmatprep.subr.bf16.mxu0 %v2094_v0  ;;  %v269_v52 = vld [vmem:[%s3176_s1 + $0x748] sm:$0xff]  ;;  %v2150_v60 = vcombine.high %v141_v50, %v145_v51  ;;  %v2149_v2 = vcombine.low %v141_v50, %v145_v51 }
  0x5d   :  { %1720 = vmatpush1.bf16.msra.mxu1 %v2213_v63  ;;  %v273_v55 = vld [vmem:[%s3176_s1 + $0x768] sm:$0xff] }
  0x5e   :  { %1721 = vmatprep.subr.bf16.mxu1 %v2222_v1  ;;  %v2278_v61 = vcombine.high %v269_v52, %v273_v55  ;;  %v149_v62 = vld [vmem:[%s3176_s1 + $0x388] sm:$0xff]  ;;  %v2277_v3 = vcombine.low %v269_v52, %v273_v55 }
  0x5f   :  { %1681 = vmatpush1.bf16.msra.mxu0 %v2093_v6  ;;  %v153_v63 = vld [vmem:[%s3176_s1 + $0x3a8] sm:$0xff] }
  0x60   :  { %1682 = vmatprep.subr.bf16.mxu0 %v2102_v8  ;;  %v277_v0 = vld [vmem:[%s3176_s1 + $0x788] sm:$0xff]  ;;  %v2158_v4 = vcombine.high %v149_v62, %v153_v63  ;;  %v2157_v10 = vcombine.low %v149_v62, %v153_v63 }
  0x61   :  { %1722 = vmatpush1.bf16.msra.mxu1 %v2221_v7  ;;  %v281_v1 = vld [vmem:[%s3176_s1 + $0x7a8] sm:$0xff] }
  0x62   :  { %1723 = vmatprep.subr.bf16.mxu1 %v2230_v9  ;;  %v2286_v5 = vcombine.high %v277_v0, %v281_v1  ;;  %v157_v6 = vld [vmem:[%s3176_s1 + $0x3c8] sm:$0xff]  ;;  %v2285_v11 = vcombine.low %v277_v0, %v281_v1 }
  0x63   :  { %1683 = vmatpush1.bf16.msra.mxu0 %v2101_v14  ;;  %v161_v7 = vld [vmem:[%s3176_s1 + $0x3e8] sm:$0xff]  ;;  %v38_v14 = vld [vmem:[%s3176_s1 + $0x10] sm:$0xff] }
  0x64   :  { %1684 = vmatprep.subr.bf16.mxu0 %v2110_v17  ;;  %v285_v8 = vld [vmem:[%s3176_s1 + $0x7c8] sm:$0xff]  ;;  %v2166_v12 = vcombine.high %v157_v6, %v161_v7  ;;  %v166_v17 = vld [vmem:[%s3176_s1 + $0x410] sm:$0xff]  ;;  %v2165_v20 = vcombine.low %v157_v6, %v161_v7 }
  0x65   :  { %1724 = vmatpush1.bf16.msra.mxu1 %v2229_v15  ;;  %v289_v9 = vld [vmem:[%s3176_s1 + $0x7e8] sm:$0xff]  ;;  %v42_v15 = vld [vmem:[%s3176_s1 + $0x30] sm:$0xff] }
  0x66   :  { %1725 = vmatprep.subr.bf16.mxu1 %v2238_v18  ;;  %v2294_v13 = vcombine.high %v285_v8, %v289_v9  ;;  %v170_v18 = vld [vmem:[%s3176_s1 + $0x430] sm:$0xff]  ;;  %v2293_v21 = vcombine.low %v285_v8, %v289_v9  ;;  %v2048_v22 = vcombine.high %v38_v14, %v42_v15  ;;  %v2047_v26 = vcombine.low %v38_v14, %v42_v15 }
  0x67   :  { %1685 = vmatpush1.bf16.msra.mxu0 %v2109_v23  ;;  %v2176_v53 = vcombine.high %v166_v17, %v170_v18  ;;  %v46_v23 = vld [vmem:[%s3176_s1 + $0x50] sm:$0xff]  ;;  %v2175_v27 = vcombine.low %v166_v17, %v170_v18 }
  0x68   :  { %1686 = vmatprep.subr.bf16.mxu0 %v2118_v54  ;;  %v174_v54 = vld [vmem:[%s3176_s1 + $0x450] sm:$0xff] }
  0x69   :  { %1726 = vmatpush1.bf16.msra.mxu1 %v2237_v24  ;;  %v50_v24 = vld [vmem:[%s3176_s1 + $0x70] sm:$0xff] }
  0x6a   :  { %1727 = vmatprep.subr.bf16.mxu1 %v2246_v25  ;;  %v178_v25 = vld [vmem:[%s3176_s1 + $0x470] sm:$0xff]  ;;  %v2056_v28 = vcombine.high %v46_v23, %v50_v24  ;;  %v2055_v34 = vcombine.low %v46_v23, %v50_v24 }
  0x6b   :  { %1687 = vmatpush1.bf16.msra.mxu0 %v2117_v30  ;;  %v2184_v29 = vcombine.high %v174_v54, %v178_v25  ;;  %v54_v30 = vld [vmem:[%s3176_s1 + $0x90] sm:$0xff]  ;;  %v2183_v35 = vcombine.low %v174_v54, %v178_v25 }
  0x6c   :  { %1688 = vmatprep.subr.bf16.mxu0 %v2126_v32  ;;  %v182_v32 = vld [vmem:[%s3176_s1 + $0x490] sm:$0xff] }
  0x6d   :  { %1728 = vmatpush1.bf16.msra.mxu1 %v2245_v31  ;;  %v58_v31 = vld [vmem:[%s3176_s1 + $0xb0] sm:$0xff] }
  0x6e   :  { %1729 = vmatprep.subr.bf16.mxu1 %v2254_v33  ;;  %v186_v33 = vld [vmem:[%s3176_s1 + $0x4b0] sm:$0xff]  ;;  %v2064_v36 = vcombine.high %v54_v30, %v58_v31  ;;  %v2063_v42 = vcombine.low %v54_v30, %v58_v31 }
  0x6f   :  { %1689 = vmatpush1.bf16.msra.mxu0 %v2125_v38  ;;  %v2192_v37 = vcombine.high %v182_v32, %v186_v33  ;;  %v62_v38 = vld [vmem:[%s3176_s1 + $0xd0] sm:$0xff]  ;;  %v2191_v43 = vcombine.low %v182_v32, %v186_v33 }
  0x70   :  { %1690 = vmatprep.subr.bf16.mxu0 %v2134_v40  ;;  %v190_v40 = vld [vmem:[%s3176_s1 + $0x4d0] sm:$0xff] }
  0x71   :  { %1730 = vmatpush1.bf16.msra.mxu1 %v2253_v39  ;;  %v66_v39 = vld [vmem:[%s3176_s1 + $0xf0] sm:$0xff] }
  0x72   :  { %1731 = vmatprep.subr.bf16.mxu1 %v2262_v41  ;;  %v194_v41 = vld [vmem:[%s3176_s1 + $0x4f0] sm:$0xff]  ;;  %v2072_v44 = vcombine.high %v62_v38, %v66_v39  ;;  %v2071_v50 = vcombine.low %v62_v38, %v66_v39 }
  0x73   :  { %1691 = vmatpush1.bf16.msra.mxu0 %v2133_v46  ;;  %v2200_v45 = vcombine.high %v190_v40, %v194_v41  ;;  %v70_v46 = vld [vmem:[%s3176_s1 + $0x110] sm:$0xff]  ;;  %v2199_v51 = vcombine.low %v190_v40, %v194_v41 }
  0x74   :  { %1692 = vmatprep.subr.bf16.mxu0 %v2142_v48  ;;  %v198_v48 = vld [vmem:[%s3176_s1 + $0x510] sm:$0xff] }
  0x75   :  { %1732 = vmatpush1.bf16.msra.mxu1 %v2261_v47  ;;  %v74_v47 = vld [vmem:[%s3176_s1 + $0x130] sm:$0xff] }
  0x76   :  { %1733 = vmatprep.subr.bf16.mxu1 %v2270_v49  ;;  %v202_v49 = vld [vmem:[%s3176_s1 + $0x530] sm:$0xff]  ;;  %v2080_v52 = vcombine.high %v70_v46, %v74_v47  ;;  %v2079_v62 = vcombine.low %v70_v46, %v74_v47 }
  0x77   :  { %1693 = vmatpush1.bf16.msra.mxu0 %v2141_v56  ;;  %v2208_v55 = vcombine.high %v198_v48, %v202_v49  ;;  %v78_v56 = vld [vmem:[%s3176_s1 + $0x150] sm:$0xff]  ;;  %v2207_v63 = vcombine.low %v198_v48, %v202_v49 }
  0x78   :  { %1694 = vmatprep.subr.bf16.mxu0 %v2150_v60  ;;  %v206_v60 = vld [vmem:[%s3176_s1 + $0x550] sm:$0xff] }
  0x79   :  { %1734 = vmatpush1.bf16.msra.mxu1 %v2269_v57  ;;  %v82_v57 = vld [vmem:[%s3176_s1 + $0x170] sm:$0xff] }
  0x7a   :  { %1735 = vmatprep.subr.bf16.mxu1 %v2278_v61  ;;  %v210_v61 = vld [vmem:[%s3176_s1 + $0x570] sm:$0xff]  ;;  %v2088_v0 = vcombine.high %v78_v56, %v82_v57  ;;  %v2087_v6 = vcombine.low %v78_v56, %v82_v57 }
  0x7b   :  { %1695 = vmatpush1.bf16.msra.mxu0 %v2149_v2  ;;  %v2216_v1 = vcombine.high %v206_v60, %v210_v61  ;;  %v86_v2 = vld [vmem:[%s3176_s1 + $0x190] sm:$0xff]  ;;  %v2215_v7 = vcombine.low %v206_v60, %v210_v61 }
  0x7c   :  { %1696 = vmatprep.subr.bf16.mxu0 %v2158_v4  ;;  %v214_v4 = vld [vmem:[%s3176_s1 + $0x590] sm:$0xff] }
  0x7d   :  { %1736 = vmatpush1.bf16.msra.mxu1 %v2277_v3  ;;  %v90_v3 = vld [vmem:[%s3176_s1 + $0x1b0] sm:$0xff] }
  0x7e   :  { %1737 = vmatprep.subr.bf16.mxu1 %v2286_v5  ;;  %v218_v5 = vld [vmem:[%s3176_s1 + $0x5b0] sm:$0xff]  ;;  %v2096_v8 = vcombine.high %v86_v2, %v90_v3  ;;  %v2095_v14 = vcombine.low %v86_v2, %v90_v3 }
  0x7f   :  { %1697 = vmatpush1.bf16.msra.mxu0 %v2157_v10  ;;  %v2224_v9 = vcombine.high %v214_v4, %v218_v5  ;;  %v94_v10 = vld [vmem:[%s3176_s1 + $0x1d0] sm:$0xff]  ;;  %v2223_v15 = vcombine.low %v214_v4, %v218_v5 }
  0x80   :  { %1698 = vmatprep.subr.bf16.mxu0 %v2166_v12  ;;  %v222_v12 = vld [vmem:[%s3176_s1 + $0x5d0] sm:$0xff] }
  0x81   :  { %1738 = vmatpush1.bf16.msra.mxu1 %v2285_v11  ;;  %v98_v11 = vld [vmem:[%s3176_s1 + $0x1f0] sm:$0xff] }
  0x82   :  { %1739 = vmatprep.subr.bf16.mxu1 %v2294_v13  ;;  %v226_v13 = vld [vmem:[%s3176_s1 + $0x5f0] sm:$0xff]  ;;  %v2104_v17 = vcombine.high %v94_v10, %v98_v11  ;;  %v2103_v23 = vcombine.low %v94_v10, %v98_v11 }
  0x83   :  { %1699 = vmatpush1.bf16.msra.mxu0 %v2165_v20  ;;  %v2232_v18 = vcombine.high %v222_v12, %v226_v13  ;;  %v102_v20 = vld [vmem:[%s3176_s1 + $0x210] sm:$0xff]  ;;  %v2231_v24 = vcombine.low %v222_v12, %v226_v13 }
  0x84   :  { %1750 = vmatprep.subr.bf16.mxu0 %v2048_v22  ;;  %v230_v22 = vld [vmem:[%s3176_s1 + $0x610] sm:$0xff] }
  0x85   :  { %1740 = vmatpush1.bf16.msra.mxu1 %v2293_v21  ;;  %v106_v21 = vld [vmem:[%s3176_s1 + $0x230] sm:$0xff] }
  0x86   :  { %1791 = vmatprep.subr.bf16.mxu1 %v2176_v53  ;;  %1701 = vmatmul.mubr.bf16.vlgmr.msra.gmra.mrb[4].mxu0 %v2563_v16  ;;  %v234_v53 = vld [vmem:[%s3176_s1 + $0x630] sm:$0xff]  ;;  %v2112_v54 = vcombine.high %v102_v20, %v106_v21  ;;  %v2111_v30 = vcombine.low %v102_v20, %v106_v21 }
  0x87   :  { %1751 = vmatpush1.bf16.msra.mxu0 %v2047_v26  ;;  %1782 = vmatprep.mubr.bf16.mxu0 %v2433_v58  ;;  %v2240_v25 = vcombine.high %v230_v22, %v234_v53  ;;  %v110_v26 = vld [vmem:[%s3176_s1 + $0x250] sm:$0xff]  ;;  %v2239_v31 = vcombine.low %v230_v22, %v234_v53 }
  0x88   :  { %1742 = vmatmul.mubr.bf16.vlgmr.msra.gmra.mrb[4].mxu1 %v2573_v19  ;;  %1752 = vmatprep.subr.bf16.mxu0 %v2056_v28  ;;  %v238_v28 = vld [vmem:[%s3176_s1 + $0x650] sm:$0xff] }
  0x89   :  { %1792 = vmatpush1.bf16.msra.mxu1 %v2175_v27  ;;  %1823 = vmatprep.mubr.bf16.mxu1 %v2437_v59  ;;  %v114_v27 = vld [vmem:[%s3176_s1 + $0x270] sm:$0xff] }
  0x8a   :  { %1793 = vmatprep.subr.bf16.mxu1 %v2184_v29  ;;  %v242_v29 = vld [vmem:[%s3176_s1 + $0x670] sm:$0xff]  ;;  %v2120_v32 = vcombine.high %v110_v26, %v114_v27  ;;  %v2119_v38 = vcombine.low %v110_v26, %v114_v27 }
  0x8b   :  { %1753 = vmatpush1.bf16.msra.mxu0 %v2055_v34  ;;  %v2248_v33 = vcombine.high %v238_v28, %v242_v29  ;;  %v118_v34 = vld [vmem:[%s3176_s1 + $0x290] sm:$0xff]  ;;  %v2247_v39 = vcombine.low %v238_v28, %v242_v29 }
  0x8c   :  { %1754 = vmatprep.subr.bf16.mxu0 %v2064_v36  ;;  %v246_v36 = vld [vmem:[%s3176_s1 + $0x690] sm:$0xff] }
  0x8d   :  { %1794 = vmatpush1.bf16.msra.mxu1 %v2183_v35  ;;  %v122_v35 = vld [vmem:[%s3176_s1 + $0x2b0] sm:$0xff] }
  0x8e   :  { %1795 = vmatprep.subr.bf16.mxu1 %v2192_v37  ;;  %v250_v37 = vld [vmem:[%s3176_s1 + $0x6b0] sm:$0xff]  ;;  %v2128_v40 = vcombine.high %v118_v34, %v122_v35  ;;  %v2127_v46 = vcombine.low %v118_v34, %v122_v35 }
  0x8f   :  { %1755 = vmatpush1.bf16.msra.mxu0 %v2063_v42  ;;  %v2256_v41 = vcombine.high %v246_v36, %v250_v37  ;;  %v126_v42 = vld [vmem:[%s3176_s1 + $0x2d0] sm:$0xff]  ;;  %v2255_v47 = vcombine.low %v246_v36, %v250_v37 }
  0x90   :  { %1756 = vmatprep.subr.bf16.mxu0 %v2072_v44  ;;  %v254_v44 = vld [vmem:[%s3176_s1 + $0x6d0] sm:$0xff] }
  0x91   :  { %1796 = vmatpush1.bf16.msra.mxu1 %v2191_v43  ;;  %v130_v43 = vld [vmem:[%s3176_s1 + $0x2f0] sm:$0xff] }
  0x92   :  { %1797 = vmatprep.subr.bf16.mxu1 %v2200_v45  ;;  %v258_v45 = vld [vmem:[%s3176_s1 + $0x6f0] sm:$0xff]  ;;  %v2136_v48 = vcombine.high %v126_v42, %v130_v43  ;;  %v2135_v56 = vcombine.low %v126_v42, %v130_v43 }
  0x93   :  { %1757 = vmatpush1.bf16.msra.mxu0 %v2071_v50  ;;  %v2264_v49 = vcombine.high %v254_v44, %v258_v45  ;;  %v134_v50 = vld [vmem:[%s3176_s1 + $0x310] sm:$0xff]  ;;  %v2263_v57 = vcombine.low %v254_v44, %v258_v45 }
  0x94   :  { %1758 = vmatprep.subr.bf16.mxu0 %v2080_v52  ;;  %v262_v52 = vld [vmem:[%s3176_s1 + $0x710] sm:$0xff] }
  0x95   :  { %1798 = vmatpush1.bf16.msra.mxu1 %v2199_v51  ;;  %v138_v51 = vld [vmem:[%s3176_s1 + $0x330] sm:$0xff] }
  0x96   :  { %1799 = vmatprep.subr.bf16.mxu1 %v2208_v55  ;;  %v266_v55 = vld [vmem:[%s3176_s1 + $0x730] sm:$0xff]  ;;  %v2144_v60 = vcombine.high %v134_v50, %v138_v51  ;;  %v2143_v2 = vcombine.low %v134_v50, %v138_v51 }
  0x97   :  { %1759 = vmatpush1.bf16.msra.mxu0 %v2079_v62  ;;  %v2272_v61 = vcombine.high %v262_v52, %v266_v55  ;;  %v142_v62 = vld [vmem:[%s3176_s1 + $0x350] sm:$0xff]  ;;  %v2271_v3 = vcombine.low %v262_v52, %v266_v55 }
  0x98   :  { %1760 = vmatprep.subr.bf16.mxu0 %v2088_v0  ;;  %v270_v0 = vld [vmem:[%s3176_s1 + $0x750] sm:$0xff] }
  0x99   :  { %1800 = vmatpush1.bf16.msra.mxu1 %v2207_v63  ;;  %v146_v63 = vld [vmem:[%s3176_s1 + $0x370] sm:$0xff] }
  0x9a   :  { %1801 = vmatprep.subr.bf16.mxu1 %v2216_v1  ;;  %v274_v1 = vld [vmem:[%s3176_s1 + $0x770] sm:$0xff]  ;;  %v2152_v4 = vcombine.high %v142_v62, %v146_v63  ;;  %v2151_v10 = vcombine.low %v142_v62, %v146_v63 }
  0x9b   :  { %1761 = vmatpush1.bf16.msra.mxu0 %v2087_v6  ;;  %v2280_v5 = vcombine.high %v270_v0, %v274_v1  ;;  %v150_v6 = vld [vmem:[%s3176_s1 + $0x390] sm:$0xff]  ;;  %v2279_v11 = vcombine.low %v270_v0, %v274_v1  ;;  %v79_v0 = vld [vmem:[%s3176_s1 + $0x158] sm:$0xff] }
  0x9c   :  { %1762 = vmatprep.subr.bf16.mxu0 %v2096_v8  ;;  %v278_v8 = vld [vmem:[%s3176_s1 + $0x790] sm:$0xff]  ;;  %v83_v1 = vld [vmem:[%s3176_s1 + $0x178] sm:$0xff] }
  0x9d   :  { %1802 = vmatpush1.bf16.msra.mxu1 %v2215_v7  ;;  %v154_v7 = vld [vmem:[%s3176_s1 + $0x3b0] sm:$0xff] }
  0x9e   :  { %1803 = vmatprep.subr.bf16.mxu1 %v2224_v9  ;;  %v282_v9 = vld [vmem:[%s3176_s1 + $0x7b0] sm:$0xff]  ;;  %v2160_v12 = vcombine.high %v150_v6, %v154_v7  ;;  %v2159_v20 = vcombine.low %v150_v6, %v154_v7  ;;  %v2090_v6 = vcombine.high %v79_v0, %v83_v1 }
  0x9f   :  { %1763 = vmatpush1.bf16.msra.mxu0 %v2095_v14  ;;  %v2288_v13 = vcombine.high %v278_v8, %v282_v9  ;;  %v158_v14 = vld [vmem:[%s3176_s1 + $0x3d0] sm:$0xff]  ;;  %v2287_v21 = vcombine.low %v278_v8, %v282_v9  ;;  %v87_v8 = vld [vmem:[%s3176_s1 + $0x198] sm:$0xff] }
  0xa0   :  { %1764 = vmatprep.subr.bf16.mxu0 %v2104_v17  ;;  %v286_v17 = vld [vmem:[%s3176_s1 + $0x7d0] sm:$0xff]  ;;  %v91_v9 = vld [vmem:[%s3176_s1 + $0x1b8] sm:$0xff] }
  0xa1   :  { %1804 = vmatpush1.bf16.msra.mxu1 %v2223_v15  ;;  %v162_v15 = vld [vmem:[%s3176_s1 + $0x3f0] sm:$0xff] }
  0xa2   :  { %1805 = vmatprep.subr.bf16.mxu1 %v2232_v18  ;;  %v290_v18 = vld [vmem:[%s3176_s1 + $0x7f0] sm:$0xff]  ;;  %v2168_v22 = vcombine.high %v158_v14, %v162_v15  ;;  %v2167_v26 = vcombine.low %v158_v14, %v162_v15  ;;  %v2098_v14 = vcombine.high %v87_v8, %v91_v9 }
  0xa3   :  { %1765 = vmatpush1.bf16.msra.mxu0 %v2103_v23  ;;  %v2296_v53 = vcombine.high %v286_v17, %v290_v18  ;;  %v39_v23 = vld [vmem:[%s3176_s1 + $0x18] sm:$0xff]  ;;  %v2295_v27 = vcombine.low %v286_v17, %v290_v18 }
  0xa4   :  { %1766 = vmatprep.subr.bf16.mxu0 %v2112_v54  ;;  %v167_v54 = vld [vmem:[%s3176_s1 + $0x418] sm:$0xff] }
  0xa5   :  { %1806 = vmatpush1.bf16.msra.mxu1 %v2231_v24  ;;  %v43_v24 = vld [vmem:[%s3176_s1 + $0x38] sm:$0xff] }
  0xa6   :  { %1807 = vmatprep.subr.bf16.mxu1 %v2240_v25  ;;  %v171_v25 = vld [vmem:[%s3176_s1 + $0x438] sm:$0xff]  ;;  %v2050_v28 = vcombine.high %v39_v23, %v43_v24  ;;  %v2049_v34 = vcombine.low %v39_v23, %v43_v24 }
  0xa7   :  { %1767 = vmatpush1.bf16.msra.mxu0 %v2111_v30  ;;  %v2178_v29 = vcombine.high %v167_v54, %v171_v25  ;;  %v47_v30 = vld [vmem:[%s3176_s1 + $0x58] sm:$0xff]  ;;  %v2177_v35 = vcombine.low %v167_v54, %v171_v25 }
  0xa8   :  { %1768 = vmatprep.subr.bf16.mxu0 %v2120_v32  ;;  %v175_v32 = vld [vmem:[%s3176_s1 + $0x458] sm:$0xff] }
  0xa9   :  { %1808 = vmatpush1.bf16.msra.mxu1 %v2239_v31  ;;  %v51_v31 = vld [vmem:[%s3176_s1 + $0x78] sm:$0xff] }
  0xaa   :  { %1809 = vmatprep.subr.bf16.mxu1 %v2248_v33  ;;  %v179_v33 = vld [vmem:[%s3176_s1 + $0x478] sm:$0xff]  ;;  %v2058_v36 = vcombine.high %v47_v30, %v51_v31  ;;  %v2057_v42 = vcombine.low %v47_v30, %v51_v31 }
  0xab   :  { %1769 = vmatpush1.bf16.msra.mxu0 %v2119_v38  ;;  %v2186_v37 = vcombine.high %v175_v32, %v179_v33  ;;  %v55_v38 = vld [vmem:[%s3176_s1 + $0x98] sm:$0xff]  ;;  %v2185_v43 = vcombine.low %v175_v32, %v179_v33 }
  0xac   :  { %1770 = vmatprep.subr.bf16.mxu0 %v2128_v40  ;;  %v183_v40 = vld [vmem:[%s3176_s1 + $0x498] sm:$0xff] }
  0xad   :  { %1810 = vmatpush1.bf16.msra.mxu1 %v2247_v39  ;;  %v59_v39 = vld [vmem:[%s3176_s1 + $0xb8] sm:$0xff] }
  0xae   :  { %1811 = vmatprep.subr.bf16.mxu1 %v2256_v41  ;;  %v187_v41 = vld [vmem:[%s3176_s1 + $0x4b8] sm:$0xff]  ;;  %v2066_v44 = vcombine.high %v55_v38, %v59_v39  ;;  %v2065_v50 = vcombine.low %v55_v38, %v59_v39 }
  0xaf   :  { %1771 = vmatpush1.bf16.msra.mxu0 %v2127_v46  ;;  %v2194_v45 = vcombine.high %v183_v40, %v187_v41  ;;  %v63_v46 = vld [vmem:[%s3176_s1 + $0xd8] sm:$0xff]  ;;  %v2193_v51 = vcombine.low %v183_v40, %v187_v41 }
  0xb0   :  { %1772 = vmatprep.subr.bf16.mxu0 %v2136_v48  ;;  %v191_v48 = vld [vmem:[%s3176_s1 + $0x4d8] sm:$0xff] }
  0xb1   :  { %1812 = vmatpush1.bf16.msra.mxu1 %v2255_v47  ;;  %v67_v47 = vld [vmem:[%s3176_s1 + $0xf8] sm:$0xff] }
  0xb2   :  { %1813 = vmatprep.subr.bf16.mxu1 %v2264_v49  ;;  %v195_v49 = vld [vmem:[%s3176_s1 + $0x4f8] sm:$0xff]  ;;  %v2074_v52 = vcombine.high %v63_v46, %v67_v47 }
  0xb3   :  { %1773 = vmatpush1.bf16.msra.mxu0 %v2135_v56  ;;  %v2202_v55 = vcombine.high %v191_v48, %v195_v49  ;;  %v75_v56 = vld [vmem:[%s3176_s1 + $0x138] sm:$0xff] }
  0xb4   :  { %1774 = vmatprep.subr.bf16.mxu0 %v2144_v60  ;;  %v2073_v60 = vcombine.low %v63_v46, %v67_v47  ;;  %v95_v17 = vld [vmem:[%s3176_s1 + $0x1d8] sm:$0xff] }
  0xb5   :  { %1814 = vmatpush1.bf16.msra.mxu1 %v2263_v57  ;;  %v203_v57 = vld [vmem:[%s3176_s1 + $0x538] sm:$0xff] }
  0xb6   :  { %1815 = vmatprep.subr.bf16.mxu1 %v2272_v61  ;;  %v2201_v61 = vcombine.low %v191_v48, %v195_v49  ;;  %v99_v18 = vld [vmem:[%s3176_s1 + $0x1f8] sm:$0xff] }
  0xb7   :  { %1775 = vmatpush1.bf16.msra.mxu0 %v2143_v2  ;;  %v207_v2 = vld [vmem:[%s3176_s1 + $0x558] sm:$0xff]  ;;  %v2106_v23 = vcombine.high %v95_v17, %v99_v18 }
  0xb8   :  { %1776 = vmatprep.subr.bf16.mxu0 %v2152_v4  ;;  %v103_v54 = vld [vmem:[%s3176_s1 + $0x218] sm:$0xff] }
  0xb9   :  { %1816 = vmatpush1.bf16.msra.mxu1 %v2271_v3  ;;  %v211_v3 = vld [vmem:[%s3176_s1 + $0x578] sm:$0xff] }
  0xba   :  { %1817 = vmatprep.subr.bf16.mxu1 %v2280_v5  ;;  %v2218_v7 = vcombine.high %v207_v2, %v211_v3  ;;  %v107_v25 = vld [vmem:[%s3176_s1 + $0x238] sm:$0xff] }
  0xbb   :  { %1777 = vmatpush1.bf16.msra.mxu0 %v2151_v10  ;;  %v215_v10 = vld [vmem:[%s3176_s1 + $0x598] sm:$0xff]  ;;  %v2114_v30 = vcombine.high %v103_v54, %v107_v25 }
  0xbc   :  { %1778 = vmatprep.subr.bf16.mxu0 %v2160_v12  ;;  %v2089_v12 = vcombine.low %v79_v0, %v83_v1  ;;  %v111_v32 = vld [vmem:[%s3176_s1 + $0x258] sm:$0xff] }
  0xbd   :  { %1818 = vmatpush1.bf16.msra.mxu1 %v2279_v11  ;;  %v219_v11 = vld [vmem:[%s3176_s1 + $0x5b8] sm:$0xff] }
  0xbe   :  { %1819 = vmatprep.subr.bf16.mxu1 %v2288_v13  ;;  %v2217_v13 = vcombine.low %v207_v2, %v211_v3  ;;  %v2226_v15 = vcombine.high %v215_v10, %v219_v11  ;;  %v115_v33 = vld [vmem:[%s3176_s1 + $0x278] sm:$0xff] }
  0xbf   :  { %1779 = vmatpush1.bf16.msra.mxu0 %v2159_v20  ;;  %v223_v20 = vld [vmem:[%s3176_s1 + $0x5d8] sm:$0xff]  ;;  %v2122_v38 = vcombine.high %v111_v32, %v115_v33 }
  0xc0   :  { %1780 = vmatprep.subr.bf16.mxu0 %v2168_v22  ;;  %v2097_v22 = vcombine.low %v87_v8, %v91_v9  ;;  %v119_v40 = vld [vmem:[%s3176_s1 + $0x298] sm:$0xff] }
  0xc1   :  { %1820 = vmatpush1.bf16.msra.mxu1 %v2287_v21  ;;  %v227_v21 = vld [vmem:[%s3176_s1 + $0x5f8] sm:$0xff] }
  0xc2   :  { %1821 = vmatprep.subr.bf16.mxu1 %v2296_v53  ;;  %v2225_v53 = vcombine.low %v215_v10, %v219_v11  ;;  %v2234_v24 = vcombine.high %v223_v20, %v227_v21  ;;  %v123_v41 = vld [vmem:[%s3176_s1 + $0x2b8] sm:$0xff] }
  0xc3   :  { %1781 = vmatpush1.bf16.msra.mxu0 %v2167_v26  ;;  %v231_v26 = vld [vmem:[%s3176_s1 + $0x618] sm:$0xff]  ;;  %v2130_v46 = vcombine.high %v119_v40, %v123_v41 }
  0xc4   :  { %1832 = vmatprep.subr.bf16.mxu0 %v2050_v28  ;;  %v2105_v28 = vcombine.low %v95_v17, %v99_v18  ;;  %v127_v48 = vld [vmem:[%s3176_s1 + $0x2d8] sm:$0xff] }
  0xc5   :  { %1822 = vmatpush1.bf16.msra.mxu1 %v2295_v27  ;;  %v235_v27 = vld [vmem:[%s3176_s1 + $0x638] sm:$0xff] }
  0xc6   :  { %1873 = vmatprep.subr.bf16.mxu1 %v2178_v29  ;;  %1783 = vmatmul.mubr.bf16.vlgmr.msra.gmra.mrb[8].mxu0 %v2563_v16  ;;  %v2233_v29 = vcombine.low %v223_v20, %v227_v21  ;;  %v2242_v31 = vcombine.high %v231_v26, %v235_v27  ;;  %v131_v49 = vld [vmem:[%s3176_s1 + $0x2f8] sm:$0xff] }
  0xc7   :  { %1833 = vmatpush1.bf16.msra.mxu0 %v2049_v34  ;;  %1864 = vmatprep.mubr.bf16.mxu0 %v2433_v58  ;;  %v71_v58 = vld [vmem:[%s3176_s1 + $0x118] sm:$0xff] }
  0xc8   :  { %1824 = vmatmul.mubr.bf16.vlgmr.msra.gmra.mrb[8].mxu1 %v2573_v19  ;;  %1834 = vmatprep.subr.bf16.mxu0 %v2058_v36  ;;  %v2082_v62 = vcombine.high %v71_v58, %v75_v56  ;;  %v2081_v4 = vcombine.low %v71_v58, %v75_v56  ;;  %v239_v34 = vld [vmem:[%s3176_s1 + $0x658] sm:$0xff]  ;;  %v2113_v36 = vcombine.low %v103_v54, %v107_v25 }
  0xc9   :  { %1874 = vmatpush1.bf16.msra.mxu1 %v2177_v35  ;;  %1905 = vmatprep.mubr.bf16.mxu1 %v2437_v59  ;;  %v199_v59 = vld [vmem:[%s3176_s1 + $0x518] sm:$0xff]  ;;  %v2138_v58 = vcombine.high %v127_v48, %v131_v49 }
  0xca   :  { %1875 = vmatprep.subr.bf16.mxu1 %v2186_v37  ;;  %v2210_v63 = vcombine.high %v199_v59, %v203_v57  ;;  %v2209_v5 = vcombine.low %v199_v59, %v203_v57  ;;  %v243_v35 = vld [vmem:[%s3176_s1 + $0x678] sm:$0xff]  ;;  %v2241_v37 = vcombine.low %v231_v26, %v235_v27 }
  0xcb   :  { %1835 = vmatpush1.bf16.msra.mxu0 %v2057_v42  ;;  %v2250_v39 = vcombine.high %v239_v34, %v243_v35  ;;  %v247_v42 = vld [vmem:[%s3176_s1 + $0x698] sm:$0xff] }
  0xcc   :  { %1836 = vmatprep.subr.bf16.mxu0 %v2066_v44  ;;  %v2121_v44 = vcombine.low %v111_v32, %v115_v33  ;;  %v135_v59 = vld [vmem:[%s3176_s1 + $0x318] sm:$0xff] }
  0xcd   :  { %1876 = vmatpush1.bf16.msra.mxu1 %v2185_v43  ;;  %v251_v43 = vld [vmem:[%s3176_s1 + $0x6b8] sm:$0xff] }
  0xce   :  { %1877 = vmatprep.subr.bf16.mxu1 %v2194_v45  ;;  %v2249_v45 = vcombine.low %v239_v34, %v243_v35  ;;  %v2258_v47 = vcombine.high %v247_v42, %v251_v43  ;;  %v139_v57 = vld [vmem:[%s3176_s1 + $0x338] sm:$0xff] }
  0xcf   :  { %1837 = vmatpush1.bf16.msra.mxu0 %v2065_v50  ;;  %v255_v50 = vld [vmem:[%s3176_s1 + $0x6d8] sm:$0xff]  ;;  %v2146_v0 = vcombine.high %v135_v59, %v139_v57 }
  0xd0   :  { %1838 = vmatprep.subr.bf16.mxu0 %v2074_v52  ;;  %v2129_v52 = vcombine.low %v119_v40, %v123_v41  ;;  %v143_v2 = vld [vmem:[%s3176_s1 + $0x358] sm:$0xff] }
  0xd1   :  { %1878 = vmatpush1.bf16.msra.mxu1 %v2193_v51  ;;  %v259_v51 = vld [vmem:[%s3176_s1 + $0x6f8] sm:$0xff] }
  0xd2   :  { %1879 = vmatprep.subr.bf16.mxu1 %v2202_v55  ;;  %v2257_v55 = vcombine.low %v247_v42, %v251_v43  ;;  %v2266_v56 = vcombine.high %v255_v50, %v259_v51  ;;  %v147_v3 = vld [vmem:[%s3176_s1 + $0x378] sm:$0xff] }
  0xd3   :  { %1839 = vmatpush1.bf16.msra.mxu0 %v2073_v60  ;;  %v263_v60 = vld [vmem:[%s3176_s1 + $0x718] sm:$0xff]  ;;  %v2154_v8 = vcombine.high %v143_v2, %v147_v3 }
  0xd4   :  { %1840 = vmatprep.subr.bf16.mxu0 %v2082_v62  ;;  %v2137_v62 = vcombine.low %v127_v48, %v131_v49  ;;  %v151_v10 = vld [vmem:[%s3176_s1 + $0x398] sm:$0xff] }
  0xd5   :  { %1880 = vmatpush1.bf16.msra.mxu1 %v2201_v61  ;;  %v267_v61 = vld [vmem:[%s3176_s1 + $0x738] sm:$0xff] }
  0xd6   :  { %1881 = vmatprep.subr.bf16.mxu1 %v2210_v63  ;;  %v2265_v63 = vcombine.low %v255_v50, %v259_v51  ;;  %v2274_v1 = vcombine.high %v263_v60, %v267_v61  ;;  %v155_v11 = vld [vmem:[%s3176_s1 + $0x3b8] sm:$0xff] }
  0xd7   :  { %1841 = vmatpush1.bf16.msra.mxu0 %v2081_v4  ;;  %v271_v4 = vld [vmem:[%s3176_s1 + $0x758] sm:$0xff]  ;;  %v2162_v17 = vcombine.high %v151_v10, %v155_v11 }
  0xd8   :  { %1842 = vmatprep.subr.bf16.mxu0 %v2090_v6  ;;  %v2145_v6 = vcombine.low %v135_v59, %v139_v57  ;;  %v159_v20 = vld [vmem:[%s3176_s1 + $0x3d8] sm:$0xff] }
  0xd9   :  { %1882 = vmatpush1.bf16.msra.mxu1 %v2209_v5  ;;  %v275_v5 = vld [vmem:[%s3176_s1 + $0x778] sm:$0xff] }
  0xda   :  { %1883 = vmatprep.subr.bf16.mxu1 %v2218_v7  ;;  %v2273_v7 = vcombine.low %v263_v60, %v267_v61  ;;  %v2282_v9 = vcombine.high %v271_v4, %v275_v5  ;;  %v163_v21 = vld [vmem:[%s3176_s1 + $0x3f8] sm:$0xff] }
  0xdb   :  { %1843 = vmatpush1.bf16.msra.mxu0 %v2089_v12  ;;  %v279_v12 = vld [vmem:[%s3176_s1 + $0x798] sm:$0xff]  ;;  %v2170_v54 = vcombine.high %v159_v20, %v163_v21  ;;  %v2169_v26 = vcombine.low %v159_v20, %v163_v21 }
  0xdc   :  { %1844 = vmatprep.subr.bf16.mxu0 %v2098_v14  ;;  %v2153_v14 = vcombine.low %v143_v2, %v147_v3 }
  0xdd   :  { %1884 = vmatpush1.bf16.msra.mxu1 %v2217_v13  ;;  %v283_v13 = vld [vmem:[%s3176_s1 + $0x7b8] sm:$0xff] }
  0xde   :  { %1885 = vmatprep.subr.bf16.mxu1 %v2226_v15  ;;  %v2281_v15 = vcombine.low %v271_v4, %v275_v5  ;;  %v2290_v18 = vcombine.high %v279_v12, %v283_v13 }
  0xdf   :  { %1845 = vmatpush1.bf16.msra.mxu0 %v2097_v22  ;;  %v287_v22 = vld [vmem:[%s3176_s1 + $0x7d8] sm:$0xff] }
  0xe0   :  { %1846 = vmatprep.subr.bf16.mxu0 %v2106_v23  ;;  %v2161_v23 = vcombine.low %v151_v10, %v155_v11 }
  0xe1   :  { %1886 = vmatpush1.bf16.msra.mxu1 %v2225_v53  ;;  %v291_v53 = vld [vmem:[%s3176_s1 + $0x7f8] sm:$0xff] }
  0xe2   :  { %1887 = vmatprep.subr.bf16.mxu1 %v2234_v24  ;;  %v2289_v24 = vcombine.low %v279_v12, %v283_v13  ;;  %v2298_v25 = vcombine.high %v287_v22, %v291_v53  ;;  %v2297_v27 = vcombine.low %v287_v22, %v291_v53 }
  0xe3   :  { %1847 = vmatpush1.bf16.msra.mxu0 %v2105_v28  ;;  %v1943_v28 = vlaneseq }
  0xe4   :  { %1848 = vmatprep.subr.bf16.mxu0 %v2114_v30 }
  0xe5   :  { %1888 = vmatpush1.bf16.msra.mxu1 %v2233_v29  ;;  %v3141_v29 = vshrl.u32 %v1943_v28, 7 }
  0xe6   :  { %1889 = vmatprep.subr.bf16.mxu1 %v2242_v31  ;;  %v3147_v31 = vld [vmem:[%s3178_s2] sm:$0xff] }
  0xe7   :  { %1849 = vmatpush1.bf16.msra.mxu0 %v2113_v36  ;;  %v1945_v30 = vsub.s32 0, %v3141_v29  ;;  %v1949_v32 = vsub.s32 1, %v3141_v29  ;;  %v1953_v48 = vsub.s32 2, %v3141_v29  ;;  %v1957_v49 = vsub.s32 3, %v3141_v29 }
  0xe8   :  { %1850 = vmatprep.subr.bf16.mxu0 %v2122_v38  ;;  %v1961_v5 = vsub.s32 4, %v3141_v29 }
  0xe9   :  { %1890 = vmatpush1.bf16.msra.mxu1 %v2241_v37  ;;  %v1946_v34 = vrot.slane %v3147_v31, %v1945_v30  ;;  %v1954_v51 = vrot.slane %v3147_v31, %v1953_v48 }
  0xea   :  { %1891 = vmatprep.subr.bf16.mxu1 %v2250_v39 }
  0xeb   :  { %1851 = vmatpush1.bf16.msra.mxu0 %v2121_v44 }
  0xec   :  { %1852 = vmatprep.subr.bf16.mxu0 %v2130_v46 }
  0xed   :  { %1892 = vmatpush1.bf16.msra.mxu1 %v2249_v45 }
  0xee   :  { %1893 = vmatprep.subr.bf16.mxu1 %v2258_v47 }
  0xef   :  { %1853 = vmatpush1.bf16.msra.mxu0 %v2129_v52 }
  0xf0   :  { %1854 = vmatprep.subr.bf16.mxu0 %v2138_v58  ;;  %v1958_v58 = vrot.slane %v3147_v31, %v1957_v49 }
  0xf1   :  { %1894 = vmatpush1.bf16.msra.mxu1 %v2257_v55 }
  0xf2   :  { %1895 = vmatprep.subr.bf16.mxu1 %v2266_v56 }
  0xf3   :  { %1855 = vmatpush1.bf16.msra.mxu0 %v2137_v62 }
  0xf4   :  { %1856 = vmatprep.subr.bf16.mxu0 %v2146_v0 }
  0xf5   :  { %1896 = vmatpush1.bf16.msra.mxu1 %v2265_v63 }
  0xf6   :  { %1897 = vmatprep.subr.bf16.mxu1 %v2274_v1 }
  0xf7   :  { %1857 = vmatpush1.bf16.msra.mxu0 %v2145_v6  ;;  %v1965_v6 = vsub.s32 5, %v3141_v29 }
  0xf8   :  { %1858 = vmatprep.subr.bf16.mxu0 %v2154_v8  ;;  %v1962_v8 = vrot.slane %v3147_v31, %v1961_v5 }
  0xf9   :  { %1898 = vmatpush1.bf16.msra.mxu1 %v2273_v7  ;;  %v1966_v11 = vrot.slane %v3147_v31, %v1965_v6 }
  0xfa   :  { %1899 = vmatprep.subr.bf16.mxu1 %v2282_v9 }
  0xfb   :  { %1859 = vmatpush1.bf16.msra.mxu0 %v2153_v14 }
  0xfc   :  { %1860 = vmatprep.subr.bf16.mxu0 %v2162_v17 }
  0xfd   :  { %1900 = vmatpush1.bf16.msra.mxu1 %v2281_v15 }
  0xfe   :  { %1901 = vmatprep.subr.bf16.mxu1 %v2290_v18 }
  0xff   :  { %1861 = vmatpush1.bf16.msra.mxu0 %v2161_v23 }
 0x100   :  { %1862 = vmatprep.subr.bf16.mxu0 %v2170_v54  ;;  %v1969_v54 = vsub.s32 6, %v3141_v29 }
 0x101   :  { %1902 = vmatpush1.bf16.msra.mxu1 %v2289_v24 }
 0x102   :  { %1903 = vmatprep.subr.bf16.mxu1 %v2298_v25  ;;  %v1973_v25 = vsub.s32 7, %v3141_v29 }
 0x103   :  { %1863 = vmatpush1.bf16.msra.mxu0 %v2169_v26 }
 0x105   :  { %1904 = vmatpush1.bf16.msra.mxu1 %v2297_v27  ;;  %v1970_v27 = vrot.slane %v3147_v31, %v1969_v54 }
 0x106   :  { %1865 = vmatmul.mubr.bf16.vlgmr.msra.gmra.mrb[12].mxu0 %v2563_v16  ;;  %v1950_v16 = vrot.slane %v3147_v31, %v1949_v32  ;;  %v1974_v32 = vrot.slane %v3147_v31, %v1973_v25 }
 0x108   :  { %1906 = vmatmul.mubr.bf16.vlgmr.msra.gmra.mrb[12].mxu1 %v2573_v19 }
 0x119   :  { %v1620_v33 = vpop.f32.mrb[0].mxu0 }
 0x11a   :  { %v1622_v36 = vpop.f32.mrb[1].mxu0 }
 0x11b   :  { %v1661_v35 = vpop.f32.mrb[0].mxu1  ;;  %v1624_v38 = vpop.f32.mrb[2].mxu0 }
 0x11c   :  { %v1662_v19 = vadd.f32 %v1661_v35, %v1620_v33  ;;  %v1663_v37 = vpop.f32.mrb[1].mxu1  ;;  %v1625_v41 = vpop.f32.mrb[3].mxu0 }
 0x11d   :  { %v1664_v39 = vadd.f32 %v1663_v37, %v1622_v36  ;;  %v1665_v40 = vpop.f32.mrb[2].mxu1 }
 0x11e   :  { %v1983_v42 = vadd.f32 %v1946_v34, %v1662_v19  ;;  %v1666_v43 = vpop.f32.mrb[3].mxu1 }
 0x11f   :  { %v1984_v44 = vadd.f32 %v1950_v16, %v1664_v39 }
 0x120   :  { %v1991_v45 = vmax.f32 %v1983_v42, 0.0 }
 0x121   :  { %v1992_v46 = vmax.f32 %v1984_v44, 0.0 }
 0x123   :  { %v2303_v47 = vpack.c.bf16 %v1992_v46, %v1991_v45 }
 0x125   :  { %2031 = vst [vmem:[%s3179_s3] sm:$0xff] %v2303_v47 }
 0x159   :  { %v1702_v50 = vpop.f32.mrb[4].mxu0 }
 0x15a   :  { %v1704_v55 = vpop.f32.mrb[5].mxu0 }
 0x15b   :  { %v1743_v52 = vpop.f32.mrb[4].mxu1  ;;  %v1706_v57 = vpop.f32.mrb[6].mxu0 }
 0x15c   :  { %v1744_v56 = vadd.f32 %v1743_v52, %v1702_v50  ;;  %v1745_v59 = vpop.f32.mrb[5].mxu1  ;;  %v1707_v62 = vpop.f32.mrb[7].mxu0 }
 0x15d   :  { %v1746_v60 = vadd.f32 %v1745_v59, %v1704_v55  ;;  %v1747_v61 = vpop.f32.mrb[6].mxu1 }
 0x15e   :  { %v1985_v63 = vadd.f32 %v1954_v51, %v1744_v56  ;;  %v1748_v0 = vpop.f32.mrb[7].mxu1 }
 0x15f   :  { %v1986_v1 = vadd.f32 %v1958_v58, %v1746_v60 }
 0x160   :  { %v1993_v2 = vmax.f32 %v1985_v63, 0.0 }
 0x161   :  { %v1994_v3 = vmax.f32 %v1986_v1, 0.0 }
 0x163   :  { %v2304_v4 = vpack.c.bf16 %v1994_v3, %v1993_v2 }
 0x165   :  { %2032 = vst [vmem:[%s3179_s3 + $0x8] sm:$0xff] %v2304_v4 }
 0x199   :  { %v1784_v7 = vpop.f32.mrb[8].mxu0 }
 0x19a   :  { %v1786_v10 = vpop.f32.mrb[9].mxu0 }
 0x19b   :  { %v1825_v9 = vpop.f32.mrb[8].mxu1  ;;  %v1788_v14 = vpop.f32.mrb[10].mxu0 }
 0x19c   :  { %v1826_v12 = vadd.f32 %v1825_v9, %v1784_v7  ;;  %v1827_v13 = vpop.f32.mrb[9].mxu1  ;;  %v1789_v18 = vpop.f32.mrb[11].mxu0 }
 0x19d   :  { %v1828_v15 = vadd.f32 %v1827_v13, %v1786_v10  ;;  %v1829_v17 = vpop.f32.mrb[10].mxu1 }
 0x19e   :  { %v1987_v20 = vadd.f32 %v1962_v8, %v1826_v12  ;;  %v1830_v21 = vpop.f32.mrb[11].mxu1 }
 0x19f   :  { %v1988_v22 = vadd.f32 %v1966_v11, %v1828_v15 }
 0x1a0   :  { %v1995_v53 = vmax.f32 %v1987_v20, 0.0 }
 0x1a1   :  { %v1996_v23 = vmax.f32 %v1988_v22, 0.0 }
 0x1a3   :  { %v2305_v24 = vpack.c.bf16 %v1996_v23, %v1995_v53 }
 0x1a5   :  { %2033 = vst [vmem:[%s3179_s3 + $0x10] sm:$0xff] %v2305_v24 }
 0x1d9   :  { %v1866_v26 = vpop.f32.mrb[12].mxu0 }
 0x1da   :  { %v1868_v30 = vpop.f32.mrb[13].mxu0 }
 0x1db   :  { %v1907_v28 = vpop.f32.mrb[12].mxu1  ;;  %v1870_v35 = vpop.f32.mrb[14].mxu0 }
 0x1dc   :  { %v1908_v33 = vadd.f32 %v1907_v28, %v1866_v26  ;;  %v1909_v34 = vpop.f32.mrb[13].mxu1  ;;  %v1871_v19 = vpop.f32.mrb[15].mxu0 }
 0x1dd   :  { %v1910_v36 = vadd.f32 %v1909_v34, %v1868_v30  ;;  %v1911_v16 = vpop.f32.mrb[14].mxu1 }
 0x1de   :  { %v1989_v37 = vadd.f32 %v1970_v27, %v1908_v33  ;;  %v1912_v38 = vpop.f32.mrb[15].mxu1 }
 0x1df   :  { %v1990_v39 = vadd.f32 %v1974_v32, %v1910_v36 }
 0x1e0   :  { %v1997_v40 = vmax.f32 %v1989_v37, 0.0 }
 0x1e1   :  { %v1998_v41 = vmax.f32 %v1990_v39, 0.0 }
 0x1e3   :  { %v2306_v42 = vpack.c.bf16 %v1998_v41, %v1997_v40 }
 0x1e5   :  { %2034 = vst [vmem:[%s3179_s3 + $0x18] sm:$0xff] %v2306_v42 }

// kernel: capsule_net_forward.13
= control target key start
LH: loop header
LB: loop body
LE: loop exit
PB: predicated region body
PF: predicated region fallthrough
CT: control target
= control target key end

     0   :  { %vm25_vm0 = vcmask 130048   ;;  %s6378_s1 = inlined_call_operand.vmem [shape: bf16[1024,784], index: 1, kind: input, shape index: {}]   ;;  %s6379_s0 = inlined_call_operand.vmem [shape: bf16[8,1024], index: 0, kind: input, shape index: {}]   ;;  %s6380_s2 = inlined_call_operand.vmem [shape: f32[1,784], index: 2, kind: input, shape index: {}]   ;;  %s6381_s3 = inlined_call_operand.vmem [shape: f32[8,784], index: 3, kind: output, shape index: {}]  }
   0x1   :  { %v4208_v0 = vld [vmem:[%s6378_s1 + $0x4] ss:$28 sps:$4 sm:$0xff]   ;;  %v4214_v4 = vld [vmem:[%s6378_s1 + $0x3c] ss:$28 sps:$4 sm:$0xff]   ;;  %v4220_v8 = vld [vmem:[%s6378_s1 + $0x74] ss:$28 sps:$4 sm:$0xff]  }
   0x2   :  { %v4210_v1 = vld [vmem:[%s6378_s1 + $0x384] ss:$28 sps:$4 sm:$0xff]   ;;  %2882 = vmatprep.subr.bf16.mxu0 %v4208_v0  ;;  %v4216_v5 = vld [vmem:[%s6378_s1 + $0x3bc] ss:$28 sps:$4 sm:$0xff]   ;;  %v4222_v9 = vld [vmem:[%s6378_s1 + $0x3f4] ss:$28 sps:$4 sm:$0xff]  }
   0x3   :  { %v4212_v2 = vld [vmem:[%s6378_s1] ss:$28 sps:$4 sm:$0xff]   ;;  %2923 = vmatprep.subr.bf16.mxu1 %v4210_v1  ;;  %v4218_v6 = vld [vmem:[%s6378_s1 + $0x38] ss:$28 sps:$4 sm:$0xff]   ;;  %v4224_v10 = vld [vmem:[%s6378_s1 + $0x70] ss:$28 sps:$4 sm:$0xff]  }
   0x4   :  { %v4213_v3 = vld [vmem:[%s6378_s1 + $0x380] ss:$28 sps:$4 sm:$0xff]   ;;  %2883 = vmatpush1.bf16.msra.mxu0 %v4212_v2  ;;  %v4219_v7 = vld [vmem:[%s6378_s1 + $0x3b8] ss:$28 sps:$4 sm:$0xff]   ;;  %v4225_v11 = vld [vmem:[%s6378_s1 + $0x3f0] ss:$28 sps:$4 sm:$0xff]  }
   0x5   :  { %2924 = vmatpush1.bf16.msra.mxu1 %v4213_v3  ;;  %2884 = vmatprep.subr.bf16.mxu0 %v4214_v4  ;;  %v4226_v12 = vld [vmem:[%s6378_s1 + $0xac] ss:$28 sps:$4 sm:$0xff]   ;;  %v4232_v16 = vld [vmem:[%s6378_s1 + $0xe4] ss:$28 sps:$4 sm:$0xff]   ;;  %v4238_v20 = vld [vmem:[%s6378_s1 + $0x11c] ss:$28 sps:$4 sm:$0xff]  }
   0x6   :  { %2925 = vmatprep.subr.bf16.mxu1 %v4216_v5  ;;  %v4228_v13 = vld [vmem:[%s6378_s1 + $0x42c] ss:$28 sps:$4 sm:$0xff]   ;;  %v4234_v17 = vld [vmem:[%s6378_s1 + $0x464] ss:$28 sps:$4 sm:$0xff]   ;;  %v4240_v21 = vld [vmem:[%s6378_s1 + $0x49c] ss:$28 sps:$4 sm:$0xff]  }
   0x7   :  { %v4230_v14 = vld [vmem:[%s6378_s1 + $0xa8] ss:$28 sps:$4 sm:$0xff]   ;;  %v4236_v18 = vld [vmem:[%s6378_s1 + $0xe0] ss:$28 sps:$4 sm:$0xff]   ;;  %v4242_v22 = vld [vmem:[%s6378_s1 + $0x118] ss:$28 sps:$4 sm:$0xff]  }
   0x8   :  { %2885 = vmatpush1.bf16.msra.mxu0 %v4218_v6  ;;  %v4231_v15 = vld [vmem:[%s6378_s1 + $0x428] ss:$28 sps:$4 sm:$0xff]   ;;  %v4237_v19 = vld [vmem:[%s6378_s1 + $0x460] ss:$28 sps:$4 sm:$0xff]   ;;  %v4243_v23 = vld [vmem:[%s6378_s1 + $0x498] ss:$28 sps:$4 sm:$0xff]  }
   0x9   :  { %2926 = vmatpush1.bf16.msra.mxu1 %v4219_v7  ;;  %2886 = vmatprep.subr.bf16.mxu0 %v4220_v8  ;;  %v4244_v24 = vld [vmem:[%s6378_s1 + $0x154] ss:$28 sps:$4 sm:$0xff]   ;;  %v4250_v28 = vld [vmem:[%s6378_s1 + $0x18c] ss:$28 sps:$4 sm:$0xff]   ;;  %v4256_v32 = vld [vmem:[%s6378_s1 + $0x1c4] ss:$28 sps:$4 sm:$0xff]  }
   0xa   :  { %2927 = vmatprep.subr.bf16.mxu1 %v4222_v9  ;;  %v4246_v25 = vld [vmem:[%s6378_s1 + $0x4d4] ss:$28 sps:$4 sm:$0xff]   ;;  %v4252_v29 = vld [vmem:[%s6378_s1 + $0x50c] ss:$28 sps:$4 sm:$0xff]   ;;  %v4258_v33 = vld [vmem:[%s6378_s1 + $0x544] ss:$28 sps:$4 sm:$0xff]  }
   0xb   :  { %v4248_v26 = vld [vmem:[%s6378_s1 + $0x150] ss:$28 sps:$4 sm:$0xff]   ;;  %v4254_v30 = vld [vmem:[%s6378_s1 + $0x188] ss:$28 sps:$4 sm:$0xff]   ;;  %v4260_v34 = vld [vmem:[%s6378_s1 + $0x1c0] ss:$28 sps:$4 sm:$0xff]  }
   0xc   :  { %2887 = vmatpush1.bf16.msra.mxu0 %v4224_v10  ;;  %v4249_v27 = vld [vmem:[%s6378_s1 + $0x4d0] ss:$28 sps:$4 sm:$0xff]   ;;  %v4255_v31 = vld [vmem:[%s6378_s1 + $0x508] ss:$28 sps:$4 sm:$0xff]   ;;  %v4261_v35 = vld [vmem:[%s6378_s1 + $0x540] ss:$28 sps:$4 sm:$0xff]  }
   0xd   :  { %2928 = vmatpush1.bf16.msra.mxu1 %v4225_v11  ;;  %2888 = vmatprep.subr.bf16.mxu0 %v4226_v12  ;;  %v4262_v36 = vld [vmem:[%s6378_s1 + $0x1fc] ss:$28 sps:$4 sm:$0xff]   ;;  %v4268_v40 = vld [vmem:[%s6378_s1 + $0x234] ss:$28 sps:$4 sm:$0xff]   ;;  %v4274_v44 = vld [vmem:[%s6378_s1 + $0x26c] ss:$28 sps:$4 sm:$0xff]  }
   0xe   :  { %2929 = vmatprep.subr.bf16.mxu1 %v4228_v13  ;;  %v4264_v37 = vld [vmem:[%s6378_s1 + $0x57c] ss:$28 sps:$4 sm:$0xff]   ;;  %v4270_v41 = vld [vmem:[%s6378_s1 + $0x5b4] ss:$28 sps:$4 sm:$0xff]   ;;  %v4276_v45 = vld [vmem:[%s6378_s1 + $0x5ec] ss:$28 sps:$4 sm:$0xff]  }
   0xf   :  { %v4266_v38 = vld [vmem:[%s6378_s1 + $0x1f8] ss:$28 sps:$4 sm:$0xff]   ;;  %v4272_v42 = vld [vmem:[%s6378_s1 + $0x230] ss:$28 sps:$4 sm:$0xff]   ;;  %v34_v46 = vld [vmem:[%s6379_s0] sm:$0xff] }
  0x10   :  { %2889 = vmatpush1.bf16.msra.mxu0 %v4230_v14  ;;  %v4267_v39 = vld [vmem:[%s6378_s1 + $0x578] ss:$28 sps:$4 sm:$0xff]   ;;  %v4273_v43 = vld [vmem:[%s6378_s1 + $0x5b0] ss:$28 sps:$4 sm:$0xff]   ;;  %v5046_v47 = vcombine.high %v34_v46, %v34_v46  ;;  %v4278_v49 = vld [vmem:[%s6378_s1 + $0x268] ss:$28 sps:$4 sm:$0xff]   ;;  %v5115_v6 = vcombine.low %v34_v46, %v34_v46 }
  0x11   :  { %2930 = vmatpush1.bf16.msra.mxu1 %v4231_v15  ;;  %2890 = vmatprep.subr.bf16.mxu0 %v4232_v16  ;;  %v35_v48 = vld [vmem:[%s6379_s0 + $0x8] sm:$0xff]  ;;  %v4280_v52 = vld [vmem:[%s6378_s1 + $0x2a4] ss:$28 sps:$4 sm:$0xff]   ;;  %v4286_v56 = vld [vmem:[%s6378_s1 + $0x2dc] ss:$28 sps:$4 sm:$0xff]  }
  0x12   :  { %2931 = vmatprep.subr.bf16.mxu1 %v4234_v17  ;;  %v4279_v50 = vld [vmem:[%s6378_s1 + $0x5e8] ss:$28 sps:$4 sm:$0xff]   ;;  %v5057_v51 = vcombine.high %v35_v48, %v35_v48  ;;  %2914 = vmatprep.mubr.bf16.mxu0 %v5046_v47  ;;  %v4284_v54 = vld [vmem:[%s6378_s1 + $0x2a0] ss:$28 sps:$4 sm:$0xff]   ;;  %v4290_v58 = vld [vmem:[%s6378_s1 + $0x2d8] ss:$28 sps:$4 sm:$0xff]   ;;  %v5117_v7 = vcombine.low %v35_v48, %v35_v48 }
  0x13   :  { %v4282_v53 = vld [vmem:[%s6378_s1 + $0x624] ss:$28 sps:$4 sm:$0xff]   ;;  %v4288_v57 = vld [vmem:[%s6378_s1 + $0x65c] ss:$28 sps:$4 sm:$0xff]   ;;  %v4292_v60 = vld [vmem:[%s6378_s1 + $0x314] ss:$28 sps:$4 sm:$0xff]  }
  0x14   :  { %2891 = vmatpush1.bf16.msra.mxu0 %v4236_v18  ;;  %2955 = vmatprep.mubr.bf16.mxu1 %v5057_v51  ;;  %v4285_v55 = vld [vmem:[%s6378_s1 + $0x620] ss:$28 sps:$4 sm:$0xff]   ;;  %v4291_v59 = vld [vmem:[%s6378_s1 + $0x658] ss:$28 sps:$4 sm:$0xff]   ;;  %v4296_v62 = vld [vmem:[%s6378_s1 + $0x310] ss:$28 sps:$4 sm:$0xff]  }
  0x15   :  { %2932 = vmatpush1.bf16.msra.mxu1 %v4237_v19  ;;  %2892 = vmatprep.subr.bf16.mxu0 %v4238_v20  ;;  %v4294_v61 = vld [vmem:[%s6378_s1 + $0x694] ss:$28 sps:$4 sm:$0xff]   ;;  %v4298_v0 = vld [vmem:[%s6378_s1 + $0x34c] ss:$28 sps:$4 sm:$0xff]   ;;  %v4310_v4 = vld [vmem:[%s6378_s1 + $0x704] ss:$28 sps:$4 sm:$0xff]  }
  0x16   :  { %2933 = vmatprep.subr.bf16.mxu1 %v4240_v21  ;;  %v4297_v63 = vld [vmem:[%s6378_s1 + $0x690] ss:$28 sps:$4 sm:$0xff]   ;;  %v4302_v2 = vld [vmem:[%s6378_s1 + $0x348] ss:$28 sps:$4 sm:$0xff]   ;;  %v4308_v8 = vld [vmem:[%s6378_s1 + $0x700] ss:$28 sps:$4 sm:$0xff]  }
  0x17   :  { %v4300_v1 = vld [vmem:[%s6378_s1 + $0x6cc] ss:$28 sps:$4 sm:$0xff]   ;;  %v4313_v5 = vld [vmem:[%s6378_s1 + $0xa84] ss:$28 sps:$4 sm:$0xff]   ;;  %v4316_v10 = vld [vmem:[%s6378_s1 + $0x73c] ss:$28 sps:$4 sm:$0xff]  }
  0x18   :  { %2893 = vmatpush1.bf16.msra.mxu0 %v4242_v22  ;;  %v4303_v3 = vld [vmem:[%s6378_s1 + $0x6c8] ss:$28 sps:$4 sm:$0xff]   ;;  %v4311_v9 = vld [vmem:[%s6378_s1 + $0xa80] ss:$28 sps:$4 sm:$0xff]   ;;  %v4314_v12 = vld [vmem:[%s6378_s1 + $0x738] ss:$28 sps:$4 sm:$0xff]  }
  0x19   :  { %2934 = vmatpush1.bf16.msra.mxu1 %v4243_v23  ;;  %2894 = vmatprep.subr.bf16.mxu0 %v4244_v24  ;;  %v4319_v11 = vld [vmem:[%s6378_s1 + $0xabc] ss:$28 sps:$4 sm:$0xff]   ;;  %v4322_v14 = vld [vmem:[%s6378_s1 + $0x774] ss:$28 sps:$4 sm:$0xff]   ;;  %v4328_v18 = vld [vmem:[%s6378_s1 + $0x7ac] ss:$28 sps:$4 sm:$0xff]  }
  0x1a   :  { %2935 = vmatprep.subr.bf16.mxu1 %v4246_v25  ;;  %v4317_v13 = vld [vmem:[%s6378_s1 + $0xab8] ss:$28 sps:$4 sm:$0xff]   ;;  %v4320_v16 = vld [vmem:[%s6378_s1 + $0x770] ss:$28 sps:$4 sm:$0xff]   ;;  %v4326_v20 = vld [vmem:[%s6378_s1 + $0x7a8] ss:$28 sps:$4 sm:$0xff]  }
  0x1b   :  { %v4325_v15 = vld [vmem:[%s6378_s1 + $0xaf4] ss:$28 sps:$4 sm:$0xff]   ;;  %v4331_v19 = vld [vmem:[%s6378_s1 + $0xb2c] ss:$28 sps:$4 sm:$0xff]   ;;  %v4334_v22 = vld [vmem:[%s6378_s1 + $0x7e4] ss:$28 sps:$4 sm:$0xff]  }
  0x1c   :  { %2895 = vmatpush1.bf16.msra.mxu0 %v4248_v26  ;;  %v4323_v17 = vld [vmem:[%s6378_s1 + $0xaf0] ss:$28 sps:$4 sm:$0xff]   ;;  %v4329_v21 = vld [vmem:[%s6378_s1 + $0xb28] ss:$28 sps:$4 sm:$0xff]   ;;  %v4332_v24 = vld [vmem:[%s6378_s1 + $0x7e0] ss:$28 sps:$4 sm:$0xff]  }
  0x1d   :  { %2936 = vmatpush1.bf16.msra.mxu1 %v4249_v27  ;;  %2896 = vmatprep.subr.bf16.mxu0 %v4250_v28  ;;  %v4337_v23 = vld [vmem:[%s6378_s1 + $0xb64] ss:$28 sps:$4 sm:$0xff]   ;;  %v4340_v26 = vld [vmem:[%s6378_s1 + $0x81c] ss:$28 sps:$4 sm:$0xff]  }
  0x1e   :  { %2937 = vmatprep.subr.bf16.mxu1 %v4252_v29  ;;  %v4335_v25 = vld [vmem:[%s6378_s1 + $0xb60] ss:$28 sps:$4 sm:$0xff]   ;;  %v4338_v28 = vld [vmem:[%s6378_s1 + $0x818] ss:$28 sps:$4 sm:$0xff]  }
  0x1f   :  { %v4343_v27 = vld [vmem:[%s6378_s1 + $0xb9c] ss:$28 sps:$4 sm:$0xff]  }
  0x20   :  { %2897 = vmatpush1.bf16.msra.mxu0 %v4254_v30  ;;  %v4341_v29 = vld [vmem:[%s6378_s1 + $0xb98] ss:$28 sps:$4 sm:$0xff]  }
  0x21   :  { %2938 = vmatpush1.bf16.msra.mxu1 %v4255_v31  ;;  %2898 = vmatprep.subr.bf16.mxu0 %v4256_v32  ;;  %v4346_v30 = vld [vmem:[%s6378_s1 + $0x854] ss:$28 sps:$4 sm:$0xff]   ;;  %v4364_v46 = vld [vmem:[%s6378_s1 + $0x8fc] ss:$28 sps:$4 sm:$0xff]  }
  0x22   :  { %2939 = vmatprep.subr.bf16.mxu1 %v4258_v33  ;;  %v4349_v31 = vld [vmem:[%s6378_s1 + $0xbd4] ss:$28 sps:$4 sm:$0xff]   ;;  %v5201_v33 = vld [vmem:[%s6379_s0 + $0x18] sm:$0xff] }
  0x23   :  { %v5196_v32 = vld [vmem:[%s6379_s0 + $0x10] sm:$0xff]  ;;  %v4367_v48 = vld [vmem:[%s6378_s1 + $0xc7c] ss:$28 sps:$4 sm:$0xff]  }
  0x24   :  { %2899 = vmatpush1.bf16.msra.mxu0 %v4260_v34  ;;  %v4344_v34 = vld [vmem:[%s6378_s1 + $0x850] ss:$28 sps:$4 sm:$0xff]  }
  0x25   :  { %2940 = vmatpush1.bf16.msra.mxu1 %v4261_v35  ;;  %2900 = vmatprep.subr.bf16.mxu0 %v4262_v36  ;;  %v4347_v35 = vld [vmem:[%s6378_s1 + $0xbd0] ss:$28 sps:$4 sm:$0xff]   ;;  %v5211_v36 = vcombine.high %v5196_v32, %v5196_v32 }
  0x26   :  { %2941 = vmatprep.subr.bf16.mxu1 %v4264_v37  ;;  %v5215_v37 = vcombine.high %v5201_v33, %v5201_v33 }
  0x28   :  { %2901 = vmatpush1.bf16.msra.mxu0 %v4266_v38  ;;  %v4352_v38 = vld [vmem:[%s6378_s1 + $0x88c] ss:$28 sps:$4 sm:$0xff]  }
  0x29   :  { %2942 = vmatpush1.bf16.msra.mxu1 %v4267_v39  ;;  %2902 = vmatprep.subr.bf16.mxu0 %v4268_v40  ;;  %v4355_v39 = vld [vmem:[%s6378_s1 + $0xc0c] ss:$28 sps:$4 sm:$0xff]  }
  0x2a   :  { %2943 = vmatprep.subr.bf16.mxu1 %v4270_v41  ;;  %v4350_v40 = vld [vmem:[%s6378_s1 + $0x888] ss:$28 sps:$4 sm:$0xff]  }
  0x2b   :  { %v4353_v41 = vld [vmem:[%s6378_s1 + $0xc08] ss:$28 sps:$4 sm:$0xff]  }
  0x2c   :  { %2903 = vmatpush1.bf16.msra.mxu0 %v4272_v42  ;;  %v4358_v42 = vld [vmem:[%s6378_s1 + $0x8c4] ss:$28 sps:$4 sm:$0xff]  }
  0x2d   :  { %2944 = vmatpush1.bf16.msra.mxu1 %v4273_v43  ;;  %2904 = vmatprep.subr.bf16.mxu0 %v4274_v44  ;;  %v4361_v43 = vld [vmem:[%s6378_s1 + $0xc44] ss:$28 sps:$4 sm:$0xff]  }
  0x2e   :  { %2945 = vmatprep.subr.bf16.mxu1 %v4276_v45  ;;  %v4356_v44 = vld [vmem:[%s6378_s1 + $0x8c0] ss:$28 sps:$4 sm:$0xff]  }
  0x2f   :  { %v4359_v45 = vld [vmem:[%s6378_s1 + $0xc40] ss:$28 sps:$4 sm:$0xff]  }
  0x30   :  { %2905 = vmatpush1.bf16.msra.mxu0 %v4278_v49  ;;  %v4362_v49 = vld [vmem:[%s6378_s1 + $0x8f8] ss:$28 sps:$4 sm:$0xff]  }
  0x31   :  { %2946 = vmatpush1.bf16.msra.mxu1 %v4279_v50  ;;  %2906 = vmatprep.subr.bf16.mxu0 %v4280_v52  ;;  %v4365_v50 = vld [vmem:[%s6378_s1 + $0xc78] ss:$28 sps:$4 sm:$0xff]  }
  0x32   :  { %2947 = vmatprep.subr.bf16.mxu1 %v4282_v53  ;;  %v4370_v52 = vld [vmem:[%s6378_s1 + $0x934] ss:$28 sps:$4 sm:$0xff]  }
  0x33   :  { %v4373_v53 = vld [vmem:[%s6378_s1 + $0xcb4] ss:$28 sps:$4 sm:$0xff]  }
  0x34   :  { %2907 = vmatpush1.bf16.msra.mxu0 %v4284_v54  ;;  %v4368_v54 = vld [vmem:[%s6378_s1 + $0x930] ss:$28 sps:$4 sm:$0xff]  }
  0x35   :  { %2948 = vmatpush1.bf16.msra.mxu1 %v4285_v55  ;;  %2908 = vmatprep.subr.bf16.mxu0 %v4286_v56  ;;  %v4371_v55 = vld [vmem:[%s6378_s1 + $0xcb0] ss:$28 sps:$4 sm:$0xff]  }
  0x36   :  { %2949 = vmatprep.subr.bf16.mxu1 %v4288_v57  ;;  %v4376_v56 = vld [vmem:[%s6378_s1 + $0x96c] ss:$28 sps:$4 sm:$0xff]  }
  0x37   :  { %v4379_v57 = vld [vmem:[%s6378_s1 + $0xcec] ss:$28 sps:$4 sm:$0xff]  }
  0x38   :  { %2909 = vmatpush1.bf16.msra.mxu0 %v4290_v58  ;;  %v4374_v58 = vld [vmem:[%s6378_s1 + $0x968] ss:$28 sps:$4 sm:$0xff]  }
  0x39   :  { %2950 = vmatpush1.bf16.msra.mxu1 %v4291_v59  ;;  %2910 = vmatprep.subr.bf16.mxu0 %v4292_v60  ;;  %v4377_v59 = vld [vmem:[%s6378_s1 + $0xce8] ss:$28 sps:$4 sm:$0xff]  }
  0x3a   :  { %2951 = vmatprep.subr.bf16.mxu1 %v4294_v61  ;;  %v4382_v60 = vld [vmem:[%s6378_s1 + $0x9a4] ss:$28 sps:$4 sm:$0xff]  }
  0x3b   :  { %v4385_v61 = vld [vmem:[%s6378_s1 + $0xd24] ss:$28 sps:$4 sm:$0xff]  }
  0x3c   :  { %2911 = vmatpush1.bf16.msra.mxu0 %v4296_v62  ;;  %v4380_v62 = vld [vmem:[%s6378_s1 + $0x9a0] ss:$28 sps:$4 sm:$0xff]  }
  0x3d   :  { %2952 = vmatpush1.bf16.msra.mxu1 %v4297_v63  ;;  %2912 = vmatprep.subr.bf16.mxu0 %v4298_v0  ;;  %v4383_v63 = vld [vmem:[%s6378_s1 + $0xd20] ss:$28 sps:$4 sm:$0xff]  }
  0x3e   :  { %2953 = vmatprep.subr.bf16.mxu1 %v4300_v1  ;;  %v4388_v0 = vld [vmem:[%s6378_s1 + $0x9dc] ss:$28 sps:$4 sm:$0xff]  }
  0x3f   :  { %v4391_v1 = vld [vmem:[%s6378_s1 + $0xd5c] ss:$28 sps:$4 sm:$0xff]  }
  0x40   :  { %2913 = vmatpush1.bf16.msra.mxu0 %v4302_v2  ;;  %v4386_v2 = vld [vmem:[%s6378_s1 + $0x9d8] ss:$28 sps:$4 sm:$0xff]  }
  0x41   :  { %2954 = vmatpush1.bf16.msra.mxu1 %v4303_v3  ;;  %2964 = vmatprep.subr.bf16.mxu0 %v4310_v4  ;;  %v4389_v3 = vld [vmem:[%s6378_s1 + $0xd58] ss:$28 sps:$4 sm:$0xff]  }
  0x42   :  { %3005 = vmatprep.subr.bf16.mxu1 %v4313_v5  ;;  %v4394_v4 = vld [vmem:[%s6378_s1 + $0xa14] ss:$28 sps:$4 sm:$0xff]  }
  0x43   :  { %2915 = vmatmul.mubr.bf16.vlgmr.msra.gmra.mrb[0].mxu0 %v5115_v6  ;;  %v4397_v5 = vld [vmem:[%s6378_s1 + $0xd94] ss:$28 sps:$4 sm:$0xff]  }
  0x44   :  { %2956 = vmatmul.mubr.bf16.vlgmr.msra.gmra.mrb[0].mxu1 %v5117_v7  ;;  %2965 = vmatpush1.bf16.msra.mxu0 %v4308_v8  ;;  %v4392_v8 = vld [vmem:[%s6378_s1 + $0xa10] ss:$28 sps:$4 sm:$0xff]  }
  0x45   :  { %3006 = vmatpush1.bf16.msra.mxu1 %v4311_v9  ;;  %2966 = vmatprep.subr.bf16.mxu0 %v4316_v10  ;;  %v4395_v9 = vld [vmem:[%s6378_s1 + $0xd90] ss:$28 sps:$4 sm:$0xff]  }
  0x46   :  { %3007 = vmatprep.subr.bf16.mxu1 %v4319_v11  ;;  %2996 = vmatprep.mubr.bf16.mxu0 %v5211_v36  ;;  %v4400_v10 = vld [vmem:[%s6378_s1 + $0xa4c] ss:$28 sps:$4 sm:$0xff]  }
  0x47   :  { %3037 = vmatprep.mubr.bf16.mxu1 %v5215_v37  ;;  %v4403_v11 = vld [vmem:[%s6378_s1 + $0xdcc] ss:$28 sps:$4 sm:$0xff]  }
  0x48   :  { %2967 = vmatpush1.bf16.msra.mxu0 %v4314_v12  ;;  %v4398_v12 = vld [vmem:[%s6378_s1 + $0xa48] ss:$28 sps:$4 sm:$0xff]  }
  0x49   :  { %3008 = vmatpush1.bf16.msra.mxu1 %v4317_v13  ;;  %2968 = vmatprep.subr.bf16.mxu0 %v4322_v14  ;;  %v4401_v13 = vld [vmem:[%s6378_s1 + $0xdc8] ss:$28 sps:$4 sm:$0xff]  }
  0x4a   :  { %3009 = vmatprep.subr.bf16.mxu1 %v4325_v15  ;;  %v4410_v14 = vld [vmem:[%s6378_s1 + $0xc] ss:$28 sps:$4 sm:$0xff]  }
  0x4b   :  { %v4413_v15 = vld [vmem:[%s6378_s1 + $0x38c] ss:$28 sps:$4 sm:$0xff]  }
  0x4c   :  { %2969 = vmatpush1.bf16.msra.mxu0 %v4320_v16  ;;  %v5335_v16 = vcombine.low %v5196_v32, %v5196_v32  ;;  %v4434_v32 = vld [vmem:[%s6378_s1 + $0xec] ss:$28 sps:$4 sm:$0xff]  }
  0x4d   :  { %3010 = vmatpush1.bf16.msra.mxu1 %v4323_v17  ;;  %2970 = vmatprep.subr.bf16.mxu0 %v4328_v18  ;;  %v5339_v17 = vcombine.low %v5201_v33, %v5201_v33  ;;  %v4408_v18 = vld [vmem:[%s6378_s1 + $0x8] ss:$28 sps:$4 sm:$0xff]  }
  0x4e   :  { %3011 = vmatprep.subr.bf16.mxu1 %v4331_v19  ;;  %v4411_v19 = vld [vmem:[%s6378_s1 + $0x388] ss:$28 sps:$4 sm:$0xff]  }
  0x4f   :  { %v4437_v33 = vld [vmem:[%s6378_s1 + $0x46c] ss:$28 sps:$4 sm:$0xff]  }
  0x50   :  { %2971 = vmatpush1.bf16.msra.mxu0 %v4326_v20  ;;  %v4416_v20 = vld [vmem:[%s6378_s1 + $0x44] ss:$28 sps:$4 sm:$0xff]  }
  0x51   :  { %3012 = vmatpush1.bf16.msra.mxu1 %v4329_v21  ;;  %2972 = vmatprep.subr.bf16.mxu0 %v4334_v22  ;;  %v4419_v21 = vld [vmem:[%s6378_s1 + $0x3c4] ss:$28 sps:$4 sm:$0xff]  }
  0x52   :  { %3013 = vmatprep.subr.bf16.mxu1 %v4337_v23  ;;  %v4414_v22 = vld [vmem:[%s6378_s1 + $0x40] ss:$28 sps:$4 sm:$0xff]  }
  0x53   :  { %v4417_v23 = vld [vmem:[%s6378_s1 + $0x3c0] ss:$28 sps:$4 sm:$0xff]  }
  0x54   :  { %2973 = vmatpush1.bf16.msra.mxu0 %v4332_v24  ;;  %v4422_v24 = vld [vmem:[%s6378_s1 + $0x7c] ss:$28 sps:$4 sm:$0xff]  }
  0x55   :  { %3014 = vmatpush1.bf16.msra.mxu1 %v4335_v25  ;;  %2974 = vmatprep.subr.bf16.mxu0 %v4340_v26  ;;  %v4425_v25 = vld [vmem:[%s6378_s1 + $0x3fc] ss:$28 sps:$4 sm:$0xff]  }
  0x56   :  { %3015 = vmatprep.subr.bf16.mxu1 %v4343_v27  ;;  %v4420_v26 = vld [vmem:[%s6378_s1 + $0x78] ss:$28 sps:$4 sm:$0xff]  }
  0x57   :  { %v4423_v27 = vld [vmem:[%s6378_s1 + $0x3f8] ss:$28 sps:$4 sm:$0xff]  }
  0x58   :  { %2975 = vmatpush1.bf16.msra.mxu0 %v4338_v28  ;;  %v4428_v28 = vld [vmem:[%s6378_s1 + $0xb4] ss:$28 sps:$4 sm:$0xff]  }
  0x59   :  { %3016 = vmatpush1.bf16.msra.mxu1 %v4341_v29  ;;  %2976 = vmatprep.subr.bf16.mxu0 %v4346_v30  ;;  %v4431_v29 = vld [vmem:[%s6378_s1 + $0x434] ss:$28 sps:$4 sm:$0xff]  }
  0x5a   :  { %3017 = vmatprep.subr.bf16.mxu1 %v4349_v31  ;;  %v4426_v30 = vld [vmem:[%s6378_s1 + $0xb0] ss:$28 sps:$4 sm:$0xff]  }
  0x5b   :  { %v4429_v31 = vld [vmem:[%s6378_s1 + $0x430] ss:$28 sps:$4 sm:$0xff]  }
  0x5c   :  { %2977 = vmatpush1.bf16.msra.mxu0 %v4344_v34  ;;  %v4432_v34 = vld [vmem:[%s6378_s1 + $0xe8] ss:$28 sps:$4 sm:$0xff]  }
  0x5d   :  { %3018 = vmatpush1.bf16.msra.mxu1 %v4347_v35  ;;  %2978 = vmatprep.subr.bf16.mxu0 %v4352_v38  ;;  %v4435_v35 = vld [vmem:[%s6378_s1 + $0x468] ss:$28 sps:$4 sm:$0xff]  }
  0x5e   :  { %3019 = vmatprep.subr.bf16.mxu1 %v4355_v39  ;;  %v4440_v38 = vld [vmem:[%s6378_s1 + $0x124] ss:$28 sps:$4 sm:$0xff]  }
  0x5f   :  { %v4443_v39 = vld [vmem:[%s6378_s1 + $0x4a4] ss:$28 sps:$4 sm:$0xff]  }
  0x60   :  { %2979 = vmatpush1.bf16.msra.mxu0 %v4350_v40  ;;  %v4438_v40 = vld [vmem:[%s6378_s1 + $0x120] ss:$28 sps:$4 sm:$0xff]  }
  0x61   :  { %3020 = vmatpush1.bf16.msra.mxu1 %v4353_v41  ;;  %2980 = vmatprep.subr.bf16.mxu0 %v4358_v42  ;;  %v4441_v41 = vld [vmem:[%s6378_s1 + $0x4a0] ss:$28 sps:$4 sm:$0xff]  }
  0x62   :  { %3021 = vmatprep.subr.bf16.mxu1 %v4361_v43  ;;  %v4446_v42 = vld [vmem:[%s6378_s1 + $0x15c] ss:$28 sps:$4 sm:$0xff]  }
  0x63   :  { %v4449_v43 = vld [vmem:[%s6378_s1 + $0x4dc] ss:$28 sps:$4 sm:$0xff]  }
  0x64   :  { %2981 = vmatpush1.bf16.msra.mxu0 %v4356_v44  ;;  %v4444_v44 = vld [vmem:[%s6378_s1 + $0x158] ss:$28 sps:$4 sm:$0xff]  }
  0x65   :  { %3022 = vmatpush1.bf16.msra.mxu1 %v4359_v45  ;;  %2982 = vmatprep.subr.bf16.mxu0 %v4364_v46  ;;  %v4447_v45 = vld [vmem:[%s6378_s1 + $0x4d8] ss:$28 sps:$4 sm:$0xff]  }
  0x66   :  { %3023 = vmatprep.subr.bf16.mxu1 %v4367_v48  ;;  %v4452_v46 = vld [vmem:[%s6378_s1 + $0x194] ss:$28 sps:$4 sm:$0xff]  }
  0x67   :  { %v4455_v48 = vld [vmem:[%s6378_s1 + $0x514] ss:$28 sps:$4 sm:$0xff]  }
  0x68   :  { %2983 = vmatpush1.bf16.msra.mxu0 %v4362_v49  ;;  %v4450_v49 = vld [vmem:[%s6378_s1 + $0x190] ss:$28 sps:$4 sm:$0xff]  }
  0x69   :  { %3024 = vmatpush1.bf16.msra.mxu1 %v4365_v50  ;;  %2984 = vmatprep.subr.bf16.mxu0 %v4370_v52  ;;  %v4453_v50 = vld [vmem:[%s6378_s1 + $0x510] ss:$28 sps:$4 sm:$0xff]  }
  0x6a   :  { %3025 = vmatprep.subr.bf16.mxu1 %v4373_v53  ;;  %v4458_v52 = vld [vmem:[%s6378_s1 + $0x1cc] ss:$28 sps:$4 sm:$0xff]  }
  0x6b   :  { %v4461_v53 = vld [vmem:[%s6378_s1 + $0x54c] ss:$28 sps:$4 sm:$0xff]  }
  0x6c   :  { %2985 = vmatpush1.bf16.msra.mxu0 %v4368_v54  ;;  %v4456_v54 = vld [vmem:[%s6378_s1 + $0x1c8] ss:$28 sps:$4 sm:$0xff]  }
  0x6d   :  { %3026 = vmatpush1.bf16.msra.mxu1 %v4371_v55  ;;  %2986 = vmatprep.subr.bf16.mxu0 %v4376_v56  ;;  %v4459_v55 = vld [vmem:[%s6378_s1 + $0x548] ss:$28 sps:$4 sm:$0xff]  }
  0x6e   :  { %3027 = vmatprep.subr.bf16.mxu1 %v4379_v57  ;;  %v4464_v56 = vld [vmem:[%s6378_s1 + $0x204] ss:$28 sps:$4 sm:$0xff]  }
  0x6f   :  { %v4467_v57 = vld [vmem:[%s6378_s1 + $0x584] ss:$28 sps:$4 sm:$0xff]  }
  0x70   :  { %2987 = vmatpush1.bf16.msra.mxu0 %v4374_v58  ;;  %v4462_v58 = vld [vmem:[%s6378_s1 + $0x200] ss:$28 sps:$4 sm:$0xff]  }
  0x71   :  { %3028 = vmatpush1.bf16.msra.mxu1 %v4377_v59  ;;  %2988 = vmatprep.subr.bf16.mxu0 %v4382_v60  ;;  %v4465_v59 = vld [vmem:[%s6378_s1 + $0x580] ss:$28 sps:$4 sm:$0xff]  }
  0x72   :  { %3029 = vmatprep.subr.bf16.mxu1 %v4385_v61  ;;  %v4470_v60 = vld [vmem:[%s6378_s1 + $0x23c] ss:$28 sps:$4 sm:$0xff]  }
  0x73   :  { %v4473_v61 = vld [vmem:[%s6378_s1 + $0x5bc] ss:$28 sps:$4 sm:$0xff]  }
  0x74   :  { %2989 = vmatpush1.bf16.msra.mxu0 %v4380_v62  ;;  %v4468_v62 = vld [vmem:[%s6378_s1 + $0x238] ss:$28 sps:$4 sm:$0xff]  }
  0x75   :  { %3030 = vmatpush1.bf16.msra.mxu1 %v4383_v63  ;;  %2990 = vmatprep.subr.bf16.mxu0 %v4388_v0  ;;  %v4471_v63 = vld [vmem:[%s6378_s1 + $0x5b8] ss:$28 sps:$4 sm:$0xff]  }
  0x76   :  { %3031 = vmatprep.subr.bf16.mxu1 %v4391_v1  ;;  %v4476_v0 = vld [vmem:[%s6378_s1 + $0x274] ss:$28 sps:$4 sm:$0xff]  }
  0x77   :  { %v4479_v1 = vld [vmem:[%s6378_s1 + $0x5f4] ss:$28 sps:$4 sm:$0xff]  }
  0x78   :  { %2991 = vmatpush1.bf16.msra.mxu0 %v4386_v2  ;;  %v4474_v2 = vld [vmem:[%s6378_s1 + $0x270] ss:$28 sps:$4 sm:$0xff]  }
  0x79   :  { %3032 = vmatpush1.bf16.msra.mxu1 %v4389_v3  ;;  %2992 = vmatprep.subr.bf16.mxu0 %v4394_v4  ;;  %v4477_v3 = vld [vmem:[%s6378_s1 + $0x5f0] ss:$28 sps:$4 sm:$0xff]  }
  0x7a   :  { %3033 = vmatprep.subr.bf16.mxu1 %v4397_v5  ;;  %v4482_v4 = vld [vmem:[%s6378_s1 + $0x2ac] ss:$28 sps:$4 sm:$0xff]  }
  0x7b   :  { %v4485_v5 = vld [vmem:[%s6378_s1 + $0x62c] ss:$28 sps:$4 sm:$0xff]  }
  0x7c   :  { %2993 = vmatpush1.bf16.msra.mxu0 %v4392_v8  ;;  %v4480_v8 = vld [vmem:[%s6378_s1 + $0x2a8] ss:$28 sps:$4 sm:$0xff]  }
  0x7d   :  { %3034 = vmatpush1.bf16.msra.mxu1 %v4395_v9  ;;  %2994 = vmatprep.subr.bf16.mxu0 %v4400_v10  ;;  %v4483_v9 = vld [vmem:[%s6378_s1 + $0x628] ss:$28 sps:$4 sm:$0xff]  }
  0x7e   :  { %3035 = vmatprep.subr.bf16.mxu1 %v4403_v11  ;;  %v4488_v10 = vld [vmem:[%s6378_s1 + $0x2e4] ss:$28 sps:$4 sm:$0xff]  }
  0x7f   :  { %v4491_v11 = vld [vmem:[%s6378_s1 + $0x664] ss:$28 sps:$4 sm:$0xff]  }
  0x80   :  { %2995 = vmatpush1.bf16.msra.mxu0 %v4398_v12  ;;  %v4486_v12 = vld [vmem:[%s6378_s1 + $0x2e0] ss:$28 sps:$4 sm:$0xff]  }
  0x81   :  { %3036 = vmatpush1.bf16.msra.mxu1 %v4401_v13  ;;  %3046 = vmatprep.subr.bf16.mxu0 %v4410_v14  ;;  %v4489_v13 = vld [vmem:[%s6378_s1 + $0x660] ss:$28 sps:$4 sm:$0xff]  }
  0x82   :  { %3087 = vmatprep.subr.bf16.mxu1 %v4413_v15  ;;  %v4494_v14 = vld [vmem:[%s6378_s1 + $0x31c] ss:$28 sps:$4 sm:$0xff]  }
  0x83   :  { %2997 = vmatmul.mubr.bf16.vlgmr.msra.gmra.mrb[4].mxu0 %v5335_v16  ;;  %v4497_v15 = vld [vmem:[%s6378_s1 + $0x69c] ss:$28 sps:$4 sm:$0xff]  }
  0x84   :  { %3038 = vmatmul.mubr.bf16.vlgmr.msra.gmra.mrb[4].mxu1 %v5339_v17  ;;  %3047 = vmatpush1.bf16.msra.mxu0 %v4408_v18  ;;  %v4492_v18 = vld [vmem:[%s6378_s1 + $0x318] ss:$28 sps:$4 sm:$0xff]  }
  0x85   :  { %3088 = vmatpush1.bf16.msra.mxu1 %v4411_v19  ;;  %3048 = vmatprep.subr.bf16.mxu0 %v4416_v20  ;;  %v4495_v19 = vld [vmem:[%s6378_s1 + $0x698] ss:$28 sps:$4 sm:$0xff]  }
  0x86   :  { %3089 = vmatprep.subr.bf16.mxu1 %v4419_v21  ;;  %3078 = vmatprep.mubr.bf16.mxu0 %v5046_v47  ;;  %v4500_v20 = vld [vmem:[%s6378_s1 + $0x354] ss:$28 sps:$4 sm:$0xff]  }
  0x87   :  { %3119 = vmatprep.mubr.bf16.mxu1 %v5057_v51  ;;  %v4503_v21 = vld [vmem:[%s6378_s1 + $0x6d4] ss:$28 sps:$4 sm:$0xff]  }
  0x88   :  { %3049 = vmatpush1.bf16.msra.mxu0 %v4414_v22  ;;  %v4498_v22 = vld [vmem:[%s6378_s1 + $0x350] ss:$28 sps:$4 sm:$0xff]  }
  0x89   :  { %3090 = vmatpush1.bf16.msra.mxu1 %v4417_v23  ;;  %3050 = vmatprep.subr.bf16.mxu0 %v4422_v24  ;;  %v4501_v23 = vld [vmem:[%s6378_s1 + $0x6d0] ss:$28 sps:$4 sm:$0xff]  }
  0x8a   :  { %3091 = vmatprep.subr.bf16.mxu1 %v4425_v25  ;;  %v4506_v24 = vld [vmem:[%s6378_s1 + $0x70c] ss:$28 sps:$4 sm:$0xff]  }
  0x8b   :  { %v4509_v25 = vld [vmem:[%s6378_s1 + $0xa8c] ss:$28 sps:$4 sm:$0xff]  }
  0x8c   :  { %3051 = vmatpush1.bf16.msra.mxu0 %v4420_v26  ;;  %v4504_v26 = vld [vmem:[%s6378_s1 + $0x708] ss:$28 sps:$4 sm:$0xff]  }
  0x8d   :  { %3092 = vmatpush1.bf16.msra.mxu1 %v4423_v27  ;;  %3052 = vmatprep.subr.bf16.mxu0 %v4428_v28  ;;  %v4507_v27 = vld [vmem:[%s6378_s1 + $0xa88] ss:$28 sps:$4 sm:$0xff]  }
  0x8e   :  { %3093 = vmatprep.subr.bf16.mxu1 %v4431_v29  ;;  %v4512_v28 = vld [vmem:[%s6378_s1 + $0x744] ss:$28 sps:$4 sm:$0xff]  }
  0x8f   :  { %v4515_v29 = vld [vmem:[%s6378_s1 + $0xac4] ss:$28 sps:$4 sm:$0xff]  }
  0x90   :  { %3053 = vmatpush1.bf16.msra.mxu0 %v4426_v30  ;;  %v4510_v30 = vld [vmem:[%s6378_s1 + $0x740] ss:$28 sps:$4 sm:$0xff]  }
  0x91   :  { %3094 = vmatpush1.bf16.msra.mxu1 %v4429_v31  ;;  %3054 = vmatprep.subr.bf16.mxu0 %v4434_v32  ;;  %v4513_v31 = vld [vmem:[%s6378_s1 + $0xac0] ss:$28 sps:$4 sm:$0xff]  }
  0x92   :  { %3095 = vmatprep.subr.bf16.mxu1 %v4437_v33  ;;  %v4518_v32 = vld [vmem:[%s6378_s1 + $0x77c] ss:$28 sps:$4 sm:$0xff]  }
  0x93   :  { %v4521_v33 = vld [vmem:[%s6378_s1 + $0xafc] ss:$28 sps:$4 sm:$0xff]  }
  0x94   :  { %3055 = vmatpush1.bf16.msra.mxu0 %v4432_v34  ;;  %v4516_v34 = vld [vmem:[%s6378_s1 + $0x778] ss:$28 sps:$4 sm:$0xff]  }
  0x95   :  { %3096 = vmatpush1.bf16.msra.mxu1 %v4435_v35  ;;  %3056 = vmatprep.subr.bf16.mxu0 %v4440_v38  ;;  %v4519_v35 = vld [vmem:[%s6378_s1 + $0xaf8] ss:$28 sps:$4 sm:$0xff]  }
  0x96   :  { %3097 = vmatprep.subr.bf16.mxu1 %v4443_v39  ;;  %v4524_v38 = vld [vmem:[%s6378_s1 + $0x7b4] ss:$28 sps:$4 sm:$0xff]  }
  0x97   :  { %v4527_v39 = vld [vmem:[%s6378_s1 + $0xb34] ss:$28 sps:$4 sm:$0xff]  }
  0x98   :  { %3057 = vmatpush1.bf16.msra.mxu0 %v4438_v40  ;;  %v4522_v40 = vld [vmem:[%s6378_s1 + $0x7b0] ss:$28 sps:$4 sm:$0xff]  }
  0x99   :  { %3098 = vmatpush1.bf16.msra.mxu1 %v4441_v41  ;;  %3058 = vmatprep.subr.bf16.mxu0 %v4446_v42  ;;  %v4525_v41 = vld [vmem:[%s6378_s1 + $0xb30] ss:$28 sps:$4 sm:$0xff]  }
  0x9a   :  { %3099 = vmatprep.subr.bf16.mxu1 %v4449_v43  ;;  %v4530_v42 = vld [vmem:[%s6378_s1 + $0x7ec] ss:$28 sps:$4 sm:$0xff]  }
  0x9b   :  { %v4533_v43 = vld [vmem:[%s6378_s1 + $0xb6c] ss:$28 sps:$4 sm:$0xff]  }
  0x9c   :  { %3059 = vmatpush1.bf16.msra.mxu0 %v4444_v44  ;;  %v4528_v44 = vld [vmem:[%s6378_s1 + $0x7e8] ss:$28 sps:$4 sm:$0xff]  }
  0x9d   :  { %3100 = vmatpush1.bf16.msra.mxu1 %v4447_v45  ;;  %3060 = vmatprep.subr.bf16.mxu0 %v4452_v46  ;;  %v4531_v45 = vld [vmem:[%s6378_s1 + $0xb68] ss:$28 sps:$4 sm:$0xff]  }
  0x9e   :  { %3101 = vmatprep.subr.bf16.mxu1 %v4455_v48  ;;  %v4536_v46 = vld [vmem:[%s6378_s1 + $0x824] ss:$28 sps:$4 sm:$0xff]  }
  0x9f   :  { %v4539_v48 = vld [vmem:[%s6378_s1 + $0xba4] ss:$28 sps:$4 sm:$0xff]  }
  0xa0   :  { %3061 = vmatpush1.bf16.msra.mxu0 %v4450_v49  ;;  %v4534_v49 = vld [vmem:[%s6378_s1 + $0x820] ss:$28 sps:$4 sm:$0xff]  }
  0xa1   :  { %3102 = vmatpush1.bf16.msra.mxu1 %v4453_v50  ;;  %3062 = vmatprep.subr.bf16.mxu0 %v4458_v52  ;;  %v4537_v50 = vld [vmem:[%s6378_s1 + $0xba0] ss:$28 sps:$4 sm:$0xff]  }
  0xa2   :  { %3103 = vmatprep.subr.bf16.mxu1 %v4461_v53  ;;  %v4542_v52 = vld [vmem:[%s6378_s1 + $0x85c] ss:$28 sps:$4 sm:$0xff]  }
  0xa3   :  { %v4545_v53 = vld [vmem:[%s6378_s1 + $0xbdc] ss:$28 sps:$4 sm:$0xff]  }
  0xa4   :  { %3063 = vmatpush1.bf16.msra.mxu0 %v4456_v54  ;;  %v4540_v54 = vld [vmem:[%s6378_s1 + $0x858] ss:$28 sps:$4 sm:$0xff]  }
  0xa5   :  { %3104 = vmatpush1.bf16.msra.mxu1 %v4459_v55  ;;  %3064 = vmatprep.subr.bf16.mxu0 %v4464_v56  ;;  %v4543_v55 = vld [vmem:[%s6378_s1 + $0xbd8] ss:$28 sps:$4 sm:$0xff]  }
  0xa6   :  { %3105 = vmatprep.subr.bf16.mxu1 %v4467_v57  ;;  %v4548_v56 = vld [vmem:[%s6378_s1 + $0x894] ss:$28 sps:$4 sm:$0xff]  }
  0xa7   :  { %v4551_v57 = vld [vmem:[%s6378_s1 + $0xc14] ss:$28 sps:$4 sm:$0xff]  }
  0xa8   :  { %3065 = vmatpush1.bf16.msra.mxu0 %v4462_v58  ;;  %v4546_v58 = vld [vmem:[%s6378_s1 + $0x890] ss:$28 sps:$4 sm:$0xff]  }
  0xa9   :  { %3106 = vmatpush1.bf16.msra.mxu1 %v4465_v59  ;;  %3066 = vmatprep.subr.bf16.mxu0 %v4470_v60  ;;  %v4549_v59 = vld [vmem:[%s6378_s1 + $0xc10] ss:$28 sps:$4 sm:$0xff]  }
  0xaa   :  { %3107 = vmatprep.subr.bf16.mxu1 %v4473_v61  ;;  %v4554_v60 = vld [vmem:[%s6378_s1 + $0x8cc] ss:$28 sps:$4 sm:$0xff]  }
  0xab   :  { %v4557_v61 = vld [vmem:[%s6378_s1 + $0xc4c] ss:$28 sps:$4 sm:$0xff]  }
  0xac   :  { %3067 = vmatpush1.bf16.msra.mxu0 %v4468_v62  ;;  %v4552_v62 = vld [vmem:[%s6378_s1 + $0x8c8] ss:$28 sps:$4 sm:$0xff]  }
  0xad   :  { %3108 = vmatpush1.bf16.msra.mxu1 %v4471_v63  ;;  %3068 = vmatprep.subr.bf16.mxu0 %v4476_v0  ;;  %v4555_v63 = vld [vmem:[%s6378_s1 + $0xc48] ss:$28 sps:$4 sm:$0xff]  }
  0xae   :  { %3109 = vmatprep.subr.bf16.mxu1 %v4479_v1  ;;  %v4560_v0 = vld [vmem:[%s6378_s1 + $0x904] ss:$28 sps:$4 sm:$0xff]  }
  0xaf   :  { %v4563_v1 = vld [vmem:[%s6378_s1 + $0xc84] ss:$28 sps:$4 sm:$0xff]  }
  0xb0   :  { %3069 = vmatpush1.bf16.msra.mxu0 %v4474_v2  ;;  %v4558_v2 = vld [vmem:[%s6378_s1 + $0x900] ss:$28 sps:$4 sm:$0xff]  }
  0xb1   :  { %3110 = vmatpush1.bf16.msra.mxu1 %v4477_v3  ;;  %3070 = vmatprep.subr.bf16.mxu0 %v4482_v4  ;;  %v4561_v3 = vld [vmem:[%s6378_s1 + $0xc80] ss:$28 sps:$4 sm:$0xff]  }
  0xb2   :  { %3111 = vmatprep.subr.bf16.mxu1 %v4485_v5  ;;  %v4566_v4 = vld [vmem:[%s6378_s1 + $0x93c] ss:$28 sps:$4 sm:$0xff]  }
  0xb3   :  { %v4569_v5 = vld [vmem:[%s6378_s1 + $0xcbc] ss:$28 sps:$4 sm:$0xff]  }
  0xb4   :  { %3071 = vmatpush1.bf16.msra.mxu0 %v4480_v8  ;;  %v4564_v8 = vld [vmem:[%s6378_s1 + $0x938] ss:$28 sps:$4 sm:$0xff]  }
  0xb5   :  { %3112 = vmatpush1.bf16.msra.mxu1 %v4483_v9  ;;  %3072 = vmatprep.subr.bf16.mxu0 %v4488_v10  ;;  %v4567_v9 = vld [vmem:[%s6378_s1 + $0xcb8] ss:$28 sps:$4 sm:$0xff]  }
  0xb6   :  { %3113 = vmatprep.subr.bf16.mxu1 %v4491_v11  ;;  %v4572_v10 = vld [vmem:[%s6378_s1 + $0x974] ss:$28 sps:$4 sm:$0xff]  }
  0xb7   :  { %v4575_v11 = vld [vmem:[%s6378_s1 + $0xcf4] ss:$28 sps:$4 sm:$0xff]  }
  0xb8   :  { %3073 = vmatpush1.bf16.msra.mxu0 %v4486_v12  ;;  %v4570_v12 = vld [vmem:[%s6378_s1 + $0x970] ss:$28 sps:$4 sm:$0xff]  }
  0xb9   :  { %3114 = vmatpush1.bf16.msra.mxu1 %v4489_v13  ;;  %3074 = vmatprep.subr.bf16.mxu0 %v4494_v14  ;;  %v4573_v13 = vld [vmem:[%s6378_s1 + $0xcf0] ss:$28 sps:$4 sm:$0xff]  }
  0xba   :  { %3115 = vmatprep.subr.bf16.mxu1 %v4497_v15  ;;  %v4578_v14 = vld [vmem:[%s6378_s1 + $0x9ac] ss:$28 sps:$4 sm:$0xff]  }
  0xbb   :  { %v4581_v15 = vld [vmem:[%s6378_s1 + $0xd2c] ss:$28 sps:$4 sm:$0xff]  }
  0xbc   :  { %3075 = vmatpush1.bf16.msra.mxu0 %v4492_v18  ;;  %v4576_v18 = vld [vmem:[%s6378_s1 + $0x9a8] ss:$28 sps:$4 sm:$0xff]  }
  0xbd   :  { %3116 = vmatpush1.bf16.msra.mxu1 %v4495_v19  ;;  %3076 = vmatprep.subr.bf16.mxu0 %v4500_v20  ;;  %v4579_v19 = vld [vmem:[%s6378_s1 + $0xd28] ss:$28 sps:$4 sm:$0xff]  }
  0xbe   :  { %3117 = vmatprep.subr.bf16.mxu1 %v4503_v21  ;;  %v4584_v20 = vld [vmem:[%s6378_s1 + $0x9e4] ss:$28 sps:$4 sm:$0xff]  }
  0xbf   :  { %v4587_v21 = vld [vmem:[%s6378_s1 + $0xd64] ss:$28 sps:$4 sm:$0xff]  }
  0xc0   :  { %3077 = vmatpush1.bf16.msra.mxu0 %v4498_v22  ;;  %v4582_v22 = vld [vmem:[%s6378_s1 + $0x9e0] ss:$28 sps:$4 sm:$0xff]  }
  0xc1   :  { %3118 = vmatpush1.bf16.msra.mxu1 %v4501_v23  ;;  %3128 = vmatprep.subr.bf16.mxu0 %v4506_v24  ;;  %v4585_v23 = vld [vmem:[%s6378_s1 + $0xd60] ss:$28 sps:$4 sm:$0xff]  }
  0xc2   :  { %3169 = vmatprep.subr.bf16.mxu1 %v4509_v25  ;;  %v4590_v24 = vld [vmem:[%s6378_s1 + $0xa1c] ss:$28 sps:$4 sm:$0xff]  }
  0xc3   :  { %3079 = vmatmul.mubr.bf16.vlgmr.msra.gmra.mrb[8].mxu0 %v5115_v6  ;;  %v4593_v25 = vld [vmem:[%s6378_s1 + $0xd9c] ss:$28 sps:$4 sm:$0xff]  }
  0xc4   :  { %3120 = vmatmul.mubr.bf16.vlgmr.msra.gmra.mrb[8].mxu1 %v5117_v7  ;;  %3129 = vmatpush1.bf16.msra.mxu0 %v4504_v26  ;;  %v4588_v26 = vld [vmem:[%s6378_s1 + $0xa18] ss:$28 sps:$4 sm:$0xff]  }
  0xc5   :  { %3170 = vmatpush1.bf16.msra.mxu1 %v4507_v27  ;;  %3130 = vmatprep.subr.bf16.mxu0 %v4512_v28  ;;  %v4591_v27 = vld [vmem:[%s6378_s1 + $0xd98] ss:$28 sps:$4 sm:$0xff]  }
  0xc6   :  { %3171 = vmatprep.subr.bf16.mxu1 %v4515_v29  ;;  %3160 = vmatprep.mubr.bf16.mxu0 %v5211_v36  ;;  %v4596_v28 = vld [vmem:[%s6378_s1 + $0xa54] ss:$28 sps:$4 sm:$0xff]  }
  0xc7   :  { %3201 = vmatprep.mubr.bf16.mxu1 %v5215_v37  ;;  %v4599_v29 = vld [vmem:[%s6378_s1 + $0xdd4] ss:$28 sps:$4 sm:$0xff]  }
  0xc8   :  { %3131 = vmatpush1.bf16.msra.mxu0 %v4510_v30  ;;  %v4594_v30 = vld [vmem:[%s6378_s1 + $0xa50] ss:$28 sps:$4 sm:$0xff]  }
  0xc9   :  { %3172 = vmatpush1.bf16.msra.mxu1 %v4513_v31  ;;  %3132 = vmatprep.subr.bf16.mxu0 %v4518_v32  ;;  %v4597_v31 = vld [vmem:[%s6378_s1 + $0xdd0] ss:$28 sps:$4 sm:$0xff]  }
  0xca   :  { %3173 = vmatprep.subr.bf16.mxu1 %v4521_v33  ;;  %v4602_v32 = vld [vmem:[%s6378_s1 + $0x14] ss:$28 sps:$4 sm:$0xff]  }
  0xcb   :  { %v4605_v33 = vld [vmem:[%s6378_s1 + $0x394] ss:$28 sps:$4 sm:$0xff]  }
  0xcc   :  { %3133 = vmatpush1.bf16.msra.mxu0 %v4516_v34  ;;  %v4600_v34 = vld [vmem:[%s6378_s1 + $0x10] ss:$28 sps:$4 sm:$0xff]  }
  0xcd   :  { %3174 = vmatpush1.bf16.msra.mxu1 %v4519_v35  ;;  %3134 = vmatprep.subr.bf16.mxu0 %v4524_v38  ;;  %v4603_v35 = vld [vmem:[%s6378_s1 + $0x390] ss:$28 sps:$4 sm:$0xff]  }
  0xce   :  { %3175 = vmatprep.subr.bf16.mxu1 %v4527_v39  ;;  %v4608_v38 = vld [vmem:[%s6378_s1 + $0x4c] ss:$28 sps:$4 sm:$0xff]  }
  0xcf   :  { %v4611_v39 = vld [vmem:[%s6378_s1 + $0x3cc] ss:$28 sps:$4 sm:$0xff]  }
  0xd0   :  { %3135 = vmatpush1.bf16.msra.mxu0 %v4522_v40  ;;  %v4606_v40 = vld [vmem:[%s6378_s1 + $0x48] ss:$28 sps:$4 sm:$0xff]  }
  0xd1   :  { %3176 = vmatpush1.bf16.msra.mxu1 %v4525_v41  ;;  %3136 = vmatprep.subr.bf16.mxu0 %v4530_v42  ;;  %v4609_v41 = vld [vmem:[%s6378_s1 + $0x3c8] ss:$28 sps:$4 sm:$0xff]  }
  0xd2   :  { %3177 = vmatprep.subr.bf16.mxu1 %v4533_v43  ;;  %v4614_v42 = vld [vmem:[%s6378_s1 + $0x84] ss:$28 sps:$4 sm:$0xff]  }
  0xd3   :  { %v4617_v43 = vld [vmem:[%s6378_s1 + $0x404] ss:$28 sps:$4 sm:$0xff]  }
  0xd4   :  { %3137 = vmatpush1.bf16.msra.mxu0 %v4528_v44  ;;  %v4612_v44 = vld [vmem:[%s6378_s1 + $0x80] ss:$28 sps:$4 sm:$0xff]  }
  0xd5   :  { %3178 = vmatpush1.bf16.msra.mxu1 %v4531_v45  ;;  %3138 = vmatprep.subr.bf16.mxu0 %v4536_v46  ;;  %v4615_v45 = vld [vmem:[%s6378_s1 + $0x400] ss:$28 sps:$4 sm:$0xff]  }
  0xd6   :  { %3179 = vmatprep.subr.bf16.mxu1 %v4539_v48  ;;  %v4620_v46 = vld [vmem:[%s6378_s1 + $0xbc] ss:$28 sps:$4 sm:$0xff]  }
  0xd7   :  { %v4623_v48 = vld [vmem:[%s6378_s1 + $0x43c] ss:$28 sps:$4 sm:$0xff]  }
  0xd8   :  { %3139 = vmatpush1.bf16.msra.mxu0 %v4534_v49  ;;  %v4618_v49 = vld [vmem:[%s6378_s1 + $0xb8] ss:$28 sps:$4 sm:$0xff]  }
  0xd9   :  { %3180 = vmatpush1.bf16.msra.mxu1 %v4537_v50  ;;  %3140 = vmatprep.subr.bf16.mxu0 %v4542_v52  ;;  %v4621_v50 = vld [vmem:[%s6378_s1 + $0x438] ss:$28 sps:$4 sm:$0xff]  }
  0xda   :  { %3181 = vmatprep.subr.bf16.mxu1 %v4545_v53  ;;  %v4626_v52 = vld [vmem:[%s6378_s1 + $0xf4] ss:$28 sps:$4 sm:$0xff]  }
  0xdb   :  { %v4629_v53 = vld [vmem:[%s6378_s1 + $0x474] ss:$28 sps:$4 sm:$0xff]  }
  0xdc   :  { %3141 = vmatpush1.bf16.msra.mxu0 %v4540_v54  ;;  %v4624_v54 = vld [vmem:[%s6378_s1 + $0xf0] ss:$28 sps:$4 sm:$0xff]  }
  0xdd   :  { %3182 = vmatpush1.bf16.msra.mxu1 %v4543_v55  ;;  %3142 = vmatprep.subr.bf16.mxu0 %v4548_v56  ;;  %v4627_v55 = vld [vmem:[%s6378_s1 + $0x470] ss:$28 sps:$4 sm:$0xff]  }
  0xde   :  { %3183 = vmatprep.subr.bf16.mxu1 %v4551_v57  ;;  %v4632_v56 = vld [vmem:[%s6378_s1 + $0x12c] ss:$28 sps:$4 sm:$0xff]  }
  0xdf   :  { %v4635_v57 = vld [vmem:[%s6378_s1 + $0x4ac] ss:$28 sps:$4 sm:$0xff]  }
  0xe0   :  { %3143 = vmatpush1.bf16.msra.mxu0 %v4546_v58  ;;  %v4630_v58 = vld [vmem:[%s6378_s1 + $0x128] ss:$28 sps:$4 sm:$0xff]  }
  0xe1   :  { %3184 = vmatpush1.bf16.msra.mxu1 %v4549_v59  ;;  %3144 = vmatprep.subr.bf16.mxu0 %v4554_v60  ;;  %v4633_v59 = vld [vmem:[%s6378_s1 + $0x4a8] ss:$28 sps:$4 sm:$0xff]  }
  0xe2   :  { %3185 = vmatprep.subr.bf16.mxu1 %v4557_v61  ;;  %v4638_v60 = vld [vmem:[%s6378_s1 + $0x164] ss:$28 sps:$4 sm:$0xff]  }
  0xe3   :  { %v4641_v61 = vld [vmem:[%s6378_s1 + $0x4e4] ss:$28 sps:$4 sm:$0xff]  }
  0xe4   :  { %3145 = vmatpush1.bf16.msra.mxu0 %v4552_v62 }
  0xe5   :  { %3186 = vmatpush1.bf16.msra.mxu1 %v4555_v63  ;;  %3146 = vmatprep.subr.bf16.mxu0 %v4560_v0  ;;  %v4636_v0 = vld [vmem:[%s6378_s1 + $0x160] ss:$28 sps:$4 sm:$0xff]  }
  0xe6   :  { %3187 = vmatprep.subr.bf16.mxu1 %v4563_v1  ;;  %v4639_v1 = vld [vmem:[%s6378_s1 + $0x4e0] ss:$28 sps:$4 sm:$0xff]  }
  0xe8   :  { %3147 = vmatpush1.bf16.msra.mxu0 %v4558_v2 }
  0xe9   :  { %3188 = vmatpush1.bf16.msra.mxu1 %v4561_v3  ;;  %3148 = vmatprep.subr.bf16.mxu0 %v4566_v4 }
  0xea   :  { %3189 = vmatprep.subr.bf16.mxu1 %v4569_v5 }
  0xec   :  { %3149 = vmatpush1.bf16.msra.mxu0 %v4564_v8 }
  0xed   :  { %3190 = vmatpush1.bf16.msra.mxu1 %v4567_v9  ;;  %3150 = vmatprep.subr.bf16.mxu0 %v4572_v10  ;;  %v4644_v10 = vld [vmem:[%s6378_s1 + $0x19c] ss:$28 sps:$4 sm:$0xff]  }
  0xee   :  { %3191 = vmatprep.subr.bf16.mxu1 %v4575_v11 }
  0xf0   :  { %3151 = vmatpush1.bf16.msra.mxu0 %v4570_v12 }
  0xf1   :  { %3192 = vmatpush1.bf16.msra.mxu1 %v4573_v13  ;;  %3152 = vmatprep.subr.bf16.mxu0 %v4578_v14  ;;  %v4647_v13 = vld [vmem:[%s6378_s1 + $0x51c] ss:$28 sps:$4 sm:$0xff]  }
  0xf2   :  { %3193 = vmatprep.subr.bf16.mxu1 %v4581_v15  ;;  %v4642_v14 = vld [vmem:[%s6378_s1 + $0x198] ss:$28 sps:$4 sm:$0xff]  }
  0xf3   :  { %v4645_v15 = vld [vmem:[%s6378_s1 + $0x518] ss:$28 sps:$4 sm:$0xff]  }
  0xf4   :  { %3153 = vmatpush1.bf16.msra.mxu0 %v4576_v18  ;;  %v4650_v18 = vld [vmem:[%s6378_s1 + $0x1d4] ss:$28 sps:$4 sm:$0xff]  }
  0xf5   :  { %3194 = vmatpush1.bf16.msra.mxu1 %v4579_v19  ;;  %3154 = vmatprep.subr.bf16.mxu0 %v4584_v20  ;;  %v4653_v19 = vld [vmem:[%s6378_s1 + $0x554] ss:$28 sps:$4 sm:$0xff]  }
  0xf6   :  { %3195 = vmatprep.subr.bf16.mxu1 %v4587_v21  ;;  %v4648_v20 = vld [vmem:[%s6378_s1 + $0x1d0] ss:$28 sps:$4 sm:$0xff]  }
  0xf7   :  { %v4651_v21 = vld [vmem:[%s6378_s1 + $0x550] ss:$28 sps:$4 sm:$0xff]  }
  0xf8   :  { %3155 = vmatpush1.bf16.msra.mxu0 %v4582_v22  ;;  %v4656_v22 = vld [vmem:[%s6378_s1 + $0x20c] ss:$28 sps:$4 sm:$0xff]  }
  0xf9   :  { %3196 = vmatpush1.bf16.msra.mxu1 %v4585_v23  ;;  %3156 = vmatprep.subr.bf16.mxu0 %v4590_v24  ;;  %v4659_v23 = vld [vmem:[%s6378_s1 + $0x58c] ss:$28 sps:$4 sm:$0xff]  }
  0xfa   :  { %3197 = vmatprep.subr.bf16.mxu1 %v4593_v25  ;;  %v4654_v24 = vld [vmem:[%s6378_s1 + $0x208] ss:$28 sps:$4 sm:$0xff]  }
  0xfb   :  { %v4657_v25 = vld [vmem:[%s6378_s1 + $0x588] ss:$28 sps:$4 sm:$0xff]  }
  0xfc   :  { %3157 = vmatpush1.bf16.msra.mxu0 %v4588_v26  ;;  %v4662_v26 = vld [vmem:[%s6378_s1 + $0x244] ss:$28 sps:$4 sm:$0xff]  }
  0xfd   :  { %3198 = vmatpush1.bf16.msra.mxu1 %v4591_v27  ;;  %3158 = vmatprep.subr.bf16.mxu0 %v4596_v28  ;;  %v4665_v27 = vld [vmem:[%s6378_s1 + $0x5c4] ss:$28 sps:$4 sm:$0xff]  }
  0xfe   :  { %3199 = vmatprep.subr.bf16.mxu1 %v4599_v29  ;;  %v4660_v28 = vld [vmem:[%s6378_s1 + $0x240] ss:$28 sps:$4 sm:$0xff]  }
  0xff   :  { %v4663_v29 = vld [vmem:[%s6378_s1 + $0x5c0] ss:$28 sps:$4 sm:$0xff]  }
 0x100   :  { %3159 = vmatpush1.bf16.msra.mxu0 %v4594_v30  ;;  %v4668_v30 = vld [vmem:[%s6378_s1 + $0x27c] ss:$28 sps:$4 sm:$0xff]  }
 0x101   :  { %3200 = vmatpush1.bf16.msra.mxu1 %v4597_v31  ;;  %3210 = vmatprep.subr.bf16.mxu0 %v4602_v32  ;;  %v4671_v31 = vld [vmem:[%s6378_s1 + $0x5fc] ss:$28 sps:$4 sm:$0xff]  }
 0x102   :  { %3251 = vmatprep.subr.bf16.mxu1 %v4605_v33  ;;  %v4666_v32 = vld [vmem:[%s6378_s1 + $0x278] ss:$28 sps:$4 sm:$0xff]  }
 0x103   :  { %3161 = vmatmul.mubr.bf16.vlgmr.msra.gmra.mrb[12].mxu0 %v5335_v16  ;;  %v4669_v33 = vld [vmem:[%s6378_s1 + $0x5f8] ss:$28 sps:$4 sm:$0xff]  }
 0x104   :  { %3202 = vmatmul.mubr.bf16.vlgmr.msra.gmra.mrb[12].mxu1 %v5339_v17  ;;  %3211 = vmatpush1.bf16.msra.mxu0 %v4600_v34  ;;  %v4674_v34 = vld [vmem:[%s6378_s1 + $0x2b4] ss:$28 sps:$4 sm:$0xff]  }
 0x105   :  { %3252 = vmatpush1.bf16.msra.mxu1 %v4603_v35  ;;  %3212 = vmatprep.subr.bf16.mxu0 %v4608_v38  ;;  %v4677_v35 = vld [vmem:[%s6378_s1 + $0x634] ss:$28 sps:$4 sm:$0xff]  }
 0x106   :  { %3253 = vmatprep.subr.bf16.mxu1 %v4611_v39  ;;  %3242 = vmatprep.mubr.bf16.mxu0 %v5046_v47  ;;  %v4672_v38 = vld [vmem:[%s6378_s1 + $0x2b0] ss:$28 sps:$4 sm:$0xff]  }
 0x107   :  { %3283 = vmatprep.mubr.bf16.mxu1 %v5057_v51  ;;  %v4675_v39 = vld [vmem:[%s6378_s1 + $0x630] ss:$28 sps:$4 sm:$0xff]  }
 0x108   :  { %3213 = vmatpush1.bf16.msra.mxu0 %v4606_v40  ;;  %v4680_v40 = vld [vmem:[%s6378_s1 + $0x2ec] ss:$28 sps:$4 sm:$0xff]  }
 0x109   :  { %3254 = vmatpush1.bf16.msra.mxu1 %v4609_v41  ;;  %3214 = vmatprep.subr.bf16.mxu0 %v4614_v42  ;;  %v4683_v41 = vld [vmem:[%s6378_s1 + $0x66c] ss:$28 sps:$4 sm:$0xff]  }
 0x10a   :  { %3255 = vmatprep.subr.bf16.mxu1 %v4617_v43  ;;  %v4678_v42 = vld [vmem:[%s6378_s1 + $0x2e8] ss:$28 sps:$4 sm:$0xff]  }
 0x10b   :  { %v4681_v43 = vld [vmem:[%s6378_s1 + $0x668] ss:$28 sps:$4 sm:$0xff]  }
 0x10c   :  { %3215 = vmatpush1.bf16.msra.mxu0 %v4612_v44  ;;  %v4686_v44 = vld [vmem:[%s6378_s1 + $0x324] ss:$28 sps:$4 sm:$0xff]  }
 0x10d   :  { %3256 = vmatpush1.bf16.msra.mxu1 %v4615_v45  ;;  %3216 = vmatprep.subr.bf16.mxu0 %v4620_v46  ;;  %v4689_v45 = vld [vmem:[%s6378_s1 + $0x6a4] ss:$28 sps:$4 sm:$0xff]  }
 0x10e   :  { %3257 = vmatprep.subr.bf16.mxu1 %v4623_v48  ;;  %v4684_v46 = vld [vmem:[%s6378_s1 + $0x320] ss:$28 sps:$4 sm:$0xff]  }
 0x10f   :  { %v4687_v48 = vld [vmem:[%s6378_s1 + $0x6a0] ss:$28 sps:$4 sm:$0xff]  }
 0x110   :  { %3217 = vmatpush1.bf16.msra.mxu0 %v4618_v49  ;;  %v4692_v49 = vld [vmem:[%s6378_s1 + $0x35c] ss:$28 sps:$4 sm:$0xff]  }
 0x111   :  { %3258 = vmatpush1.bf16.msra.mxu1 %v4621_v50  ;;  %3218 = vmatprep.subr.bf16.mxu0 %v4626_v52  ;;  %v4695_v50 = vld [vmem:[%s6378_s1 + $0x6dc] ss:$28 sps:$4 sm:$0xff]  }
 0x112   :  { %3259 = vmatprep.subr.bf16.mxu1 %v4629_v53  ;;  %v4690_v52 = vld [vmem:[%s6378_s1 + $0x358] ss:$28 sps:$4 sm:$0xff]  }
 0x113   :  { %v4693_v53 = vld [vmem:[%s6378_s1 + $0x6d8] ss:$28 sps:$4 sm:$0xff]  }
 0x114   :  { %3219 = vmatpush1.bf16.msra.mxu0 %v4624_v54  ;;  %v4698_v54 = vld [vmem:[%s6378_s1 + $0x714] ss:$28 sps:$4 sm:$0xff]  }
 0x115   :  { %3260 = vmatpush1.bf16.msra.mxu1 %v4627_v55  ;;  %3220 = vmatprep.subr.bf16.mxu0 %v4632_v56  ;;  %v4701_v55 = vld [vmem:[%s6378_s1 + $0xa94] ss:$28 sps:$4 sm:$0xff]  }
 0x116   :  { %3261 = vmatprep.subr.bf16.mxu1 %v4635_v57  ;;  %v2916_v62 = vpop.f32.mrb[0].mxu0  ;;  %v4696_v56 = vld [vmem:[%s6378_s1 + $0x710] ss:$28 sps:$4 sm:$0xff]  }
 0x117   :  { %v2957_v63 = vpop.f32.mrb[0].mxu1  ;;  %v2918_v3 = vpop.f32.mrb[1].mxu0  ;;  %v4699_v57 = vld [vmem:[%s6378_s1 + $0xa90] ss:$28 sps:$4 sm:$0xff]  }
 0x118   :  { %v5815_v2 = vadd.f32 %v2957_v63, %v2916_v62  ;;  %v2959_v4 = vpop.f32.mrb[1].mxu1  ;;  %v2920_v8 = vpop.f32.mrb[2].mxu0  ;;  %3221 = vmatpush1.bf16.msra.mxu0 %v4630_v58  ;;  %v4704_v58 = vld [vmem:[%s6378_s1 + $0x74c] ss:$28 sps:$4 sm:$0xff]   ;;  %v4710_v62 = vld [vmem:[%s6378_s1 + $0x784] ss:$28 sps:$4 sm:$0xff]  }
 0x119   :  { %v5817_v5 = vadd.f32 %v2959_v4, %v2918_v3  ;;  %v2961_v9 = vpop.f32.mrb[2].mxu1  ;;  %3262 = vmatpush1.bf16.msra.mxu1 %v4633_v59  ;;  %v2921_v11 = vpop.f32.mrb[3].mxu0  ;;  %3222 = vmatprep.subr.bf16.mxu0 %v4638_v60  ;;  %v4707_v59 = vld [vmem:[%s6378_s1 + $0xacc] ss:$28 sps:$4 sm:$0xff]   ;;  %v4713_v63 = vld [vmem:[%s6378_s1 + $0xb04] ss:$28 sps:$4 sm:$0xff]  }
 0x11a   :  { %v2962_v12 = vpop.f32.mrb[3].mxu1  ;;  %3263 = vmatprep.subr.bf16.mxu1 %v4641_v61  ;;  %v4702_v60 = vld [vmem:[%s6378_s1 + $0x748] ss:$28 sps:$4 sm:$0xff]   ;;  %v4716_v3 = vld [vmem:[%s6378_s1 + $0x7bc] ss:$28 sps:$4 sm:$0xff]  }
 0x11b   :  { %v4705_v61 = vld [vmem:[%s6378_s1 + $0xac8] ss:$28 sps:$4 sm:$0xff]   ;;  %v4719_v4 = vld [vmem:[%s6378_s1 + $0xb3c] ss:$28 sps:$4 sm:$0xff]   ;;  %v4725_v11 = vld [vmem:[%s6378_s1 + $0xb74] ss:$28 sps:$4 sm:$0xff]   ;;  %v3561_v12 = vlaneseq }
 0x11c   :  { %3223 = vmatpush1.bf16.msra.mxu0 %v4636_v0  ;;  %v4708_v0 = vld [vmem:[%s6378_s1 + $0x780] ss:$28 sps:$4 sm:$0xff]   ;;  %v4714_v8 = vld [vmem:[%s6378_s1 + $0x7b8] ss:$28 sps:$4 sm:$0xff]  }
 0x11d   :  { %3264 = vmatpush1.bf16.msra.mxu1 %v4639_v1  ;;  %3224 = vmatprep.subr.bf16.mxu0 %v4644_v10  ;;  %v4711_v1 = vld [vmem:[%s6378_s1 + $0xb00] ss:$28 sps:$4 sm:$0xff]   ;;  %v4717_v9 = vld [vmem:[%s6378_s1 + $0xb38] ss:$28 sps:$4 sm:$0xff]  }
 0x11e   :  { %3265 = vmatprep.subr.bf16.mxu1 %v4647_v13  ;;  %v4722_v10 = vld [vmem:[%s6378_s1 + $0x7f4] ss:$28 sps:$4 sm:$0xff]  }
 0x11f   :  { %v4720_v13 = vld [vmem:[%s6378_s1 + $0x7f0] ss:$28 sps:$4 sm:$0xff]  }
 0x120   :  { %3225 = vmatpush1.bf16.msra.mxu0 %v4642_v14  ;;  %v4723_v14 = vld [vmem:[%s6378_s1 + $0xb70] ss:$28 sps:$4 sm:$0xff]  }
 0x121   :  { %3266 = vmatpush1.bf16.msra.mxu1 %v4645_v15  ;;  %3226 = vmatprep.subr.bf16.mxu0 %v4650_v18  ;;  %v5991_v15 = vshrl.u32 %v3561_v12, 7  ;;  %v4728_v18 = vld [vmem:[%s6378_s1 + $0x82c] ss:$28 sps:$4 sm:$0xff]  }
 0x122   :  { %3267 = vmatprep.subr.bf16.mxu1 %v4653_v19  ;;  %v4731_v19 = vld [vmem:[%s6378_s1 + $0xbac] ss:$28 sps:$4 sm:$0xff]  }
 0x124   :  { %3227 = vmatpush1.bf16.msra.mxu0 %v4648_v20  ;;  %v4726_v20 = vld [vmem:[%s6378_s1 + $0x828] ss:$28 sps:$4 sm:$0xff]  }
 0x125   :  { %3268 = vmatpush1.bf16.msra.mxu1 %v4651_v21  ;;  %3228 = vmatprep.subr.bf16.mxu0 %v4656_v22  ;;  %v4729_v21 = vld [vmem:[%s6378_s1 + $0xba8] ss:$28 sps:$4 sm:$0xff]   ;;  %v3563_v22 = vsub.s32 0, %v5991_v15 }
 0x126   :  { %3269 = vmatprep.subr.bf16.mxu1 %v4659_v23  ;;  %v4734_v23 = vld [vmem:[%s6378_s1 + $0x864] ss:$28 sps:$4 sm:$0xff]  }
 0x128   :  { %3229 = vmatpush1.bf16.msra.mxu0 %v4654_v24  ;;  %v4737_v24 = vld [vmem:[%s6378_s1 + $0xbe4] ss:$28 sps:$4 sm:$0xff]  }
 0x129   :  { %3270 = vmatpush1.bf16.msra.mxu1 %v4657_v25  ;;  %3230 = vmatprep.subr.bf16.mxu0 %v4662_v26 }
 0x12a   :  { %3271 = vmatprep.subr.bf16.mxu1 %v4665_v27  ;;  %v6015_v27 = vld [vmem:[%s6380_s2] sm:$0x7f] }
 0x12c   :  { %3231 = vmatpush1.bf16.msra.mxu0 %v4660_v28  ;;  %v3567_v28 = vsub.s32 1, %v5991_v15 }
 0x12d   :  { %3272 = vmatpush1.bf16.msra.mxu1 %v4663_v29  ;;  %3232 = vmatprep.subr.bf16.mxu0 %v4668_v30 }
 0x12e   :  { %3273 = vmatprep.subr.bf16.mxu1 %v4671_v31 }
 0x130   :  { %3233 = vmatpush1.bf16.msra.mxu0 %v4666_v32 }
 0x131   :  { %3274 = vmatpush1.bf16.msra.mxu1 %v4669_v33  ;;  %3234 = vmatprep.subr.bf16.mxu0 %v4674_v34 }
 0x132   :  { %3275 = vmatprep.subr.bf16.mxu1 %v4677_v35  ;;  %v4732_v35 = vld [vmem:[%s6378_s1 + $0x860] ss:$28 sps:$4 sm:$0xff]  }
 0x134   :  { %3235 = vmatpush1.bf16.msra.mxu0 %v4672_v38  ;;  %v4735_v38 = vld [vmem:[%s6378_s1 + $0xbe0] ss:$28 sps:$4 sm:$0xff]  }
 0x135   :  { %3276 = vmatpush1.bf16.msra.mxu1 %v4675_v39  ;;  %3236 = vmatprep.subr.bf16.mxu0 %v4680_v40  ;;  %v3564_v40 = vrot.slane %v6015_v27, %v3563_v22  ;;  %v4774_v22 = vld [vmem:[%s6378_s1 + $0x9e8] ss:$28 sps:$4 sm:$0xff]  }
 0x136   :  { %3277 = vmatprep.subr.bf16.mxu1 %v4683_v41 }
 0x138   :  { %3237 = vmatpush1.bf16.msra.mxu0 %v4678_v42  ;;  %v4743_v42 = vld [vmem:[%s6378_s1 + $0xc1c] ss:$28 sps:$4 sm:$0xff]  }
 0x139   :  { %3278 = vmatpush1.bf16.msra.mxu1 %v4681_v43  ;;  %3238 = vmatprep.subr.bf16.mxu0 %v4686_v44  ;;  %v3568_v44 = vrot.slane %v6015_v27, %v3567_v28  ;;  %v4780_v28 = vld [vmem:[%s6378_s1 + $0xa20] ss:$28 sps:$4 sm:$0xff]  }
 0x13a   :  { %3279 = vmatprep.subr.bf16.mxu1 %v4689_v45  ;;  %v4738_v45 = vld [vmem:[%s6378_s1 + $0x898] ss:$28 sps:$4 sm:$0xff]  }
 0x13c   :  { %3239 = vmatpush1.bf16.msra.mxu0 %v4684_v46  ;;  %v4741_v46 = vld [vmem:[%s6378_s1 + $0xc18] ss:$28 sps:$4 sm:$0xff]  }
 0x13d   :  { %3280 = vmatpush1.bf16.msra.mxu1 %v4687_v48  ;;  %3240 = vmatprep.subr.bf16.mxu0 %v4692_v49  ;;  %v4746_v49 = vld [vmem:[%s6378_s1 + $0x8d4] ss:$28 sps:$4 sm:$0xff]  }
 0x13e   :  { %3281 = vmatprep.subr.bf16.mxu1 %v4695_v50  ;;  %v4749_v50 = vld [vmem:[%s6378_s1 + $0xc54] ss:$28 sps:$4 sm:$0xff]  }
 0x140   :  { %3241 = vmatpush1.bf16.msra.mxu0 %v4690_v52 }
 0x141   :  { %3282 = vmatpush1.bf16.msra.mxu1 %v4693_v53  ;;  %3292 = vmatprep.subr.bf16.mxu0 %v4698_v54 }
 0x142   :  { %3333 = vmatprep.subr.bf16.mxu1 %v4701_v55  ;;  %v4744_v55 = vld [vmem:[%s6378_s1 + $0x8d0] ss:$28 sps:$4 sm:$0xff]  }
 0x143   :  { %3243 = vmatmul.mubr.bf16.vlgmr.msra.gmra.mrb[16].mxu0 %v5115_v6 }
 0x144   :  { %3284 = vmatmul.mubr.bf16.vlgmr.msra.gmra.mrb[16].mxu1 %v5117_v7  ;;  %3293 = vmatpush1.bf16.msra.mxu0 %v4696_v56  ;;  %v4747_v56 = vld [vmem:[%s6378_s1 + $0xc50] ss:$28 sps:$4 sm:$0xff]  }
 0x145   :  { %3334 = vmatpush1.bf16.msra.mxu1 %v4699_v57  ;;  %3294 = vmatprep.subr.bf16.mxu0 %v4704_v58  ;;  %v4752_v57 = vld [vmem:[%s6378_s1 + $0x90c] ss:$28 sps:$4 sm:$0xff]  }
 0x146   :  { %3335 = vmatprep.subr.bf16.mxu1 %v4707_v59  ;;  %3324 = vmatprep.mubr.bf16.mxu0 %v5211_v36  ;;  %v4755_v58 = vld [vmem:[%s6378_s1 + $0xc8c] ss:$28 sps:$4 sm:$0xff]  }
 0x147   :  { %3365 = vmatprep.mubr.bf16.mxu1 %v5215_v37  ;;  %v4750_v59 = vld [vmem:[%s6378_s1 + $0x908] ss:$28 sps:$4 sm:$0xff]  }
 0x148   :  { %3295 = vmatpush1.bf16.msra.mxu0 %v4702_v60  ;;  %v4753_v60 = vld [vmem:[%s6378_s1 + $0xc88] ss:$28 sps:$4 sm:$0xff]  }
 0x149   :  { %3336 = vmatpush1.bf16.msra.mxu1 %v4705_v61  ;;  %3296 = vmatprep.subr.bf16.mxu0 %v4710_v62  ;;  %v4758_v61 = vld [vmem:[%s6378_s1 + $0x944] ss:$28 sps:$4 sm:$0xff]  }
 0x14a   :  { %3337 = vmatprep.subr.bf16.mxu1 %v4713_v63  ;;  %v4761_v62 = vld [vmem:[%s6378_s1 + $0xcc4] ss:$28 sps:$4 sm:$0xff]  }
 0x14b   :  { %v4756_v63 = vld [vmem:[%s6378_s1 + $0x940] ss:$28 sps:$4 sm:$0xff]  }
 0x14c   :  { %3297 = vmatpush1.bf16.msra.mxu0 %v4708_v0  ;;  %v4759_v0 = vld [vmem:[%s6378_s1 + $0xcc0] ss:$28 sps:$4 sm:$0xff]  }
 0x14d   :  { %3338 = vmatpush1.bf16.msra.mxu1 %v4711_v1  ;;  %3298 = vmatprep.subr.bf16.mxu0 %v4716_v3  ;;  %v4764_v1 = vld [vmem:[%s6378_s1 + $0x97c] ss:$28 sps:$4 sm:$0xff]  }
 0x14e   :  { %3339 = vmatprep.subr.bf16.mxu1 %v4719_v4  ;;  %v4767_v3 = vld [vmem:[%s6378_s1 + $0xcfc] ss:$28 sps:$4 sm:$0xff]  }
 0x150   :  { %3299 = vmatpush1.bf16.msra.mxu0 %v4714_v8 }
 0x151   :  { %3340 = vmatpush1.bf16.msra.mxu1 %v4717_v9  ;;  %3300 = vmatprep.subr.bf16.mxu0 %v4722_v10  ;;  %v4762_v10 = vld [vmem:[%s6378_s1 + $0x978] ss:$28 sps:$4 sm:$0xff]  }
 0x152   :  { %3341 = vmatprep.subr.bf16.mxu1 %v4725_v11  ;;  %v4765_v11 = vld [vmem:[%s6378_s1 + $0xcf8] ss:$28 sps:$4 sm:$0xff]  }
 0x154   :  { %3301 = vmatpush1.bf16.msra.mxu0 %v4720_v13  ;;  %v4770_v13 = vld [vmem:[%s6378_s1 + $0x9b4] ss:$28 sps:$4 sm:$0xff]  }
 0x155   :  { %3342 = vmatpush1.bf16.msra.mxu1 %v4723_v14  ;;  %3302 = vmatprep.subr.bf16.mxu0 %v4728_v18  ;;  %v4773_v14 = vld [vmem:[%s6378_s1 + $0xd34] ss:$28 sps:$4 sm:$0xff]  }
 0x156   :  { %3343 = vmatprep.subr.bf16.mxu1 %v4731_v19  ;;  %v2998_v25 = vpop.f32.mrb[4].mxu0  ;;  %v4768_v18 = vld [vmem:[%s6378_s1 + $0x9b0] ss:$28 sps:$4 sm:$0xff]  }
 0x157   :  { %v3039_v26 = vpop.f32.mrb[4].mxu1  ;;  %v2999_v29 = vadd.f32 %v2998_v25, %v5815_v2  ;;  %v3000_v30 = vpop.f32.mrb[5].mxu0  ;;  %v4771_v19 = vld [vmem:[%s6378_s1 + $0xd30] ss:$28 sps:$4 sm:$0xff]   ;;  %v4785_v25 = vld [vmem:[%s6378_s1 + $0xda4] ss:$28 sps:$4 sm:$0xff]  }
 0x158   :  { %v3041_v31 = vpop.f32.mrb[5].mxu1  ;;  %v3001_v32 = vadd.f32 %v3000_v30, %v5817_v5  ;;  %v3002_v33 = vpop.f32.mrb[6].mxu0  ;;  %3303 = vmatpush1.bf16.msra.mxu0 %v4726_v20  ;;  %v4740_v5 = vld [vmem:[%s6378_s1 + $0x89c] ss:$28 sps:$4 sm:$0xff]   ;;  %v4776_v20 = vld [vmem:[%s6378_s1 + $0x9ec] ss:$28 sps:$4 sm:$0xff]  }
 0x159   :  { %v3043_v34 = vpop.f32.mrb[6].mxu1  ;;  %3344 = vmatpush1.bf16.msra.mxu1 %v4729_v21  ;;  %v3040_v39 = vadd.f32 %v3039_v26, %v2999_v29  ;;  %v3003_v2 = vpop.f32.mrb[7].mxu0  ;;  %3304 = vmatprep.subr.bf16.mxu0 %v4734_v23  ;;  %v4779_v21 = vld [vmem:[%s6378_s1 + $0xd6c] ss:$28 sps:$4 sm:$0xff]   ;;  %v4783_v29 = vld [vmem:[%s6378_s1 + $0xda0] ss:$28 sps:$4 sm:$0xff]  }
 0x15a   :  { %v3044_v41 = vpop.f32.mrb[7].mxu1  ;;  %3345 = vmatprep.subr.bf16.mxu1 %v4737_v24  ;;  %v3042_v43 = vadd.f32 %v3041_v31, %v3001_v32  ;;  %v4777_v23 = vld [vmem:[%s6378_s1 + $0xd68] ss:$28 sps:$4 sm:$0xff]   ;;  %v4788_v31 = vld [vmem:[%s6378_s1 + $0xa5c] ss:$28 sps:$4 sm:$0xff]  }
 0x15b   :  { %v3596_v48 = vadd.f32 %v3564_v40, %v3040_v39  ;;  %v4782_v24 = vld [vmem:[%s6378_s1 + $0xa24] ss:$28 sps:$4 sm:$0xff]   ;;  %v4791_v32 = vld [vmem:[%s6378_s1 + $0xddc] ss:$28 sps:$4 sm:$0xff]   ;;  %v4796_v2 = vld [vmem:[%s6378_s1 + $0x210] ss:$28 sps:$4 sm:$0xff]  }
 0x15c   :  { %3305 = vmatpush1.bf16.msra.mxu0 %v4732_v35  ;;  %v3597_v52 = vadd.f32 %v3568_v44, %v3042_v43  ;;  %v4786_v33 = vld [vmem:[%s6378_s1 + $0xa58] ss:$28 sps:$4 sm:$0xff]   ;;  %v4797_v41 = vld [vmem:[%s6378_s1 + $0x590] ss:$28 sps:$4 sm:$0xff]   ;;  %v4800_v43 = vld [vmem:[%s6378_s1 + $0x248] ss:$28 sps:$4 sm:$0xff]  }
 0x15d   :  { %3346 = vmatpush1.bf16.msra.mxu1 %v4735_v38  ;;  %3306 = vmatprep.subr.bf16.mxu0 %v4740_v5  ;;  %v4112_v53 = vmul.f32 -1.442695, %v3596_v48  ;;  %v4789_v34 = vld [vmem:[%s6378_s1 + $0xdd8] ss:$28 sps:$4 sm:$0xff]   ;;  %v4798_v5 = vld [vmem:[%s6378_s1 + $0x50] ss:$28 sps:$4 sm:$0xff]  }
 0x15e   :  { %3347 = vmatprep.subr.bf16.mxu1 %v4743_v42  ;;  %v4113_v54 = vmul.f32 -1.442695, %v3597_v52  ;;  %v4792_v35 = vld [vmem:[%s6378_s1 + $0x1d8] ss:$28 sps:$4 sm:$0xff]   ;;  %v4799_v42 = vld [vmem:[%s6378_s1 + $0x3d0] ss:$28 sps:$4 sm:$0xff]  }
 0x15f   :  { %4856 = vpow2.f32 %v4112_v53  ;;  %v4793_v38 = vld [vmem:[%s6378_s1 + $0x558] ss:$28 sps:$4 sm:$0xff]   ;;  %v4801_v44 = vld [vmem:[%s6378_s1 + $0x5c8] ss:$28 sps:$4 sm:$0xff]   ;;  %v4804_v48 = vld [vmem:[%s6378_s1 + $0x280] ss:$28 sps:$4 sm:$0xff]  }
 0x160   :  { %3307 = vmatpush1.bf16.msra.mxu0 %v4738_v45  ;;  %4858 = vpow2.f32 %v4113_v54  ;;  %v4794_v39 = vld [vmem:[%s6378_s1 + $0x18] ss:$28 sps:$4 sm:$0xff]   ;;  %v4802_v45 = vld [vmem:[%s6378_s1 + $0x88] ss:$28 sps:$4 sm:$0xff]  }
 0x161   :  { %3348 = vmatpush1.bf16.msra.mxu1 %v4741_v46  ;;  %3308 = vmatprep.subr.bf16.mxu0 %v4746_v49  ;;  %v4795_v40 = vld [vmem:[%s6378_s1 + $0x398] ss:$28 sps:$4 sm:$0xff]   ;;  %v4803_v46 = vld [vmem:[%s6378_s1 + $0x408] ss:$28 sps:$4 sm:$0xff]   ;;  %v4807_v49 = vld [vmem:[%s6378_s1 + $0x440] ss:$28 sps:$4 sm:$0xff]  }
 0x162   :  { %3349 = vmatprep.subr.bf16.mxu1 %v4749_v50  ;;  %v4808_v50 = vld [vmem:[%s6378_s1 + $0x2b8] ss:$28 sps:$4 sm:$0xff]  }
 0x163   :  { %v4809_v52 = vld [vmem:[%s6378_s1 + $0x638] ss:$28 sps:$4 sm:$0xff]  }
 0x164   :  { %3309 = vmatpush1.bf16.msra.mxu0 %v4744_v55  ;;  %v4810_v53 = vld [vmem:[%s6378_s1 + $0xf8] ss:$28 sps:$4 sm:$0xff]   ;;  %v4812_v55 = vld [vmem:[%s6378_s1 + $0x2f0] ss:$28 sps:$4 sm:$0xff]  }
 0x165   :  { %3350 = vmatpush1.bf16.msra.mxu1 %v4747_v56  ;;  %3310 = vmatprep.subr.bf16.mxu0 %v4752_v57  ;;  %v4811_v54 = vld [vmem:[%s6378_s1 + $0x478] ss:$28 sps:$4 sm:$0xff]   ;;  %v4813_v56 = vld [vmem:[%s6378_s1 + $0x670] ss:$28 sps:$4 sm:$0xff]  }
 0x166   :  { %3351 = vmatprep.subr.bf16.mxu1 %v4755_v58  ;;  %v4814_v57 = vld [vmem:[%s6378_s1 + $0x130] ss:$28 sps:$4 sm:$0xff]  }
 0x167   :  { %v4815_v58 = vld [vmem:[%s6378_s1 + $0x4b0] ss:$28 sps:$4 sm:$0xff]  }
 0x168   :  { %3311 = vmatpush1.bf16.msra.mxu0 %v4750_v59  ;;  %v4816_v59 = vld [vmem:[%s6378_s1 + $0x328] ss:$28 sps:$4 sm:$0xff]  }
 0x169   :  { %3352 = vmatpush1.bf16.msra.mxu1 %v4753_v60  ;;  %3312 = vmatprep.subr.bf16.mxu0 %v4758_v61  ;;  %v4857_v4 = vpop.eup %4856  ;;  %v4817_v60 = vld [vmem:[%s6378_s1 + $0x6a8] ss:$28 sps:$4 sm:$0xff]  }
 0x16a   :  { %3353 = vmatprep.subr.bf16.mxu1 %v4761_v62  ;;  %v4859_v8 = vpop.eup %4858  ;;  %v3624_v9 = vadd.f32 1.0, %v4857_v4 }
 0x16b   :  { %v3625_v12 = vadd.f32 1.0, %v4859_v8 }
 0x16c   :  { %3313 = vmatpush1.bf16.msra.mxu0 %v4756_v63  ;;  %4860 = vrcp.f32 %v3624_v9  ;;  %v4818_v9 = vld [vmem:[%s6378_s1 + $0x168] ss:$28 sps:$4 sm:$0xff]  }
 0x16d   :  { %3354 = vmatpush1.bf16.msra.mxu1 %v4759_v0  ;;  %3314 = vmatprep.subr.bf16.mxu0 %v4764_v1  ;;  %4862 = vrcp.f32 %v3625_v12 }
 0x16e   :  { %3355 = vmatprep.subr.bf16.mxu1 %v4767_v3 }
 0x170   :  { %3315 = vmatpush1.bf16.msra.mxu0 %v4762_v10  ;;  %v4819_v10 = vld [vmem:[%s6378_s1 + $0x4e8] ss:$28 sps:$4 sm:$0xff]  }
 0x171   :  { %3356 = vmatpush1.bf16.msra.mxu1 %v4765_v11  ;;  %3316 = vmatprep.subr.bf16.mxu0 %v4770_v13  ;;  %v4820_v13 = vld [vmem:[%s6378_s1 + $0x360] ss:$28 sps:$4 sm:$0xff]  }
 0x172   :  { %3357 = vmatprep.subr.bf16.mxu1 %v4773_v14  ;;  %v4821_v14 = vld [vmem:[%s6378_s1 + $0x6e0] ss:$28 sps:$4 sm:$0xff]  }
 0x174   :  { %3317 = vmatpush1.bf16.msra.mxu0 %v4768_v18  ;;  %v4822_v18 = vld [vmem:[%s6378_s1 + $0x1a0] ss:$28 sps:$4 sm:$0xff]  }
 0x175   :  { %3358 = vmatpush1.bf16.msra.mxu1 %v4771_v19  ;;  %3318 = vmatprep.subr.bf16.mxu0 %v4776_v20  ;;  %v4823_v19 = vld [vmem:[%s6378_s1 + $0x520] ss:$28 sps:$4 sm:$0xff]   ;;  %v4824_v20 = vld [vmem:[%s6378_s1 + $0x8d8] ss:$28 sps:$4 sm:$0xff]  }
 0x176   :  { %3359 = vmatprep.subr.bf16.mxu1 %v4779_v21  ;;  %v4861_v26 = vpop.eup %4860  ;;  %v4825_v21 = vld [vmem:[%s6378_s1 + $0xc58] ss:$28 sps:$4 sm:$0xff]  }
 0x177   :  { %v4863_v30 = vpop.eup %4862  ;;  %3645 = vst [vmem:[%s6381_s3] sm:$0xff] %v4861_v26  ;;  %v4830_v26 = vld [vmem:[%s6378_s1 + $0x750] ss:$28 sps:$4 sm:$0xff]  }
 0x178   :  { %3319 = vmatpush1.bf16.msra.mxu0 %v4774_v22  ;;  %3646 = vst [vmem:[%s6381_s3 + $0x8] sm:$0xff] %v4863_v30  ;;  %v4826_v22 = vld [vmem:[%s6378_s1 + $0x718] ss:$28 sps:$4 sm:$0xff]   ;;  %v4835_v30 = vld [vmem:[%s6378_s1 + $0xb08] ss:$28 sps:$4 sm:$0xff]  }
 0x179   :  { %3360 = vmatpush1.bf16.msra.mxu1 %v4777_v23  ;;  %3320 = vmatprep.subr.bf16.mxu0 %v4782_v24  ;;  %v4827_v23 = vld [vmem:[%s6378_s1 + $0xa98] ss:$28 sps:$4 sm:$0xff]   ;;  %v4828_v24 = vld [vmem:[%s6378_s1 + $0x910] ss:$28 sps:$4 sm:$0xff]  }
 0x17a   :  { %3361 = vmatprep.subr.bf16.mxu1 %v4785_v25  ;;  %v4829_v25 = vld [vmem:[%s6378_s1 + $0xc90] ss:$28 sps:$4 sm:$0xff]  }
 0x17c   :  { %3321 = vmatpush1.bf16.msra.mxu0 %v4780_v28  ;;  %v4831_v28 = vld [vmem:[%s6378_s1 + $0xad0] ss:$28 sps:$4 sm:$0xff]  }
 0x17d   :  { %3362 = vmatpush1.bf16.msra.mxu1 %v4783_v29  ;;  %3322 = vmatprep.subr.bf16.mxu0 %v4788_v31  ;;  %v4832_v29 = vld [vmem:[%s6378_s1 + $0x948] ss:$28 sps:$4 sm:$0xff]   ;;  %v4836_v31 = vld [vmem:[%s6378_s1 + $0x980] ss:$28 sps:$4 sm:$0xff]  }
 0x17e   :  { %3363 = vmatprep.subr.bf16.mxu1 %v4791_v32  ;;  %v4839_v32 = vld [vmem:[%s6378_s1 + $0xb40] ss:$28 sps:$4 sm:$0xff]  }
 0x180   :  { %3323 = vmatpush1.bf16.msra.mxu0 %v4786_v33  ;;  %v4840_v33 = vld [vmem:[%s6378_s1 + $0x9b8] ss:$28 sps:$4 sm:$0xff]  }
 0x181   :  { %3364 = vmatpush1.bf16.msra.mxu1 %v4789_v34  ;;  %4119 = vmatprep.subr.bf16.mxu0 %v4792_v35  ;;  %v4841_v34 = vld [vmem:[%s6378_s1 + $0xd38] ss:$28 sps:$4 sm:$0xff]  }
 0x182   :  { %4141 = vmatprep.subr.bf16.mxu1 %v4793_v38  ;;  %v4842_v35 = vld [vmem:[%s6378_s1 + $0x7f8] ss:$28 sps:$4 sm:$0xff]  }
 0x183   :  { %3325 = vmatmul.mubr.bf16.vlgmr.msra.gmra.mrb[20].mxu0 %v5335_v16  ;;  %v4843_v38 = vld [vmem:[%s6378_s1 + $0xb78] ss:$28 sps:$4 sm:$0xff]  }
 0x184   :  { %3366 = vmatmul.mubr.bf16.vlgmr.msra.gmra.mrb[20].mxu1 %v5339_v17  ;;  %4120 = vmatpush3.bf16.msra.mxu0 %v4794_v39  ;;  %v4844_v39 = vld [vmem:[%s6378_s1 + $0x9f0] ss:$28 sps:$4 sm:$0xff]  }
 0x185   :  { %4142 = vmatpush3.bf16.msra.mxu1 %v4795_v40  ;;  %4121 = vmatprep.subr.bf16.mxu0 %v4796_v2  ;;  %v4845_v40 = vld [vmem:[%s6378_s1 + $0xd70] ss:$28 sps:$4 sm:$0xff]  }
 0x186   :  { %4143 = vmatprep.subr.bf16.mxu1 %v4797_v41  ;;  %3406 = vmatprep.mubr.bf16.mxu0 %v5046_v47  ;;  %v4805_v47 = vld [vmem:[%s6378_s1 + $0x600] ss:$28 sps:$4 sm:$0xff]   ;;  %v4846_v2 = vld [vmem:[%s6378_s1 + $0x830] ss:$28 sps:$4 sm:$0xff]  }
 0x187   :  { %3446 = vmatprep.mubr.bf16.mxu1 %v5057_v51  ;;  %v4806_v51 = vld [vmem:[%s6378_s1 + $0xc0] ss:$28 sps:$4 sm:$0xff]   ;;  %v4847_v41 = vld [vmem:[%s6378_s1 + $0xbb0] ss:$28 sps:$4 sm:$0xff]  }
 0x188   :  { %4122 = vmatpush3.bf16.msra.mxu0 %v4798_v5  ;;  %v4848_v5 = vld [vmem:[%s6378_s1 + $0xa28] ss:$28 sps:$4 sm:$0xff]  }
 0x189   :  { %4144 = vmatpush3.bf16.msra.mxu1 %v4799_v42  ;;  %4123 = vmatprep.subr.bf16.mxu0 %v4800_v43  ;;  %v4849_v42 = vld [vmem:[%s6378_s1 + $0xda8] ss:$28 sps:$4 sm:$0xff]  }
 0x18a   :  { %4145 = vmatprep.subr.bf16.mxu1 %v4801_v44  ;;  %v4850_v43 = vld [vmem:[%s6378_s1 + $0x868] ss:$28 sps:$4 sm:$0xff]  }
 0x18b   :  { %v4851_v44 = vld [vmem:[%s6378_s1 + $0xbe8] ss:$28 sps:$4 sm:$0xff]  }
 0x18c   :  { %4124 = vmatpush3.bf16.msra.mxu0 %v4802_v45  ;;  %v4852_v45 = vld [vmem:[%s6378_s1 + $0xa60] ss:$28 sps:$4 sm:$0xff]  }
 0x18d   :  { %4146 = vmatpush3.bf16.msra.mxu1 %v4803_v46  ;;  %4125 = vmatprep.subr.bf16.mxu0 %v4804_v48  ;;  %v4853_v46 = vld [vmem:[%s6378_s1 + $0xde0] ss:$28 sps:$4 sm:$0xff]  }
 0x18e   :  { %4147 = vmatprep.subr.bf16.mxu1 %v4805_v47  ;;  %v4854_v48 = vld [vmem:[%s6378_s1 + $0x8a0] ss:$28 sps:$4 sm:$0xff]  }
 0x18f   :  { %v4855_v47 = vld [vmem:[%s6378_s1 + $0xc20] ss:$28 sps:$4 sm:$0xff]  }
 0x190   :  { %4126 = vmatpush3.bf16.msra.mxu0 %v4806_v51  ;;  %v3571_v51 = vsub.s32 2, %v5991_v15 }
 0x191   :  { %4148 = vmatpush3.bf16.msra.mxu1 %v4807_v49  ;;  %4127 = vmatprep.subr.bf16.mxu0 %v4808_v50 }
 0x192   :  { %4149 = vmatprep.subr.bf16.mxu1 %v4809_v52  ;;  %v3575_v52 = vsub.s32 3, %v5991_v15 }
 0x194   :  { %4128 = vmatpush3.bf16.msra.mxu0 %v4810_v53 }
 0x195   :  { %4150 = vmatpush3.bf16.msra.mxu1 %v4811_v54  ;;  %4129 = vmatprep.subr.bf16.mxu0 %v4812_v55 }
 0x196   :  { %4151 = vmatprep.subr.bf16.mxu1 %v4813_v56  ;;  %v3080_v61 = vpop.f32.mrb[8].mxu0 }
 0x197   :  { %v3121_v62 = vpop.f32.mrb[8].mxu1  ;;  %v3082_v0 = vpop.f32.mrb[9].mxu0 }
 0x198   :  { %v6224_v63 = vadd.f32 %v3121_v62, %v3080_v61  ;;  %v3123_v1 = vpop.f32.mrb[9].mxu1  ;;  %v3084_v4 = vpop.f32.mrb[10].mxu0  ;;  %4130 = vmatpush3.bf16.msra.mxu0 %v4814_v57  ;;  %v3576_v62 = vrot.slane %v6015_v27, %v3575_v52 }
 0x199   :  { %v6226_v3 = vadd.f32 %v3123_v1, %v3082_v0  ;;  %v3125_v8 = vpop.f32.mrb[10].mxu1  ;;  %4152 = vmatpush3.bf16.msra.mxu1 %v4815_v58  ;;  %v3085_v11 = vpop.f32.mrb[11].mxu0  ;;  %4131 = vmatprep.subr.bf16.mxu0 %v4816_v59 }
 0x19a   :  { %v3126_v12 = vpop.f32.mrb[11].mxu1  ;;  %4153 = vmatprep.subr.bf16.mxu1 %v4817_v60  ;;  %v3572_v60 = vrot.slane %v6015_v27, %v3571_v51 }
 0x19c   :  { %4132 = vmatpush3.bf16.msra.mxu0 %v4818_v9 }
 0x19d   :  { %4154 = vmatpush3.bf16.msra.mxu1 %v4819_v10  ;;  %4133 = vmatprep.subr.bf16.mxu0 %v4820_v13 }
 0x19e   :  { %4155 = vmatprep.subr.bf16.mxu1 %v4821_v14 }
 0x1a0   :  { %4134 = vmatpush3.bf16.msra.mxu0 %v4822_v18  ;;  %v4884_v18 = vmov 0.0  }
 0x1a1   :  { %4156 = vmatpush3.bf16.msra.mxu1 %v4823_v19  ;;  %4163 = vmatprep.subr.bf16.mxu0 %v4824_v20  ;;  %26 = vst.msk [vmem:[#allocation2 + $0x30] sm:$0xff] %vm25_vm0, %v4884_v18 }
 0x1a2   :  { %4185 = vmatprep.subr.bf16.mxu1 %v4825_v21 }
 0x1a3   :  { %3407 = vmatmul.mubr.bf16.vlgmr.msra.gmra.mrb[24].mxu0 %v5115_v6  ;;  %v4833_v6 = vld [vmem:[%s6378_s1 + $0xcc8] ss:$28 sps:$4 sm:$0xff]  }
 0x1a4   :  { %3447 = vmatmul.mubr.bf16.vlgmr.msra.gmra.mrb[24].mxu1 %v5117_v7  ;;  %4164 = vmatpush3.bf16.msra.mxu0 %v4826_v22  ;;  %v4834_v7 = vld [vmem:[%s6378_s1 + $0x788] ss:$28 sps:$4 sm:$0xff]  }
 0x1a5   :  { %4186 = vmatpush3.bf16.msra.mxu1 %v4827_v23  ;;  %4165 = vmatprep.subr.bf16.mxu0 %v4828_v24 }
 0x1a6   :  { %4187 = vmatprep.subr.bf16.mxu1 %v4829_v25  ;;  %3486 = vmatprep.mubr.bf16.mxu0 %v5211_v36  ;;  %v4837_v36 = vld [vmem:[%s6378_s1 + $0xd00] ss:$28 sps:$4 sm:$0xff]  }
 0x1a7   :  { %3526 = vmatprep.mubr.bf16.mxu1 %v5215_v37  ;;  %v4838_v37 = vld [vmem:[%s6378_s1 + $0x7c0] ss:$28 sps:$4 sm:$0xff]  }
 0x1a8   :  { %4166 = vmatpush3.bf16.msra.mxu0 %v4830_v26 }
 0x1a9   :  { %4188 = vmatpush3.bf16.msra.mxu1 %v4831_v28  ;;  %4167 = vmatprep.subr.bf16.mxu0 %v4832_v29  ;;  %v3579_v28 = vsub.s32 4, %v5991_v15 }
 0x1aa   :  { %4189 = vmatprep.subr.bf16.mxu1 %v4833_v6 }
 0x1ac   :  { %4168 = vmatpush3.bf16.msra.mxu0 %v4834_v7  ;;  %v3583_v7 = vsub.s32 5, %v5991_v15 }
 0x1ad   :  { %4190 = vmatpush3.bf16.msra.mxu1 %v4835_v30  ;;  %4169 = vmatprep.subr.bf16.mxu0 %v4836_v31 }
 0x1ae   :  { %4191 = vmatprep.subr.bf16.mxu1 %v4837_v36 }
 0x1b0   :  { %4170 = vmatpush3.bf16.msra.mxu0 %v4838_v37 }
 0x1b1   :  { %4192 = vmatpush3.bf16.msra.mxu1 %v4839_v32  ;;  %4171 = vmatprep.subr.bf16.mxu0 %v4840_v33 }
 0x1b2   :  { %4193 = vmatprep.subr.bf16.mxu1 %v4841_v34 }
 0x1b4   :  { %4172 = vmatpush3.bf16.msra.mxu0 %v4842_v35  ;;  %v3580_v35 = vrot.slane %v6015_v27, %v3579_v28 }
 0x1b5   :  { %4194 = vmatpush3.bf16.msra.mxu1 %v4843_v38  ;;  %4173 = vmatprep.subr.bf16.mxu0 %v4844_v39 }
 0x1b6   :  { %4195 = vmatprep.subr.bf16.mxu1 %v4845_v40 }
 0x1b8   :  { %4174 = vmatpush3.bf16.msra.mxu0 %v4846_v2  ;;  %v3584_v2 = vrot.slane %v6015_v27, %v3583_v7 }
 0x1b9   :  { %4196 = vmatpush3.bf16.msra.mxu1 %v4847_v41  ;;  %4175 = vmatprep.subr.bf16.mxu0 %v4848_v5 }
 0x1ba   :  { %4197 = vmatprep.subr.bf16.mxu1 %v4849_v42 }
 0x1bc   :  { %4176 = vmatpush3.bf16.msra.mxu0 %v4850_v43 }
 0x1bd   :  { %4198 = vmatpush3.bf16.msra.mxu1 %v4851_v44  ;;  %4177 = vmatprep.subr.bf16.mxu0 %v4852_v45 }
 0x1be   :  { %4199 = vmatprep.subr.bf16.mxu1 %v4853_v46 }
 0x1c0   :  { %4178 = vmatpush3.bf16.msra.mxu0 %v4854_v48 }
 0x1c1   :  { %4200 = vmatpush3.bf16.msra.mxu1 %v4855_v47 }
 0x1c3   :  { %3487 = vmatmul.mubr.bf16.vlgmr.msra.gmra.mrb[28].mxu0 %v5335_v16 }
 0x1c4   :  { %3527 = vmatmul.mubr.bf16.vlgmr.msra.gmra.mrb[28].mxu1 %v5339_v17 }
 0x1d6   :  { %v3162_v49 = vpop.f32.mrb[12].mxu0 }
 0x1d7   :  { %v3203_v50 = vpop.f32.mrb[12].mxu1  ;;  %v3163_v53 = vadd.f32 %v3162_v49, %v6224_v63  ;;  %v3164_v54 = vpop.f32.mrb[13].mxu0 }
 0x1d8   :  { %v3205_v55 = vpop.f32.mrb[13].mxu1  ;;  %v3165_v56 = vadd.f32 %v3164_v54, %v6226_v3  ;;  %v3166_v57 = vpop.f32.mrb[14].mxu0 }
 0x1d9   :  { %v3207_v58 = vpop.f32.mrb[14].mxu1  ;;  %v3204_v59 = vadd.f32 %v3203_v50, %v3163_v53  ;;  %v3167_v16 = vpop.f32.mrb[15].mxu0 }
 0x1da   :  { %v3208_v61 = vpop.f32.mrb[15].mxu1  ;;  %v3206_v17 = vadd.f32 %v3205_v55, %v3165_v56 }
 0x1db   :  { %v3598_v0 = vadd.f32 %v3572_v60, %v3204_v59 }
 0x1dc   :  { %v3599_v1 = vadd.f32 %v3576_v62, %v3206_v17 }
 0x1dd   :  { %v4114_v4 = vmul.f32 -1.442695, %v3598_v0 }
 0x1de   :  { %v4115_v8 = vmul.f32 -1.442695, %v3599_v1 }
 0x1df   :  { %4864 = vpow2.f32 %v4114_v4 }
 0x1e0   :  { %4866 = vpow2.f32 %v4115_v8 }
 0x1e9   :  { %v4865_v63 = vpop.eup %4864 }
 0x1ea   :  { %v4867_v9 = vpop.eup %4866  ;;  %v3626_v10 = vadd.f32 1.0, %v4865_v63 }
 0x1eb   :  { %v3627_v3 = vadd.f32 1.0, %v4867_v9 }
 0x1ec   :  { %4868 = vrcp.f32 %v3626_v10 }
 0x1ed   :  { %4870 = vrcp.f32 %v3627_v3  ;;  %v33_v3 = vld [vmem:[#allocation2 + $0x30] sm:$0xff] }
 0x1f6   :  { %v4869_v11 = vpop.eup %4868 }
 0x1f7   :  { %v4871_v12 = vpop.eup %4870  ;;  %3647 = vst [vmem:[%s6381_s3 + $0x10] sm:$0xff] %v4869_v11 }
 0x1f8   :  { %3648 = vst [vmem:[%s6381_s3 + $0x18] sm:$0xff] %v4871_v12 }
 0x216   :  { %v3244_v13 = vpop.f32.mrb[16].mxu0 }
 0x217   :  { %v3285_v14 = vpop.f32.mrb[16].mxu1  ;;  %v3246_v20 = vpop.f32.mrb[17].mxu0 }
 0x218   :  { %v3286_v19 = vadd.f32 %v3285_v14, %v3244_v13  ;;  %v3287_v21 = vpop.f32.mrb[17].mxu1  ;;  %v3248_v23 = vpop.f32.mrb[18].mxu0  ;;  %v3587_v13 = vsub.s32 6, %v5991_v15 }
 0x219   :  { %v3288_v22 = vadd.f32 %v3287_v21, %v3246_v20  ;;  %v3289_v24 = vpop.f32.mrb[18].mxu1  ;;  %v3249_v25 = vpop.f32.mrb[19].mxu0 }
 0x21a   :  { %v3290_v26 = vpop.f32.mrb[19].mxu1  ;;  %v3588_v14 = vrot.slane %v6015_v27, %v3587_v13 }
 0x256   :  { %v3326_v29 = vpop.f32.mrb[20].mxu0 }
 0x257   :  { %v3367_v6 = vpop.f32.mrb[20].mxu1  ;;  %v3327_v30 = vadd.f32 %v3326_v29, %v3286_v19  ;;  %v3328_v31 = vpop.f32.mrb[21].mxu0 }
 0x258   :  { %v3369_v36 = vpop.f32.mrb[21].mxu1  ;;  %v3329_v37 = vadd.f32 %v3328_v31, %v3288_v22  ;;  %v3330_v32 = vpop.f32.mrb[22].mxu0 }
 0x259   :  { %v3371_v33 = vpop.f32.mrb[22].mxu1  ;;  %v3368_v34 = vadd.f32 %v3367_v6, %v3327_v30  ;;  %v3331_v38 = vpop.f32.mrb[23].mxu0 }
 0x25a   :  { %v3372_v39 = vpop.f32.mrb[23].mxu1  ;;  %v3370_v40 = vadd.f32 %v3369_v36, %v3329_v37 }
 0x25b   :  { %v3600_v41 = vadd.f32 %v3580_v35, %v3368_v34 }
 0x25c   :  { %v3601_v5 = vadd.f32 %v3584_v2, %v3370_v40 }
 0x25d   :  { %v4116_v42 = vmul.f32 -1.442695, %v3600_v41 }
 0x25e   :  { %v4117_v43 = vmul.f32 -1.442695, %v3601_v5 }
 0x25f   :  { %4872 = vpow2.f32 %v4116_v42 }
 0x260   :  { %4874 = vpow2.f32 %v4117_v43 }
 0x269   :  { %v4873_v44 = vpop.eup %4872 }
 0x26a   :  { %v4875_v45 = vpop.eup %4874  ;;  %v3628_v46 = vadd.f32 1.0, %v4873_v44 }
 0x26b   :  { %v3629_v48 = vadd.f32 1.0, %v4875_v45 }
 0x26c   :  { %4876 = vrcp.f32 %v3628_v46 }
 0x26d   :  { %4878 = vrcp.f32 %v3629_v48 }
 0x276   :  { %v4135_v47 = vpop.f32.mrb[24].mxu0  ;;  %v4877_v52 = vpop.eup %4876 }
 0x277   :  { %v4157_v51 = vpop.f32.mrb[24].mxu1  ;;  %v4136_v49 = vpop.f32.mrb[25].mxu0  ;;  %3649 = vst [vmem:[%s6381_s3 + $0x20] sm:$0xff] %v4877_v52 }
 0x278   :  { %v4158_v50 = vpop.f32.mrb[25].mxu1  ;;  %v4137_v53 = vadd.f32 %v4136_v49, %v4135_v47  ;;  %v4138_v55 = vpop.f32.mrb[26].mxu0 }
 0x279   :  { %v4159_v54 = vadd.f32 %v4158_v50, %v4157_v51  ;;  %v4160_v56 = vpop.f32.mrb[26].mxu1  ;;  %v4879_v57 = vpop.eup %4878 }
 0x27a   :  { %v4139_v58 = vpop.f32.mrb[27].mxu0  ;;  %v4161_v59 = vpop.f32.mrb[27].mxu1  ;;  %3650 = vst [vmem:[%s6381_s3 + $0x28] sm:$0xff] %v4879_v57 }
 0x27b   :  { %v3449_v60 = vadd.f32 %v4159_v54, %v4137_v53 }
 0x296   :  { %v4179_v16 = vpop.f32.mrb[28].mxu0 }
 0x297   :  { %v4201_v61 = vpop.f32.mrb[28].mxu1  ;;  %v4180_v17 = vpop.f32.mrb[29].mxu0 }
 0x298   :  { %v4202_v62 = vpop.f32.mrb[29].mxu1  ;;  %v4181_v0 = vadd.f32 %v4180_v17, %v4179_v16  ;;  %v4182_v4 = vpop.f32.mrb[30].mxu0 }
 0x299   :  { %v4203_v1 = vadd.f32 %v4202_v62, %v4201_v61  ;;  %v4204_v8 = vpop.f32.mrb[30].mxu1  ;;  %v4183_v63 = vpop.f32.mrb[31].mxu0 }
 0x29a   :  { %v4205_v9 = vpop.f32.mrb[31].mxu1  ;;  %v3489_v10 = vadd.f32 %v4181_v0, %v3449_v60 }
 0x29c   :  { %v3529_v11 = vadd.f32 %v4203_v1, %v3489_v10 }
 0x29e   :  { %v3540_v12 = vadd.f32 %v3529_v11, %v33_v3 }
 0x2a0   :  { %3548 = vst.msk [vmem:[#allocation2 + $0x30] sm:$0xff] %vm25_vm0, %v3540_v12 }
 0x2a7   :  { %v3558_v18 = vld [vmem:[#allocation2 + $0x30] sm:$0xff] }
 0x2a8   :  { %v3602_v19 = vadd.f32 %v3588_v14, %v3558_v18 }
 0x2aa   :  { %v4118_v20 = vmul.f32 -1.442695, %v3602_v19 }
 0x2ac   :  { %4880 = vpow2.f32 %v4118_v20 }
 0x2b6   :  { %v4881_v21 = vpop.eup %4880 }
 0x2b7   :  { %v3630_v22 = vadd.f32 1.0, %v4881_v21 }
 0x2b9   :  { %4882 = vrcp.f32 %v3630_v22 }
 0x2c3   :  { %v4883_v23 = vpop.eup %4882 }
 0x2c4   :  { %3651 = vst.msk [vmem:[%s6381_s3 + $0x30] sm:$0xff] %vm25_vm0, %v4883_v23 }

</bundles_post_ra>
